<compile_context>
chip_gen: v5e
topology: v5e:2x2
jax: 0.10.0
libtpu: 0.0.40
codegen_flags: <defaults>
</compile_context>

<pallas_src>
import functools

import jax
import jax.numpy as jnp
from jax.experimental import pallas as pl
from jax.experimental.pallas import tpu as pltpu


def _round_up(x: int, m: int) -> int:
    return ((x + m - 1) // m) * m


def merge_module_kernel(x_ref, w_ref, b_ref, joint_ref, att_ref):
    # x_ref:     [Bt, N, D]   stacked view embeddings (one batch tile)
    # w_ref:     [N*D, D]     attention Linear weight, torch layout (resident)
    # b_ref:     [1, N*D]     attention Linear bias (resident)
    # joint_ref: [Bt, D]      fused representation (output)
    # att_ref:   [Bt, N, D]   softmax attention weights (output)
    Bt, N, D = x_ref.shape

    x = x_ref[...].astype(jnp.float32)                     # [Bt, N, D]

    # --- UniformSum_ pooling: mean over the views axis ---
    joint = jnp.sum(x, axis=1) * (1.0 / N)                 # [Bt, D]

    # --- adaptive attention: one fused Linear over all views ---
    # torch: att = joint @ W.T + b, W is [N*D, D]; consume W transposed on the
    # MXU directly (no host-side transpose of the weight).
    logits = jnp.dot(joint, w_ref[...].T,
                     preferred_element_type=jnp.float32)   # [Bt, N*D]
    logits = logits + b_ref[...]                           # bias broadcast [1, N*D]

    # --- per-view softmax on lane-aligned 128-wide slices + weighted sum ---
    out = jnp.zeros((Bt, D), jnp.float32)
    for n in range(N):
        ln = logits[:, n * D:(n + 1) * D]                  # static, lane-aligned
        m = jnp.max(ln, axis=-1, keepdims=True)
        e = jnp.exp(ln - m)
        att_n = e * pl.reciprocal(jnp.sum(e, axis=-1, keepdims=True))
        att_ref[:, n, :] = att_n
        out = out + x[:, n, :] * att_n

    joint_ref[...] = out


@functools.partial(jax.jit, static_argnames=("b_tile",))
def merge_module_forward(views_emb, weight, bias, *, b_tile=128):
    """views_emb: list of N arrays [B, D]; weight: [N*D, D] (torch Linear layout);
    bias: [N*D]. Returns dict with 'joint_rep' [B, D] and 'att_views' [B, N, D]."""
    N = len(views_emb)
    B, D = views_emb[0].shape

    # glue: stack views; pad batch to a multiple of the tile (rows are
    # independent, padded rows are dropped at the end).
    x = jnp.stack(views_emb, axis=1)                       # [B, N, D]
    bt = min(b_tile, _round_up(B, 8))
    b_pad = _round_up(B, bt)
    if b_pad != B:
        x = jnp.pad(x, ((0, b_pad - B), (0, 0), (0, 0)))

    bias2d = bias.reshape(1, N * D)

    joint, att = pl.pallas_call(
        merge_module_kernel,
        grid=(b_pad // bt,),
        out_shape=(
            jax.ShapeDtypeStruct((b_pad, D), jnp.float32),
            jax.ShapeDtypeStruct((b_pad, N, D), jnp.float32),
        ),
        in_specs=[
            pl.BlockSpec((bt, N, D), lambda i: (i, 0, 0)),   # batch-tiled views
            pl.BlockSpec((N * D, D), lambda i: (0, 0)),      # weight: resident
            pl.BlockSpec((1, N * D), lambda i: (0, 0)),      # bias: resident
        ],
        out_specs=(
            pl.BlockSpec((bt, D), lambda i: (i, 0)),
            pl.BlockSpec((bt, N, D), lambda i: (i, 0, 0)),
        ),
        compiler_params=pltpu.CompilerParams(
            dimension_semantics=("parallel",),               # v7x dual-TC sharding
            vmem_limit_bytes=32 * 1024 * 1024,
        ),
    )(x, weight, bias2d)

    return {"joint_rep": joint[:B], "att_views": att[:B]}


def _reference(views_emb, weight, bias):
    # pure-JAX reference for validation
    N = len(views_emb)
    B, D = views_emb[0].shape
    x = jnp.stack(views_emb, axis=1)                  # [B, N, D]
    joint = jnp.mean(x, axis=1)                       # [B, D]
    att = joint @ weight.T + bias                     # [B, N*D]
    att = att.reshape(B, N, D)
    att = jax.nn.softmax(att, axis=-1)
    return {"joint_rep": jnp.sum(x * att, axis=1), "att_views": att}


if __name__ == "__main__":
    # B=144 exercises batch tiling (2 grid steps of 128 with padding) while
    # staying small; D=128 maps to one lane group, N_VIEWS=4 views.
    B, N_VIEWS, D = 144, 4, 128

    key = jax.random.PRNGKey(0)
    keys = jax.random.split(key, N_VIEWS + 2)

    # deterministic synthetic inputs: N_VIEWS view embeddings of shape [B, D]
    views_emb = [jax.random.normal(keys[v], (B, D), jnp.float32)
                 for v in range(N_VIEWS)]

    # deterministic synthetic Linear(D -> N*D) parameters (torch layout)
    weight = jax.random.normal(keys[-2], (N_VIEWS * D, D), jnp.float32) * 0.05
    bias = jax.random.normal(keys[-1], (N_VIEWS * D,), jnp.float32) * 0.01

    out = merge_module_forward(views_emb, weight, bias)
    jax.block_until_ready(out)

    ref = _reference(views_emb, weight, bias)
    assert jnp.allclose(out["joint_rep"], ref["joint_rep"], atol=1e-5, rtol=1e-5)
    assert jnp.allclose(out["att_views"], ref["att_views"], atol=1e-5, rtol=1e-5)

    print("KERNEL_OK")
</pallas_src>

<mosaic_0001>
module attributes {stable_mosaic.version = 11 : i64} {
  func.func @merge_module_kernel(%arg0: i32, %arg1: memref<128x4x128xf32, #tpu.memory_space<vmem>>, %arg2: memref<512x128xf32, #tpu.memory_space<vmem>>, %arg3: memref<1x512xf32, #tpu.memory_space<vmem>>, %arg4: memref<128x128xf32, #tpu.memory_space<vmem>>, %arg5: memref<128x4x128xf32, #tpu.memory_space<vmem>>) attributes {dimension_semantics = [#tpu.dimension_semantics<parallel>], iteration_bounds = array<i64: 2>, scalar_prefetch = 0 : i64, scratch_operands = 0 : i64, tpu.core_type = #tpu.core_type<tc>, window_params = [{transform_indices = @transform_0, window_bounds = array<i64: 128, 4, 128>}, {pipeline_mode = #tpu.pipeline_mode<synchronous>, transform_indices = @transform_1, window_bounds = array<i64: 512, 128>}, {pipeline_mode = #tpu.pipeline_mode<synchronous>, transform_indices = @transform_2, window_bounds = array<i64: 1, 512>}, {transform_indices = @transform_3, window_bounds = array<i64: 128, 128>}, {transform_indices = @transform_4, window_bounds = array<i64: 128, 4, 128>}]} {
    %c0 = arith.constant 0 : index
    %c0_0 = arith.constant 0 : index
    %c0_1 = arith.constant 0 : index
    %0 = vector.load %arg1[%c0, %c0_0, %c0_1] : memref<128x4x128xf32, #tpu.memory_space<vmem>>, vector<128x4x128xf32>
    %cst = arith.constant dense<0.000000e+00> : vector<128x128xf32>
    %1 = vector.multi_reduction <add>, %0, %cst [1] : vector<128x4x128xf32> to vector<128x128xf32>
    %cst_2 = arith.constant 2.500000e-01 : f32
    %2 = vector.broadcast %cst_2 : f32 to vector<128x128xf32>
    %3 = arith.mulf %1, %2 : vector<128x128xf32>
    %c0_3 = arith.constant 0 : index
    %c0_4 = arith.constant 0 : index
    %4 = vector.load %arg2[%c0_3, %c0_4] : memref<512x128xf32, #tpu.memory_space<vmem>>, vector<512x128xf32>
    %5 = tpu.transpose %4, [1, 0] : vector<512x128xf32> -> vector<128x512xf32>
    %cst_5 = arith.constant dense<0.000000e+00> : vector<128x512xf32>
    %6 = tpu.matmul %3, %5, %cst_5 {dimension_numbers = #tpu.dot_dimension_numbers<[1], [0], [0], [1], [0, 0, 1, 1], [], []>} : vector<128x128xf32>, vector<128x512xf32>, vector<128x512xf32> -> vector<128x512xf32>
    %c0_6 = arith.constant 0 : index
    %c0_7 = arith.constant 0 : index
    %7 = vector.load %arg3[%c0_6, %c0_7] : memref<1x512xf32, #tpu.memory_space<vmem>>, vector<1x512xf32>
    %8 = vector.broadcast %7 : vector<1x512xf32> to vector<128x512xf32>
    %9 = arith.addf %6, %8 : vector<128x512xf32>
    %cst_8 = arith.constant 0.000000e+00 : f32
    %10 = vector.broadcast %cst_8 : f32 to vector<128x128xf32>
    %11 = vector.extract_strided_slice %9 {offsets = [0, 0], sizes = [128, 128], strides = [1, 1]} : vector<128x512xf32> to vector<128x128xf32>
    %cst_9 = arith.constant dense<0xFF800000> : vector<128xf32>
    %12 = vector.multi_reduction <maximumf>, %11, %cst_9 [1] : vector<128x128xf32> to vector<128xf32>
    %13 = vector.shape_cast %12 : vector<128xf32> to vector<128x1xf32>
    %14 = vector.broadcast %13 : vector<128x1xf32> to vector<128x128xf32>
    %15 = arith.subf %11, %14 : vector<128x128xf32>
    %16 = math.exp %15 : vector<128x128xf32>
    %cst_10 = arith.constant dense<0.000000e+00> : vector<128xf32>
    %17 = vector.multi_reduction <add>, %16, %cst_10 [1] : vector<128x128xf32> to vector<128xf32>
    %18 = vector.shape_cast %17 : vector<128xf32> to vector<128x1xf32>
    %19 = tpu.reciprocal %18 : vector<128x1xf32> -> vector<128x1xf32>
    %20 = vector.broadcast %19 : vector<128x1xf32> to vector<128x128xf32>
    %21 = arith.mulf %16, %20 : vector<128x128xf32>
    %c0_11 = arith.constant 0 : index
    %c0_12 = arith.constant 0 : index
    %c0_13 = arith.constant 0 : index
    %22 = vector.load %arg5[%c0_11, %c0_12, %c0_13] : memref<128x4x128xf32, #tpu.memory_space<vmem>>, vector<128x1x128xf32>
    %23 = vector.shape_cast %22 : vector<128x1x128xf32> to vector<128x128xf32>
    %24 = vector.shape_cast %21 : vector<128x128xf32> to vector<128x1x128xf32>
    tpu.vector_store %arg5[%c0_11, %c0_12, %c0_13], %24 {strides = array<i32>} : memref<128x4x128xf32, #tpu.memory_space<vmem>>, vector<128x1x128xf32>,
    %25 = vector.extract_strided_slice %0 {offsets = [0, 0, 0], sizes = [128, 1, 128], strides = [1, 1, 1]} : vector<128x4x128xf32> to vector<128x1x128xf32>
    %26 = vector.shape_cast %25 : vector<128x1x128xf32> to vector<128x128xf32>
    %27 = arith.mulf %26, %21 : vector<128x128xf32>
    %28 = arith.addf %10, %27 : vector<128x128xf32>
    %29 = vector.extract_strided_slice %9 {offsets = [0, 128], sizes = [128, 128], strides = [1, 1]} : vector<128x512xf32> to vector<128x128xf32>
    %cst_14 = arith.constant dense<0xFF800000> : vector<128xf32>
    %30 = vector.multi_reduction <maximumf>, %29, %cst_14 [1] : vector<128x128xf32> to vector<128xf32>
    %31 = vector.shape_cast %30 : vector<128xf32> to vector<128x1xf32>
    %32 = vector.broadcast %31 : vector<128x1xf32> to vector<128x128xf32>
    %33 = arith.subf %29, %32 : vector<128x128xf32>
    %34 = math.exp %33 : vector<128x128xf32>
    %cst_15 = arith.constant dense<0.000000e+00> : vector<128xf32>
    %35 = vector.multi_reduction <add>, %34, %cst_15 [1] : vector<128x128xf32> to vector<128xf32>
    %36 = vector.shape_cast %35 : vector<128xf32> to vector<128x1xf32>
    %37 = tpu.reciprocal %36 : vector<128x1xf32> -> vector<128x1xf32>
    %38 = vector.broadcast %37 : vector<128x1xf32> to vector<128x128xf32>
    %39 = arith.mulf %34, %38 : vector<128x128xf32>
    %c0_16 = arith.constant 0 : index
    %c1 = arith.constant 1 : index
    %c0_17 = arith.constant 0 : index
    %40 = vector.load %arg5[%c0_16, %c1, %c0_17] : memref<128x4x128xf32, #tpu.memory_space<vmem>>, vector<128x1x128xf32>
    %41 = vector.shape_cast %40 : vector<128x1x128xf32> to vector<128x128xf32>
    %42 = vector.shape_cast %39 : vector<128x128xf32> to vector<128x1x128xf32>
    tpu.vector_store %arg5[%c0_16, %c1, %c0_17], %42 {strides = array<i32>} : memref<128x4x128xf32, #tpu.memory_space<vmem>>, vector<128x1x128xf32>,
    %43 = vector.extract_strided_slice %0 {offsets = [0, 1, 0], sizes = [128, 1, 128], strides = [1, 1, 1]} : vector<128x4x128xf32> to vector<128x1x128xf32>
    %44 = vector.shape_cast %43 : vector<128x1x128xf32> to vector<128x128xf32>
    %45 = arith.mulf %44, %39 : vector<128x128xf32>
    %46 = arith.addf %28, %45 : vector<128x128xf32>
    %47 = vector.extract_strided_slice %9 {offsets = [0, 256], sizes = [128, 128], strides = [1, 1]} : vector<128x512xf32> to vector<128x128xf32>
    %cst_18 = arith.constant dense<0xFF800000> : vector<128xf32>
    %48 = vector.multi_reduction <maximumf>, %47, %cst_18 [1] : vector<128x128xf32> to vector<128xf32>
    %49 = vector.shape_cast %48 : vector<128xf32> to vector<128x1xf32>
    %50 = vector.broadcast %49 : vector<128x1xf32> to vector<128x128xf32>
    %51 = arith.subf %47, %50 : vector<128x128xf32>
    %52 = math.exp %51 : vector<128x128xf32>
    %cst_19 = arith.constant dense<0.000000e+00> : vector<128xf32>
    %53 = vector.multi_reduction <add>, %52, %cst_19 [1] : vector<128x128xf32> to vector<128xf32>
    %54 = vector.shape_cast %53 : vector<128xf32> to vector<128x1xf32>
    %55 = tpu.reciprocal %54 : vector<128x1xf32> -> vector<128x1xf32>
    %56 = vector.broadcast %55 : vector<128x1xf32> to vector<128x128xf32>
    %57 = arith.mulf %52, %56 : vector<128x128xf32>
    %c0_20 = arith.constant 0 : index
    %c2 = arith.constant 2 : index
    %c0_21 = arith.constant 0 : index
    %58 = vector.load %arg5[%c0_20, %c2, %c0_21] : memref<128x4x128xf32, #tpu.memory_space<vmem>>, vector<128x1x128xf32>
    %59 = vector.shape_cast %58 : vector<128x1x128xf32> to vector<128x128xf32>
    %60 = vector.shape_cast %57 : vector<128x128xf32> to vector<128x1x128xf32>
    tpu.vector_store %arg5[%c0_20, %c2, %c0_21], %60 {strides = array<i32>} : memref<128x4x128xf32, #tpu.memory_space<vmem>>, vector<128x1x128xf32>,
    %61 = vector.extract_strided_slice %0 {offsets = [0, 2, 0], sizes = [128, 1, 128], strides = [1, 1, 1]} : vector<128x4x128xf32> to vector<128x1x128xf32>
    %62 = vector.shape_cast %61 : vector<128x1x128xf32> to vector<128x128xf32>
    %63 = arith.mulf %62, %57 : vector<128x128xf32>
    %64 = arith.addf %46, %63 : vector<128x128xf32>
    %65 = vector.extract_strided_slice %9 {offsets = [0, 384], sizes = [128, 128], strides = [1, 1]} : vector<128x512xf32> to vector<128x128xf32>
    %cst_22 = arith.constant dense<0xFF800000> : vector<128xf32>
    %66 = vector.multi_reduction <maximumf>, %65, %cst_22 [1] : vector<128x128xf32> to vector<128xf32>
    %67 = vector.shape_cast %66 : vector<128xf32> to vector<128x1xf32>
    %68 = vector.broadcast %67 : vector<128x1xf32> to vector<128x128xf32>
    %69 = arith.subf %65, %68 : vector<128x128xf32>
    %70 = math.exp %69 : vector<128x128xf32>
    %cst_23 = arith.constant dense<0.000000e+00> : vector<128xf32>
    %71 = vector.multi_reduction <add>, %70, %cst_23 [1] : vector<128x128xf32> to vector<128xf32>
    %72 = vector.shape_cast %71 : vector<128xf32> to vector<128x1xf32>
    %73 = tpu.reciprocal %72 : vector<128x1xf32> -> vector<128x1xf32>
    %74 = vector.broadcast %73 : vector<128x1xf32> to vector<128x128xf32>
    %75 = arith.mulf %70, %74 : vector<128x128xf32>
    %c0_24 = arith.constant 0 : index
    %c3 = arith.constant 3 : index
    %c0_25 = arith.constant 0 : index
    %76 = vector.load %arg5[%c0_24, %c3, %c0_25] : memref<128x4x128xf32, #tpu.memory_space<vmem>>, vector<128x1x128xf32>
    %77 = vector.shape_cast %76 : vector<128x1x128xf32> to vector<128x128xf32>
    %78 = vector.shape_cast %75 : vector<128x128xf32> to vector<128x1x128xf32>
    tpu.vector_store %arg5[%c0_24, %c3, %c0_25], %78 {strides = array<i32>} : memref<128x4x128xf32, #tpu.memory_space<vmem>>, vector<128x1x128xf32>,
    %79 = vector.extract_strided_slice %0 {offsets = [0, 3, 0], sizes = [128, 1, 128], strides = [1, 1, 1]} : vector<128x4x128xf32> to vector<128x1x128xf32>
    %80 = vector.shape_cast %79 : vector<128x1x128xf32> to vector<128x128xf32>
    %81 = arith.mulf %80, %75 : vector<128x128xf32>
    %82 = arith.addf %64, %81 : vector<128x128xf32>
    %c0_26 = arith.constant 0 : index
    %c0_27 = arith.constant 0 : index
    %83 = vector.load %arg4[%c0_26, %c0_27] : memref<128x128xf32, #tpu.memory_space<vmem>>, vector<128x128xf32>
    tpu.vector_store %arg4[%c0_26, %c0_27], %82 {strides = array<i32>} : memref<128x128xf32, #tpu.memory_space<vmem>>, vector<128x128xf32>,
    return
  }
  func.func @transform_0(%arg0: i32) -> (i32, i32, i32) {
    %c0_i32 = arith.constant 0 : i32
    %c0_i32_0 = arith.constant 0 : i32
    %c0_i32_1 = arith.constant 0 : i32
    return %arg0, %c0_i32, %c0_i32_0 : i32, i32, i32
  }
  func.func @transform_1(%arg0: i32) -> (i32, i32) {
    %c0_i32 = arith.constant 0 : i32
    %c0_i32_0 = arith.constant 0 : i32
    %c0_i32_1 = arith.constant 0 : i32
    return %c0_i32, %c0_i32_0 : i32, i32
  }
  func.func @transform_2(%arg0: i32) -> (i32, i32) {
    %c0_i32 = arith.constant 0 : i32
    %c0_i32_0 = arith.constant 0 : i32
    %c0_i32_1 = arith.constant 0 : i32
    return %c0_i32, %c0_i32_0 : i32, i32
  }
  func.func @transform_3(%arg0: i32) -> (i32, i32) {
    %c0_i32 = arith.constant 0 : i32
    %c0_i32_0 = arith.constant 0 : i32
    return %arg0, %c0_i32 : i32, i32
  }
  func.func @transform_4(%arg0: i32) -> (i32, i32, i32) {
    %c0_i32 = arith.constant 0 : i32
    %c0_i32_0 = arith.constant 0 : i32
    %c0_i32_1 = arith.constant 0 : i32
    return %arg0, %c0_i32, %c0_i32_0 : i32, i32, i32
  }
}

</mosaic_0001>

<bundles_post_ra>
// kernel: merge_module_forward.1
= control target key start
LH: loop header
LB: loop body
LE: loop exit
PB: predicated region body
PF: predicated region fallthrough
CT: control target
= control target key end

     0   :  { %s7999_s15 = smov 0   ;;  %s14595_s0 = inlined_call_operand.vmem [shape: f32[256,4,128], index: 0, kind: input, shape index: {}]   ;;  %s14596_s1 = inlined_call_operand.vmem [shape: f32[512,128], index: 1, kind: input, shape index: {}]   ;;  %s14597_s2 = inlined_call_operand.vmem [shape: f32[1,512], index: 2, kind: input, shape index: {}]   ;;  %s14598_s3 = inlined_call_operand.vmem [shape: f32[256,128], index: 3, kind: output, shape index: {0}]   ;;  %s14599_s4 = inlined_call_operand.vmem [shape: f32[256,4,128], index: 4, kind: output, shape index: {1}]  }
   0x1 LB: > { %s7559_s16 = sadd.s32 4294967295, %s7972_s15   ;;  %p7563_p0 = scmp.ge.s32.totalorder %s7972_s15, 1  ;;  %s7972_s15 = sphi %s7999_s15, %s15_s15  }
   0x2   : > { %p166_p1 = scmp.lt.s32.totalorder %s7972_s15, 3 }
   0x4   : > { %p167_p2 = pnand %p7563_p0, %p166_p1 }
   0x6   : > { %170 = sbr.rel (%p167_p2) target bundleno = 1312 (0x520), region = 32 }
   0xb   : > { %v1383_v0 = vld [vmem:[%s14596_s1 + $0x78] sm:$0xff]  ;;  %s7564_s23 = sshll.u32 %s7559_s16, 7  ;;  %v1382_v4 = vld [vmem:[%s14596_s1 + $0x70] sm:$0xff]  ;;  %v1381_v8 = vld [vmem:[%s14596_s1 + $0x68] sm:$0xff]  ;;  %vm343_vm0 = vcmask 1043456   ;;  %vm1570_vm1 = vcmask 1041409  }
   0xc   : > { %v1399_v1 = vld [vmem:[%s14596_s1 + $0xf8] sm:$0xff]  ;;  %1705 = vmatpush.xpose.msra.mxu0 %v1383_v0  ;;  %v1398_v5 = vld [vmem:[%s14596_s1 + $0xf0] sm:$0xff]  ;;  %p198_p3 = scmp.lt.s32.totalorder %s7564_s23, 255  ;;  %v1397_v9 = vld [vmem:[%s14596_s1 + $0xe8] sm:$0xff]  ;;  %vm1572_vm2 = vcmask 1042434   ;;  %vm1574_vm3 = vcmask 1043459  }
   0xd   : > { %v1415_v2 = vld [vmem:[%s14596_s1 + $0x178] sm:$0xff]  ;;  %1770 = vmatpush.xpose.msra.mxu1 %v1399_v1  ;;  %v1414_v6 = vld [vmem:[%s14596_s1 + $0x170] sm:$0xff]  ;;  %v1413_v10 = vld [vmem:[%s14596_s1 + $0x168] sm:$0xff]  ;;  %vm1576_vm4 = vcmask 1044484   ;;  %vm1578_vm5 = vcmask 1045509   ;;  %vm1580_vm6 = vcmask 1046534  }
   0xe   : > { %v1431_v3 = vld [vmem:[%s14596_s1 + $0x1f8] sm:$0xff]  ;;  %1835 = vmatpush.xpose.msra.mxu2 %v1415_v2  ;;  %v1430_v7 = vld [vmem:[%s14596_s1 + $0x1f0] sm:$0xff]  ;;  %s15237_s23 = smov (!%p198_p3, %s7564_s23), 255  ;;  %v1429_v11 = vld [vmem:[%s14596_s1 + $0x1e8] sm:$0xff]  ;;  %vm1582_vm7 = vcmask 1047559  }
   0xf   : > { %1900 = vmatpush.xpose.msra.mxu3 %v1431_v3  ;;  %v1380_v12 = vld [vmem:[%s14596_s1 + $0x60] sm:$0xff]  ;;  %s7565_s22 = sshll.u32 %s15237_s23, 2  ;;  %v1379_v16 = vld [vmem:[%s14596_s1 + $0x58] sm:$0xff]  ;;  %v1378_v22 = vld [vmem:[%s14596_s1 + $0x50] sm:$0xff]  ;;  %s9681_s23 = sshll.u32 %s7559_s16, 4 }
  0x10   : > { %1706 = vmatpush.xpose.msra.mxu0 %v1382_v4  ;;  %v1396_v13 = vld [vmem:[%s14596_s1 + $0xe0] sm:$0xff]  ;;  %s8065_s30 = scalar_lea.vmem %s14595_s0, %s7565_s22  ;;  %v1395_v17 = vld [vmem:[%s14596_s1 + $0xd8] sm:$0xff]  ;;  %v1394_v26 = vld [vmem:[%s14596_s1 + $0xd0] sm:$0xff]  ;;  %s9309_s25 = scalar_lea.vmem %s14599_s4, %s7565_s22 }
  0x11   : > { %1771 = vmatpush.xpose.msra.mxu1 %v1398_v5  ;;  %v1412_v14 = vld [vmem:[%s14596_s1 + $0x160] sm:$0xff]  ;;  %v1411_v18 = vld [vmem:[%s14596_s1 + $0x158] sm:$0xff]  ;;  %v217_v23 = vld [vmem:[%s8065_s30 + $0x8] sm:$0xf]  ;;  %p204_p4 = scmp.lt.s32.totalorder %s9681_s23, 31 }
  0x12   : > { %1836 = vmatpush.xpose.msra.mxu2 %v1414_v6  ;;  %v1428_v15 = vld [vmem:[%s14596_s1 + $0x1e0] sm:$0xff]  ;;  %v1427_v19 = vld [vmem:[%s14596_s1 + $0x1d8] sm:$0xff]  ;;  %v1410_v27 = vld [vmem:[%s14596_s1 + $0x150] sm:$0xff]  ;;  %v358_v38 = vsel %vm343_vm0, %v217_v23, 0.0 }
  0x13   : > { %1901 = vmatpush.xpose.msra.mxu3 %v1430_v7  ;;  %v215_v20 = vld [vmem:[%s8065_s30] sm:$0xf]  ;;  %v216_v21 = vld [vmem:[%s8065_s30 + $0x4] sm:$0xf]  ;;  %v218_v28 = vld [vmem:[%s8065_s30 + $0xc] sm:$0xf] }
  0x14   : > { %1707 = vmatpush.xpose.msra.mxu0 %v1381_v8  ;;  %v344_v24 = vsel %vm343_vm0, %v215_v20, 0.0  ;;  %v351_v25 = vsel %vm343_vm0, %v216_v21, 0.0  ;;  %v1426_v31 = vld [vmem:[%s14596_s1 + $0x1d0] sm:$0xff]  ;;  %v221_v34 = vld [vmem:[%s8065_s30 + $0x18] sm:$0xf]  ;;  %v365_v39 = vsel %vm343_vm0, %v218_v28, 0.0 }
  0x15   : > { %1772 = vmatpush.xpose.msra.mxu1 %v1397_v9  ;;  %v345_v29 = vrot.slane %v344_v24, 4  ;;  %v352_v30 = vrot.slane %v351_v25, 4  ;;  %v219_v32 = vld [vmem:[%s8065_s30 + $0x10] sm:$0xf]  ;;  %v220_v33 = vld [vmem:[%s8065_s30 + $0x14] sm:$0xf] }
  0x16   : > { %1837 = vmatpush.xpose.msra.mxu2 %v1413_v10  ;;  %v222_v35 = vld [vmem:[%s8065_s30 + $0x1c] sm:$0xf]  ;;  %v359_v40 = vrot.slane %v358_v38, 4  ;;  %v366_v41 = vrot.slane %v365_v39, 4  ;;  %v372_v42 = vsel %vm343_vm0, %v219_v32, 0.0  ;;  %v379_v43 = vsel %vm343_vm0, %v220_v33, 0.0 }
  0x17   : > { %1902 = vmatpush.xpose.msra.mxu3 %v1429_v11  ;;  %v346_v36 = vadd.f32 %v345_v29, %v344_v24  ;;  %v353_v37 = vadd.f32 %v352_v30, %v351_v25  ;;  %v1377_v44 = vld [vmem:[%s14596_s1 + $0x48] sm:$0xff]  ;;  %v373_v48 = vrot.slane %v372_v42, 4  ;;  %v380_v49 = vrot.slane %v379_v43, 4  ;;  %v1376_v0 = vld [vmem:[%s14596_s1 + $0x40] sm:$0xff]  ;;  %v1375_v20 = vld [vmem:[%s14596_s1 + $0x38] sm:$0xff]  ;;  %s15239_s23 = smov (!%p204_p4, %s9681_s23), 31 }
  0x18   : > { %1708 = vmatpush.xpose.msra.mxu0 %v1380_v12  ;;  %v1393_v45 = vld [vmem:[%s14596_s1 + $0xc8] sm:$0xff]  ;;  %v360_v52 = vadd.f32 %v359_v40, %v358_v38  ;;  %v367_v53 = vadd.f32 %v366_v41, %v365_v39  ;;  %v386_v54 = vsel %vm343_vm0, %v221_v34, 0.0  ;;  %v393_v55 = vsel %vm343_vm0, %v222_v35, 0.0  ;;  %v1392_v1 = vld [vmem:[%s14596_s1 + $0xc0] sm:$0xff]  ;;  %v1391_v21 = vld [vmem:[%s14596_s1 + $0xb8] sm:$0xff]  ;;  %s7567_s16 = sshll.u32 %s15239_s23, 3 }
  0x19   : > { %1773 = vmatpush.xpose.msra.mxu1 %v1396_v13  ;;  %v347_v46 = vrot.slane %v346_v36, 2  ;;  %v354_v47 = vrot.slane %v353_v37, 2  ;;  %v1409_v50 = vld [vmem:[%s14596_s1 + $0x148] sm:$0xff]  ;;  %v374_v58 = vadd.f32 %v373_v48, %v372_v42  ;;  %v381_v59 = vadd.f32 %v380_v49, %v379_v43  ;;  %v1408_v6 = vld [vmem:[%s14596_s1 + $0x140] sm:$0xff]  ;;  %v1374_v34 = vld [vmem:[%s14596_s1 + $0x30] sm:$0xff]  ;;  %s9759_s27 = scalar_lea.vmem %s14598_s3, %s7567_s16 }
  0x1a   : > { %1838 = vmatpush.xpose.msra.mxu2 %v1412_v14  ;;  %v1425_v51 = vld [vmem:[%s14596_s1 + $0x1c8] sm:$0xff]  ;;  %v361_v60 = vrot.slane %v360_v52, 2  ;;  %v368_v61 = vrot.slane %v367_v53, 2  ;;  %v387_v62 = vrot.slane %v386_v54, 4  ;;  %v394_v63 = vrot.slane %v393_v55, 4  ;;  %v1424_v7 = vld [vmem:[%s14596_s1 + $0x1c0] sm:$0xff] }
  0x1b   : > { %1903 = vmatpush.xpose.msra.mxu3 %v1428_v15  ;;  %v348_v56 = vadd.f32 %v347_v46, %v346_v36  ;;  %v355_v57 = vadd.f32 %v354_v47, %v353_v37  ;;  %v375_v4 = vrot.slane %v374_v58, 2  ;;  %v382_v5 = vrot.slane %v381_v59, 2  ;;  %v1390_v35 = vld [vmem:[%s14596_s1 + $0xb0] sm:$0xff]  ;;  %v224_v49 = vld [vmem:[%s8065_s30 + $0x24] sm:$0xf] }
  0x1c   : > { %1709 = vmatpush.xpose.msra.mxu0 %v1379_v16  ;;  %v362_v8 = vadd.f32 %v361_v60, %v360_v52  ;;  %v369_v9 = vadd.f32 %v368_v61, %v367_v53  ;;  %v388_v10 = vadd.f32 %v387_v62, %v386_v54  ;;  %v395_v11 = vadd.f32 %v394_v63, %v393_v55  ;;  %v1406_v40 = vld [vmem:[%s14596_s1 + $0x130] sm:$0xff]  ;;  %v226_v53 = vld [vmem:[%s8065_s30 + $0x2c] sm:$0xf] }
  0x1d   : > { %1774 = vmatpush.xpose.msra.mxu1 %v1395_v17  ;;  %v349_v2 = vrot.slane %v348_v56, 1  ;;  %v356_v3 = vrot.slane %v355_v57, 1  ;;  %v376_v14 = vadd.f32 %v375_v4, %v374_v58  ;;  %v383_v15 = vadd.f32 %v382_v5, %v381_v59  ;;  %v1389_v54 = vld [vmem:[%s14596_s1 + $0xa8] sm:$0xff]  ;;  %v227_v58 = vld [vmem:[%s8065_s30 + $0x30] sm:$0xf] }
  0x1e   : > { %1839 = vmatpush.xpose.msra.mxu2 %v1411_v18  ;;  %v363_v16 = vrot.slane %v362_v8, 1  ;;  %v370_v17 = vrot.slane %v369_v9, 1  ;;  %v389_v18 = vrot.slane %v388_v10, 2  ;;  %v1405_v60 = vld [vmem:[%s14596_s1 + $0x128] sm:$0xff]  ;;  %v228_v62 = vld [vmem:[%s8065_s30 + $0x34] sm:$0xf] }
  0x1f   : > { %1904 = vmatpush.xpose.msra.mxu3 %v1427_v19  ;;  %v350_v12 = vadd.f32 %v349_v2, %v348_v56  ;;  %v357_v13 = vadd.f32 %v356_v3, %v355_v57  ;;  %v396_v19 = vrot.slane %v395_v11, 2  ;;  %v384_v23 = vrot.slane %v383_v15, 1  ;;  %v1421_v2 = vld [vmem:[%s14596_s1 + $0x1a8] sm:$0xff]  ;;  %v229_v4 = vld [vmem:[%s8065_s30 + $0x38] sm:$0xf] }
  0x20   : > { %1710 = vmatpush.xpose.msra.mxu0 %v1378_v22  ;;  %v377_v22 = vrot.slane %v376_v14, 1  ;;  %v364_v28 = vadd.f32 %v363_v16, %v362_v8  ;;  %v371_v29 = vadd.f32 %v370_v17, %v369_v9  ;;  %v390_v30 = vadd.f32 %v389_v18, %v388_v10  ;;  %v1372_v17 = vld [vmem:[%s14596_s1 + $0x20] sm:$0xff] }
  0x21   : > { %1775 = vmatpush.xpose.msra.mxu1 %v1394_v26  ;;  %v1240_v24 = vmul.f32 0.25, %v350_v12  ;;  %v1241_v25 = vmul.f32 0.25, %v357_v13  ;;  %v1407_v26 = vld [vmem:[%s14596_s1 + $0x138] sm:$0xff]  ;;  %v385_v33 = vadd.f32 %v384_v23, %v383_v15  ;;  %v435_v16 = vsel %vm343_vm0, %v228_v62, 0.0  ;;  %v1388_v18 = vld [vmem:[%s14596_s1 + $0xa0] sm:$0xff] }
  0x22   : > { %1840 = vmatpush.xpose.msra.mxu2 %v1410_v27  ;;  %v1423_v27 = vld [vmem:[%s14596_s1 + $0x1b8] sm:$0xff]  ;;  %v378_v32 = vadd.f32 %v377_v22, %v376_v14  ;;  %v391_v36 = vrot.slane %v390_v30, 1  ;;  %v1242_v38 = vmul.f32 0.25, %v364_v28  ;;  %v1243_v39 = vmul.f32 0.25, %v371_v29  ;;  %v1404_v23 = vld [vmem:[%s14596_s1 + $0x120] sm:$0xff] }
  0x23   : > { %1905 = vmatpush.xpose.msra.mxu3 %v1426_v31  ;;  %v397_v31 = vadd.f32 %v396_v19, %v395_v11  ;;  %v1245_v42 = vmul.f32 0.25, %v385_v33  ;;  %v1571_v43 = vsel %vm1570_vm1, %v1241_v25, %v1240_v24  ;;  %v428_v11 = vsel %vm343_vm0, %v227_v58, 0.0  ;;  %v230_v12 = vld [vmem:[%s8065_s30 + $0x3c] sm:$0xf]  ;;  %v1420_v24 = vld [vmem:[%s14596_s1 + $0x1a0] sm:$0xff]  ;;  %v1370_v58 = vld [vmem:[%s14596_s1 + $0x10] sm:$0xff] }
  0x24   : > { %1711 = vmatpush.xpose.msra.mxu0 %v1377_v44  ;;  %v1244_v41 = vmul.f32 0.25, %v378_v32  ;;  %v223_v44 = vld [vmem:[%s8065_s30 + $0x20] sm:$0xf]  ;;  %v392_v46 = vadd.f32 %v391_v36, %v390_v30  ;;  %v1573_v48 = vsel %vm1572_vm2, %v1242_v38, %v1571_v43  ;;  %v429_v15 = vrot.slane %v428_v11, 4  ;;  %v1387_v38 = vld [vmem:[%s14596_s1 + $0x98] sm:$0xff] }
  0x25   : > { %1776 = vmatpush.xpose.msra.mxu1 %v1393_v45  ;;  %v398_v37 = vrot.slane %v397_v31, 1  ;;  %v1422_v45 = vld [vmem:[%s14596_s1 + $0x1b0] sm:$0xff]  ;;  %v1575_v52 = vsel %vm1574_vm3, %v1243_v39, %v1573_v48  ;;  %v400_v59 = vsel %vm343_vm0, %v223_v44, 0.0  ;;  %v442_v22 = vsel %vm343_vm0, %v229_v4, 0.0  ;;  %v1403_v43 = vld [vmem:[%s14596_s1 + $0x118] sm:$0xff] }
  0x26   : > { %1841 = vmatpush.xpose.msra.mxu2 %v1409_v50  ;;  %v225_v50 = vld [vmem:[%s8065_s30 + $0x28] sm:$0xf]  ;;  %v1246_v55 = vmul.f32 0.25, %v392_v46  ;;  %v1577_v57 = vsel %vm1576_vm4, %v1244_v41, %v1575_v52  ;;  %v401_v63 = vrot.slane %v400_v59, 4  ;;  %v443_v28 = vrot.slane %v442_v22, 4  ;;  %v1419_v44 = vld [vmem:[%s14596_s1 + $0x198] sm:$0xff] }
  0x27   : > { %1906 = vmatpush.xpose.msra.mxu3 %v1425_v51  ;;  %v399_v47 = vadd.f32 %v398_v37, %v397_v31  ;;  %v1373_v51 = vld [vmem:[%s14596_s1 + $0x28] sm:$0xff]  ;;  %v1579_v61 = vsel %vm1578_vm5, %v1245_v42, %v1577_v57  ;;  %v449_v32 = vsel %vm343_vm0, %v230_v12, 0.0  ;;  %v1371_v37 = vld [vmem:[%s14596_s1 + $0x18] sm:$0xff]  ;;  %v231_v57 = vld [vmem:[%s8065_s30 + $0x40] sm:$0xf] }
  0x28   : > { %1712 = vmatpush.xpose.msra.mxu0 %v1376_v0  ;;  %v407_v0 = vsel %vm343_vm0, %v224_v49, 0.0  ;;  %v1581_v3 = vsel %vm1580_vm6, %v1246_v55, %v1579_v61  ;;  %v402_v9 = vadd.f32 %v401_v63, %v400_v59  ;;  %v444_v36 = vadd.f32 %v443_v28, %v442_v22  ;;  %v1386_v59 = vld [vmem:[%s14596_s1 + $0x90] sm:$0xff] }
  0x29   : > { %1777 = vmatpush.xpose.msra.mxu1 %v1392_v1  ;;  %v1247_v56 = vmul.f32 0.25, %v399_v47  ;;  %v414_v1 = vsel %vm343_vm0, %v225_v50, 0.0  ;;  %v408_v5 = vrot.slane %v407_v0, 4  ;;  %v450_v42 = vrot.slane %v449_v32, 4  ;;  %v235_v28 = vld [vmem:[%s8065_s30 + $0x50] sm:$0xf] }
  0x2a   : > { %1842 = vmatpush.xpose.msra.mxu2 %v1408_v6  ;;  %v415_v6 = vrot.slane %v414_v1, 4  ;;  %v403_v19 = vrot.slane %v402_v9, 2  ;;  %v445_v48 = vrot.slane %v444_v36, 2 }
  0x2b   : > { %1907 = vmatpush.xpose.msra.mxu3 %v1424_v7  ;;  %v421_v7 = vsel %vm343_vm0, %v226_v53, 0.0  ;;  %v8185_v8 = vsel %vm1582_vm7, %v1247_v56, %v1581_v3  ;;  %v409_v13 = vadd.f32 %v408_v5, %v407_v0  ;;  %v451_v52 = vadd.f32 %v450_v42, %v449_v32  ;;  %v1384_v42 = vld [vmem:[%s14596_s1 + $0x80] sm:$0xff] }
  0x2c   : > { %1713 = vmatpush.xpose.msra.mxu0 %v1375_v20  ;;  %v422_v10 = vrot.slane %v421_v7, 4  ;;  %v416_v14 = vadd.f32 %v415_v6, %v414_v1  ;;  %v404_v29 = vadd.f32 %v403_v19, %v402_v9  ;;  %v446_v56 = vadd.f32 %v445_v48, %v444_v36  ;;  %v1418_v1 = vld [vmem:[%s14596_s1 + $0x190] sm:$0xff]  ;;  %v232_v6 = vld [vmem:[%s8065_s30 + $0x44] sm:$0xf]  ;;  %v1385_v19 = vld [vmem:[%s14596_s1 + $0x88] sm:$0xff] }
  0x2d   : > { %1778 = vmatpush.xpose.msra.mxu1 %v1391_v21  ;;  %v436_v21 = vrot.slane %v435_v16, 4  ;;  %v410_v25 = vrot.slane %v409_v13, 2  ;;  %v452_v63 = vrot.slane %v451_v52, 2  ;;  %v236_v36 = vld [vmem:[%s8065_s30 + $0x54] sm:$0xf]  ;;  %v1416_v48 = vld [vmem:[%s14596_s1 + $0x180] sm:$0xff] }
  0x2e   : > { %1843 = vmatpush.xpose.msra.mxu2 %v1407_v26  ;;  %v423_v20 = vadd.f32 %v422_v10, %v421_v7  ;;  %v417_v26 = vrot.slane %v416_v14, 2  ;;  %v405_v39 = vrot.slane %v404_v29, 1  ;;  %v447_v3 = vrot.slane %v446_v56, 1 }
  0x2f   : > { %1908 = vmatpush.xpose.msra.mxu3 %v1423_v27  ;;  %v430_v27 = vadd.f32 %v429_v15, %v428_v11  ;;  %v437_v31 = vadd.f32 %v436_v21, %v435_v16  ;;  %v411_v33 = vadd.f32 %v410_v25, %v409_v13  ;;  %v453_v9 = vadd.f32 %v452_v63, %v451_v52  ;;  %v233_v15 = vld [vmem:[%s8065_s30 + $0x48] sm:$0xf]  ;;  %v234_v16 = vld [vmem:[%s8065_s30 + $0x4c] sm:$0xf] }
  0x30   : > { %1714 = vmatpush.xpose.msra.mxu0 %v1374_v34  ;;  %v424_v30 = vrot.slane %v423_v20, 2  ;;  %v418_v34 = vadd.f32 %v417_v26, %v416_v14  ;;  %v406_v49 = vadd.f32 %v405_v39, %v404_v29  ;;  %v456_v11 = vsel %vm343_vm0, %v231_v57, 0.0  ;;  %v1417_v25 = vld [vmem:[%s14596_s1 + $0x188] sm:$0xff] }
  0x31   : > { %1779 = vmatpush.xpose.msra.mxu1 %v1390_v35  ;;  %v431_v35 = vrot.slane %v430_v27, 2  ;;  %v438_v41 = vrot.slane %v437_v31, 2  ;;  %v448_v12 = vadd.f32 %v447_v3, %v446_v56  ;;  %v491_v56 = vsel %vm343_vm0, %v236_v36, 0.0  ;;  %v241_v36 = vld [vmem:[%s8065_s30 + $0x68] sm:$0xf] }
  0x32   : > { %1844 = vmatpush.xpose.msra.mxu2 %v1406_v40  ;;  %v425_v40 = vadd.f32 %v424_v30, %v423_v20  ;;  %v419_v46 = vrot.slane %v418_v34, 1  ;;  %v1248_v0 = vmul.f32 0.25, %v406_v49  ;;  %v454_v20 = vrot.slane %v453_v9, 1  ;;  %v238_v49 = vld [vmem:[%s8065_s30 + $0x5c] sm:$0xf] }
  0x33   : > { %1909 = vmatpush.xpose.msra.mxu3 %v1422_v45  ;;  %v412_v45 = vrot.slane %v411_v33, 1  ;;  %v432_v47 = vadd.f32 %v431_v35, %v430_v27  ;;  %v1254_v26 = vmul.f32 0.25, %v448_v12  ;;  %v492_v63 = vrot.slane %v491_v56, 4 }
  0x34   : > { %1715 = vmatpush.xpose.msra.mxu0 %v1373_v51  ;;  %v426_v50 = vrot.slane %v425_v40, 1  ;;  %v439_v51 = vadd.f32 %v438_v41, %v437_v31  ;;  %v455_v31 = vadd.f32 %v454_v20, %v453_v9  ;;  %v1368_v41 = vld [vmem:[%s14596_s1] sm:$0xff] }
  0x35   : > { %1780 = vmatpush.xpose.msra.mxu1 %v1389_v54  ;;  %v413_v53 = vadd.f32 %v412_v45, %v411_v33  ;;  %v420_v54 = vadd.f32 %v419_v46, %v418_v34  ;;  %v433_v55 = vrot.slane %v432_v47, 1  ;;  %v470_v33 = vsel %vm343_vm0, %v233_v15, 0.0 }
  0x36   : > { %1845 = vmatpush.xpose.msra.mxu2 %v1405_v60  ;;  %v1402_v60 = vld [vmem:[%s14596_s1 + $0x110] sm:$0xff]  ;;  %v427_v61 = vadd.f32 %v426_v50, %v425_v40  ;;  %v440_v62 = vrot.slane %v439_v51, 1  ;;  %v477_v34 = vsel %vm343_vm0, %v234_v16, 0.0  ;;  %v471_v40 = vrot.slane %v470_v33, 4 }
  0x37   : > { %1910 = vmatpush.xpose.msra.mxu3 %v1421_v2  ;;  %v434_v2 = vadd.f32 %v433_v55, %v432_v47  ;;  %v1249_v4 = vmul.f32 0.25, %v413_v53  ;;  %v1250_v5 = vmul.f32 0.25, %v420_v54  ;;  %v478_v45 = vrot.slane %v477_v34, 4  ;;  %v1400_v47 = vld [vmem:[%s14596_s1 + $0x100] sm:$0xff] }
  0x38   : > { %1716 = vmatpush.xpose.msra.mxu0 %v1372_v17  ;;  %v441_v7 = vadd.f32 %v440_v62, %v439_v51  ;;  %v1251_v10 = vmul.f32 0.25, %v427_v61  ;;  %v457_v17 = vrot.slane %v456_v11, 4  ;;  %v484_v46 = vsel %vm343_vm0, %v235_v28, 0.0 }
  0x39   : > { %1781 = vmatpush.xpose.msra.mxu1 %v1388_v18  ;;  %v1252_v13 = vmul.f32 0.25, %v434_v2  ;;  %v1584_v14 = vsel %vm1570_vm1, %v1249_v4, %v1248_v0  ;;  %v1369_v18 = vld [vmem:[%s14596_s1 + $0x8] sm:$0xff]  ;;  %v472_v52 = vadd.f32 %v471_v40, %v470_v33  ;;  %v485_v53 = vrot.slane %v484_v46, 4 }
  0x3a   : > { %1846 = vmatpush.xpose.msra.mxu2 %v1404_v23  ;;  %v1253_v21 = vmul.f32 0.25, %v441_v7  ;;  %v1585_v22 = vsel %vm1572_vm2, %v1250_v5, %v1584_v14  ;;  %v463_v23 = vsel %vm343_vm0, %v232_v6, 0.0  ;;  %v458_v29 = vadd.f32 %v457_v17, %v456_v11  ;;  %v239_v11 = vld [vmem:[%s8065_s30 + $0x60] sm:$0xf] }
  0x3b   : > { %1911 = vmatpush.xpose.msra.mxu3 %v1420_v24  ;;  %v1401_v24 = vld [vmem:[%s14596_s1 + $0x108] sm:$0xff]  ;;  %v1586_v27 = vsel %vm1574_vm3, %v1251_v10, %v1585_v22  ;;  %v464_v30 = vrot.slane %v463_v23, 4  ;;  %v479_v55 = vadd.f32 %v478_v45, %v477_v34  ;;  %v486_v61 = vadd.f32 %v485_v53, %v484_v46  ;;  %v243_v46 = vld [vmem:[%s8065_s30 + $0x70] sm:$0xf] }
  0x3c   : > { %1717 = vmatpush.xpose.msra.mxu0 %v1371_v37  ;;  %v1587_v32 = vsel %vm1576_vm4, %v1252_v13, %v1586_v27  ;;  %v237_v37 = vld [vmem:[%s8065_s30 + $0x58] sm:$0xf]  ;;  %v493_v7 = vadd.f32 %v492_v63, %v491_v56  ;;  %v242_v45 = vld [vmem:[%s8065_s30 + $0x6c] sm:$0xf]  ;;  %v244_v56 = vld [vmem:[%s8065_s30 + $0x74] sm:$0xf] }
  0x3d   : > { %1782 = vmatpush.xpose.msra.mxu1 %v1387_v38  ;;  %v1588_v35 = vsel %vm1578_vm5, %v1253_v21, %v1587_v32  ;;  %v459_v38 = vrot.slane %v458_v29, 2  ;;  %v465_v39 = vadd.f32 %v464_v30, %v463_v23  ;;  %v498_v57 = vsel %vm343_vm0, %v237_v37, 0.0 }
  0x3e   : > { %1847 = vmatpush.xpose.msra.mxu2 %v1403_v43  ;;  %v1255_v43 = vmul.f32 0.25, %v455_v31  ;;  %v480_v62 = vrot.slane %v479_v55, 2  ;;  %v499_v0 = vrot.slane %v498_v57, 4  ;;  %v487_v5 = vrot.slane %v486_v61, 2 }
  0x3f   : > { %1912 = vmatpush.xpose.msra.mxu3 %v1419_v44  ;;  %v1589_v44 = vsel %vm1580_vm6, %v1254_v26, %v1588_v35  ;;  %v460_v50 = vadd.f32 %v459_v38, %v458_v29  ;;  %v466_v51 = vrot.slane %v465_v39, 2  ;;  %v494_v17 = vrot.slane %v493_v7, 2 }
  0x40   : > { %1718 = vmatpush.xpose.msra.mxu0 %v1370_v58  ;;  %v8272_v54 = vsel %vm1582_vm7, %v1255_v43, %v1589_v44  ;;  %v481_v6 = vadd.f32 %v480_v62, %v479_v55  ;;  %v500_v9 = vadd.f32 %v499_v0, %v498_v57  ;;  %v488_v14 = vadd.f32 %v487_v5, %v486_v61  ;;  %v245_v62 = vld [vmem:[%s8065_s30 + $0x78] sm:$0xf] }
  0x41   : > { %1783 = vmatpush.xpose.msra.mxu1 %v1386_v59  ;;  %v461_v58 = vrot.slane %v460_v50, 1  ;;  %v467_v59 = vadd.f32 %v466_v51, %v465_v39  ;;  %v512_v23 = vsel %vm343_vm0, %v239_v11, 0.0 }
  0x42   : > { %1848 = vmatpush.xpose.msra.mxu2 %v1402_v60  ;;  %v473_v60 = vrot.slane %v472_v52, 2  ;;  %v482_v16 = vrot.slane %v481_v6, 1  ;;  %v489_v21 = vrot.slane %v488_v14, 1  ;;  %v513_v31 = vrot.slane %v512_v23, 4 }
  0x43   : > { %1913 = vmatpush.xpose.msra.mxu3 %v1418_v1  ;;  %v505_v1 = vsel %vm343_vm0, %v238_v49, 0.0  ;;  %v462_v2 = vadd.f32 %v461_v58, %v460_v50  ;;  %v468_v3 = vrot.slane %v467_v59, 1  ;;  %v526_v50 = vsel %vm343_vm0, %v241_v36, 0.0 }
  0x44   : > { %1719 = vmatpush.xpose.msra.mxu0 %v1369_v18  ;;  %v474_v4 = vadd.f32 %v473_v60, %v472_v52  ;;  %v506_v10 = vrot.slane %v505_v1, 4  ;;  %v501_v18 = vrot.slane %v500_v9, 2  ;;  %v490_v28 = vadd.f32 %v489_v21, %v488_v14 }
  0x45   : > { %1784 = vmatpush.xpose.msra.mxu1 %v1385_v19  ;;  %v469_v12 = vadd.f32 %v468_v3, %v467_v59  ;;  %v1256_v15 = vmul.f32 0.25, %v462_v2  ;;  %v514_v39 = vadd.f32 %v513_v31, %v512_v23  ;;  %v527_v55 = vrot.slane %v526_v50, 4  ;;  %v246_v2 = vld [vmem:[%s8065_s30 + $0x7c] sm:$0xf]  ;;  %v247_v23 = vld [vmem:[%s8065_s30 + $0x80] sm:$0xf] }
  0x46   : > { %1849 = vmatpush.xpose.msra.mxu2 %v1401_v24  ;;  %v475_v13 = vrot.slane %v474_v4, 1  ;;  %v507_v19 = vadd.f32 %v506_v10, %v505_v1  ;;  %v483_v24 = vadd.f32 %v482_v16, %v481_v6  ;;  %v502_v26 = vadd.f32 %v501_v18, %v500_v9 }
  0x47   : > { %1914 = vmatpush.xpose.msra.mxu3 %v1417_v25  ;;  %v1257_v22 = vmul.f32 0.25, %v469_v12  ;;  %v495_v25 = vadd.f32 %v494_v17, %v493_v7  ;;  %v1260_v37 = vmul.f32 0.25, %v490_v28  ;;  %v533_v59 = vsel %vm343_vm0, %v242_v45, 0.0 }
  0x48   : > { %1720 = vmatpush.xpose.msra.mxu0 %v1368_v41  ;;  %v476_v20 = vadd.f32 %v475_v13, %v474_v4  ;;  %v508_v27 = vrot.slane %v507_v19, 2  ;;  %v503_v33 = vrot.slane %v502_v26, 1  ;;  %v1259_v35 = vmul.f32 0.25, %v483_v24 }
  0x49   : > { %1785 = vmatpush.xpose.msra.mxu1 %v1384_v42  ;;  %v1591_v30 = vsel %vm1570_vm1, %v1257_v22, %v1256_v15  ;;  %v496_v32 = vrot.slane %v495_v25, 1  ;;  %v540_v60 = vsel %vm343_vm0, %v243_v46, 0.0  ;;  %v528_v63 = vadd.f32 %v527_v55, %v526_v50 }
  0x4a   : > { %1850 = vmatpush.xpose.msra.mxu2 %v1400_v47  ;;  %v1258_v29 = vmul.f32 0.25, %v476_v20  ;;  %v509_v34 = vadd.f32 %v508_v27, %v507_v19  ;;  %v504_v42 = vadd.f32 %v503_v33, %v502_v26  ;;  %v534_v0 = vrot.slane %v533_v59, 4 }
  0x4b   : > { %1915 = vmatpush.xpose.msra.mxu3 %v1416_v48  ;;  %1721 = vmatmul.f32.vlgmr.msra.gmra.mxu0 %v8185_v8  ;;  %v497_v41 = vadd.f32 %v496_v32, %v495_v25  ;;  %v515_v48 = vrot.slane %v514_v39, 2  ;;  %v541_v5 = vrot.slane %v540_v60, 4  ;;  %v529_v7 = vrot.slane %v528_v63, 2 }
  0x4c   : > { %1786 = vmatmul.f32.vlgmr.msra.gmra.mxu1 %v8185_v8  ;;  %v1592_v38 = vsel %vm1572_vm2, %v1258_v29, %v1591_v30  ;;  %v510_v43 = vrot.slane %v509_v34, 1  ;;  %v1262_v53 = vmul.f32 0.25, %v504_v42  ;;  %v535_v9 = vadd.f32 %v534_v0, %v533_v59  ;;  %v248_v42 = vld [vmem:[%s8065_s30 + $0x84] sm:$0xf] }
  0x4d   : > { %1851 = vmatmul.f32.vlgmr.msra.gmra.mxu2 %v8185_v8  ;;  %v1593_v44 = vsel %vm1574_vm3, %v1259_v35, %v1592_v38  ;;  %v1261_v52 = vmul.f32 0.25, %v497_v41  ;;  %v516_v57 = vadd.f32 %v515_v48, %v514_v39  ;;  %v547_v10 = vsel %vm343_vm0, %v244_v56, 0.0 }
  0x4e   : > { %1916 = vmatmul.f32.vlgmr.msra.gmra.mxu3 %v8185_v8  ;;  %v240_v8 = vld [vmem:[%s8065_s30 + $0x64] sm:$0xf]  ;;  %v1594_v47 = vsel %vm1576_vm4, %v1260_v37, %v1593_v44  ;;  %v511_v51 = vadd.f32 %v510_v43, %v509_v34  ;;  %v542_v13 = vadd.f32 %v541_v5, %v540_v60  ;;  %v548_v14 = vrot.slane %v547_v10, 4 }
  0x4f   : > { %v519_v40 = vsel %vm343_vm0, %v240_v8, 0.0  ;;  %v1595_v61 = vsel %vm1578_vm5, %v1261_v52, %v1594_v47  ;;  %v517_v3 = vrot.slane %v516_v57, 1  ;;  %v530_v15 = vadd.f32 %v529_v7, %v528_v63 }
  0x50   : > { %v520_v49 = vrot.slane %v519_v40, 4  ;;  %v1596_v1 = vsel %vm1580_vm6, %v1262_v53, %v1595_v61  ;;  %v536_v16 = vrot.slane %v535_v9, 2  ;;  %v554_v17 = vsel %vm343_vm0, %v245_v62, 0.0 }
  0x51   : > { %v518_v11 = vadd.f32 %v517_v3, %v516_v57  ;;  %v561_v18 = vsel %vm343_vm0, %v246_v2, 0.0  ;;  %v543_v20 = vrot.slane %v542_v13, 2  ;;  %v549_v21 = vadd.f32 %v548_v14, %v547_v10  ;;  %v250_v57 = vld [vmem:[%s8065_s30 + $0x8c] sm:$0xf]  ;;  %v253_v14 = vld [vmem:[%s8065_s30 + $0x98] sm:$0xf] }
  0x52   : > { %v521_v58 = vadd.f32 %v520_v49, %v519_v40  ;;  %v555_v22 = vrot.slane %v554_v17, 4  ;;  %v531_v24 = vrot.slane %v530_v15, 1  ;;  %v537_v25 = vadd.f32 %v536_v16, %v535_v9 }
  0x53   : > { %1724 = vmatmul.f32.gmra.mxu0 %v8272_v54  ;;  %v562_v26 = vrot.slane %v561_v18, 4  ;;  %v1264_v27 = vmul.f32 0.25, %v518_v11  ;;  %v544_v28 = vadd.f32 %v543_v20, %v542_v13  ;;  %v550_v29 = vrot.slane %v549_v21, 2 }
  0x54   : > { %1789 = vmatmul.f32.gmra.mxu1 %v8272_v54  ;;  %v522_v4 = vrot.slane %v521_v58, 2  ;;  %v556_v30 = vadd.f32 %v555_v22, %v554_v17  ;;  %v532_v31 = vadd.f32 %v531_v24, %v530_v15  ;;  %v538_v32 = vrot.slane %v537_v25, 1 }
  0x55   : > { %1854 = vmatmul.f32.gmra.mxu2 %v8272_v54  ;;  %v563_v33 = vadd.f32 %v562_v26, %v561_v18  ;;  %v568_v34 = vsel %vm343_vm0, %v247_v23, 0.0  ;;  %v545_v35 = vrot.slane %v544_v28, 1  ;;  %v551_v36 = vadd.f32 %v550_v29, %v549_v21 }
  0x56   : > { %1919 = vmatmul.f32.gmra.mxu3 %v8272_v54  ;;  %v1263_v54 = vmul.f32 0.25, %v511_v51  ;;  %v523_v12 = vadd.f32 %v522_v4, %v521_v58  ;;  %v557_v37 = vrot.slane %v556_v30, 2  ;;  %v539_v39 = vadd.f32 %v538_v32, %v537_v25  ;;  %v249_v51 = vld [vmem:[%s8065_s30 + $0x88] sm:$0xf]  ;;  %v252_v4 = vld [vmem:[%s8065_s30 + $0x94] sm:$0xf] }
  0x57   : > { %v564_v40 = vrot.slane %v563_v33, 2  ;;  %v1266_v41 = vmul.f32 0.25, %v532_v31  ;;  %v569_v43 = vrot.slane %v568_v34, 4  ;;  %v546_v44 = vadd.f32 %v545_v35, %v544_v28 }
  0x58   : > { %v1597_v6 = vsel %vm1582_vm7, %v1263_v54, %v1596_v1  ;;  %v524_v19 = vrot.slane %v523_v12, 1  ;;  %v552_v45 = vrot.slane %v551_v36, 1  ;;  %v558_v46 = vadd.f32 %v557_v37, %v556_v30  ;;  %v251_v54 = vld [vmem:[%s8065_s30 + $0x90] sm:$0xf] }
  0x59   : > { %v565_v48 = vadd.f32 %v564_v40, %v563_v33  ;;  %v1267_v49 = vmul.f32 0.25, %v539_v39  ;;  %v570_v52 = vadd.f32 %v569_v43, %v568_v34  ;;  %v1268_v56 = vmul.f32 0.25, %v546_v44 }
  0x5a   : > { %v525_v8 = vadd.f32 %v524_v19, %v523_v12  ;;  %v553_v53 = vadd.f32 %v552_v45, %v551_v36  ;;  %v559_v55 = vrot.slane %v558_v46, 1  ;;  %v575_v58 = vsel %vm343_vm0, %v248_v42, 0.0  ;;  %v254_v19 = vld [vmem:[%s8065_s30 + $0x9c] sm:$0xf] }
  0x5b   : > { %1727 = vmatmul.f32.gmra.mxu0 %v1597_v6  ;;  %v566_v59 = vrot.slane %v565_v48, 1  ;;  %v571_v61 = vrot.slane %v570_v52, 2  ;;  %v576_v62 = vrot.slane %v575_v58, 4  ;;  %v582_v2 = vsel %vm343_vm0, %v249_v51, 0.0 }
  0x5c   : > { %1792 = vmatmul.f32.gmra.mxu1 %v1597_v6  ;;  %v1265_v38 = vmul.f32 0.25, %v525_v8  ;;  %v560_v63 = vadd.f32 %v559_v55, %v558_v46  ;;  %v1269_v0 = vmul.f32 0.25, %v553_v53  ;;  %v583_v7 = vrot.slane %v582_v2, 4 }
  0x5d   : > { %1857 = vmatmul.f32.gmra.mxu2 %v1597_v6  ;;  %v567_v3 = vadd.f32 %v566_v59, %v565_v48  ;;  %v572_v5 = vadd.f32 %v571_v61, %v570_v52  ;;  %v589_v11 = vsel %vm343_vm0, %v250_v57, 0.0  ;;  %v596_v12 = vsel %vm343_vm0, %v251_v54, 0.0 }
  0x5e   : > { %1922 = vmatmul.f32.gmra.mxu3 %v1597_v6  ;;  %v1598_v47 = vsel %vm1570_vm1, %v1265_v38, %v1264_v27  ;;  %v577_v6 = vadd.f32 %v576_v62, %v575_v58  ;;  %v1270_v9 = vmul.f32 0.25, %v560_v63  ;;  %v584_v17 = vadd.f32 %v583_v7, %v582_v2  ;;  %v255_v38 = vld [vmem:[%s8065_s30 + $0xa0] sm:$0xf] }
  0x5f   : > { %v1599_v50 = vsel %vm1572_vm2, %v1266_v41, %v1598_v47  ;;  %v1271_v13 = vmul.f32 0.25, %v567_v3  ;;  %v573_v15 = vrot.slane %v572_v5, 1  ;;  %v590_v20 = vrot.slane %v589_v11, 4 }
  0x60   : > { %v1600_v60 = vsel %vm1574_vm3, %v1267_v49, %v1599_v50  ;;  %v578_v16 = vrot.slane %v577_v6, 2  ;;  %v597_v21 = vrot.slane %v596_v12, 4  ;;  %v603_v22 = vsel %vm343_vm0, %v252_v4, 0.0 }
  0x61   : > { %v1601_v1 = vsel %vm1576_vm4, %v1268_v56, %v1600_v60  ;;  %v574_v24 = vadd.f32 %v573_v15, %v572_v5  ;;  %v585_v26 = vrot.slane %v584_v17, 2  ;;  %v591_v27 = vadd.f32 %v590_v20, %v589_v11  ;;  %v256_v56 = vld [vmem:[%s8065_s30 + $0xa4] sm:$0xf]  ;;  %v258_v11 = vld [vmem:[%s8065_s30 + $0xac] sm:$0xf] }
  0x62   : > { %v1602_v10 = vsel %vm1578_vm5, %v1269_v0, %v1601_v1  ;;  %v579_v25 = vadd.f32 %v578_v16, %v577_v6  ;;  %v598_v8 = vadd.f32 %v597_v21, %v596_v12  ;;  %v604_v28 = vrot.slane %v603_v22, 4  ;;  %v257_v0 = vld [vmem:[%s8065_s30 + $0xa8] sm:$0xf]  ;;  %v259_v21 = vld [vmem:[%s8065_s30 + $0xb0] sm:$0xf] }
  0x63   : > { %v1603_v18 = vsel %vm1580_vm6, %v1270_v9, %v1602_v10  ;;  %v610_v29 = vsel %vm343_vm0, %v253_v14, 0.0  ;;  %v586_v31 = vadd.f32 %v585_v26, %v584_v17  ;;  %v617_v33 = vsel %vm343_vm0, %v254_v19, 0.0 }
  0x64   : > { %v1604_v23 = vsel %vm1582_vm7, %v1271_v13, %v1603_v18  ;;  %v580_v30 = vrot.slane %v579_v25, 1  ;;  %v611_v32 = vrot.slane %v610_v29, 4  ;;  %v592_v34 = vrot.slane %v591_v27, 2 }
  0x65   : > { %1795 = vmatmul.f32.gmra.mxu1 %v1604_v23  ;;  %1730 = vmatmul.f32.gmra.mxu0 %v1604_v23  ;;  %v599_v35 = vrot.slane %v598_v8, 2  ;;  %v605_v36 = vadd.f32 %v604_v28, %v603_v22  ;;  %v618_v37 = vrot.slane %v617_v33, 4  ;;  %v587_v40 = vrot.slane %v586_v31, 1  ;;  %v260_v22 = vld [vmem:[%s8065_s30 + $0xb4] sm:$0xf] }
  0x66   : > { %1925 = vmatmul.f32.gmra.mxu3 %v1604_v23  ;;  %1860 = vmatmul.f32.gmra.mxu2 %v1604_v23  ;;  %v581_v39 = vadd.f32 %v580_v30, %v579_v25  ;;  %v612_v41 = vadd.f32 %v611_v32, %v610_v29  ;;  %v1272_v42 = vmul.f32 0.25, %v574_v24  ;;  %v593_v43 = vadd.f32 %v592_v34, %v591_v27  ;;  %v261_v27 = vld [vmem:[%s8065_s30 + $0xb8] sm:$0xf]  ;;  %v262_v30 = vld [vmem:[%s8065_s30 + $0xbc] sm:$0xf] }
  0x67   : > { %v600_v44 = vadd.f32 %v599_v35, %v598_v8  ;;  %v606_v45 = vrot.slane %v605_v36, 2  ;;  %v619_v46 = vadd.f32 %v618_v37, %v617_v33  ;;  %v588_v47 = vadd.f32 %v587_v40, %v586_v31 }
  0x68   : > { %v613_v48 = vrot.slane %v612_v41, 2  ;;  %v1273_v49 = vmul.f32 0.25, %v581_v39  ;;  %v624_v50 = vsel %vm343_vm0, %v255_v38, 0.0  ;;  %v594_v51 = vrot.slane %v593_v43, 1 }
  0x69   : > { %v601_v52 = vrot.slane %v600_v44, 1  ;;  %v607_v53 = vadd.f32 %v606_v45, %v605_v36  ;;  %v620_v55 = vrot.slane %v619_v46, 2  ;;  %v1274_v58 = vmul.f32 0.25, %v588_v47 }
  0x6a   : > { %v614_v57 = vadd.f32 %v613_v48, %v612_v41  ;;  %v1605_v59 = vsel %vm1570_vm1, %v1273_v49, %v1272_v42  ;;  %v625_v60 = vrot.slane %v624_v50, 4  ;;  %v595_v54 = vadd.f32 %v594_v51, %v593_v43 }
  0x6b   : > { %v602_v61 = vadd.f32 %v601_v52, %v600_v44  ;;  %v608_v62 = vrot.slane %v607_v53, 1  ;;  %v621_v63 = vadd.f32 %v620_v55, %v619_v46  ;;  %v1606_v2 = vsel %vm1572_vm2, %v1274_v58, %v1605_v59 }
  0x6c   : > { %v615_v1 = vrot.slane %v614_v57, 1  ;;  %v626_v3 = vadd.f32 %v625_v60, %v624_v50  ;;  %v631_v4 = vsel %vm343_vm0, %v256_v56, 0.0  ;;  %v1275_v7 = vmul.f32 0.25, %v595_v54  ;;  %v263_v50 = vld [vmem:[%s8065_s30 + $0xc0] sm:$0xf] }
  0x6d   : > { %v609_v5 = vadd.f32 %v608_v62, %v607_v53  ;;  %v622_v6 = vrot.slane %v621_v63, 1  ;;  %v1276_v9 = vmul.f32 0.25, %v602_v61  ;;  %v632_v13 = vrot.slane %v631_v4, 4 }
  0x6e   : > { %v616_v10 = vadd.f32 %v615_v1, %v614_v57  ;;  %v627_v12 = vrot.slane %v626_v3, 2  ;;  %v638_v14 = vsel %vm343_vm0, %v257_v0, 0.0  ;;  %v1607_v17 = vsel %vm1574_vm3, %v1275_v7, %v1606_v2 }
  0x6f   : > { %v623_v15 = vadd.f32 %v622_v6, %v621_v63  ;;  %v1277_v16 = vmul.f32 0.25, %v609_v5  ;;  %v639_v18 = vrot.slane %v638_v14, 4  ;;  %v1608_v20 = vsel %vm1576_vm4, %v1276_v9, %v1607_v17  ;;  %v264_v6 = vld [vmem:[%s8065_s30 + $0xc4] sm:$0xf] }
  0x70   : > { %v1278_v19 = vmul.f32 0.25, %v616_v10  ;;  %v628_v23 = vadd.f32 %v627_v12, %v626_v3  ;;  %v633_v24 = vadd.f32 %v632_v13, %v631_v4  ;;  %v645_v28 = vsel %vm343_vm0, %v258_v11, 0.0 }
  0x71   : > { %v1279_v25 = vmul.f32 0.25, %v623_v15  ;;  %v1609_v26 = vsel %vm1578_vm5, %v1277_v16, %v1608_v20  ;;  %v640_v8 = vadd.f32 %v639_v18, %v638_v14  ;;  %v646_v33 = vrot.slane %v645_v28, 4  ;;  %v265_v16 = vld [vmem:[%s8065_s30 + $0xc8] sm:$0xf] }
  0x72   : > { %v1610_v29 = vsel %vm1580_vm6, %v1278_v19, %v1609_v26  ;;  %v629_v31 = vrot.slane %v628_v23, 1  ;;  %v634_v32 = vrot.slane %v633_v24, 2  ;;  %v652_v36 = vsel %vm343_vm0, %v259_v21, 0.0 }
  0x73   : > { %v1611_v34 = vsel %vm1582_vm7, %v1279_v25, %v1610_v29  ;;  %v641_v35 = vrot.slane %v640_v8, 2  ;;  %v659_v37 = vsel %vm343_vm0, %v260_v22, 0.0  ;;  %v647_v40 = vadd.f32 %v646_v33, %v645_v28 }
  0x74   : > { %1733 = vmatmul.f32.gmra.mxu0 %v1611_v34  ;;  %1798 = vmatmul.f32.gmra.mxu1 %v1611_v34  ;;  %v630_v38 = vadd.f32 %v629_v31, %v628_v23  ;;  %v635_v39 = vadd.f32 %v634_v32, %v633_v24  ;;  %v653_v41 = vrot.slane %v652_v36, 4  ;;  %v660_v43 = vrot.slane %v659_v37, 4  ;;  %v266_v24 = vld [vmem:[%s8065_s30 + $0xcc] sm:$0xf]  ;;  %v267_v32 = vld [vmem:[%s8065_s30 + $0xd0] sm:$0xf] }
  0x75   : > { %1863 = vmatmul.f32.gmra.mxu2 %v1611_v34  ;;  %1928 = vmatmul.f32.gmra.mxu3 %v1611_v34  ;;  %v642_v42 = vadd.f32 %v641_v35, %v640_v8  ;;  %v666_v44 = vsel %vm343_vm0, %v261_v27, 0.0  ;;  %v673_v45 = vsel %vm343_vm0, %v262_v30, 0.0  ;;  %v648_v47 = vrot.slane %v647_v40, 2 }
  0x76   : > { %v636_v46 = vrot.slane %v635_v39, 1  ;;  %v654_v48 = vadd.f32 %v653_v41, %v652_v36  ;;  %v667_v49 = vrot.slane %v666_v44, 4  ;;  %v661_v52 = vadd.f32 %v660_v43, %v659_v37  ;;  %v268_v37 = vld [vmem:[%s8065_s30 + $0xd4] sm:$0xf] }
  0x77   : > { %v643_v51 = vrot.slane %v642_v42, 1  ;;  %v674_v53 = vrot.slane %v673_v45, 4  ;;  %v1280_v55 = vmul.f32 0.25, %v630_v38  ;;  %v649_v57 = vadd.f32 %v648_v47, %v647_v40 }
  0x78   : > { %v637_v56 = vadd.f32 %v636_v46, %v635_v39  ;;  %v655_v58 = vrot.slane %v654_v48, 2  ;;  %v668_v59 = vadd.f32 %v667_v49, %v666_v44  ;;  %v662_v54 = vrot.slane %v661_v52, 2 }
  0x79   : > { %v644_v60 = vadd.f32 %v643_v51, %v642_v42  ;;  %v675_v61 = vadd.f32 %v674_v53, %v673_v45  ;;  %v680_v62 = vsel %vm343_vm0, %v263_v50, 0.0  ;;  %v650_v63 = vrot.slane %v649_v57, 1  ;;  %v269_v42 = vld [vmem:[%s8065_s30 + $0xd8] sm:$0xf]  ;;  %v270_v50 = vld [vmem:[%s8065_s30 + $0xdc] sm:$0xf] }
  0x7a   : > { %v656_v0 = vadd.f32 %v655_v58, %v654_v48  ;;  %v669_v1 = vrot.slane %v668_v59, 2  ;;  %v1281_v2 = vmul.f32 0.25, %v637_v56  ;;  %v663_v3 = vadd.f32 %v662_v54, %v661_v52 }
  0x7b   : > { %v676_v4 = vrot.slane %v675_v61, 2  ;;  %v1282_v5 = vmul.f32 0.25, %v644_v60  ;;  %v681_v7 = vrot.slane %v680_v62, 4  ;;  %v651_v9 = vadd.f32 %v650_v63, %v649_v57 }
  0x7c   : > { %v657_v10 = vrot.slane %v656_v0, 1  ;;  %v670_v11 = vadd.f32 %v669_v1, %v668_v59  ;;  %v1612_v12 = vsel %vm1570_vm1, %v1281_v2, %v1280_v55  ;;  %v664_v13 = vrot.slane %v663_v3, 1 }
  0x7d   : > { %v677_v14 = vadd.f32 %v676_v4, %v675_v61  ;;  %v1613_v15 = vsel %vm1572_vm2, %v1282_v5, %v1612_v12  ;;  %v682_v17 = vadd.f32 %v681_v7, %v680_v62  ;;  %v1283_v20 = vmul.f32 0.25, %v651_v9  ;;  %v271_v62 = vld [vmem:[%s8065_s30 + $0xe0] sm:$0xf] }
  0x7e   : > { %v658_v18 = vadd.f32 %v657_v10, %v656_v0  ;;  %v671_v19 = vrot.slane %v670_v11, 1  ;;  %v687_v21 = vsel %vm343_vm0, %v264_v6, 0.0  ;;  %v665_v22 = vadd.f32 %v664_v13, %v663_v3 }
  0x7f   : > { %v678_v23 = vrot.slane %v677_v14, 1  ;;  %v683_v25 = vrot.slane %v682_v17, 2  ;;  %v688_v26 = vrot.slane %v687_v21, 4  ;;  %v1614_v28 = vsel %vm1574_vm3, %v1283_v20, %v1613_v15 }
  0x80   : > { %v672_v27 = vadd.f32 %v671_v19, %v670_v11  ;;  %v1284_v8 = vmul.f32 0.25, %v658_v18  ;;  %v694_v29 = vsel %vm343_vm0, %v265_v16, 0.0  ;;  %v1285_v31 = vmul.f32 0.25, %v665_v22  ;;  %v272_v19 = vld [vmem:[%s8065_s30 + $0xe4] sm:$0xf] }
  0x81   : > { %v679_v30 = vadd.f32 %v678_v23, %v677_v14  ;;  %v684_v33 = vadd.f32 %v683_v25, %v682_v17  ;;  %v689_v34 = vadd.f32 %v688_v26, %v687_v21  ;;  %v695_v38 = vrot.slane %v694_v29, 4 }
  0x82   : > { %v1286_v35 = vmul.f32 0.25, %v672_v27  ;;  %v1615_v36 = vsel %vm1576_vm4, %v1284_v8, %v1614_v28  ;;  %v701_v39 = vsel %vm343_vm0, %v266_v24, 0.0  ;;  %v708_v48 = vsel %vm343_vm0, %v267_v32, 0.0 }
  0x83   : > { %v1287_v40 = vmul.f32 0.25, %v679_v30  ;;  %v1616_v41 = vsel %vm1578_vm5, %v1285_v31, %v1615_v36  ;;  %v685_v43 = vrot.slane %v684_v33, 1  ;;  %v690_v44 = vrot.slane %v689_v34, 2  ;;  %v273_v31 = vld [vmem:[%s8065_s30 + $0xe8] sm:$0xf] }
  0x84   : > { %v1617_v45 = vsel %vm1580_vm6, %v1286_v35, %v1616_v41  ;;  %v696_v46 = vadd.f32 %v695_v38, %v694_v29  ;;  %v702_v47 = vrot.slane %v701_v39, 4  ;;  %v709_v53 = vrot.slane %v708_v48, 4 }
  0x85   : > { %v1618_v49 = vsel %vm1582_vm7, %v1287_v40, %v1617_v45  ;;  %v686_v51 = vadd.f32 %v685_v43, %v684_v33  ;;  %v691_v52 = vadd.f32 %v690_v44, %v689_v34  ;;  %v715_v57 = vsel %vm343_vm0, %v268_v37, 0.0  ;;  %v274_v40 = vld [vmem:[%s8065_s30 + $0xec] sm:$0xf]  ;;  %v275_v44 = vld [vmem:[%s8065_s30 + $0xf0] sm:$0xf] }
  0x86   : > { %1866 = vmatmul.f32.gmra.mxu2 %v1618_v49  ;;  %1736 = vmatmul.f32.gmra.mxu0 %v1618_v49  ;;  %v697_v55 = vrot.slane %v696_v46, 2  ;;  %v703_v56 = vadd.f32 %v702_v47, %v701_v39  ;;  %v722_v58 = vsel %vm343_vm0, %v269_v42, 0.0  ;;  %v710_v60 = vadd.f32 %v709_v53, %v708_v48 }
  0x87   : > { %1801 = vmatmul.f32.gmra.mxu1 %v1618_v49  ;;  %1931 = vmatmul.f32.gmra.mxu3 %v1618_v49  ;;  %v692_v59 = vrot.slane %v691_v52, 1  ;;  %v716_v54 = vrot.slane %v715_v57, 4  ;;  %v723_v61 = vrot.slane %v722_v58, 4  ;;  %v729_v1 = vsel %vm343_vm0, %v270_v50, 0.0 }
  0x88   : > { %v698_v63 = vadd.f32 %v697_v55, %v696_v46  ;;  %v704_v0 = vrot.slane %v703_v56, 2  ;;  %v1288_v2 = vmul.f32 0.25, %v686_v51  ;;  %v711_v4 = vrot.slane %v710_v60, 2 }
  0x89   : > { %v693_v3 = vadd.f32 %v692_v59, %v691_v52  ;;  %v717_v5 = vadd.f32 %v716_v54, %v715_v57  ;;  %v724_v6 = vadd.f32 %v723_v61, %v722_v58  ;;  %v730_v10 = vrot.slane %v729_v1, 4  ;;  %v276_v52 = vld [vmem:[%s8065_s30 + $0xf4] sm:$0xf]  ;;  %v277_v58 = vld [vmem:[%s8065_s30 + $0xf8] sm:$0xf] }
  0x8a   : > { %v699_v7 = vrot.slane %v698_v63, 1  ;;  %v705_v9 = vadd.f32 %v704_v0, %v703_v56  ;;  %v736_v11 = vsel %vm343_vm0, %v271_v62, 0.0  ;;  %v712_v12 = vadd.f32 %v711_v4, %v710_v60 }
  0x8b   : > { %v718_v13 = vrot.slane %v717_v5, 2  ;;  %v725_v14 = vrot.slane %v724_v6, 2  ;;  %v1289_v15 = vmul.f32 0.25, %v693_v3  ;;  %v731_v18 = vadd.f32 %v730_v10, %v729_v1  ;;  %v278_v1 = vld [vmem:[%s8065_s30 + $0xfc] sm:$0xf] }
  0x8c   : > { %v700_v16 = vadd.f32 %v699_v7, %v698_v63  ;;  %v706_v17 = vrot.slane %v705_v9, 1  ;;  %v737_v20 = vrot.slane %v736_v11, 4  ;;  %v713_v21 = vrot.slane %v712_v12, 1 }
  0x8d   : > { %v719_v22 = vadd.f32 %v718_v13, %v717_v5  ;;  %v726_v23 = vadd.f32 %v725_v14, %v724_v6  ;;  %v1619_v24 = vsel %vm1570_vm1, %v1289_v15, %v1288_v2  ;;  %v732_v26 = vrot.slane %v731_v18, 2  ;;  %v279_v15 = vld [vmem:[%s8065_s30 + $0x100] sm:$0xf] }
  0x8e   : > { %v707_v25 = vadd.f32 %v706_v17, %v705_v9  ;;  %v1290_v27 = vmul.f32 0.25, %v700_v16  ;;  %v738_v8 = vadd.f32 %v737_v20, %v736_v11  ;;  %v714_v28 = vadd.f32 %v713_v21, %v712_v12 }
  0x8f   : > { %v720_v29 = vrot.slane %v719_v22, 1  ;;  %v727_v30 = vrot.slane %v726_v23, 1  ;;  %v743_v32 = vsel %vm343_vm0, %v272_v19, 0.0  ;;  %v733_v33 = vadd.f32 %v732_v26, %v731_v18 }
  0x90   : > { %v1291_v34 = vmul.f32 0.25, %v707_v25  ;;  %v1620_v35 = vsel %vm1572_vm2, %v1290_v27, %v1619_v24  ;;  %v739_v36 = vrot.slane %v738_v8, 2  ;;  %v1292_v39 = vmul.f32 0.25, %v714_v28 }
  0x91   : > { %v721_v37 = vadd.f32 %v720_v29, %v719_v22  ;;  %v728_v38 = vadd.f32 %v727_v30, %v726_v23  ;;  %v744_v41 = vrot.slane %v743_v32, 4  ;;  %v734_v42 = vrot.slane %v733_v33, 1 }
  0x92   : > { %v1621_v43 = vsel %vm1574_vm3, %v1291_v34, %v1620_v35  ;;  %v740_v45 = vadd.f32 %v739_v36, %v738_v8  ;;  %v750_v46 = vsel %vm343_vm0, %v273_v31, 0.0  ;;  %v757_v56 = vsel %vm343_vm0, %v274_v40, 0.0  ;;  %v280_v34 = vld [vmem:[%s8065_s30 + $0x104] sm:$0xf] }
  0x93   : > { %v1293_v47 = vmul.f32 0.25, %v721_v37  ;;  %v1294_v48 = vmul.f32 0.25, %v728_v38  ;;  %v1622_v49 = vsel %vm1576_vm4, %v1292_v39, %v1621_v43  ;;  %v745_v50 = vadd.f32 %v744_v41, %v743_v32 }
  0x94   : > { %v735_v51 = vadd.f32 %v734_v42, %v733_v33  ;;  %v741_v53 = vrot.slane %v740_v45, 1  ;;  %v751_v55 = vrot.slane %v750_v46, 4  ;;  %v758_v60 = vrot.slane %v757_v56, 4 }
  0x95   : > { %v1623_v57 = vsel %vm1578_vm5, %v1293_v47, %v1622_v49  ;;  %v746_v59 = vrot.slane %v745_v50, 2  ;;  %v764_v54 = vsel %vm343_vm0, %v275_v44, 0.0  ;;  %v771_v5 = vsel %vm343_vm0, %v276_v52, 0.0  ;;  %v281_v47 = vld [vmem:[%s8065_s30 + $0x108] sm:$0xf] }
  0x96   : > { %v1295_v61 = vmul.f32 0.25, %v735_v51  ;;  %v1624_v62 = vsel %vm1580_vm6, %v1294_v48, %v1623_v57  ;;  %v742_v63 = vadd.f32 %v741_v53, %v740_v45  ;;  %v752_v0 = vadd.f32 %v751_v55, %v750_v46  ;;  %v282_v57 = vld [vmem:[%s8065_s30 + $0x10c] sm:$0xf] }
  0x97   : > { %v747_v2 = vadd.f32 %v746_v59, %v745_v50  ;;  %v759_v3 = vadd.f32 %v758_v60, %v757_v56  ;;  %v765_v4 = vrot.slane %v764_v54, 4  ;;  %v772_v9 = vrot.slane %v771_v5, 4 }
  0x98   : > { %v1625_v6 = vsel %vm1582_vm7, %v1295_v61, %v1624_v62  ;;  %v753_v7 = vrot.slane %v752_v0, 2  ;;  %v778_v10 = vsel %vm343_vm0, %v277_v58, 0.0  ;;  %v785_v18 = vsel %vm343_vm0, %v278_v1, 0.0  ;;  %v284_v1 = vld [vmem:[%s8065_s30 + $0x114] sm:$0xf] }
  0x99   : > { %1739 = vmatmul.f32.gmra.mxu0 %v1625_v6  ;;  %1804 = vmatmul.f32.gmra.mxu1 %v1625_v6  ;;  %v748_v11 = vrot.slane %v747_v2, 1  ;;  %v760_v12 = vrot.slane %v759_v3, 2  ;;  %v766_v13 = vadd.f32 %v765_v4, %v764_v54  ;;  %v779_v14 = vrot.slane %v778_v10, 4 }
  0x9a   : > { %1869 = vmatmul.f32.gmra.mxu2 %v1625_v6  ;;  %1934 = vmatmul.f32.gmra.mxu3 %v1625_v6  ;;  %v754_v16 = vadd.f32 %v753_v7, %v752_v0  ;;  %v773_v17 = vadd.f32 %v772_v9, %v771_v5  ;;  %v1296_v19 = vmul.f32 0.25, %v742_v63  ;;  %v786_v26 = vrot.slane %v785_v18, 4  ;;  %v283_v0 = vld [vmem:[%s8065_s30 + $0x110] sm:$0xf] }
  0x9b   : > { %v749_v20 = vadd.f32 %v748_v11, %v747_v2  ;;  %v761_v21 = vadd.f32 %v760_v12, %v759_v3  ;;  %v767_v22 = vrot.slane %v766_v13, 2  ;;  %v780_v23 = vadd.f32 %v779_v14, %v778_v10  ;;  %v285_v10 = vld [vmem:[%s8065_s30 + $0x118] sm:$0xf]  ;;  %v286_v11 = vld [vmem:[%s8065_s30 + $0x11c] sm:$0xf] }
  0x9c   : > { %v755_v24 = vrot.slane %v754_v16, 1  ;;  %v774_v25 = vrot.slane %v773_v17, 2  ;;  %v792_v27 = vsel %vm343_vm0, %v279_v15, 0.0  ;;  %v787_v33 = vadd.f32 %v786_v26, %v785_v18 }
  0x9d   : > { %v762_v8 = vrot.slane %v761_v21, 1  ;;  %v768_v28 = vadd.f32 %v767_v22, %v766_v13  ;;  %v781_v29 = vrot.slane %v780_v23, 2  ;;  %v1297_v30 = vmul.f32 0.25, %v749_v20 }
  0x9e   : > { %v756_v31 = vadd.f32 %v755_v24, %v754_v16  ;;  %v775_v32 = vadd.f32 %v774_v25, %v773_v17  ;;  %v793_v35 = vrot.slane %v792_v27, 4  ;;  %v788_v41 = vrot.slane %v787_v33, 2 }
  0x9f   : > { %v763_v36 = vadd.f32 %v762_v8, %v761_v21  ;;  %v769_v37 = vrot.slane %v768_v28, 1  ;;  %v782_v38 = vadd.f32 %v781_v29, %v780_v23  ;;  %v1626_v39 = vsel %vm1570_vm1, %v1297_v30, %v1296_v19  ;;  %v287_v30 = vld [vmem:[%s8065_s30 + $0x120] sm:$0xf] }
  0xa0   : > { %v776_v40 = vrot.slane %v775_v32, 1  ;;  %v1298_v42 = vmul.f32 0.25, %v756_v31  ;;  %v794_v43 = vadd.f32 %v793_v35, %v792_v27  ;;  %v799_v48 = vsel %vm343_vm0, %v280_v34, 0.0 }
  0xa1   : > { %v770_v44 = vadd.f32 %v769_v37, %v768_v28  ;;  %v783_v45 = vrot.slane %v782_v38, 1  ;;  %v1299_v46 = vmul.f32 0.25, %v763_v36  ;;  %v789_v50 = vadd.f32 %v788_v41, %v787_v33 }
  0xa2   : > { %v777_v49 = vadd.f32 %v776_v40, %v775_v32  ;;  %v1627_v51 = vsel %vm1572_vm2, %v1298_v42, %v1626_v39  ;;  %v795_v52 = vrot.slane %v794_v43, 2  ;;  %v800_v58 = vrot.slane %v799_v48, 4 }
  0xa3   : > { %v784_v53 = vadd.f32 %v783_v45, %v782_v38  ;;  %v1300_v55 = vmul.f32 0.25, %v770_v44  ;;  %v1628_v56 = vsel %vm1574_vm3, %v1299_v46, %v1627_v51  ;;  %v790_v59 = vrot.slane %v789_v50, 1 }
  0xa4   : > { %v1301_v60 = vmul.f32 0.25, %v777_v49  ;;  %v796_v54 = vadd.f32 %v795_v52, %v794_v43  ;;  %v806_v61 = vsel %vm343_vm0, %v281_v47, 0.0  ;;  %v801_v2 = vadd.f32 %v800_v58, %v799_v48 }
  0xa5   : > { %v1302_v62 = vmul.f32 0.25, %v784_v53  ;;  %v1629_v63 = vsel %vm1576_vm4, %v1300_v55, %v1628_v56  ;;  %v807_v3 = vrot.slane %v806_v61, 4  ;;  %v791_v4 = vadd.f32 %v790_v59, %v789_v50  ;;  %v288_v50 = vld [vmem:[%s8065_s30 + $0x124] sm:$0xf] }
  0xa6   : > { %v1630_v5 = vsel %vm1578_vm5, %v1301_v60, %v1629_v63  ;;  %v797_v6 = vrot.slane %v796_v54, 1  ;;  %v813_v7 = vsel %vm343_vm0, %v282_v57, 0.0  ;;  %v802_v12 = vrot.slane %v801_v2, 2  ;;  %v289_v60 = vld [vmem:[%s8065_s30 + $0x128] sm:$0xf] }
  0xa7   : > { %v1631_v9 = vsel %vm1580_vm6, %v1302_v62, %v1630_v5  ;;  %v808_v13 = vadd.f32 %v807_v3, %v806_v61  ;;  %v814_v14 = vrot.slane %v813_v7, 4  ;;  %v1303_v15 = vmul.f32 0.25, %v791_v4  ;;  %v290_v4 = vld [vmem:[%s8065_s30 + $0x12c] sm:$0xf] }
  0xa8   : > { %v798_v16 = vadd.f32 %v797_v6, %v796_v54  ;;  %v820_v17 = vsel %vm343_vm0, %v283_v0, 0.0  ;;  %v827_v18 = vsel %vm343_vm0, %v284_v1, 0.0  ;;  %v803_v19 = vadd.f32 %v802_v12, %v801_v2 }
  0xa9   : > { %v809_v20 = vrot.slane %v808_v13, 2  ;;  %v815_v21 = vadd.f32 %v814_v14, %v813_v7  ;;  %v821_v22 = vrot.slane %v820_v17, 4  ;;  %v1632_v23 = vsel %vm1582_vm7, %v1303_v15, %v1631_v9  ;;  %v291_v14 = vld [vmem:[%s8065_s30 + $0x130] sm:$0xf] }
  0xaa   : > { %v828_v24 = vrot.slane %v827_v18, 4  ;;  %v834_v25 = vsel %vm343_vm0, %v285_v10, 0.0  ;;  %v841_v26 = vsel %vm343_vm0, %v286_v11, 0.0  ;;  %1807 = vmatmul.f32.gmra.mxu1 %v1632_v23  ;;  %1872 = vmatmul.f32.gmra.mxu2 %v1632_v23  ;;  %v804_v27 = vrot.slane %v803_v19, 1 }
  0xab   : > { %v810_v8 = vadd.f32 %v809_v20, %v808_v13  ;;  %v816_v28 = vrot.slane %v815_v21, 2  ;;  %v822_v29 = vadd.f32 %v821_v22, %v820_v17  ;;  %1937 = vmatmul.f32.gmra.mxu3 %v1632_v23  ;;  %1742 = vmatmul.f32.gmra.mxu0 %v1632_v23  ;;  %v835_v32 = vrot.slane %v834_v25, 4  ;;  %v292_v17 = vld [vmem:[%s8065_s30 + $0x134] sm:$0xf] }
  0xac   : > { %v829_v31 = vadd.f32 %v828_v24, %v827_v18  ;;  %v842_v33 = vrot.slane %v841_v26, 4  ;;  %v1304_v34 = vmul.f32 0.25, %v798_v16  ;;  %v805_v35 = vadd.f32 %v804_v27, %v803_v19  ;;  %v293_v24 = vld [vmem:[%s8065_s30 + $0x138] sm:$0xf] }
  0xad   : > { %v811_v36 = vrot.slane %v810_v8, 1  ;;  %v817_v37 = vadd.f32 %v816_v28, %v815_v21  ;;  %v823_v38 = vrot.slane %v822_v29, 2  ;;  %v836_v40 = vadd.f32 %v835_v32, %v834_v25 }
  0xae   : > { %v830_v39 = vrot.slane %v829_v31, 2  ;;  %v843_v41 = vadd.f32 %v842_v33, %v841_v26  ;;  %v848_v42 = vsel %vm343_vm0, %v287_v30, 0.0  ;;  %v1305_v46 = vmul.f32 0.25, %v805_v35  ;;  %v294_v26 = vld [vmem:[%s8065_s30 + $0x13c] sm:$0xf] }
  0xaf   : > { %v812_v43 = vadd.f32 %v811_v36, %v810_v8  ;;  %v818_v44 = vrot.slane %v817_v37, 1  ;;  %v824_v45 = vadd.f32 %v823_v38, %v822_v29  ;;  %v837_v48 = vrot.slane %v836_v40, 2 }
  0xb0   : > { %v831_v47 = vadd.f32 %v830_v39, %v829_v31  ;;  %v844_v49 = vrot.slane %v843_v41, 2  ;;  %v849_v51 = vrot.slane %v848_v42, 4  ;;  %v1633_v56 = vsel %vm1570_vm1, %v1305_v46, %v1304_v34  ;;  %v295_v46 = vld [vmem:[%s8065_s30 + $0x140] sm:$0xf] }
  0xb1   : > { %v819_v52 = vadd.f32 %v818_v44, %v817_v37  ;;  %v825_v53 = vrot.slane %v824_v45, 1  ;;  %v1306_v55 = vmul.f32 0.25, %v812_v43  ;;  %v838_v58 = vadd.f32 %v837_v48, %v836_v40 }
  0xb2   : > { %v832_v57 = vrot.slane %v831_v47, 1  ;;  %v845_v59 = vadd.f32 %v844_v49, %v843_v41  ;;  %v850_v54 = vadd.f32 %v849_v51, %v848_v42  ;;  %v855_v0 = vsel %vm343_vm0, %v288_v50, 0.0 }
  0xb3   : > { %v826_v61 = vadd.f32 %v825_v53, %v824_v45  ;;  %v1307_v62 = vmul.f32 0.25, %v819_v52  ;;  %v1634_v63 = vsel %vm1572_vm2, %v1306_v55, %v1633_v56  ;;  %v839_v2 = vrot.slane %v838_v58, 1 }
  0xb4   : > { %v833_v1 = vadd.f32 %v832_v57, %v831_v47  ;;  %v846_v3 = vrot.slane %v845_v59, 1  ;;  %v851_v5 = vrot.slane %v850_v54, 2  ;;  %v856_v9 = vrot.slane %v855_v0, 4 }
  0xb5   : > { %v1308_v6 = vmul.f32 0.25, %v826_v61  ;;  %v1635_v7 = vsel %vm1574_vm3, %v1307_v62, %v1634_v63  ;;  %v862_v10 = vsel %vm343_vm0, %v289_v60, 0.0  ;;  %v840_v11 = vadd.f32 %v839_v2, %v838_v58  ;;  %v296_v2 = vld [vmem:[%s8065_s30 + $0x144] sm:$0xf] }
  0xb6   : > { %v847_v12 = vadd.f32 %v846_v3, %v845_v59  ;;  %v1309_v13 = vmul.f32 0.25, %v833_v1  ;;  %v852_v15 = vadd.f32 %v851_v5, %v850_v54  ;;  %v857_v18 = vadd.f32 %v856_v9, %v855_v0 }
  0xb7   : > { %v1636_v16 = vsel %vm1576_vm4, %v1308_v6, %v1635_v7  ;;  %v863_v19 = vrot.slane %v862_v10, 4  ;;  %v869_v20 = vsel %vm343_vm0, %v290_v4, 0.0  ;;  %v1310_v21 = vmul.f32 0.25, %v840_v11 }
  0xb8   : > { %v1311_v22 = vmul.f32 0.25, %v847_v12  ;;  %v1637_v23 = vsel %vm1578_vm5, %v1309_v13, %v1636_v16  ;;  %v853_v25 = vrot.slane %v852_v15, 1  ;;  %v858_v27 = vrot.slane %v857_v18, 2  ;;  %v297_v12 = vld [vmem:[%s8065_s30 + $0x148] sm:$0xf] }
  0xb9   : > { %v864_v8 = vadd.f32 %v863_v19, %v862_v10  ;;  %v870_v28 = vrot.slane %v869_v20, 4  ;;  %v876_v29 = vsel %vm343_vm0, %v291_v14, 0.0  ;;  %v1638_v30 = vsel %vm1580_vm6, %v1310_v21, %v1637_v23  ;;  %v298_v21 = vld [vmem:[%s8065_s30 + $0x14c] sm:$0xf] }
  0xba   : > { %v854_v31 = vadd.f32 %v853_v25, %v852_v15  ;;  %v877_v32 = vrot.slane %v876_v29, 4  ;;  %v883_v33 = vsel %vm343_vm0, %v292_v17, 0.0  ;;  %v1639_v34 = vsel %vm1582_vm7, %v1311_v22, %v1638_v30 }
  0xbb   : > { %v859_v35 = vadd.f32 %v858_v27, %v857_v18  ;;  %v865_v36 = vrot.slane %v864_v8, 2  ;;  %v871_v37 = vadd.f32 %v870_v28, %v869_v20  ;;  %1875 = vmatmul.f32.gmra.mxu2 %v1639_v34  ;;  %1745 = vmatmul.f32.gmra.mxu0 %v1639_v34  ;;  %v884_v39 = vrot.slane %v883_v33, 4 }
  0xbc   : > { %v878_v38 = vadd.f32 %v877_v32, %v876_v29  ;;  %v890_v40 = vsel %vm343_vm0, %v293_v24, 0.0  ;;  %v897_v41 = vsel %vm343_vm0, %v294_v26, 0.0  ;;  %1810 = vmatmul.f32.gmra.mxu1 %v1639_v34  ;;  %1940 = vmatmul.f32.gmra.mxu3 %v1639_v34  ;;  %v1312_v50 = vmul.f32 0.25, %v854_v31  ;;  %v299_v29 = vld [vmem:[%s8065_s30 + $0x150] sm:$0xf] }
  0xbd   : > { %v860_v42 = vrot.slane %v859_v35, 1  ;;  %v866_v43 = vadd.f32 %v865_v36, %v864_v8  ;;  %v872_v44 = vrot.slane %v871_v37, 2  ;;  %v891_v45 = vrot.slane %v890_v40, 4  ;;  %v300_v32 = vld [vmem:[%s8065_s30 + $0x154] sm:$0xf] }
  0xbe   : > { %v879_v47 = vrot.slane %v878_v38, 2  ;;  %v885_v48 = vadd.f32 %v884_v39, %v883_v33  ;;  %v898_v49 = vrot.slane %v897_v41, 4  ;;  %v904_v59 = vsel %vm343_vm0, %v295_v46, 0.0  ;;  %v302_v46 = vld [vmem:[%s8065_s30 + $0x15c] sm:$0xf] }
  0xbf   : > { %v861_v51 = vadd.f32 %v860_v42, %v859_v35  ;;  %v867_v52 = vrot.slane %v866_v43, 1  ;;  %v873_v53 = vadd.f32 %v872_v44, %v871_v37  ;;  %v892_v55 = vadd.f32 %v891_v45, %v890_v40 }
  0xc0   : > { %v880_v56 = vadd.f32 %v879_v47, %v878_v38  ;;  %v886_v57 = vrot.slane %v885_v48, 2  ;;  %v899_v58 = vadd.f32 %v898_v49, %v897_v41  ;;  %v905_v3 = vrot.slane %v904_v59, 4  ;;  %v301_v38 = vld [vmem:[%s8065_s30 + $0x158] sm:$0xf] }
  0xc1   : > { %v868_v60 = vadd.f32 %v867_v52, %v866_v43  ;;  %v874_v54 = vrot.slane %v873_v53, 1  ;;  %v893_v61 = vrot.slane %v892_v55, 2  ;;  %v1313_v62 = vmul.f32 0.25, %v861_v51 }
  0xc2   : > { %v881_v63 = vrot.slane %v880_v56, 1  ;;  %v887_v0 = vadd.f32 %v886_v57, %v885_v48  ;;  %v900_v1 = vrot.slane %v899_v58, 2  ;;  %v906_v13 = vadd.f32 %v905_v3, %v904_v59  ;;  %v303_v59 = vld [vmem:[%s8065_s30 + $0x160] sm:$0xf] }
  0xc3   : > { %v875_v4 = vadd.f32 %v874_v54, %v873_v53  ;;  %v894_v5 = vadd.f32 %v893_v61, %v892_v55  ;;  %v1314_v6 = vmul.f32 0.25, %v868_v60  ;;  %v1640_v7 = vsel %vm1570_vm1, %v1313_v62, %v1312_v50 }
  0xc4   : > { %v882_v9 = vadd.f32 %v881_v63, %v880_v56  ;;  %v888_v10 = vrot.slane %v887_v0, 1  ;;  %v901_v11 = vadd.f32 %v900_v1, %v899_v58  ;;  %v911_v17 = vsel %vm343_vm0, %v296_v2, 0.0 }
  0xc5   : > { %v895_v14 = vrot.slane %v894_v5, 1  ;;  %v1315_v15 = vmul.f32 0.25, %v875_v4  ;;  %v1641_v16 = vsel %vm1572_vm2, %v1314_v6, %v1640_v7  ;;  %v907_v22 = vrot.slane %v906_v13, 2 }
  0xc6   : > { %v889_v18 = vadd.f32 %v888_v10, %v887_v0  ;;  %v902_v19 = vrot.slane %v901_v11, 1  ;;  %v1316_v20 = vmul.f32 0.25, %v882_v9  ;;  %v912_v25 = vrot.slane %v911_v17, 4 }
  0xc7   : > { %v896_v23 = vadd.f32 %v895_v14, %v894_v5  ;;  %v1642_v24 = vsel %vm1574_vm3, %v1315_v15, %v1641_v16  ;;  %v918_v26 = vsel %vm343_vm0, %v297_v12, 0.0  ;;  %v908_v30 = vadd.f32 %v907_v22, %v906_v13 }
  0xc8   : > { %v903_v27 = vadd.f32 %v902_v19, %v901_v11  ;;  %v1317_v8 = vmul.f32 0.25, %v889_v18  ;;  %v1643_v28 = vsel %vm1576_vm4, %v1316_v20, %v1642_v24  ;;  %v913_v33 = vadd.f32 %v912_v25, %v911_v17  ;;  %v304_v20 = vld [vmem:[%s8065_s30 + $0x164] sm:$0xf] }
  0xc9   : > { %v1318_v31 = vmul.f32 0.25, %v896_v23  ;;  %v919_v34 = vrot.slane %v918_v26, 4  ;;  %v925_v35 = vsel %vm343_vm0, %v298_v21, 0.0  ;;  %v909_v39 = vrot.slane %v908_v30, 1 }
  0xca   : > { %v1319_v36 = vmul.f32 0.25, %v903_v27  ;;  %v1644_v37 = vsel %vm1578_vm5, %v1317_v8, %v1643_v28  ;;  %v926_v40 = vrot.slane %v925_v35, 4  ;;  %v914_v42 = vrot.slane %v913_v33, 2  ;;  %v305_v28 = vld [vmem:[%s8065_s30 + $0x168] sm:$0xf] }
  0xcb   : > { %v1645_v41 = vsel %vm1580_vm6, %v1318_v31, %v1644_v37  ;;  %v920_v43 = vadd.f32 %v919_v34, %v918_v26  ;;  %v932_v44 = vsel %vm343_vm0, %v299_v29, 0.0  ;;  %v910_v47 = vadd.f32 %v909_v39, %v908_v30  ;;  %v306_v37 = vld [vmem:[%s8065_s30 + $0x16c] sm:$0xf]  ;;  %v307_v39 = vld [vmem:[%s8065_s30 + $0x170] sm:$0xf] }
  0xcc   : > { %v1646_v45 = vsel %vm1582_vm7, %v1319_v36, %v1645_v41  ;;  %v927_v48 = vadd.f32 %v926_v40, %v925_v35  ;;  %v933_v49 = vrot.slane %v932_v44, 4  ;;  %v915_v50 = vadd.f32 %v914_v42, %v913_v33 }
  0xcd   : > { %1748 = vmatmul.f32.gmra.mxu0 %v1646_v45  ;;  %1813 = vmatmul.f32.gmra.mxu1 %v1646_v45  ;;  %v921_v51 = vrot.slane %v920_v43, 2  ;;  %v939_v52 = vsel %vm343_vm0, %v300_v32, 0.0  ;;  %v946_v53 = vsel %vm343_vm0, %v301_v38, 0.0  ;;  %v953_v61 = vsel %vm343_vm0, %v302_v46, 0.0 }
  0xce   : > { %1878 = vmatmul.f32.gmra.mxu2 %v1646_v45  ;;  %1943 = vmatmul.f32.gmra.mxu3 %v1646_v45  ;;  %v928_v55 = vrot.slane %v927_v48, 2  ;;  %v934_v56 = vadd.f32 %v933_v49, %v932_v44  ;;  %v940_v57 = vrot.slane %v939_v52, 4  ;;  %v947_v58 = vrot.slane %v946_v53, 4 }
  0xcf   : > { %v916_v60 = vrot.slane %v915_v50, 1  ;;  %v922_v54 = vadd.f32 %v921_v51, %v920_v43  ;;  %v1320_v62 = vmul.f32 0.25, %v910_v47  ;;  %v954_v5 = vrot.slane %v953_v61, 4 }
  0xd0   : > { %v929_v63 = vadd.f32 %v928_v55, %v927_v48  ;;  %v935_v0 = vrot.slane %v934_v56, 2  ;;  %v941_v1 = vadd.f32 %v940_v57, %v939_v52  ;;  %v948_v2 = vadd.f32 %v947_v58, %v946_v53  ;;  %v308_v48 = vld [vmem:[%s8065_s30 + $0x174] sm:$0xf]  ;;  %v309_v53 = vld [vmem:[%s8065_s30 + $0x178] sm:$0xf] }
  0xd1   : > { %v917_v3 = vadd.f32 %v916_v60, %v915_v50  ;;  %v923_v4 = vrot.slane %v922_v54, 1  ;;  %v960_v6 = vsel %vm343_vm0, %v303_v59, 0.0  ;;  %v955_v13 = vadd.f32 %v954_v5, %v953_v61  ;;  %v310_v61 = vld [vmem:[%s8065_s30 + $0x17c] sm:$0xf] }
  0xd2   : > { %v930_v7 = vrot.slane %v929_v63, 1  ;;  %v936_v9 = vadd.f32 %v935_v0, %v934_v56  ;;  %v942_v10 = vrot.slane %v941_v1, 2  ;;  %v949_v11 = vrot.slane %v948_v2, 2 }
  0xd3   : > { %v924_v12 = vadd.f32 %v923_v4, %v922_v54  ;;  %v1321_v14 = vmul.f32 0.25, %v917_v3  ;;  %v961_v15 = vrot.slane %v960_v6, 4  ;;  %v956_v21 = vrot.slane %v955_v13, 2 }
  0xd4   : > { %v931_v16 = vadd.f32 %v930_v7, %v929_v63  ;;  %v937_v17 = vrot.slane %v936_v9, 1  ;;  %v943_v18 = vadd.f32 %v942_v10, %v941_v1  ;;  %v950_v19 = vadd.f32 %v949_v11, %v948_v2  ;;  %v8494_v11 = vld [vmem:[%s14597_s2] sm:$0xf] }
  0xd5   : > { %v1322_v22 = vmul.f32 0.25, %v924_v12  ;;  %v1647_v23 = vsel %vm1570_vm1, %v1321_v14, %v1320_v62  ;;  %v962_v24 = vadd.f32 %v961_v15, %v960_v6  ;;  %v957_v29 = vadd.f32 %v956_v21, %v955_v13 }
  0xd6   : > { %v938_v25 = vadd.f32 %v937_v17, %v936_v9  ;;  %v944_v26 = vrot.slane %v943_v18, 1  ;;  %v951_v27 = vrot.slane %v950_v19, 1  ;;  %v1323_v8 = vmul.f32 0.25, %v931_v16 }
  0xd7   : > { %v1648_v30 = vsel %vm1572_vm2, %v1322_v22, %v1647_v23  ;;  %v963_v31 = vrot.slane %v962_v24, 2  ;;  %v967_v32 = vsel %vm343_vm0, %v304_v20, 0.0  ;;  %v958_v38 = vrot.slane %v957_v29, 1  ;;  %v1722_v20 = vpop.f32.mrf.mxu0 }
  0xd8   : > { %v945_v33 = vadd.f32 %v944_v26, %v943_v18  ;;  %v952_v34 = vadd.f32 %v951_v27, %v950_v19  ;;  %v1324_v35 = vmul.f32 0.25, %v938_v25  ;;  %v1649_v36 = vsel %vm1574_vm3, %v1323_v8, %v1648_v30 }
  0xd9   : > { %v964_v40 = vadd.f32 %v963_v31, %v962_v24  ;;  %v968_v41 = vrot.slane %v967_v32, 4  ;;  %v974_v42 = vsel %vm343_vm0, %v305_v28, 0.0  ;;  %v959_v47 = vadd.f32 %v958_v38, %v957_v29 }
  0xda   : > { %v1325_v43 = vmul.f32 0.25, %v945_v33  ;;  %v1326_v44 = vmul.f32 0.25, %v952_v34  ;;  %v1650_v45 = vsel %vm1576_vm4, %v1324_v35, %v1649_v36  ;;  %v975_v46 = vrot.slane %v974_v42, 4  ;;  %v1787_v36 = vpop.f32.mrf.mxu1 }
  0xdb   : > { %v965_v49 = vrot.slane %v964_v40, 1  ;;  %v969_v50 = vadd.f32 %v968_v41, %v967_v32  ;;  %v981_v51 = vsel %vm343_vm0, %v306_v37, 0.0  ;;  %v988_v57 = vsel %vm343_vm0, %v307_v39, 0.0  ;;  %v311_v37 = vld [vmem:[%s8065_s30 + $0x180] sm:$0xf] }
  0xdc   : > { %v1651_v52 = vsel %vm1578_vm5, %v1325_v43, %v1650_v45  ;;  %v976_v55 = vadd.f32 %v975_v46, %v974_v42  ;;  %v982_v56 = vrot.slane %v981_v51, 4  ;;  %v1327_v58 = vmul.f32 0.25, %v959_v47  ;;  %v312_v46 = vld [vmem:[%s8065_s30 + $0x184] sm:$0xf]  ;;  %v313_v47 = vld [vmem:[%s8065_s30 + $0x188] sm:$0xf] }
  0xdd   : > { %v1652_v59 = vsel %vm1580_vm6, %v1326_v44, %v1651_v52  ;;  %v966_v60 = vadd.f32 %v965_v49, %v964_v40  ;;  %v970_v54 = vrot.slane %v969_v50, 2  ;;  %v989_v0 = vrot.slane %v988_v57, 4 }
  0xde   : > { %v977_v62 = vrot.slane %v976_v55, 2  ;;  %v983_v63 = vadd.f32 %v982_v56, %v981_v51  ;;  %v995_v1 = vsel %vm343_vm0, %v308_v48, 0.0  ;;  %v1653_v2 = vsel %vm1582_vm7, %v1327_v58, %v1652_v59  ;;  %v314_v56 = vld [vmem:[%s8065_s30 + $0x18c] sm:$0xf] }
  0xdf   : > { %v971_v3 = vadd.f32 %v970_v54, %v969_v50  ;;  %v996_v4 = vrot.slane %v995_v1, 4  ;;  %v1002_v5 = vsel %vm343_vm0, %v309_v53, 0.0  ;;  %1816 = vmatmul.f32.gmra.mxu1 %v1653_v2  ;;  %1881 = vmatmul.f32.gmra.mxu2 %v1653_v2  ;;  %v990_v9 = vadd.f32 %v989_v0, %v988_v57  ;;  %v316_v0 = vld [vmem:[%s8065_s30 + $0x194] sm:$0xf] }
  0xe0   : > { %v978_v6 = vadd.f32 %v977_v62, %v976_v55  ;;  %v984_v7 = vrot.slane %v983_v63, 2  ;;  %v1003_v10 = vrot.slane %v1002_v5, 4  ;;  %1946 = vmatmul.f32.gmra.mxu3 %v1653_v2  ;;  %1751 = vmatmul.f32.gmra.mxu0 %v1653_v2  ;;  %v1009_v14 = vsel %vm343_vm0, %v310_v61, 0.0 }
  0xe1   : > { %v972_v12 = vrot.slane %v971_v3, 1  ;;  %v997_v13 = vadd.f32 %v996_v4, %v995_v1  ;;  %v1328_v15 = vmul.f32 0.25, %v966_v60  ;;  %v991_v18 = vrot.slane %v990_v9, 2 }
  0xe2   : > { %v979_v16 = vrot.slane %v978_v6, 1  ;;  %v985_v17 = vadd.f32 %v984_v7, %v983_v63  ;;  %v1004_v19 = vadd.f32 %v1003_v10, %v1002_v5  ;;  %v1010_v23 = vrot.slane %v1009_v14, 4  ;;  %v315_v63 = vld [vmem:[%s8065_s30 + $0x190] sm:$0xf] }
  0xe3   : > { %v973_v21 = vadd.f32 %v972_v12, %v971_v3  ;;  %v998_v22 = vrot.slane %v997_v13, 2  ;;  %v8498_v24 = vperm.slane %v8494_v11, 0  ;;  %v992_v27 = vadd.f32 %v991_v18, %v990_v9  ;;  %v317_v9 = vld [vmem:[%s8065_s30 + $0x198] sm:$0xf]  ;;  %v318_v18 = vld [vmem:[%s8065_s30 + $0x19c] sm:$0xf] }
  0xe4   : > { %v980_v25 = vadd.f32 %v979_v16, %v978_v6  ;;  %v986_v26 = vrot.slane %v985_v17, 1  ;;  %v1005_v8 = vrot.slane %v1004_v19, 2  ;;  %v1011_v29 = vadd.f32 %v1010_v23, %v1009_v14 }
  0xe5   : > { %v999_v28 = vadd.f32 %v998_v22, %v997_v13  ;;  %v1329_v30 = vmul.f32 0.25, %v973_v21  ;;  %v8501_v31 = vadd.f32 %v1722_v20, %v8498_v24  ;;  %v993_v33 = vrot.slane %v992_v27, 1 }
  0xe6   : > { %v987_v32 = vadd.f32 %v986_v26, %v985_v17  ;;  %v1006_v34 = vadd.f32 %v1005_v8, %v1004_v19  ;;  %v1330_v35 = vmul.f32 0.25, %v980_v25  ;;  %v1012_v39 = vrot.slane %v1011_v29, 2 }
  0xe7   : > { %v1000_v38 = vrot.slane %v999_v28, 1  ;;  %v1654_v40 = vsel %vm1570_vm1, %v1329_v30, %v1328_v15  ;;  %v8506_v41 = vperm.slane %v8494_v11, 1  ;;  %1965 = vmax.xlane.f32.xlu0 %v8501_v31  ;;  %v994_v42 = vadd.f32 %v993_v33, %v992_v27 }
  0xe8   : > { %v1007_v43 = vrot.slane %v1006_v34, 1  ;;  %v1331_v44 = vmul.f32 0.25, %v987_v32  ;;  %v1655_v45 = vsel %vm1572_vm2, %v1330_v35, %v1654_v40  ;;  %v1013_v49 = vadd.f32 %v1012_v39, %v1011_v29 }
  0xe9   : > { %v1001_v48 = vadd.f32 %v1000_v38, %v999_v28  ;;  %v8513_v50 = vadd.f32 %v1787_v36, %v8506_v41  ;;  %v1016_v51 = vsel %vm343_vm0, %v311_v37, 0.0  ;;  %v1332_v53 = vmul.f32 0.25, %v994_v42 }
  0xea   : > { %v1008_v52 = vadd.f32 %v1007_v43, %v1006_v34  ;;  %v1656_v55 = vsel %vm1574_vm3, %v1331_v44, %v1655_v45  ;;  %v1017_v57 = vrot.slane %v1016_v51, 4  ;;  %v1014_v58 = vrot.slane %v1013_v49, 1 }
  0xeb   : > { %v1333_v59 = vmul.f32 0.25, %v1001_v48  ;;  %v1023_v60 = vsel %vm343_vm0, %v312_v46, 0.0  ;;  %v1030_v54 = vsel %vm343_vm0, %v313_v47, 0.0  ;;  %2957 = vmax.xlane.f32.xlu2 %v8513_v50  ;;  %v1657_v62 = vsel %vm1576_vm4, %v1332_v53, %v1656_v55  ;;  %v1852_v55 = vpop.f32.mrf.mxu2 }
  0xec   : > { %v1334_v61 = vmul.f32 0.25, %v1008_v52  ;;  %v1018_v1 = vadd.f32 %v1017_v57, %v1016_v51  ;;  %v1024_v2 = vrot.slane %v1023_v60, 4  ;;  %v1015_v3 = vadd.f32 %v1014_v58, %v1013_v49 }
  0xed   : > { %v1658_v4 = vsel %vm1578_vm5, %v1333_v59, %v1657_v62  ;;  %v1031_v5 = vrot.slane %v1030_v54, 4  ;;  %v1037_v6 = vsel %vm343_vm0, %v314_v56, 0.0  ;;  %v1044_v16 = vsel %vm343_vm0, %v315_v63, 0.0  ;;  %v1725_v63 = vpop.f32.mrf.mxu0 }
  0xee   : > { %v1659_v7 = vsel %vm1580_vm6, %v1334_v61, %v1658_v4  ;;  %v1019_v10 = vrot.slane %v1018_v1, 2  ;;  %v1025_v12 = vadd.f32 %v1024_v2, %v1023_v60  ;;  %v1038_v13 = vrot.slane %v1037_v6, 4  ;;  %v319_v4 = vld [vmem:[%s8065_s30 + $0x1a0] sm:$0xf] }
  0xef   : > { %v1335_v14 = vmul.f32 0.25, %v1015_v3  ;;  %v1032_v15 = vadd.f32 %v1031_v5, %v1030_v54  ;;  %v1051_v17 = vsel %vm343_vm0, %v316_v0, 0.0  ;;  %v1045_v22 = vrot.slane %v1044_v16, 4 }
  0xf0   : > { %v1020_v19 = vadd.f32 %v1019_v10, %v1018_v1  ;;  %v1026_v20 = vrot.slane %v1025_v12, 2  ;;  %v1039_v21 = vadd.f32 %v1038_v13, %v1037_v6  ;;  %v1052_v26 = vrot.slane %v1051_v17, 4  ;;  %v1790_v10 = vpop.f32.mrf.mxu1  ;;  %v321_v13 = vld [vmem:[%s8065_s30 + $0x1a8] sm:$0xf] }
  0xf1   : > { %v1660_v23 = vsel %vm1582_vm7, %v1335_v14, %v1659_v7  ;;  %v1033_v25 = vrot.slane %v1032_v15, 2  ;;  %v1058_v27 = vsel %vm343_vm0, %v317_v9, 0.0  ;;  %v1046_v30 = vadd.f32 %v1045_v22, %v1044_v16 }
  0xf2   : > { %1884 = vmatmul.f32.gmra.mxu2 %v1660_v23  ;;  %1754 = vmatmul.f32.gmra.mxu0 %v1660_v23  ;;  %v1021_v8 = vrot.slane %v1020_v19, 1  ;;  %v1027_v28 = vadd.f32 %v1026_v20, %v1025_v12  ;;  %v1040_v29 = vrot.slane %v1039_v21, 2  ;;  %v1053_v33 = vadd.f32 %v1052_v26, %v1051_v17  ;;  %v320_v12 = vld [vmem:[%s8065_s30 + $0x1a4] sm:$0xf]  ;;  %v323_v26 = vld [vmem:[%s8065_s30 + $0x1b0] sm:$0xf] }
  0xf3   : > { %1819 = vmatmul.f32.gmra.mxu1 %v1660_v23  ;;  %1949 = vmatmul.f32.gmra.mxu3 %v1660_v23  ;;  %v1034_v32 = vadd.f32 %v1033_v25, %v1032_v15  ;;  %v1059_v34 = vrot.slane %v1058_v27, 4  ;;  %v1065_v35 = vsel %vm343_vm0, %v318_v18, 0.0  ;;  %v1047_v39 = vrot.slane %v1046_v30, 2  ;;  %v1917_v18 = vpop.f32.mrf.mxu3  ;;  %v322_v23 = vld [vmem:[%s8065_s30 + $0x1ac] sm:$0xf] }
  0xf4   : > { %v1022_v36 = vadd.f32 %v1021_v8, %v1020_v19  ;;  %v1028_v37 = vrot.slane %v1027_v28, 1  ;;  %v1041_v38 = vadd.f32 %v1040_v29, %v1039_v21  ;;  %v1054_v42 = vrot.slane %v1053_v33, 2 }
  0xf5   : > { %v1035_v40 = vrot.slane %v1034_v32, 1  ;;  %v1060_v43 = vadd.f32 %v1059_v34, %v1058_v27  ;;  %v1066_v44 = vrot.slane %v1065_v35, 4  ;;  %v1048_v47 = vadd.f32 %v1047_v39, %v1046_v30  ;;  %v325_v34 = vld [vmem:[%s8065_s30 + $0x1b8] sm:$0xf] }
  0xf6   : > { %v1029_v45 = vadd.f32 %v1028_v37, %v1027_v28  ;;  %v1042_v46 = vrot.slane %v1041_v38, 1  ;;  %v1336_v48 = vmul.f32 0.25, %v1022_v36  ;;  %v1055_v51 = vadd.f32 %v1054_v42, %v1053_v33  ;;  %v324_v33 = vld [vmem:[%s8065_s30 + $0x1b4] sm:$0xf] }
  0xf7   : > { %v1036_v49 = vadd.f32 %v1035_v40, %v1034_v32  ;;  %v1061_v52 = vrot.slane %v1060_v43, 2  ;;  %v1067_v53 = vadd.f32 %v1066_v44, %v1065_v35  ;;  %v1049_v57 = vrot.slane %v1048_v47, 1  ;;  %v326_v44 = vld [vmem:[%s8065_s30 + $0x1bc] sm:$0xf] }
  0xf8   : > { %v1043_v56 = vadd.f32 %v1042_v46, %v1041_v38  ;;  %v1337_v58 = vmul.f32 0.25, %v1029_v45  ;;  %v8535_v59 = vperm.slane %v8494_v11, 2  ;;  %v1056_v60 = vrot.slane %v1055_v51, 1 }
  0xf9   : > { %v1062_v54 = vadd.f32 %v1061_v52, %v1060_v43  ;;  %v1068_v61 = vrot.slane %v1067_v53, 2  ;;  %v1338_v62 = vmul.f32 0.25, %v1036_v49  ;;  %v1050_v0 = vadd.f32 %v1049_v57, %v1048_v47 }
  0xfa   : > { %v1339_v1 = vmul.f32 0.25, %v1043_v56  ;;  %v1661_v2 = vsel %vm1570_vm1, %v1337_v58, %v1336_v48  ;;  %v8539_v3 = vadd.f32 %v1852_v55, %v8535_v59  ;;  %v1057_v5 = vadd.f32 %v1056_v60, %v1055_v51 }
  0xfb   : > { %v1063_v6 = vrot.slane %v1062_v54, 1  ;;  %v1069_v7 = vadd.f32 %v1068_v61, %v1067_v53  ;;  %v1662_v9 = vsel %vm1572_vm2, %v1338_v62, %v1661_v2  ;;  %v1340_v14 = vmul.f32 0.25, %v1050_v0 }
  0xfc   : > { %v1663_v15 = vsel %vm1574_vm3, %v1339_v1, %v1662_v9  ;;  %v8547_v16 = vadd.f32 %v1725_v63, %v8498_v24  ;;  %v8550_v17 = vadd.f32 %v1790_v10, %v8506_v41  ;;  %4333 = vmax.xlane.f32.xlu1 %v8539_v3  ;;  %v1341_v21 = vmul.f32 0.25, %v1057_v5 }
  0xfd   : > { %v1064_v19 = vadd.f32 %v1063_v6, %v1062_v54  ;;  %v1070_v20 = vrot.slane %v1069_v7, 1  ;;  %v8554_v22 = vperm.slane %v8494_v11, 3  ;;  %v1664_v25 = vsel %vm1576_vm4, %v1340_v14, %v1663_v15 }
  0xfe   : > { %v1072_v27 = vsel %vm343_vm0, %v319_v4, 0.0  ;;  %v1079_v8 = vsel %vm343_vm0, %v320_v12, 0.0  ;;  %v1086_v28 = vsel %vm343_vm0, %v321_v13, 0.0  ;;  %1967 = vmax.xlane.f32.xlu0 %v8547_v16  ;;  %v1665_v32 = vsel %vm1578_vm5, %v1341_v21, %v1664_v25 }
  0xff   : > { %v1071_v29 = vadd.f32 %v1070_v20, %v1069_v7  ;;  %v1342_v30 = vmul.f32 0.25, %v1064_v19  ;;  %v8565_v11 = vadd.f32 %v1917_v18, %v8554_v22  ;;  %v1073_v35 = vrot.slane %v1072_v27, 4 }
 0x100   : > { %v1080_v36 = vrot.slane %v1079_v8, 4  ;;  %v1087_v37 = vrot.slane %v1086_v28, 4  ;;  %v1093_v38 = vsel %vm343_vm0, %v322_v23, 0.0  ;;  %v1100_v43 = vsel %vm343_vm0, %v323_v26, 0.0 }
 0x101   : > { %v1343_v39 = vmul.f32 0.25, %v1071_v29  ;;  %v1666_v40 = vsel %vm1580_vm6, %v1342_v30, %v1665_v32  ;;  %v1094_v42 = vrot.slane %v1093_v38, 4  ;;  %5709 = vmax.xlane.f32.xlu2 %v8565_v11  ;;  %v1074_v45 = vadd.f32 %v1073_v35, %v1072_v27  ;;  %v1728_v29 = vpop.f32.mrf.mxu0  ;;  %v1920_v35 = vpop.f32.mrf.mxu3 }
 0x102   : > { %v1081_v46 = vadd.f32 %v1080_v36, %v1079_v8  ;;  %v1088_v47 = vadd.f32 %v1087_v37, %v1086_v28  ;;  %v1101_v48 = vrot.slane %v1100_v43, 4  ;;  %v1107_v52 = vsel %vm343_vm0, %v324_v33, 0.0 }
 0x103   : > { %v1667_v49 = vsel %vm1582_vm7, %v1343_v39, %v1666_v40  ;;  %v1095_v51 = vadd.f32 %v1094_v42, %v1093_v38  ;;  %v1114_v53 = vsel %vm343_vm0, %v325_v34, 0.0  ;;  %v1075_v55 = vrot.slane %v1074_v45, 2  ;;  %v1793_v40 = vpop.f32.mrf.mxu1  ;;  %v1855_v42 = vpop.f32.mrf.mxu2 }
 0x104   : > { %1822 = vmatmul.f32.gmra.mxu1 %v1667_v49  ;;  %1757 = vmatmul.f32.gmra.mxu0 %v1667_v49  ;;  %v1082_v56 = vrot.slane %v1081_v46, 2  ;;  %v1089_v57 = vrot.slane %v1088_v47, 2  ;;  %v1102_v58 = vadd.f32 %v1101_v48, %v1100_v43  ;;  %v1108_v54 = vrot.slane %v1107_v52, 4  ;;  %v327_v43 = vld [vmem:[%s8065_s30 + $0x1c0] sm:$0xf] }
 0x105   : > { %1887 = vmatmul.f32.gmra.mxu2 %v1667_v49  ;;  %1952 = vmatmul.f32.gmra.mxu3 %v1667_v49  ;;  %v1096_v60 = vrot.slane %v1095_v51, 2  ;;  %v1115_v61 = vrot.slane %v1114_v53, 4  ;;  %v1121_v62 = vsel %vm343_vm0, %v326_v44, 0.0  ;;  %v1076_v63 = vadd.f32 %v1075_v55, %v1074_v45  ;;  %v328_v48 = vld [vmem:[%s8065_s30 + $0x1c4] sm:$0xf] }
 0x106   : > { %v1083_v0 = vadd.f32 %v1082_v56, %v1081_v46  ;;  %v1090_v1 = vadd.f32 %v1089_v57, %v1088_v47  ;;  %v1103_v2 = vrot.slane %v1102_v58, 2  ;;  %2959 = vmax.xlane.f32.xlu0 %v8550_v17  ;;  %v1109_v5 = vadd.f32 %v1108_v54, %v1107_v52  ;;  %v329_v55 = vld [vmem:[%s8065_s30 + $0x1c8] sm:$0xf]  ;;  %v330_v56 = vld [vmem:[%s8065_s30 + $0x1cc] sm:$0xf] }
 0x107   : > { %v1097_v4 = vadd.f32 %v1096_v60, %v1095_v51  ;;  %v1116_v6 = vadd.f32 %v1115_v61, %v1114_v53  ;;  %v1122_v7 = vrot.slane %v1121_v62, 4  ;;  %v1077_v9 = vrot.slane %v1076_v63, 1 }
 0x108   : > { %v1084_v10 = vrot.slane %v1083_v0, 1  ;;  %v1091_v12 = vrot.slane %v1090_v1, 1  ;;  %v1104_v13 = vadd.f32 %v1103_v2, %v1102_v58  ;;  %v1110_v15 = vrot.slane %v1109_v5, 2  ;;  %v332_v2 = vld [vmem:[%s8065_s30 + $0x1d4] sm:$0xf] }
 0x109   : > { %v1098_v14 = vrot.slane %v1097_v4, 1  ;;  %v1117_v18 = vrot.slane %v1116_v6, 2  ;;  %v1123_v19 = vadd.f32 %v1122_v7, %v1121_v62  ;;  %v1078_v20 = vadd.f32 %v1077_v9, %v1076_v63 }
 0x10a   : > { %v1085_v21 = vadd.f32 %v1084_v10, %v1083_v0  ;;  %v1092_v23 = vadd.f32 %v1091_v12, %v1090_v1  ;;  %v1105_v25 = vrot.slane %v1104_v13, 1  ;;  %v1111_v27 = vadd.f32 %v1110_v15, %v1109_v5  ;;  %v331_v1 = vld [vmem:[%s8065_s30 + $0x1d0] sm:$0xf]  ;;  %v333_v12 = vld [vmem:[%s8065_s30 + $0x1d8] sm:$0xf] }
 0x10b   : > { %v1099_v26 = vadd.f32 %v1098_v14, %v1097_v4  ;;  %v1118_v8 = vadd.f32 %v1117_v18, %v1116_v6  ;;  %v1124_v28 = vrot.slane %v1123_v19, 2  ;;  %v1344_v32 = vmul.f32 0.25, %v1078_v20 }
 0x10c   : > { %v1106_v30 = vadd.f32 %v1105_v25, %v1104_v13  ;;  %v1345_v33 = vmul.f32 0.25, %v1085_v21  ;;  %v1346_v34 = vmul.f32 0.25, %v1092_v23  ;;  %v1112_v36 = vrot.slane %v1111_v27, 1  ;;  %v334_v23 = vld [vmem:[%s8065_s30 + $0x1dc] sm:$0xf] }
 0x10d   : > { %v1119_v37 = vrot.slane %v1118_v8, 1  ;;  %v1125_v38 = vadd.f32 %v1124_v28, %v1123_v19  ;;  %v1347_v39 = vmul.f32 0.25, %v1099_v26  ;;  %v8582_v46 = vadd.f32 %v1728_v29, %v8498_v24 }
 0x10e   : > { %v1348_v44 = vmul.f32 0.25, %v1106_v30  ;;  %v1668_v45 = vsel %vm1570_vm1, %v1345_v33, %v1344_v32  ;;  %v8585_v47 = vadd.f32 %v1793_v40, %v8506_v41  ;;  %v1113_v49 = vadd.f32 %v1112_v36, %v1111_v27  ;;  %v1923_v32 = vpop.f32.mrf.mxu3 }
 0x10f   : > { %v1120_v51 = vadd.f32 %v1119_v37, %v1118_v8  ;;  %v1126_v52 = vrot.slane %v1125_v38, 1  ;;  %v1669_v53 = vsel %vm1572_vm2, %v1346_v34, %v1668_v45  ;;  %v8593_v58 = vadd.f32 %v1855_v42, %v8535_v59  ;;  %1969 = vmax.xlane.f32.xlu1 %v8582_v46 }
 0x110   : > { %v1670_v57 = vsel %vm1574_vm3, %v1347_v39, %v1669_v53  ;;  %v8596_v60 = vadd.f32 %v1920_v35, %v8554_v22  ;;  %v1128_v54 = vsel %vm343_vm0, %v327_v43, 0.0  ;;  %v1349_v62 = vmul.f32 0.25, %v1113_v49 }
 0x111   : > { %v1127_v61 = vadd.f32 %v1126_v52, %v1125_v38  ;;  %v1350_v63 = vmul.f32 0.25, %v1120_v51  ;;  %v1671_v0 = vsel %vm1576_vm4, %v1348_v44, %v1670_v57  ;;  %4335 = vmax.xlane.f32.xlu2 %v8593_v58  ;;  %v1129_v4 = vrot.slane %v1128_v54, 4 }
 0x112   : > { %v1135_v5 = vsel %vm343_vm0, %v328_v48, 0.0  ;;  %v1142_v6 = vsel %vm343_vm0, %v329_v55, 0.0  ;;  %v1149_v7 = vsel %vm343_vm0, %v330_v56, 0.0  ;;  %5711 = vmax.xlane.f32.xlu0 %v8596_v60  ;;  %v1672_v10 = vsel %vm1578_vm5, %v1349_v62, %v1671_v0 }
 0x113   : > { %v1351_v9 = vmul.f32 0.25, %v1127_v61  ;;  %v1136_v13 = vrot.slane %v1135_v5, 4  ;;  %v1143_v14 = vrot.slane %v1142_v6, 4  ;;  %v1673_v15 = vsel %vm1580_vm6, %v1350_v63, %v1672_v10 }
 0x114   : > { %v1130_v18 = vadd.f32 %v1129_v4, %v1128_v54  ;;  %v1150_v19 = vrot.slane %v1149_v7, 4  ;;  %v1156_v20 = vsel %vm343_vm0, %v331_v1, 0.0  ;;  %v1163_v29 = vsel %vm343_vm0, %v332_v2, 0.0 }
 0x115   : > { %v1674_v21 = vsel %vm1582_vm7, %v1351_v9, %v1673_v15  ;;  %v1137_v25 = vadd.f32 %v1136_v13, %v1135_v5  ;;  %v1144_v26 = vadd.f32 %v1143_v14, %v1142_v6  ;;  %v1157_v27 = vrot.slane %v1156_v20, 4  ;;  %v1796_v5 = vpop.f32.mrf.mxu1 }
 0x116   : > { %1825 = vmatmul.f32.gmra.mxu1 %v1674_v21  ;;  %1890 = vmatmul.f32.gmra.mxu2 %v1674_v21  ;;  %v1131_v8 = vrot.slane %v1130_v18, 2  ;;  %v1151_v28 = vadd.f32 %v1150_v19, %v1149_v7  ;;  %v1170_v30 = vsel %vm343_vm0, %v333_v12, 0.0  ;;  %v1164_v36 = vrot.slane %v1163_v29, 4 }
 0x117   : > { %1955 = vmatmul.f32.gmra.mxu3 %v1674_v21  ;;  %1760 = vmatmul.f32.gmra.mxu0 %v1674_v21  ;;  %v1138_v33 = vrot.slane %v1137_v25, 2  ;;  %v1145_v34 = vrot.slane %v1144_v26, 2  ;;  %v1158_v35 = vadd.f32 %v1157_v27, %v1156_v20  ;;  %v1171_v39 = vrot.slane %v1170_v30, 4 }
 0x118   : > { %v1132_v37 = vadd.f32 %v1131_v8, %v1130_v18  ;;  %v1152_v38 = vrot.slane %v1151_v28, 2  ;;  %v1177_v40 = vsel %vm343_vm0, %v334_v23, 0.0  ;;  %2961 = vmax.xlane.f32.xlu1 %v8585_v47  ;;  %v1165_v45 = vadd.f32 %v1164_v36, %v1163_v29  ;;  %v1858_v23 = vpop.f32.mrf.mxu2  ;;  %v1731_v29 = vpop.f32.mrf.mxu0 }
 0x119   : > { %v1139_v42 = vadd.f32 %v1138_v33, %v1137_v25  ;;  %v1146_v43 = vadd.f32 %v1145_v34, %v1144_v26  ;;  %v1159_v44 = vrot.slane %v1158_v35, 2  ;;  %v1172_v51 = vadd.f32 %v1171_v39, %v1170_v30  ;;  %v1926_v25 = vpop.f32.mrf.mxu3  ;;  %v335_v30 = vld [vmem:[%s8065_s30 + $0x1e0] sm:$0xf] }
 0x11a   : > { %v1133_v48 = vrot.slane %v1132_v37, 1  ;;  %v1153_v49 = vadd.f32 %v1152_v38, %v1151_v28  ;;  %v1178_v52 = vrot.slane %v1177_v40, 4  ;;  %v1166_v57 = vrot.slane %v1165_v45, 2  ;;  %v337_v38 = vld [vmem:[%s8065_s30 + $0x1e8] sm:$0xf] }
 0x11b   : > { %v1140_v53 = vrot.slane %v1139_v42, 1  ;;  %v1147_v55 = vrot.slane %v1146_v43, 1  ;;  %v1160_v56 = vadd.f32 %v1159_v44, %v1158_v35  ;;  %v1173_v62 = vrot.slane %v1172_v51, 2 }
 0x11c   : > { %v1134_v54 = vadd.f32 %v1133_v48, %v1132_v37  ;;  %v1154_v61 = vrot.slane %v1153_v49, 1  ;;  %v1179_v63 = vadd.f32 %v1178_v52, %v1177_v40  ;;  %v1167_v4 = vadd.f32 %v1166_v57, %v1165_v45  ;;  %v336_v37 = vld [vmem:[%s8065_s30 + $0x1e4] sm:$0xf] }
 0x11d   : > { %v1141_v0 = vadd.f32 %v1140_v53, %v1139_v42  ;;  %v1148_v1 = vadd.f32 %v1147_v55, %v1146_v43  ;;  %v1161_v2 = vrot.slane %v1160_v56, 1  ;;  %v1174_v7 = vadd.f32 %v1173_v62, %v1172_v51  ;;  %v338_v43 = vld [vmem:[%s8065_s30 + $0x1ec] sm:$0xf]  ;;  %v340_v51 = vld [vmem:[%s8065_s30 + $0x1f4] sm:$0xf] }
 0x11e   : > { %v1155_v6 = vadd.f32 %v1154_v61, %v1153_v49  ;;  %v1180_v9 = vrot.slane %v1179_v63, 2  ;;  %v1352_v10 = vmul.f32 0.25, %v1134_v54  ;;  %v1168_v13 = vrot.slane %v1167_v4, 1  ;;  %v339_v49 = vld [vmem:[%s8065_s30 + $0x1f0] sm:$0xf] }
 0x11f   : > { %v1162_v12 = vadd.f32 %v1161_v2, %v1160_v56  ;;  %v1353_v14 = vmul.f32 0.25, %v1141_v0  ;;  %v1354_v15 = vmul.f32 0.25, %v1148_v1  ;;  %v1175_v18 = vrot.slane %v1174_v7, 1  ;;  %v341_v62 = vld [vmem:[%s8065_s30 + $0x1f8] sm:$0xf] }
 0x120   : > { %v1181_v19 = vadd.f32 %v1180_v9, %v1179_v63  ;;  %v1355_v20 = vmul.f32 0.25, %v1155_v6  ;;  %v8619_v21 = vadd.f32 %v1796_v5, %v8506_v41  ;;  %v1169_v26 = vadd.f32 %v1168_v13, %v1167_v4 }
 0x121   : > { %v1356_v27 = vmul.f32 0.25, %v1162_v12  ;;  %v1675_v8 = vsel %vm1570_vm1, %v1353_v14, %v1352_v10  ;;  %v8623_v28 = vadd.f32 %v1923_v32, %v8554_v22  ;;  %v1176_v33 = vadd.f32 %v1175_v18, %v1174_v7  ;;  %v342_v7 = vld [vmem:[%s8065_s30 + $0x1fc] sm:$0xf] }
 0x122   : > { %v1182_v34 = vrot.slane %v1181_v19, 1  ;;  %v1676_v35 = vsel %vm1572_vm2, %v1354_v15, %v1675_v8  ;;  %2963 = vmax.xlane.f32.xlu2 %v8619_v21  ;;  %v8629_v36 = vadd.f32 %v1731_v29, %v8498_v24  ;;  %v1357_v39 = vmul.f32 0.25, %v1169_v26 }
 0x123   : > { %v1677_v40 = vsel %vm1574_vm3, %v1355_v20, %v1676_v35  ;;  %v8635_v32 = vadd.f32 %v1858_v23, %v8535_v59  ;;  %v8638_v42 = vadd.f32 %v1926_v25, %v8554_v22  ;;  %5713 = vmax.xlane.f32.xlu1 %v8623_v28  ;;  %v1358_v45 = vmul.f32 0.25, %v1176_v33 }
 0x124   : > { %v1183_v44 = vadd.f32 %v1182_v34, %v1181_v19  ;;  %v1678_v48 = vsel %vm1576_vm4, %v1356_v27, %v1677_v40  ;;  %v1184_v52 = vsel %vm343_vm0, %v335_v30, 0.0  ;;  %v1191_v56 = vsel %vm343_vm0, %v336_v37, 0.0  ;;  %v1861_v30 = vpop.f32.mrf.mxu2 }
 0x125   : > { %v1679_v53 = vsel %vm1578_vm5, %v1357_v39, %v1678_v48  ;;  %v1185_v55 = vrot.slane %v1184_v52, 4  ;;  %v1198_v57 = vsel %vm343_vm0, %v337_v38, 0.0  ;;  %4337 = vmax.xlane.f32.xlu0 %v8635_v32  ;;  %v1192_v63 = vrot.slane %v1191_v56, 4 }
 0x126   : > { %v1359_v54 = vmul.f32 0.25, %v1183_v44  ;;  %v1680_v61 = vsel %vm1580_vm6, %v1358_v45, %v1679_v53  ;;  %v1199_v0 = vrot.slane %v1198_v57, 4  ;;  %v1205_v2 = vsel %vm343_vm0, %v338_v43, 0.0 }
 0x127   : > { %v1186_v1 = vadd.f32 %v1185_v55, %v1184_v52  ;;  %v1212_v4 = vsel %vm343_vm0, %v339_v49, 0.0  ;;  %v1219_v5 = vsel %vm343_vm0, %v340_v51, 0.0  ;;  %v1193_v9 = vadd.f32 %v1192_v63, %v1191_v56 }
 0x128   : > { %v1681_v6 = vsel %vm1582_vm7, %v1359_v54, %v1680_v61  ;;  %v1200_v10 = vadd.f32 %v1199_v0, %v1198_v57  ;;  %v1206_v12 = vrot.slane %v1205_v2, 4  ;;  %v1213_v14 = vrot.slane %v1212_v4, 4 }
 0x129   : > { %1893 = vmatmul.f32.gmra.mxu2 %v1681_v6  ;;  %1828 = vmatmul.f32.gmra.mxu1 %v1681_v6  ;;  %v1187_v13 = vrot.slane %v1186_v1, 2  ;;  %v1220_v15 = vrot.slane %v1219_v5, 4  ;;  %v1226_v18 = vsel %vm343_vm0, %v341_v62, 0.0  ;;  %v1194_v19 = vrot.slane %v1193_v9, 2  ;;  %v1734_v62 = vpop.f32.mrf.mxu0 }
 0x12a   : > { %1763 = vmatmul.f32.gmra.mxu0 %v1681_v6  ;;  %1958 = vmatmul.f32.gmra.mxu3 %v1681_v6  ;;  %v1201_v20 = vrot.slane %v1200_v10, 2  ;;  %v1207_v23 = vadd.f32 %v1206_v12, %v1205_v2  ;;  %v1227_v25 = vrot.slane %v1226_v18, 4  ;;  %v1214_v27 = vadd.f32 %v1213_v14, %v1212_v4  ;;  %v1799_v4 = vpop.f32.mrf.mxu1 }
 0x12b   : > { %v1188_v26 = vadd.f32 %v1187_v13, %v1186_v1  ;;  %v1221_v8 = vadd.f32 %v1220_v15, %v1219_v5  ;;  %v1233_v29 = vsel %vm343_vm0, %v342_v7, 0.0  ;;  %5715 = vmax.xlane.f32.xlu2 %v8638_v42  ;;  %1971 = vmax.xlane.f32.xlu1 %v8629_v36  ;;  %v1195_v33 = vadd.f32 %v1194_v19, %v1193_v9 }
 0x12c   : > { %v1202_v34 = vadd.f32 %v1201_v20, %v1200_v10  ;;  %v1208_v35 = vrot.slane %v1207_v23, 2  ;;  %v1228_v37 = vadd.f32 %v1227_v25, %v1226_v18  ;;  %v1215_v39 = vrot.slane %v1214_v27, 2 }
 0x12d   : > { %v1189_v38 = vrot.slane %v1188_v26, 1  ;;  %v1222_v40 = vrot.slane %v1221_v8, 2  ;;  %v1234_v43 = vrot.slane %v1233_v29, 4  ;;  %v1196_v44 = vrot.slane %v1195_v33, 1 }
 0x12e   : > { %v1203_v45 = vrot.slane %v1202_v34, 1  ;;  %v1209_v48 = vadd.f32 %v1208_v35, %v1207_v23  ;;  %v1229_v49 = vrot.slane %v1228_v37, 2  ;;  %v1216_v52 = vadd.f32 %v1215_v39, %v1214_v27 }
 0x12f   : > { %v1190_v51 = vadd.f32 %v1189_v38, %v1188_v26  ;;  %v1223_v53 = vadd.f32 %v1222_v40, %v1221_v8  ;;  %v1235_v55 = vadd.f32 %v1234_v43, %v1233_v29  ;;  %v1197_v56 = vadd.f32 %v1196_v44, %v1195_v33  ;;  %v1864_v8 = vpop.f32.mrf.mxu2  ;;  %v1929_v38 = vpop.f32.mrf.mxu3 }
 0x130   : > { %v1204_v57 = vadd.f32 %v1203_v45, %v1202_v34  ;;  %v1210_v54 = vrot.slane %v1209_v48, 1  ;;  %v1230_v61 = vadd.f32 %v1229_v49, %v1228_v37  ;;  %v1217_v63 = vrot.slane %v1216_v52, 1 }
 0x131   : > { %v1224_v0 = vrot.slane %v1223_v53, 1  ;;  %v1236_v1 = vrot.slane %v1235_v55, 2  ;;  %v1360_v2 = vmul.f32 0.25, %v1190_v51  ;;  %v1361_v7 = vmul.f32 0.25, %v1197_v56  ;;  %v1737_v51 = vpop.f32.mrf.mxu0 }
 0x132   : > { %v1211_v5 = vadd.f32 %v1210_v54, %v1209_v48  ;;  %v1231_v6 = vrot.slane %v1230_v61, 1  ;;  %v1362_v9 = vmul.f32 0.25, %v1204_v57  ;;  %v1218_v10 = vadd.f32 %v1217_v63, %v1216_v52  ;;  %v1802_v44 = vpop.f32.mrf.mxu1 }
 0x133   : > { %v1225_v12 = vadd.f32 %v1224_v0, %v1223_v53  ;;  %v1237_v13 = vadd.f32 %v1236_v1, %v1235_v55  ;;  %v8662_v14 = vadd.f32 %v1734_v62, %v8498_v24  ;;  %v1682_v19 = vsel %vm1570_vm1, %v1361_v7, %v1360_v2 }
 0x134   : > { %v1232_v15 = vadd.f32 %v1231_v6, %v1230_v61  ;;  %v1363_v18 = vmul.f32 0.25, %v1211_v5  ;;  %v8666_v20 = vadd.f32 %v1799_v4, %v8506_v41  ;;  %v1364_v25 = vmul.f32 0.25, %v1218_v10 }
 0x135   : > { %v1238_v23 = vrot.slane %v1237_v13, 1  ;;  %v1365_v26 = vmul.f32 0.25, %v1225_v12  ;;  %v1683_v27 = vsel %vm1572_vm2, %v1362_v9, %v1682_v19  ;;  %1973 = vmax.xlane.f32.xlu2 %v8662_v14  ;;  %v8672_v34 = vadd.f32 %v1861_v30, %v8535_v59 }
 0x136   : > { %v1366_v29 = vmul.f32 0.25, %v1232_v15  ;;  %v1684_v33 = vsel %vm1574_vm3, %v1363_v18, %v1683_v27  ;;  %2965 = vmax.xlane.f32.xlu0 %v8666_v20  ;;  %v8680_v45 = vadd.f32 %v1864_v8, %v8535_v59  ;;  %v8683_v30 = vadd.f32 %v1929_v38, %v8554_v22 }
 0x137   : > { %v1239_v35 = vadd.f32 %v1238_v23, %v1237_v13  ;;  %v1685_v37 = vsel %vm1576_vm4, %v1364_v25, %v1684_v33  ;;  %4339 = vmax.xlane.f32.xlu1 %v8672_v34  ;;  %v8687_v49 = vadd.f32 %v1802_v44, %v8506_v41  ;;  %v1867_v52 = vpop.f32.mrf.mxu2  ;;  %v1932_v53 = vpop.f32.mrf.mxu3  ;;  %v8693_v55 = vadd.f32 %v1737_v51, %v8498_v24 }
 0x138   : > { %v1686_v39 = vsel %vm1578_vm5, %v1365_v26, %v1685_v37  ;;  %v8696_v56 = vadd.f32 %v1867_v52, %v8535_v59  ;;  %v8699_v57 = vadd.f32 %v1932_v53, %v8554_v22 }
 0x139   : > { %v1367_v40 = vmul.f32 0.25, %v1239_v35  ;;  %v1687_v43 = vsel %vm1580_vm6, %v1366_v29, %v1686_v39  ;;  %v1740_v61 = vpop.f32.mrf.mxu0 }
 0x13a   : > { %v1805_v54 = vpop.f32.mrf.mxu1  ;;  %v8705_v63 = vadd.f32 %v1740_v61, %v8498_v24 }
 0x13b   : > { %v1688_v48 = vsel %vm1582_vm7, %v1367_v40, %v1687_v43  ;;  %v8708_v0 = vadd.f32 %v1805_v54, %v8506_v41 }
 0x13c   : > { %1831 = vmatmul.f32.gmra.mxu1 %v1688_v48  ;;  %1766 = vmatmul.f32.gmra.mxu0 %v1688_v48 }
 0x13d   : > { %1896 = vmatmul.f32.gmra.mxu2 %v1688_v48  ;;  %1961 = vmatmul.f32.gmra.mxu3 %v1688_v48 }
 0x13e   : > { %4341 = vmax.xlane.f32.xlu2 %v8680_v45  ;;  %5717 = vmax.xlane.f32.xlu0 %v8683_v30 }
 0x13f   : > { %2967 = vmax.xlane.f32.xlu1 %v8687_v49  ;;  %v1870_v62 = vpop.f32.mrf.mxu2  ;;  %v1935_v2 = vpop.f32.mrf.mxu3 }
 0x140   : > { %v8711_v1 = vadd.f32 %v1870_v62, %v8535_v59  ;;  %v8720_v7 = vadd.f32 %v1935_v2, %v8554_v22 }
 0x141   : > { %v1743_v5 = vpop.f32.mrf.mxu0 }
 0x142   : > { %v1808_v4 = vpop.f32.mrf.mxu1  ;;  %v8723_v9 = vadd.f32 %v1743_v5, %v8498_v24 }
 0x143   : > { %v8717_v6 = vadd.f32 %v1808_v4, %v8506_v41 }
 0x145   : > { %14746 = vst [vmem:[#allocation2_spill] sm:$0xff] %v8717_v6 }
 0x146   : > { %1975 = vmax.xlane.f32.xlu2 %v8693_v55  ;;  %4343 = vmax.xlane.f32.xlu0 %v8696_v56 }
 0x147   : > { %5719 = vmax.xlane.f32.xlu1 %v8699_v57  ;;  %v1873_v10 = vpop.f32.mrf.mxu2  ;;  %v1938_v12 = vpop.f32.mrf.mxu3 }
 0x148   : > { %v8729_v15 = vadd.f32 %v1873_v10, %v8535_v59  ;;  %v8732_v18 = vadd.f32 %v1938_v12, %v8554_v22 }
 0x149   : > { %v1746_v23 = vpop.f32.mrf.mxu0 }
 0x14a   : > { %v1811_v13 = vpop.f32.mrf.mxu1  ;;  %14747 = vst [vmem:[#allocation3_spill] sm:$0xff] %v8729_v15  ;;  %v8741_v27 = vadd.f32 %v1746_v23, %v8498_v24 }
 0x14b   : > { %14748 = vst [vmem:[#allocation4_spill] sm:$0xff] %v8732_v18  ;;  %v8735_v19 = vadd.f32 %v1811_v13, %v8506_v41 }
 0x14c   : > { %14750 = vst [vmem:[#allocation6_spill] sm:$0xff] %v8741_v27 }
 0x14d   : > { %14749 = vst [vmem:[#allocation5_spill] sm:$0xff] %v8735_v19 }
 0x14e   : > { %2969 = vmax.xlane.f32.xlu2 %v8708_v0  ;;  %1977 = vmax.xlane.f32.xlu0 %v8705_v63 }
 0x14f   : > { %4345 = vmax.xlane.f32.xlu1 %v8711_v1  ;;  %v1876_v25 = vpop.f32.mrf.mxu2  ;;  %v1941_v26 = vpop.f32.mrf.mxu3 }
 0x150   : > { %v8744_v8 = vadd.f32 %v1876_v25, %v8535_v59  ;;  %v8747_v29 = vadd.f32 %v1941_v26, %v8554_v22 }
 0x151   : > { %v1749_v35 = vpop.f32.mrf.mxu0 }
 0x152   : > { %14751 = vst [vmem:[#allocation7_spill] sm:$0xff] %v8744_v8  ;;  %v1814_v33 = vpop.f32.mrf.mxu1  ;;  %v8753_v38 = vadd.f32 %v1749_v35, %v8498_v24 }
 0x153   : > { %14752 = vst [vmem:[#allocation8_spill] sm:$0xff] %v8747_v29  ;;  %v8756_v39 = vadd.f32 %v1814_v33, %v8506_v41 }
 0x154   : > { %14753 = vst [vmem:[#allocation9_spill] sm:$0xff] %v8753_v38 }
 0x155   : > { %14754 = vst [vmem:[#allocation10_spill] sm:$0xff] %v8756_v39 }
 0x156   : > { %5721 = vmax.xlane.f32.xlu2 %v8720_v7  ;;  %2971 = vmax.xlane.f32.xlu0 %v8717_v6 }
 0x157   : > { %1979 = vmax.xlane.f32.xlu1 %v8723_v9  ;;  %v1879_v37 = vpop.f32.mrf.mxu2  ;;  %v1944_v43 = vpop.f32.mrf.mxu3 }
 0x158   : > { %v8759_v40 = vadd.f32 %v1879_v37, %v8535_v59  ;;  %v8768_v52 = vadd.f32 %v1944_v43, %v8554_v22 }
 0x15a   : > { %14755 = vst [vmem:[#allocation11_spill] sm:$0xff] %v8759_v40  ;;  %v8775_v61 = vpop.xlane.xlu0 %1965 }
 0x15b   : > { %14757 = vst [vmem:[#allocation13_spill] sm:$0xff] %v8768_v52 }
 0x15c   : > { %v1817_v44 = vpop.f32.mrf.mxu1 }
 0x15d   : > { %v1752_v48 = vpop.f32.mrf.mxu0  ;;  %v8765_v51 = vadd.f32 %v1817_v44, %v8506_v41 }
 0x15e   : > { %4347 = vmax.xlane.f32.xlu2 %v8729_v15  ;;  %5723 = vmax.xlane.f32.xlu0 %v8732_v18  ;;  %v8771_v53 = vadd.f32 %v1752_v48, %v8498_v24  ;;  %v8777_v2 = vpop.xlane.xlu2 %2957 }
 0x15f   : > { %2973 = vmax.xlane.f32.xlu1 %v8735_v19  ;;  %14756 = vst [vmem:[#allocation12_spill] sm:$0xff] %v8765_v51 }
 0x160   : > { %14758 = vst [vmem:[#allocation14_spill] sm:$0xff] %v8771_v53 }
 0x162   : > { %v1882_v54 = vpop.f32.mrf.mxu2 }
 0x163   : > { %v1947_v62 = vpop.f32.mrf.mxu3  ;;  %v8781_v5 = vadd.f32 %v1882_v54, %v8535_v59 }
 0x164   : > { %v8784_v10 = vadd.f32 %v1947_v62, %v8554_v22 }
 0x165   : > { %14759 = vst [vmem:[#allocation15_spill] sm:$0xff] %v8781_v5 }
 0x166   : > { %1981 = vmax.xlane.f32.xlu2 %v8741_v27  ;;  %4349 = vmax.xlane.f32.xlu0 %v8744_v8  ;;  %14760 = vst [vmem:[#allocation16_spill] sm:$0xff] %v8784_v10  ;;  %v1997_v27 = vsub.f32 %v8501_v31, %v8775_v61 }
 0x167   : > { %5725 = vmax.xlane.f32.xlu1 %v8747_v29 }
 0x16e   : > { %2975 = vmax.xlane.f32.xlu2 %v8756_v39  ;;  %1983 = vmax.xlane.f32.xlu0 %v8753_v38 }
 0x16f   : > { %4351 = vmax.xlane.f32.xlu1 %v8759_v40  ;;  %v8786_v12 = vpop.xlane.xlu1 %4333  ;;  %v1755_v23 = vpop.f32.mrf.mxu0 }
 0x170   : > { %v1820_v4 = vpop.f32.mrf.mxu1  ;;  %v8799_v37 = vadd.f32 %v1755_v23, %v8498_v24 }
 0x171   : > { %v8789_v13 = vadd.f32 %v1820_v4, %v8506_v41  ;;  %v8794_v26 = vpop.xlane.xlu0 %1967 }
 0x172   : > { %14762 = vst [vmem:[#allocation18_spill] sm:$0xff] %v8799_v37 }
 0x173   : > { %14761 = vst [vmem:[#allocation17_spill] sm:$0xff] %v8789_v13 }
 0x174   : > { %v8796_v33 = vpop.xlane.xlu2 %5709 }
 0x175   : > { %v1885_v25 = vpop.f32.mrf.mxu2 }
 0x176   : > { %5727 = vmax.xlane.f32.xlu2 %v8768_v52  ;;  %2977 = vmax.xlane.f32.xlu0 %v8765_v51  ;;  %v1950_v35 = vpop.f32.mrf.mxu3  ;;  %v8802_v43 = vadd.f32 %v1885_v25, %v8535_v59 }
 0x177   : > { %1985 = vmax.xlane.f32.xlu1 %v8771_v53  ;;  %v8807_v48 = vadd.f32 %v1950_v35, %v8554_v22 }
 0x178   : > { %14763 = vst [vmem:[#allocation19_spill] sm:$0xff] %v8802_v43 }
 0x179   : > { %14764 = vst [vmem:[#allocation20_spill] sm:$0xff] %v8807_v48 }
 0x17e   : > { %4353 = vmax.xlane.f32.xlu2 %v8781_v5  ;;  %5729 = vmax.xlane.f32.xlu0 %v8784_v10 }
 0x17f   : > { %2979 = vmax.xlane.f32.xlu1 %v8789_v13  ;;  %v8820_v13 = vpop.xlane.xlu0 %2959 }
 0x181   : > { %v1758_v54 = vpop.f32.mrf.mxu0  ;;  %v1823_v62 = vpop.f32.mrf.mxu1 }
 0x182   : > { %v8804_v44 = vpop.xlane.xlu1 %1969  ;;  %v8813_v23 = vadd.f32 %v1758_v54, %v8498_v24  ;;  %v8816_v25 = vadd.f32 %v1823_v62, %v8506_v41 }
 0x184   : > { %14765 = vst [vmem:[#allocation21_spill] sm:$0xff] %v8813_v23  ;;  %v8818_v5 = vpop.xlane.xlu2 %4335 }
 0x185   : > { %14766 = vst [vmem:[#allocation22_spill] sm:$0xff] %v8816_v25 }
 0x186   : > { %1987 = vmax.xlane.f32.xlu2 %v8799_v37  ;;  %4355 = vmax.xlane.f32.xlu0 %v8802_v43 }
 0x187   : > { %5731 = vmax.xlane.f32.xlu1 %v8807_v48 }
 0x188   : > { %v1888_v4 = vpop.f32.mrf.mxu2  ;;  %v1953_v43 = vpop.f32.mrf.mxu3 }
 0x189   : > { %v8823_v35 = vadd.f32 %v1888_v4, %v8535_v59  ;;  %v8831_v54 = vadd.f32 %v1953_v43, %v8554_v22  ;;  %v8838_v4 = vpop.xlane.xlu0 %5711 }
 0x18b   : > { %14767 = vst [vmem:[#allocation23_spill] sm:$0xff] %v8823_v35  ;;  %v8825_v51 = vpop.xlane.xlu1 %2961 }
 0x18c   : > { %14768 = vst [vmem:[#allocation24_spill] sm:$0xff] %v8831_v54 }
 0x18e   : > { %2981 = vmax.xlane.f32.xlu2 %v8816_v25  ;;  %1989 = vmax.xlane.f32.xlu0 %v8813_v23 }
 0x18f   : > { %4357 = vmax.xlane.f32.xlu1 %v8823_v35 }
 0x193   : > { %v1826_v62 = vpop.f32.mrf.mxu1 }
 0x194   : > { %v8834_v48 = vadd.f32 %v1826_v62, %v8506_v41  ;;  %v1761_v37 = vpop.f32.mrf.mxu0 }
 0x195   : > { %v8836_v10 = vpop.xlane.xlu2 %2963  ;;  %v8841_v52 = vadd.f32 %v1761_v37, %v8498_v24 }
 0x196   : > { %14769 = vst [vmem:[#allocation25_spill] sm:$0xff] %v8834_v48  ;;  %5733 = vmax.xlane.f32.xlu2 %v8831_v54  ;;  %2983 = vmax.xlane.f32.xlu0 %v8834_v48  ;;  %v8845_v35 = vpop.xlane.xlu1 %5713 }
 0x197   : > { %14770 = vst [vmem:[#allocation26_spill] sm:$0xff] %v8841_v52  ;;  %1991 = vmax.xlane.f32.xlu1 %v8841_v52 }
 0x198   : > { %v8858_v54 = vpop.xlane.xlu0 %4337 }
 0x199   : > { %v1891_v43 = vpop.f32.mrf.mxu2 }
 0x19a   : > { %v8849_v62 = vadd.f32 %v1891_v43, %v8535_v59  ;;  %v1956_v23 = vpop.f32.mrf.mxu3 }
 0x19b   : > { %v8852_v25 = vadd.f32 %v1956_v23, %v8554_v22 }
 0x19c   : > { %14771 = vst [vmem:[#allocation27_spill] sm:$0xff] %v8849_v62 }
 0x19d   : > { %14772 = vst [vmem:[#allocation28_spill] sm:$0xff] %v8852_v25 }
 0x19e   : > { %4359 = vmax.xlane.f32.xlu2 %v8849_v62  ;;  %5735 = vmax.xlane.f32.xlu0 %v8852_v25  ;;  %v8856_v37 = vpop.xlane.xlu2 %5715  ;;  %v8860_v48 = vpop.xlane.xlu1 %1971 }
 0x1a6   : > { %v1829_v53 = vpop.f32.mrf.mxu1 }
 0x1a7   : > { %v1764_v52 = vpop.f32.mrf.mxu0  ;;  %v8863_v40 = vadd.f32 %v1829_v53, %v8506_v41 }
 0x1a8   : > { %v8866_v43 = vadd.f32 %v1764_v52, %v8498_v24  ;;  %v8868_v23 = vpop.xlane.xlu2 %1973 }
 0x1a9   : > { %14773 = vst [vmem:[#allocation29_spill] sm:$0xff] %v8863_v40  ;;  %2985 = vmax.xlane.f32.xlu1 %v8863_v40  ;;  %v8871_v62 = vpop.xlane.xlu0 %2965 }
 0x1aa   : > { %14774 = vst [vmem:[#allocation30_spill] sm:$0xff] %v8866_v43  ;;  %1993 = vmax.xlane.f32.xlu2 %v8866_v43  ;;  %v8874_v25 = vpop.xlane.xlu1 %4339  ;;  %v2989_v43 = vsub.f32 %v8513_v50, %v8777_v2  ;;  %v4365_v50 = vsub.f32 %v8539_v3, %v8786_v12 }
 0x1ac   : > { %v1894_v38 = vpop.f32.mrf.mxu2  ;;  %v3005_v29 = vmul.f32 1.442695, %v2989_v43 }
 0x1ad   : > { %v8877_v39 = vadd.f32 %v1894_v38, %v8535_v59  ;;  %v1959_v8 = vpop.f32.mrf.mxu3 }
 0x1ae   : > { %v8880_v53 = vadd.f32 %v1959_v8, %v8554_v22  ;;  %7580 = vpow2.f32 %v3005_v29 }
 0x1af   : > { %14775 = vst [vmem:[#allocation31_spill] sm:$0xff] %v8877_v39  ;;  %4361 = vmax.xlane.f32.xlu0 %v8877_v39 }
 0x1b0   : > { %14776 = vst [vmem:[#allocation32_spill] sm:$0xff] %v8880_v53 }
 0x1b1   : > { %5737 = vmax.xlane.f32.xlu1 %v8880_v53  ;;  %v8884_v52 = vpop.xlane.xlu2 %4341  ;;  %v8886_v40 = vpop.xlane.xlu0 %5717 }
 0x1b2   : > { %v8888_v15 = vpop.xlane.xlu1 %2967 }
 0x1b9   : > { %v1767_v38 = vpop.f32.mrf.mxu0  ;;  %v1832_v19 = vpop.f32.mrf.mxu1 }
 0x1ba   : > { %v8893_v6 = vadd.f32 %v1767_v38, %v8498_v24  ;;  %v8896_v8 = vadd.f32 %v1832_v19, %v8506_v41  ;;  %v8898_v39 = vpop.xlane.xlu2 %1975  ;;  %v8900_v53 = vpop.xlane.xlu0 %4343  ;;  %v4366_v24 = vsub.f32 %v8593_v58, %v8818_v5  ;;  %v2013_v41 = vmul.f32 1.442695, %v1997_v27 }
 0x1bb   : > { %v8904_v18 = vpop.xlane.xlu1 %5719  ;;  %v4381_v19 = vmul.f32 1.442695, %v4365_v50  ;;  %v1998_v58 = vsub.f32 %v8547_v16, %v8794_v26 }
 0x1bc   : > { %14777 = vst [vmem:[#allocation33_spill] sm:$0xff] %v8893_v6  ;;  %2987 = vmax.xlane.f32.xlu2 %v8896_v8  ;;  %1995 = vmax.xlane.f32.xlu0 %v8893_v6  ;;  %v4383_v38 = vmul.f32 1.442695, %v4366_v24  ;;  %v8922_v6 = vpop.eup %7580  ;;  %7582 = vpow2.f32 %v2013_v41 }
 0x1bd   : > { %7584 = vpow2.f32 %v4381_v19  ;;  %v2015_v29 = vmul.f32 1.442695, %v1998_v58  ;;  %v5743_v19 = vsub.f32 %v8623_v28, %v8845_v35  ;;  %v4367_v35 = vsub.f32 %v8635_v32, %v8858_v54 }
 0x1be   : > { %7586 = vpow2.f32 %v4383_v38  ;;  %v2000_v54 = vsub.f32 %v8629_v36, %v8860_v48 }
 0x1bf   : > { %7588 = vpow2.f32 %v2015_v29 }
 0x1c0   : > { %v1897_v2 = vpop.f32.mrf.mxu2  ;;  %v1962_v43 = vpop.f32.mrf.mxu3 }
 0x1c1   : > { %v8913_v31 = vadd.f32 %v1897_v2, %v8535_v59  ;;  %v8916_v61 = vadd.f32 %v1962_v43, %v8554_v22  ;;  %v5741_v59 = vsub.f32 %v8565_v11, %v8796_v33  ;;  %v1999_v22 = vsub.f32 %v8582_v46, %v8804_v44 }
 0x1c2   : > { %v8918_v3 = vpop.xlane.xlu2 %2969  ;;  %v8920_v12 = vpop.xlane.xlu0 %1977  ;;  %v2990_v33 = vsub.f32 %v8550_v17, %v8820_v13  ;;  %v5742_v44 = vsub.f32 %v8596_v60, %v8838_v4  ;;  %v5761_v17 = vmul.f32 1.442695, %v5743_v19  ;;  %v2991_v4 = vsub.f32 %v8585_v47, %v8825_v51 }
 0x1c3   : > { %4363 = vmax.xlane.f32.xlu1 %v8913_v31  ;;  %v8927_v27 = vpop.xlane.xlu1 %4345  ;;  %v5757_v5 = vmul.f32 1.442695, %v5741_v59  ;;  %v8935_v50 = vpop.eup %7582  ;;  %v2017_v16 = vmul.f32 1.442695, %v1999_v22  ;;  %v2992_v22 = vsub.f32 %v8619_v21, %v8836_v10  ;;  %v4368_v21 = vsub.f32 %v8672_v34, %v8874_v25 }
 0x1c4   : > { %5739 = vmax.xlane.f32.xlu2 %v8916_v61  ;;  %3037 = vadd.xlane.f32.xlu0 %v8922_v6  ;;  %v8937_v26 = vpop.eup %7584  ;;  %v3007_v2 = vmul.f32 1.442695, %v2990_v33  ;;  %v5759_v43 = vmul.f32 1.442695, %v5742_v44  ;;  %v3009_v29 = vmul.f32 1.442695, %v2991_v4  ;;  %v4369_v19 = vsub.f32 %v8680_v45, %v8884_v52 }
 0x1c5   : > { %v8943_v11 = vpop.eup %7586  ;;  %7590 = vpow2.f32 %v5757_v5  ;;  %v4385_v5 = vmul.f32 1.442695, %v4367_v35  ;;  %v3011_v47 = vmul.f32 1.442695, %v2992_v22  ;;  %v5744_v35 = vsub.f32 %v8638_v42, %v8856_v37 }
 0x1c6   : > { %7592 = vpow2.f32 %v2017_v16  ;;  %v8956_v38 = vpop.eup %7588  ;;  %v4389_v36 = vmul.f32 1.442695, %v4369_v19  ;;  %v2001_v45 = vsub.f32 %v8662_v14, %v8868_v23  ;;  %v2002_v52 = vsub.f32 %v8693_v55, %v8898_v39 }
 0x1c7   : > { %7594 = vpow2.f32 %v3007_v2  ;;  %v2019_v2 = vmul.f32 1.442695, %v2000_v54  ;;  %v5745_v55 = vsub.f32 %v8683_v30, %v8886_v40  ;;  %v5746_v39 = vsub.f32 %v8699_v57, %v8904_v18 }
 0x1c8   : > { %7596 = vpow2.f32 %v5759_v43  ;;  %v4387_v43 = vmul.f32 1.442695, %v4368_v21  ;;  %v2023_v37 = vmul.f32 1.442695, %v2002_v52  ;;  %v2993_v21 = vsub.f32 %v8666_v20, %v8871_v62 }
 0x1c9   : > { %7598 = vpow2.f32 %v5761_v17  ;;  %v5767_v20 = vmul.f32 1.442695, %v5746_v39  ;;  %v2994_v30 = vsub.f32 %v8687_v49, %v8888_v15  ;;  %v4370_v18 = vsub.f32 %v8696_v56, %v8900_v53 }
 0x1ca   : > { %v8939_v24 = vpop.xlane.xlu2 %5721  ;;  %v8941_v41 = vpop.xlane.xlu0 %2971  ;;  %7600 = vpow2.f32 %v3009_v29  ;;  %v5763_v29 = vmul.f32 1.442695, %v5744_v35  ;;  %v3013_v19 = vmul.f32 1.442695, %v2993_v21  ;;  %v2003_v56 = vsub.f32 %v8705_v63, %v8920_v12 }
 0x1cb   : > { %2045 = vadd.xlane.f32.xlu1 %v8935_v50  ;;  %v8948_v46 = vpop.xlane.xlu1 %1979  ;;  %v8958_v13 = vpop.eup %7590  ;;  %7602 = vpow2.f32 %v4385_v5  ;;  %v2021_v5 = vmul.f32 1.442695, %v2001_v45  ;;  %v2995_v45 = vsub.f32 %v8708_v0, %v8918_v3  ;;  %v3015_v52 = vmul.f32 1.442695, %v2994_v30  ;;  %v14793_v30 = vld [vmem:[#allocation6_spill] sm:$0xff] }
 0x1cc   : > { %4413 = vadd.xlane.f32.xlu2 %v8937_v26  ;;  %4415 = vadd.xlane.f32.xlu0 %v8943_v11  ;;  %v8964_v60 = vpop.eup %7592  ;;  %7604 = vpow2.f32 %v3011_v47  ;;  %v4391_v49 = vmul.f32 1.442695, %v4370_v18  ;;  %v4371_v0 = vsub.f32 %v8711_v1, %v8927_v27  ;;  %v2004_v53 = vsub.f32 %v8723_v9, %v8948_v46  ;;  %v14792_v9 = vld [vmem:[#allocation4_spill] sm:$0xff] }
 0x1cd   : > { %v8977_v16 = vpop.eup %7594  ;;  %7606 = vpow2.f32 %v2019_v2  ;;  %v5765_v2 = vmul.f32 1.442695, %v5745_v55  ;;  %v2025_v39 = vmul.f32 1.442695, %v2003_v56  ;;  %v5747_v27 = vsub.f32 %v8720_v7, %v8939_v24 }
 0x1ce   : > { %v8979_v51 = vpop.eup %7596  ;;  %7608 = vpow2.f32 %v4387_v43  ;;  %v4393_v63 = vmul.f32 1.442695, %v4371_v0  ;;  %v14797_v0 = vld [vmem:[#allocation2_spill] sm:$0xff] }
 0x1cf   : > { %v8985_v32 = vpop.eup %7598  ;;  %7610 = vpow2.f32 %v4389_v36 }
 0x1d0   : > { %v8998_v17 = vpop.eup %7600  ;;  %7612 = vpow2.f32 %v5763_v29  ;;  %v3017_v29 = vmul.f32 1.442695, %v2995_v45  ;;  %v5769_v45 = vmul.f32 1.442695, %v5747_v27 }
 0x1d1   : > { %v9000_v48 = vpop.eup %7602  ;;  %7614 = vpow2.f32 %v2021_v5 }
 0x1d2   : > { %v8960_v58 = vpop.xlane.xlu2 %4347  ;;  %v8962_v59 = vpop.xlane.xlu0 %5723  ;;  %14778 = vst [vmem:[#allocation34_spill] sm:$0xff] %v9000_v48  ;;  %7616 = vpow2.f32 %v2023_v37 }
 0x1d3   : > { %5789 = vadd.xlane.f32.xlu1 %v8958_v13  ;;  %v8969_v28 = vpop.xlane.xlu1 %2973  ;;  %v9006_v25 = vpop.eup %7604  ;;  %7618 = vpow2.f32 %v3013_v19  ;;  %v2027_v19 = vmul.f32 1.442695, %v2004_v53  ;;  %v5748_v46 = vsub.f32 %v14792_v9, %v8962_v59  ;;  %v2996_v53 = vsub.f32 %v14797_v0, %v8941_v41 }
 0x1d4   : > { %2049 = vadd.xlane.f32.xlu0 %v8964_v60  ;;  %2047 = vadd.xlane.f32.xlu2 %v8956_v38  ;;  %14779 = vst [vmem:[#allocation35_spill] sm:$0xff] %v9006_v25  ;;  %v9019_v42 = vpop.eup %7606  ;;  %7620 = vpow2.f32 %v5765_v2 }
 0x1d5   : > { %14780 = vst [vmem:[#allocation36_spill] sm:$0xff] %v9019_v42  ;;  %v9021_v47 = vpop.eup %7608  ;;  %7622 = vpow2.f32 %v5767_v20  ;;  %v5771_v24 = vmul.f32 1.442695, %v5748_v46  ;;  %v3019_v9 = vmul.f32 1.442695, %v2996_v53 }
 0x1d6   : > { %14781 = vst [vmem:[#allocation37_spill] sm:$0xff] %v9021_v47  ;;  %v9027_v23 = vpop.eup %7610  ;;  %7624 = vpow2.f32 %v3015_v52 }
 0x1d7   : > { %14782 = vst [vmem:[#allocation38_spill] sm:$0xff] %v9027_v23  ;;  %v9040_v36 = vpop.eup %7612  ;;  %7626 = vpow2.f32 %v4391_v49 }
 0x1d8   : > { %14783 = vst [vmem:[#allocation39_spill] sm:$0xff] %v9040_v36  ;;  %v9042_v62 = vpop.eup %7614  ;;  %7628 = vpow2.f32 %v3017_v29 }
 0x1d9   : > { %14784 = vst [vmem:[#allocation40_spill] sm:$0xff] %v9042_v62  ;;  %v9044_v35 = vpop.eup %7616  ;;  %7630 = vpow2.f32 %v2025_v39 }
 0x1da   : > { %v8981_v33 = vpop.xlane.xlu2 %1981  ;;  %v8983_v44 = vpop.xlane.xlu0 %4349  ;;  %14785 = vst [vmem:[#allocation41_spill] sm:$0xff] %v9044_v35  ;;  %7632 = vpow2.f32 %v4393_v63  ;;  %v14799_v63 = vld [vmem:[#allocation8_spill] sm:$0xff] }
 0x1db   : > { %3039 = vadd.xlane.f32.xlu1 %v8977_v16  ;;  %v8994_v10 = vpop.xlane.xlu1 %5725  ;;  %v9059_v15 = vpop.eup %7618  ;;  %7634 = vpow2.f32 %v2027_v19  ;;  %v2005_v18 = vsub.f32 %v14793_v30, %v8981_v33  ;;  %v14798_v33 = vld [vmem:[#allocation5_spill] sm:$0xff] }
 0x1dc   : > { %5793 = vadd.xlane.f32.xlu0 %v8985_v32  ;;  %5791 = vadd.xlane.f32.xlu2 %v8979_v51  ;;  %14786 = vst [vmem:[#allocation42_spill] sm:$0xff] %v9059_v15  ;;  %v9061_v5 = vpop.eup %7620  ;;  %7636 = vpow2.f32 %v5769_v45  ;;  %v2997_v39 = vsub.f32 %v14798_v33, %v8969_v28  ;;  %v5749_v19 = vsub.f32 %v14799_v63, %v8994_v10  ;;  %v14804_v10 = vld [vmem:[#allocation7_spill] sm:$0xff]  ;;  %v14805_v33 = vld [vmem:[#allocation10_spill] sm:$0xff] }
 0x1dd   : > { %14787 = vst [vmem:[#allocation43_spill] sm:$0xff] %v9061_v5  ;;  %v9065_v21 = vpop.eup %7622  ;;  %v2029_v29 = vmul.f32 1.442695, %v2005_v18  ;;  %7638 = vpow2.f32 %v5771_v24  ;;  %v4373_v53 = vsub.f32 %v14804_v10, %v8983_v44  ;;  %v14809_v44 = vld [vmem:[#allocation9_spill] sm:$0xff] }
 0x1de   : > { %14788 = vst [vmem:[#allocation44_spill] sm:$0xff] %v9065_v21  ;;  %v9080_v12 = vpop.eup %7624  ;;  %v3021_v46 = vmul.f32 1.442695, %v2997_v39  ;;  %v5773_v41 = vmul.f32 1.442695, %v5749_v19 }
 0x1df   : > { %14789 = vst [vmem:[#allocation45_spill] sm:$0xff] %v9080_v12  ;;  %v9082_v2 = vpop.eup %7626  ;;  %7640 = vpow2.f32 %v2029_v29  ;;  %v14803_v29 = vld [vmem:[#allocation3_spill] sm:$0xff]  ;;  %v4397_v19 = vmul.f32 1.442695, %v4373_v53  ;;  %v14811_v53 = vld [vmem:[#allocation14_spill] sm:$0xff] }
 0x1e0   : > { %14790 = vst [vmem:[#allocation46_spill] sm:$0xff] %v9082_v2  ;;  %v9084_v1 = vpop.eup %7628  ;;  %7642 = vpow2.f32 %v3019_v9  ;;  %v4372_v0 = vsub.f32 %v14803_v29, %v8960_v58 }
 0x1e1   : > { %14791 = vst [vmem:[#allocation47_spill] sm:$0xff] %v9084_v1  ;;  %v9101_v49 = vpop.eup %7630  ;;  %7644 = vpow2.f32 %v3021_v46 }
 0x1e2   : > { %v9002_v4 = vpop.xlane.xlu2 %2975  ;;  %v9004_v34 = vpop.xlane.xlu0 %1983  ;;  %14794 = vst [vmem:[#allocation4_spill] sm:$0xff] %v9101_v49  ;;  %7646 = vpow2.f32 %v5773_v41  ;;  %v4395_v63 = vmul.f32 1.442695, %v4372_v0  ;;  %v14810_v41 = vld [vmem:[#allocation11_spill] sm:$0xff] }
 0x1e3   : > { %4417 = vadd.xlane.f32.xlu1 %v9000_v48  ;;  %v9017_v22 = vpop.xlane.xlu1 %4351  ;;  %v9103_v59 = vpop.eup %7632  ;;  %v2998_v39 = vsub.f32 %v14805_v33, %v9002_v4  ;;  %v2006_v10 = vsub.f32 %v14809_v44, %v9004_v34 }
 0x1e4   : > { %3043 = vadd.xlane.f32.xlu0 %v9006_v25  ;;  %3041 = vadd.xlane.f32.xlu2 %v8998_v17  ;;  %14795 = vst [vmem:[#allocation6_spill] sm:$0xff] %v9103_v59  ;;  %v9105_v56 = vpop.eup %7634  ;;  %7648 = vpow2.f32 %v4395_v63  ;;  %v4374_v0 = vsub.f32 %v14810_v41, %v9017_v22  ;;  %v14815_v22 = vld [vmem:[#allocation13_spill] sm:$0xff]  ;;  %v10045_v25 = vld [vmem:[%s8065_s30 + $0x4c] sm:$0xf] }
 0x1e5   : > { %14796 = vst [vmem:[#allocation48_spill] sm:$0xff] %v9105_v56  ;;  %v9118_v30 = vpop.eup %7636  ;;  %v3023_v58 = vmul.f32 1.442695, %v2998_v39  ;;  %7650 = vpow2.f32 %v4397_v19  ;;  %v2031_v39 = vmul.f32 1.442695, %v2006_v10  ;;  %v14817_v10 = vld [vmem:[#allocation18_spill] sm:$0xff] }
 0x1e6   : > { %14800 = vst [vmem:[#allocation2_spill] sm:$0xff] %v9118_v30  ;;  %v9124_v28 = vpop.eup %7638  ;;  %v4399_v34 = vmul.f32 1.442695, %v4374_v0 }
 0x1e7   : > { %14801 = vst [vmem:[#allocation5_spill] sm:$0xff] %v9124_v28  ;;  %v9126_v24 = vpop.eup %7640  ;;  %7652 = vpow2.f32 %v3023_v58 }
 0x1e8   : > { %14802 = vst [vmem:[#allocation8_spill] sm:$0xff] %v9126_v24  ;;  %7654 = vpow2.f32 %v2031_v39 }
 0x1e9   : > { %7656 = vpow2.f32 %v4399_v34  ;;  %14916 = vst [vmem:[#allocation60_spill] sm:$0xff] %v10045_v25 }
 0x1ea   : > { %v9023_v54 = vpop.xlane.xlu2 %5727  ;;  %v9025_v14 = vpop.xlane.xlu0 %2977 }
 0x1eb   : > { %2051 = vadd.xlane.f32.xlu1 %v9019_v42  ;;  %v9038_v43 = vpop.xlane.xlu1 %1985  ;;  %v5750_v41 = vsub.f32 %v14815_v22, %v9023_v54 }
 0x1ec   : > { %4421 = vadd.xlane.f32.xlu0 %v9027_v23  ;;  %4419 = vadd.xlane.f32.xlu2 %v9021_v47  ;;  %v2007_v33 = vsub.f32 %v14811_v53, %v9038_v43  ;;  %v14816_v43 = vld [vmem:[#allocation16_spill] sm:$0xff] }
 0x1ed   : > { %v5775_v39 = vmul.f32 1.442695, %v5750_v41 }
 0x1ee   : > { %v2033_v44 = vmul.f32 1.442695, %v2007_v33 }
 0x1f0   : > { %7658 = vpow2.f32 %v2033_v44 }
 0x1f1   : > { %7660 = vpow2.f32 %v5775_v39  ;;  %v14824_v39 = vld [vmem:[#allocation15_spill] sm:$0xff] }
 0x1f2   : > { %v9049_v40 = vpop.xlane.xlu2 %4353  ;;  %v9051_v57 = vpop.xlane.xlu0 %5729 }
 0x1f3   : > { %5795 = vadd.xlane.f32.xlu1 %v9040_v36  ;;  %v9063_v37 = vpop.xlane.xlu1 %2979  ;;  %v5751_v58 = vsub.f32 %v14816_v43, %v9051_v57  ;;  %v14821_v43 = vld [vmem:[#allocation12_spill] sm:$0xff] }
 0x1f4   : > { %2055 = vadd.xlane.f32.xlu0 %v9044_v35  ;;  %2053 = vadd.xlane.f32.xlu2 %v9042_v62  ;;  %v2999_v44 = vsub.f32 %v14821_v43, %v9025_v14  ;;  %v14825_v43 = vld [vmem:[#allocation19_spill] sm:$0xff] }
 0x1f5   : > { %v5777_v54 = vmul.f32 1.442695, %v5751_v58  ;;  %v14823_v58 = vld [vmem:[#allocation20_spill] sm:$0xff] }
 0x1f6   : > { %v3025_v14 = vmul.f32 1.442695, %v2999_v44 }
 0x1f7   : > { %7662 = vpow2.f32 %v5777_v54 }
 0x1fa   : > { %v9076_v3 = vpop.xlane.xlu2 %1987  ;;  %v9078_v55 = vpop.xlane.xlu0 %4355 }
 0x1fb   : > { %3045 = vadd.xlane.f32.xlu1 %v9059_v15  ;;  %v9093_v20 = vpop.xlane.xlu1 %5731  ;;  %v2008_v0 = vsub.f32 %v14817_v10, %v9076_v3  ;;  %v14822_v3 = vld [vmem:[#allocation17_spill] sm:$0xff]  ;;  %v4376_v54 = vsub.f32 %v14825_v43, %v9078_v55 }
 0x1fc   : > { %5799 = vadd.xlane.f32.xlu0 %v9065_v21  ;;  %5797 = vadd.xlane.f32.xlu2 %v9061_v5  ;;  %v3000_v10 = vsub.f32 %v14822_v3, %v9063_v37 }
 0x1fd   : > { %v2035_v34 = vmul.f32 1.442695, %v2008_v0  ;;  %v5752_v0 = vsub.f32 %v14823_v58, %v9093_v20  ;;  %v4403_v55 = vmul.f32 1.442695, %v4376_v54 }
 0x1fe   : > { %v3027_v3 = vmul.f32 1.442695, %v3000_v10  ;;  %v14832_v10 = vld [vmem:[#allocation24_spill] sm:$0xff] }
 0x1ff   : > { %7664 = vpow2.f32 %v2035_v34 }
 0x200   : > { %7666 = vpow2.f32 %v3025_v14  ;;  %v14834_v14 = vld [vmem:[#allocation26_spill] sm:$0xff] }
 0x201   : > { %7668 = vpow2.f32 %v3027_v3 }
 0x202   : > { %v9097_v52 = vpop.xlane.xlu2 %2981  ;;  %v9099_v7 = vpop.xlane.xlu0 %1989 }
 0x203   : > { %4423 = vadd.xlane.f32.xlu1 %v9082_v2  ;;  %v9116_v27 = vpop.xlane.xlu1 %4357 }
 0x204   : > { %3049 = vadd.xlane.f32.xlu0 %v9084_v1  ;;  %3047 = vadd.xlane.f32.xlu2 %v9080_v12  ;;  %v9493_v12 = vld [vmem:[%s8065_s30 + $0x1c] sm:$0xf] }
 0x20a   : > { %v9120_v18 = vpop.xlane.xlu2 %5733  ;;  %v9122_v45 = vpop.xlane.xlu0 %2983 }
 0x20b   : > { %2057 = vadd.xlane.f32.xlu1 %v9101_v49  ;;  %v9137_v9 = vpop.xlane.xlu1 %1991 }
 0x20c   : > { %4425 = vadd.xlane.f32.xlu0 %v9103_v59  ;;  %2059 = vadd.xlane.f32.xlu2 %v9105_v56  ;;  %v9139_v59 = vpop.eup %7642 }
 0x20d   : > { %14806 = vst [vmem:[#allocation3_spill] sm:$0xff] %v9139_v59  ;;  %v9141_v29 = vpop.eup %7644 }
 0x20e   : > { %14807 = vst [vmem:[#allocation7_spill] sm:$0xff] %v9141_v29  ;;  %v9143_v46 = vpop.eup %7646 }
 0x20f   : > { %14808 = vst [vmem:[#allocation10_spill] sm:$0xff] %v9143_v46  ;;  %v9158_v63 = vpop.eup %7648 }
 0x210   : > { %14812 = vst [vmem:[#allocation9_spill] sm:$0xff] %v9158_v63 }
 0x212   : > { %v9150_v4 = vpop.xlane.xlu0 %5735 }
 0x213   : > { %5801 = vadd.xlane.f32.xlu1 %v9118_v30  ;;  %v9478_v30 = vld [vmem:[%s8065_s30 + $0x18] sm:$0xf] }
 0x214   : > { %2061 = vadd.xlane.f32.xlu0 %v9126_v24  ;;  %5803 = vadd.xlane.f32.xlu2 %v9124_v28  ;;  %v9148_v24 = vpop.xlane.xlu2 %4359 }
 0x21b   : > { %3051 = vadd.xlane.f32.xlu1 %v9139_v59  ;;  %v9160_v59 = vpop.eup %7650 }
 0x21c   : > { %5805 = vadd.xlane.f32.xlu0 %v9143_v46  ;;  %3053 = vadd.xlane.f32.xlu2 %v9141_v29  ;;  %14813 = vst [vmem:[#allocation11_spill] sm:$0xff] %v9160_v59  ;;  %v9162_v28 = vpop.xlane.xlu1 %2985  ;;  %v9164_v19 = vpop.eup %7652 }
 0x21d   : > { %14814 = vst [vmem:[#allocation14_spill] sm:$0xff] %v9164_v19  ;;  %v9175_v53 = vpop.xlane.xlu2 %1993  ;;  %v9179_v22 = vpop.eup %7654 }
 0x21e   : > { %14818 = vst [vmem:[#allocation13_spill] sm:$0xff] %v9179_v22 }
 0x222   : > { %v9177_v33 = vpop.xlane.xlu0 %4361 }
 0x223   : > { %4427 = vadd.xlane.f32.xlu1 %v9158_v63  ;;  %v9181_v63 = vpop.eup %7656 }
 0x224   : > { %3055 = vadd.xlane.f32.xlu0 %v9164_v19  ;;  %4429 = vadd.xlane.f32.xlu2 %v9160_v59  ;;  %14819 = vst [vmem:[#allocation16_spill] sm:$0xff] %v9181_v63  ;;  %v9183_v57 = vpop.eup %7658  ;;  %v9192_v41 = vpop.xlane.xlu1 %5737  ;;  %v4375_v19 = vsub.f32 %v14824_v39, %v9049_v40  ;;  %v5779_v59 = vmul.f32 1.442695, %v5752_v0  ;;  %v14829_v40 = vld [vmem:[#allocation21_spill] sm:$0xff]  ;;  %v14831_v39 = vld [vmem:[#allocation23_spill] sm:$0xff] }
 0x225   : > { %14820 = vst [vmem:[#allocation18_spill] sm:$0xff] %v9183_v57  ;;  %v2009_v44 = vsub.f32 %v14829_v40, %v9099_v7  ;;  %v4377_v43 = vsub.f32 %v14831_v39, %v9116_v27  ;;  %v14833_v7 = vld [vmem:[#allocation25_spill] sm:$0xff]  ;;  %v2010_v27 = vsub.f32 %v14834_v14, %v9137_v9  ;;  %v14843_v14 = vld [vmem:[#allocation30_spill] sm:$0xff] }
 0x226   : > { %v4401_v20 = vmul.f32 1.442695, %v4375_v19  ;;  %7670 = vpow2.f32 %v5779_v59 }
 0x227   : > { %v2037_v0 = vmul.f32 1.442695, %v2009_v44  ;;  %v4405_v3 = vmul.f32 1.442695, %v4377_v43  ;;  %v2039_v9 = vmul.f32 1.442695, %v2010_v27  ;;  %v2011_v27 = vsub.f32 %v14843_v14, %v9175_v53 }
 0x228   : > { %7672 = vpow2.f32 %v4401_v20 }
 0x229   : > { %7674 = vpow2.f32 %v4403_v55  ;;  %v14838_v55 = vld [vmem:[#allocation28_spill] sm:$0xff] }
 0x22a   : > { %v5754_v43 = vsub.f32 %v14838_v55, %v9150_v4 }
 0x22b   : > { %2063 = vadd.xlane.f32.xlu1 %v9179_v22 }
 0x22c   : > { %4431 = vadd.xlane.f32.xlu0 %v9181_v63  ;;  %2065 = vadd.xlane.f32.xlu2 %v9183_v57  ;;  %v9204_v63 = vpop.eup %7660  ;;  %v14827_v57 = vld [vmem:[#allocation22_spill] sm:$0xff] }
 0x22d   : > { %14826 = vst [vmem:[#allocation12_spill] sm:$0xff] %v9204_v63  ;;  %v3001_v34 = vsub.f32 %v14827_v57, %v9097_v52  ;;  %v9208_v46 = vpop.eup %7662  ;;  %v5753_v52 = vsub.f32 %v14832_v10, %v9120_v18  ;;  %v3002_v57 = vsub.f32 %v14833_v7, %v9122_v45  ;;  %v14842_v7 = vld [vmem:[#allocation29_spill] sm:$0xff] }
 0x22e   : > { %14828 = vst [vmem:[#allocation17_spill] sm:$0xff] %v9208_v46  ;;  %v9212_v58 = vpop.eup %7664 }
 0x22f   : > { %v9200_v22 = vpop.xlane.xlu2 %2987  ;;  %v9202_v37 = vpop.xlane.xlu0 %1995  ;;  %14830 = vst [vmem:[#allocation20_spill] sm:$0xff] %v9212_v58  ;;  %v3029_v19 = vmul.f32 1.442695, %v3001_v34  ;;  %v5781_v39 = vmul.f32 1.442695, %v5753_v52  ;;  %v14836_v34 = vld [vmem:[#allocation27_spill] sm:$0xff] }
 0x230   : > { %v9232_v59 = vpop.eup %7666  ;;  %v3031_v45 = vmul.f32 1.442695, %v3002_v57  ;;  %v4378_v20 = vsub.f32 %v14836_v34, %v9148_v24  ;;  %v3003_v57 = vsub.f32 %v14842_v7, %v9162_v28  ;;  %v14846_v28 = vld [vmem:[#allocation31_spill] sm:$0xff] }
 0x231   : > { %14835 = vst [vmem:[#allocation15_spill] sm:$0xff] %v9232_v59  ;;  %v9236_v44 = vpop.eup %7668 }
 0x232   : > { %14837 = vst [vmem:[#allocation19_spill] sm:$0xff] %v9236_v44  ;;  %v9240_v10 = vpop.eup %7670  ;;  %v3033_v53 = vmul.f32 1.442695, %v3003_v57 }
 0x233   : > { %5807 = vadd.xlane.f32.xlu1 %v9204_v63  ;;  %14839 = vst [vmem:[#allocation22_spill] sm:$0xff] %v9240_v10  ;;  %v9243_v52 = vpop.eup %7672 }
 0x234   : > { %2067 = vadd.xlane.f32.xlu0 %v9212_v58  ;;  %5809 = vadd.xlane.f32.xlu2 %v9208_v46  ;;  %14840 = vst [vmem:[#allocation21_spill] sm:$0xff] %v9243_v52  ;;  %v9247_v24 = vpop.eup %7674  ;;  %v3004_v58 = vsub.f32 %v8896_v8, %v9200_v22 }
 0x235   : > { %14841 = vst [vmem:[#allocation23_spill] sm:$0xff] %v9247_v24 }
 0x236   : > { %v9225_v54 = vpop.xlane.xlu1 %4363 }
 0x237   : > { %v9227_v40 = vpop.xlane.xlu2 %5739  ;;  %v9229_v18 = vpop.xlane.xlu0 %3037 }
 0x238   : > { %7676 = vrcp.f32 %v9229_v18  ;;  %vm3074_vm9 = vweird.f32 %v9229_v18 }
 0x239   : > { %7678 = vpow2.f32 %v3029_v19  ;;  %v4407_v19 = vmul.f32 1.442695, %v4378_v20  ;;  %v4379_v20 = vsub.f32 %v14846_v28, %v9177_v33  ;;  %v3080_v33 = vand.u32 2147483648, %v9229_v18 }
 0x23a   : > { %7680 = vpow2.f32 %v2037_v0  ;;  %v5783_v0 = vmul.f32 1.442695, %v5754_v43  ;;  %v14848_v43 = vld [vmem:[#allocation32_spill] sm:$0xff] }
 0x23b   : > { %7682 = vpow2.f32 %v4405_v3  ;;  %3057 = vadd.xlane.f32.xlu1 %v9232_v59  ;;  %v5755_v7 = vsub.f32 %v14848_v43, %v9192_v41  ;;  %v2041_v59 = vmul.f32 1.442695, %v2011_v27  ;;  %v3078_v41 = vand.u32 2147483647, %v9229_v18 }
 0x23c   : > { %7684 = vpow2.f32 %v5781_v39  ;;  %5811 = vadd.xlane.f32.xlu0 %v9240_v10  ;;  %3059 = vadd.xlane.f32.xlu2 %v9236_v44  ;;  %v4380_v27 = vsub.f32 %v8913_v31, %v9225_v54  ;;  %v5756_v31 = vsub.f32 %v8916_v61, %v9227_v40  ;;  %v3081_v54 = vor.u32 1.1754944e-38, %v3080_v33 }
 0x23d   : > { %7686 = vpow2.f32 %v3031_v45  ;;  %v5785_v22 = vmul.f32 1.442695, %v5755_v7  ;;  %vm3079_vm11 = vcmp.eq.f32.partialorder %v3078_v41, 8.507059e+37 }
 0x23e   : > { %v7677_v4 = vpop.eup %7676  ;;  %7688 = vpow2.f32 %v2039_v9  ;;  %v9253_v3 = vpop.xlane.xlu1 %2045  ;;  %v4411_v61 = vmul.f32 1.442695, %v4380_v27  ;;  %v5787_v33 = vmul.f32 1.442695, %v5756_v31 }
 0x23f   : > { %v9255_v39 = vpop.eup %7678  ;;  %v3070_v34 = vmul.f32 %v7677_v4, %v9229_v18  ;;  %v9258_v55 = vpop.xlane.xlu2 %4413  ;;  %7690 = vrcp.f32 %v9253_v3  ;;  %vm3075_vm8 = vweird.f32 %v7677_v4  ;;  %vm2082_vm15 = vweird.f32 %v9253_v3 }
 0x240   : > { %14844 = vst [vmem:[#allocation24_spill] sm:$0xff] %v9255_v39  ;;  %v9261_v45 = vpop.eup %7680  ;;  %7692 = vrcp.f32 %v9258_v55  ;;  %v9270_v10 = vpop.xlane.xlu0 %4415  ;;  %vm3076_vm10 = vmor %vm3074_vm9, %vm3075_vm8  ;;  %vm4450_vm14 = vweird.f32 %v9258_v55 }
 0x241   : > { %14845 = vst [vmem:[#allocation25_spill] sm:$0xff] %v9261_v45  ;;  %v9266_v9 = vpop.eup %7682  ;;  %7694 = vpow2.f32 %v4407_v19  ;;  %v3071_v14 = vsub.f32 1.0, %v3070_v34  ;;  %v14851_v19 = vld [vmem:[#allocation33_spill] sm:$0xff] }
 0x242   : > { %14847 = vst [vmem:[#allocation26_spill] sm:$0xff] %v9266_v9  ;;  %v9272_v44 = vpop.eup %7684  ;;  %7696 = vpow2.f32 %v5783_v0  ;;  %v2012_v57 = vsub.f32 %v14851_v19, %v9202_v37  ;;  %v4409_v0 = vmul.f32 1.442695, %v4379_v20  ;;  %v3035_v20 = vmul.f32 1.442695, %v3004_v58 }
 0x243   : > { %14849 = vst [vmem:[#allocation27_spill] sm:$0xff] %v9272_v44  ;;  %v9277_v28 = vpop.eup %7686  ;;  %v3072_v46 = vmul.f32 %v7677_v4, %v3071_v14  ;;  %4433 = vadd.xlane.f32.xlu1 %v9243_v52  ;;  %7698 = vrcp.f32 %v9270_v10  ;;  %v9431_v52 = vld [vmem:[%s8065_s30 + $0xc] sm:$0xf] }
 0x244   : > { %14850 = vst [vmem:[#allocation28_spill] sm:$0xff] %v9277_v28  ;;  %v9283_v34 = vpop.eup %7688  ;;  %3061 = vadd.xlane.f32.xlu0 %v9255_v39  ;;  %4435 = vadd.xlane.f32.xlu2 %v9247_v24  ;;  %7700 = vpow2.f32 %v3033_v53  ;;  %v2043_v53 = vmul.f32 1.442695, %v2012_v57 }
 0x245   : > { %14852 = vst [vmem:[#allocation29_spill] sm:$0xff] %v9283_v34  ;;  %v9290_v8 = vpop.eup %7690  ;;  %v3073_v37 = vadd.f32 %v7677_v4, %v3072_v46  ;;  %7702 = vpow2.f32 %v2041_v59 }
 0x246   : > { %v9293_v43 = vpop.eup %7692  ;;  %v2078_v14 = vmul.f32 %v9290_v8, %v9253_v3  ;;  %7704 = vpow2.f32 %v4409_v0  ;;  %vm2083_vm12 = vweird.f32 %v9290_v8 }
 0x247   : > { %v9300_v19 = vpop.eup %7694  ;;  %v3077_v7 = vsel %vm3076_vm10, %v7677_v4, %v3073_v37  ;;  %v4446_v40 = vmul.f32 %v9293_v43, %v9258_v55  ;;  %7706 = vpow2.f32 %v5785_v22  ;;  %v9327_v37 = vpop.xlane.xlu1 %5789  ;;  %vm4451_vm13 = vweird.f32 %v9293_v43  ;;  %vm2084_vm8 = vmor %vm2082_vm15, %vm2083_vm12 }
 0x248   : > { %14853 = vst [vmem:[#allocation30_spill] sm:$0xff] %v9300_v19  ;;  %v9302_v46 = vpop.eup %7696  ;;  %v3082_v58 = vsel %vm3079_vm11, %v3081_v54, %v3077_v7  ;;  %v2079_v59 = vsub.f32 1.0, %v2078_v14  ;;  %7708 = vpow2.f32 %v3035_v20  ;;  %v4454_v54 = vand.u32 2147483647, %v9258_v55  ;;  %v9341_v7 = vpop.xlane.xlu2 %2047  ;;  %vm4452_vm9 = vmor %vm4450_vm14, %vm4451_vm13 }
 0x249   : > { %14854 = vst [vmem:[#allocation31_spill] sm:$0xff] %v9302_v46  ;;  %v9314_v18 = vmul.f32 %v8922_v6, %v3082_v58  ;;  %v9316_v4 = vpop.eup %7698  ;;  %7710 = vpow2.f32 %v2043_v53  ;;  %v4447_v22 = vsub.f32 1.0, %v4446_v40  ;;  %v4456_v40 = vand.u32 2147483648, %v9258_v55 }
 0x24a   : > { %v9318_v57 = vpop.eup %7700  ;;  %7712 = vpow2.f32 %v4411_v61  ;;  %v2080_v14 = vmul.f32 %v9290_v8, %v2079_v59  ;;  %v4460_v53 = vmul.f32 %v9316_v4, %v9270_v10  ;;  %vm9383_vm0 = vcmp.eq.f32.partialorder %v4454_v54, 8.507059e+37 }
 0x24b   : > { %14855 = vst [vmem:[#allocation32_spill] sm:$0xff] %v9318_v57  ;;  %v14648_v41 = vrot.slane %v9314_v18, 1  ;;  %v14649_v0 = vrot.slane %v9314_v18, 2  ;;  %v14651_v27 = vrot.slane %v9314_v18, 3  ;;  %2069 = vadd.xlane.f32.xlu1 %v9261_v45  ;;  %v14654_v6 = vrot.slane %v9314_v18, 4  ;;  %v9331_v20 = vpop.eup %7702 }
 0x24c   : > { %3549 = vst [vmem:[%s9309_s25 + $0x1] sm:$0x1] %v9314_v18  ;;  %4437 = vadd.xlane.f32.xlu0 %v9266_v9  ;;  %2071 = vadd.xlane.f32.xlu2 %v9283_v34  ;;  %v9343_v61 = vpop.eup %7704  ;;  %7714 = vpow2.f32 %v5787_v33  ;;  %v3331_v31 = vrot.slane %v9314_v18, 7  ;;  %v2086_v33 = vand.u32 2147483647, %v9253_v3  ;;  %v4448_v58 = vmul.f32 %v9293_v43, %v4447_v22 }
 0x24d   : > { %14856 = vst [vmem:[#allocation33_spill] sm:$0xff] %v9331_v20  ;;  %v9351_v59 = vpop.eup %7706  ;;  %7716 = vrcp.f32 %v9327_v37  ;;  %v4470_v9 = vand.u32 2147483648, %v9270_v10  ;;  %v14861_v45 = vrot.slane %v9314_v18, 5  ;;  %v2081_v34 = vadd.f32 %v9290_v8, %v2080_v14 }
 0x24e   : > { %3550 = vst [vmem:[%s9309_s25 + $0x5] sm:$0x1] %v14648_v41  ;;  %v2088_v41 = vand.u32 2147483648, %v9253_v3  ;;  %7718 = vrcp.f32 %v9341_v7  ;;  %v14863_v39 = vrot.slane %v9314_v18, 6  ;;  %v4449_v24 = vadd.f32 %v9293_v43, %v4448_v58  ;;  %v9416_v58 = vld [vmem:[%s8065_s30 + $0x4] sm:$0xf] }
 0x24f   : > { %14857 = vst [vmem:[#allocation49_spill] sm:$0xff] %v9343_v61  ;;  %v4457_v63 = vor.u32 1.1754944e-38, %v4456_v40  ;;  %v2085_v3 = vsel %vm2084_vm8, %v9290_v8, %v2081_v34  ;;  %vm2087_vm10 = vcmp.eq.f32.partialorder %v2086_v33, 8.507059e+37  ;;  %vm4464_vm11 = vweird.f32 %v9270_v10  ;;  %v9423_v33 = vld [vmem:[%s8065_s30 + $0x8] sm:$0xf] }
 0x250   : > { %3551 = vst [vmem:[%s9309_s25 + $0x9] sm:$0x1] %v14649_v0  ;;  %v9360_v0 = vpop.eup %7708  ;;  %v2089_v55 = vor.u32 1.1754944e-38, %v2088_v41  ;;  %v4453_v54 = vsel %vm4452_vm9, %v9293_v43, %v4449_v24  ;;  %vm4465_vm12 = vweird.f32 %v9316_v4  ;;  %v9400_v14 = vor.u32 1.1754944e-38, %v4470_v9 }
 0x251   : > { %14858 = vst [vmem:[#allocation50_spill] sm:$0xff] %v9351_v59  ;;  %v4458_v8 = vsel %vm9383_vm0, %v4457_v63, %v4453_v54  ;;  %v9420_v40 = vmul.f32 %v9416_v58, %v9314_v18  ;;  %v14867_v63 = vrot.slane %v9314_v18, 1  ;;  %v9442_v54 = vld [vmem:[%s8065_s30] sm:$0xf]  ;;  %v14869_v9 = vrot.slane %v9314_v18, 3  ;;  %vm9518_vm14 = vmor %vm4464_vm11, %vm4465_vm12 }
 0x252   : > { %3552 = vst [vmem:[%s9309_s25 + $0xd] sm:$0x1] %v14651_v27  ;;  %v9369_v27 = vpop.eup %7710  ;;  %v2090_v41 = vsel %vm2087_vm10, %v2089_v55, %v2085_v3  ;;  %v9439_v3 = vmul.f32 %v8937_v26, %v4458_v8  ;;  %v14873_v8 = vrot.slane %v9314_v18, 5  ;;  %v14875_v21 = vrot.slane %v9314_v18, 6 }
 0x253   : > { %14859 = vst [vmem:[#allocation51_spill] sm:$0xff] %v9360_v0  ;;  %v9377_v22 = vpop.eup %7712  ;;  %5813 = vadd.xlane.f32.xlu1 %v9272_v44  ;;  %v9409_v24 = vmul.f32 %v8935_v50, %v2090_v41  ;;  %v9428_v50 = vmul.f32 %v9423_v33, %v14867_v63  ;;  %v9445_v41 = vmul.f32 %v9442_v54, %v3331_v31  ;;  %v9448_v63 = vld [vmem:[%s8065_s30 + $0x10] sm:$0xf]  ;;  %v9456_v44 = vld [vmem:[%s8065_s30 + $0x14] sm:$0xf]  ;;  %vm5826_vm0 = vweird.f32 %v9327_v37 }
 0x254   : > { %3553 = vst [vmem:[%s9309_s25 + $0x11] sm:$0x1] %v14654_v6  ;;  %v4461_v6 = vsub.f32 1.0, %v4460_v53  ;;  %2073 = vadd.xlane.f32.xlu0 %v9331_v20  ;;  %3065 = vadd.xlane.f32.xlu2 %v9318_v57  ;;  %v9453_v20 = vmul.f32 %v9448_v63, %v14869_v9  ;;  %v4701_v9 = vrot.slane %v9439_v3, 1  ;;  %v4702_v57 = vrot.slane %v9439_v3, 2 }
 0x255   : > { %14860 = vst [vmem:[#allocation52_spill] sm:$0xff] %v9369_v27  ;;  %v4703_v29 = vrot.slane %v9439_v3, 3  ;;  %v4704_v49 = vrot.slane %v9439_v3, 4  ;;  %v14874_v56 = vrot.slane %v9409_v24, 1  ;;  %v9498_v5 = vmul.f32 %v9493_v12, %v14875_v21 }
 0x256   : > { %3554 = vst [vmem:[%s9309_s25 + $0x15] sm:$0x1] %v14861_v45  ;;  %v9396_v45 = vpop.eup %7714  ;;  %v4462_v43 = vmul.f32 %v9316_v4, %v4461_v6  ;;  %v14868_v6 = vrot.slane %v9314_v18, 2  ;;  %v4705_v15 = vrot.slane %v9439_v3, 5  ;;  %v4706_v62 = vrot.slane %v9439_v3, 6 }
 0x257   : > { %14862 = vst [vmem:[#allocation53_spill] sm:$0xff] %v9377_v22  ;;  %v9404_v34 = vpop.eup %7716  ;;  %v2334_v21 = vrot.slane %v9409_v24, 2  ;;  %v9545_v35 = vmul.f32 %v9448_v63, %v4702_v57  ;;  %v14881_v42 = vrot.slane %v9409_v24, 1  ;;  %vm2096_vm11 = vweird.f32 %v9341_v7 }
 0x258   : > { %3555 = vst [vmem:[%s9309_s25 + $0x19] sm:$0x1] %v14863_v39  ;;  %v4468_v39 = vand.u32 2147483647, %v9270_v10  ;;  %v9413_v53 = vpop.eup %7718  ;;  %v9436_v55 = vmul.f32 %v9431_v52, %v14868_v6  ;;  %v14870_v6 = vrot.slane %v9314_v18, 4  ;;  %v4463_v1 = vadd.f32 %v9316_v4, %v4462_v43 }
 0x259   : > { %3556 = vst [vmem:[%s9309_s25 + $0x1d] sm:$0x1] %v3331_v31  ;;  %v2092_v2 = vmul.f32 %v9413_v53, %v9341_v7  ;;  %vm5827_vm15 = vweird.f32 %v9404_v34  ;;  %v9539_v18 = vmul.f32 %v9423_v33, %v9439_v3  ;;  %v5069_v31 = vmul.f32 %v9442_v54, %v4706_v62 }
 0x25a   : > { %14866 = vst [vmem:[#allocation54_spill] sm:$0xff] %v9396_v45  ;;  %v9461_v26 = vmul.f32 %v9456_v44, %v14870_v6  ;;  %vm9466_vm13 = vcmp.eq.f32.partialorder %v4468_v39, 8.507059e+37  ;;  %v5822_v6 = vmul.f32 %v9404_v34, %v9327_v37  ;;  %v9483_v39 = vmul.f32 %v9478_v30, %v14873_v8  ;;  %vm5828_vm10 = vmor %vm5826_vm0, %vm5827_vm15 }
 0x25b   : > { %2557 = vst [vmem:[%s9309_s25] sm:$0x1] %v9409_v24  ;;  %3063 = vadd.xlane.f32.xlu1 %v9277_v28  ;;  %v4707_v8 = vrot.slane %v9439_v3, 7  ;;  %v4467_v43 = vsel %vm9518_vm14, %v9316_v4, %v4463_v1  ;;  %v2093_v10 = vsub.f32 1.0, %v2092_v2  ;;  %v2336_v2 = vrot.slane %v9409_v24, 4 }
 0x25c   : > { %4925 = vst [vmem:[%s9309_s25 + $0x2] sm:$0x1] %v9439_v3  ;;  %v5823_v36 = vsub.f32 1.0, %v5822_v6  ;;  %3067 = vadd.xlane.f32.xlu0 %v9360_v0  ;;  %4441 = vadd.xlane.f32.xlu2 %v9343_v61  ;;  %v2335_v6 = vrot.slane %v9409_v24, 3  ;;  %v9542_v61 = vmul.f32 %v9431_v52, %v4701_v9  ;;  %v9550_v1 = vmul.f32 %v9456_v44, %v4703_v29 }
 0x25d   : > { %2558 = vst [vmem:[%s9309_s25 + $0x4] sm:$0x1] %v14874_v56  ;;  %v5832_v56 = vand.u32 2147483648, %v9327_v37  ;;  %v2337_v4 = vrot.slane %v9409_v24, 5  ;;  %v4472_v3 = vsel %vm9466_vm13, %v9400_v14, %v4467_v43  ;;  %v9570_v14 = vmul.f32 %v9493_v12, %v4705_v15 }
 0x25e   : > { %4926 = vst [vmem:[%s9309_s25 + $0x6] sm:$0x1] %v4701_v9  ;;  %v2338_v9 = vrot.slane %v9409_v24, 6  ;;  %v14878_v43 = vand.u32 2147483647, %v9327_v37  ;;  %v2703_v47 = vmul.f32 %v9423_v33, %v2334_v21  ;;  %vm2097_vm9 = vweird.f32 %v9413_v53 }
 0x25f   : > { %4927 = vst [vmem:[%s9309_s25 + $0xa] sm:$0x1] %v4702_v57  ;;  %v9534_v0 = vor.u32 1.1754944e-38, %v5832_v56  ;;  %v5824_v56 = vmul.f32 %v9404_v34, %v5823_v36  ;;  %v9559_v57 = vmul.f32 %v9478_v30, %v4704_v49  ;;  %v5070_v36 = vmul.f32 %v9416_v58, %v4707_v8  ;;  %vm9704_vm12 = vmor %vm2096_vm11, %vm2097_vm9 }
 0x260   : > { %4928 = vst [vmem:[%s9309_s25 + $0xe] sm:$0x1] %v4703_v29  ;;  %v9564_v29 = vmul.f32 %v9413_v53, %v2093_v10  ;;  %vm9576_vm8 = vcmp.eq.f32.partialorder %v14878_v43, 8.507059e+37  ;;  %v5327_v10 = vrot.slane %v9539_v18, 2  ;;  %v2702_v43 = vmul.f32 %v9416_v58, %v14881_v42 }
 0x261   : > { %4929 = vst [vmem:[%s9309_s25 + $0x12] sm:$0x1] %v4704_v49  ;;  %v2339_v49 = vrot.slane %v9409_v24, 7  ;;  %v2705_v18 = vmul.f32 %v9448_v63, %v2336_v2  ;;  %v2706_v28 = vmul.f32 %v9456_v44, %v2337_v4  ;;  %v5325_v42 = vrot.slane %v5069_v31, 2 }
 0x262   : > { %4930 = vst [vmem:[%s9309_s25 + $0x16] sm:$0x1] %v4705_v15  ;;  %v9585_v15 = vmul.f32 %v8943_v11, %v4472_v3  ;;  %v2707_v3 = vmul.f32 %v9478_v30, %v2338_v9  ;;  %v5331_v11 = vrot.slane %v9559_v57, 2  ;;  %v14891_v37 = vrot.slane %v9483_v39, 1 }
 0x263   : > { %4931 = vst [vmem:[%s9309_s25 + $0x1a] sm:$0x1] %v4706_v62  ;;  %v5329_v62 = vrot.slane %v9545_v35, 2  ;;  %v2701_v35 = vmul.f32 %v9442_v54, %v9409_v24  ;;  %4439 = vadd.xlane.f32.xlu1 %v9300_v19  ;;  %v5825_v24 = vadd.f32 %v9404_v34, %v5824_v56  ;;  %v14883_v56 = vrot.slane %v9428_v50, 1 }
 0x264   : > { %4932 = vst [vmem:[%s9309_s25 + $0x1e] sm:$0x1] %v4707_v8  ;;  %v5330_v8 = vrot.slane %v9550_v1, 2  ;;  %4443 = vadd.xlane.f32.xlu0 %v9377_v22  ;;  %5815 = vadd.xlane.f32.xlu2 %v9302_v46  ;;  %v2708_v1 = vmul.f32 %v9493_v12, %v2339_v49  ;;  %v14884_v22 = vrot.slane %v9453_v20, 1  ;;  %v14886_v46 = vrot.slane %v9445_v41, 1 }
 0x265   : > { %2559 = vst [vmem:[%s9309_s25 + $0x8] sm:$0x1] %v2334_v21  ;;  %v2704_v21 = vmul.f32 %v9431_v52, %v2335_v6  ;;  %v4713_v50 = vrot.slane %v9585_v15, 6  ;;  %v5332_v20 = vrot.slane %v9570_v14, 2  ;;  %v14890_v41 = vrot.slane %v9585_v15, 3 }
 0x266   : > { %2560 = vst [vmem:[%s9309_s25 + $0xc] sm:$0x1] %v2335_v6  ;;  %v14882_v6 = vrot.slane %v9420_v40, 1  ;;  %v4205_v19 = vadd.f32 %v14886_v46, %v2701_v35  ;;  %v14887_v40 = vrot.slane %v9461_v26, 1  ;;  %v14889_v46 = vrot.slane %v9436_v55, 1 }
 0x267   : > { %2561 = vst [vmem:[%s9309_s25 + $0x10] sm:$0x1] %v2336_v2  ;;  %v4207_v2 = vadd.f32 %v14883_v56, %v2703_v47  ;;  %v14888_v47 = vrot.slane %v9585_v15, 2  ;;  %v5829_v26 = vsel %vm5828_vm10, %v9404_v34, %v5825_v24  ;;  %v9649_v35 = vadd.f32 %v14891_v37, %v2707_v3 }
 0x268   : > { %2562 = vst [vmem:[%s9309_s25 + $0x14] sm:$0x1] %v2337_v4  ;;  %v5326_v4 = vrot.slane %v5070_v36, 2  ;;  %v4206_v31 = vadd.f32 %v14882_v6, %v2702_v43  ;;  %v4209_v36 = vadd.f32 %v14884_v22, %v2705_v18  ;;  %v4210_v43 = vadd.f32 %v14887_v40, %v2706_v28  ;;  %v9645_v18 = vpop.xlane.xlu0 %2049 }
 0x269   : > { %2563 = vst [vmem:[%s9309_s25 + $0x18] sm:$0x1] %v2338_v9  ;;  %v4712_v9 = vrot.slane %v9585_v15, 5  ;;  %v4208_v22 = vadd.f32 %v14889_v46, %v2704_v21  ;;  %v4714_v28 = vrot.slane %v9585_v15, 7  ;;  %v14892_v6 = vrot.slane %v9498_v5, 1 }
 0x26a   : > { %2564 = vst [vmem:[%s9309_s25 + $0x1c] sm:$0x1] %v2339_v49  ;;  %v14885_v49 = vrot.slane %v9585_v15, 1  ;;  %v9655_v55 = vadd.f32 %v5325_v42, %v4205_v19  ;;  %v14893_v21 = vrot.slane %v9585_v15, 4  ;;  %v5834_v34 = vsel %vm9576_vm8, %v9534_v0, %v5829_v26 }
 0x26b   : > { %4933 = vst [vmem:[%s9309_s25 + $0x22] sm:$0x1] %v9585_v15  ;;  %v9653_v56 = vadd.f32 %v14892_v6, %v2708_v1  ;;  %v5582_v24 = vadd.f32 %v5326_v4, %v4206_v31  ;;  %v5585_v39 = vadd.f32 %v5329_v62, %v4209_v36  ;;  %v6045_v5 = vmul.f32 %v8958_v13, %v5834_v34  ;;  %v9685_v4 = vpop.xlane.xlu1 %3039 }
 0x26c   : > { %4934 = vst [vmem:[%s9309_s25 + $0x26] sm:$0x1] %v14885_v49  ;;  %v5583_v49 = vadd.f32 %v5327_v10, %v4207_v2  ;;  %v5586_v1 = vadd.f32 %v5330_v8, %v4210_v43  ;;  %v2095_v19 = vadd.f32 %v9413_v53, %v9564_v29  ;;  %v2102_v23 = vand.u32 2147483648, %v9341_v7  ;;  %5817 = vadd.xlane.f32.xlu0 %v9351_v59 }
 0x26d   : > { %4935 = vst [vmem:[%s9309_s25 + $0x2a] sm:$0x1] %v14888_v47  ;;  %7720 = vrcp.f32 %v9645_v18  ;;  %2075 = vadd.xlane.f32.xlu1 %v9369_v27  ;;  %v6077_v13 = vrot.slane %v6045_v5, 1  ;;  %v6078_v0 = vrot.slane %v6045_v5, 2  ;;  %v6079_v10 = vrot.slane %v6045_v5, 3 }
 0x26e   : > { %4936 = vst [vmem:[%s9309_s25 + $0x2e] sm:$0x1] %v14890_v41  ;;  %v6080_v62 = vrot.slane %v6045_v5, 4  ;;  %v6081_v29 = vrot.slane %v6045_v5, 5  ;;  %v6082_v8 = vrot.slane %v6045_v5, 6  ;;  %v6083_v42 = vrot.slane %v6045_v5, 7 }
 0x26f   : > { %4937 = vst [vmem:[%s9309_s25 + $0x32] sm:$0x1] %v14893_v21  ;;  %v6448_v2 = vmul.f32 %v9431_v52, %v6045_v5  ;;  %v6449_v3 = vmul.f32 %v9448_v63, %v6077_v13  ;;  %v6450_v31 = vmul.f32 %v9456_v44, %v6078_v0  ;;  %v6451_v36 = vmul.f32 %v9478_v30, %v6079_v10 }
 0x270   : > { %4938 = vst [vmem:[%s9309_s25 + $0x36] sm:$0x1] %v4712_v9  ;;  %v6452_v40 = vmul.f32 %v9493_v12, %v6080_v62  ;;  %v6445_v43 = vmul.f32 %v9442_v54, %v6081_v29  ;;  %v6446_v47 = vmul.f32 %v9416_v58, %v6082_v8  ;;  %v6447_v52 = vmul.f32 %v9423_v33, %v6083_v42 }
 0x271   : > { %4939 = vst [vmem:[%s9309_s25 + $0x3a] sm:$0x1] %v4713_v50  ;;  %v6704_v46 = vrot.slane %v6448_v2, 3  ;;  %v14894_v41 = vrot.slane %v9542_v61, 2  ;;  %v6705_v44 = vrot.slane %v6449_v3, 3  ;;  %v6706_v26 = vrot.slane %v6450_v31, 3 }
 0x272   : > { %4940 = vst [vmem:[%s9309_s25 + $0x3e] sm:$0x1] %v4714_v28  ;;  %7722 = vrcp.f32 %v9685_v4  ;;  %v6701_v58 = vrot.slane %v6445_v43, 3  ;;  %v6702_v61 = vrot.slane %v6446_v47, 3  ;;  %v6703_v33 = vrot.slane %v6447_v52, 3 }
 0x273   : > { %6301 = vst [vmem:[%s9309_s25 + $0x3] sm:$0x1] %v6045_v5  ;;  %v5584_v63 = vadd.f32 %v14894_v41, %v4208_v22  ;;  %v9709_v30 = vpop.eup %7720  ;;  %v2099_v54 = vsel %vm9704_vm12, %v9413_v53, %v2095_v19  ;;  %v6707_v22 = vrot.slane %v6451_v36, 3  ;;  %v6708_v37 = vrot.slane %v6452_v40, 3 }
 0x274   : > { %6302 = vst [vmem:[%s9309_s25 + $0x7] sm:$0x1] %v6077_v13  ;;  %v6961_v21 = vadd.f32 %v6705_v44, %v5585_v39  ;;  %v6958_v34 = vadd.f32 %v6702_v61, %v5582_v24  ;;  %v6959_v5 = vadd.f32 %v6703_v33, %v5583_v49  ;;  %v6962_v13 = vadd.f32 %v6706_v26, %v5586_v1  ;;  %v9781_v33 = vld [vmem:[%s8065_s30 + $0x28] sm:$0xf] }
 0x275   : > { %6303 = vst [vmem:[%s9309_s25 + $0xb] sm:$0x1] %v6078_v0  ;;  %v6960_v6 = vadd.f32 %v6704_v46, %v5584_v63  ;;  %v2103_v0 = vor.u32 1.1754944e-38, %v2102_v23  ;;  %5819 = vadd.xlane.f32.xlu1 %v9396_v45  ;;  %v5588_v53 = vadd.f32 %v5332_v20, %v9653_v56  ;;  %v6957_v24 = vadd.f32 %v6701_v58, %v9655_v55 }
 0x276   : > { %6304 = vst [vmem:[%s9309_s25 + $0xf] sm:$0x1] %v6079_v10  ;;  %v5587_v10 = vadd.f32 %v5331_v11, %v9649_v35  ;;  %v14897_v49 = vand.u32 2147483647, %v9341_v7  ;;  %v7213_v39 = vrot.slane %v6958_v34, 7  ;;  %v7215_v1 = vrot.slane %v6959_v5, 6 }
 0x277   : > { %6305 = vst [vmem:[%s9309_s25 + $0x13] sm:$0x1] %v6080_v62  ;;  %v2106_v57 = vmul.f32 %v9709_v30, %v9645_v18  ;;  %v6964_v20 = vadd.f32 %v6708_v37, %v5588_v53  ;;  %v7217_v55 = vrot.slane %v6960_v6, 5  ;;  %v7219_v7 = vrot.slane %v6961_v21, 4  ;;  %v9797_v21 = vld [vmem:[%s8065_s30 + $0x2c] sm:$0xf] }
 0x278   : > { %6306 = vst [vmem:[%s9309_s25 + $0x17] sm:$0x1] %v6081_v29  ;;  %vm2101_vm13 = vcmp.eq.f32.partialorder %v14897_v49, 8.507059e+37  ;;  %v9735_v11 = vpop.eup %7722  ;;  %v6963_v14 = vadd.f32 %v6707_v22, %v5587_v10  ;;  %v7214_v56 = vsel %vm1570_vm1, %v7213_v39, %v6957_v24  ;;  %v7221_v23 = vrot.slane %v6962_v13, 3 }
 0x279   : > { %6307 = vst [vmem:[%s9309_s25 + $0x1b] sm:$0x1] %v6082_v8  ;;  %v2104_v19 = vsel %vm2101_vm13, %v2103_v0, %v2099_v54  ;;  %v7216_v62 = vsel %vm1572_vm2, %v7215_v1, %v7214_v56  ;;  %v2107_v3 = vsub.f32 1.0, %v2106_v57  ;;  %v3084_v31 = vmul.f32 %v9735_v11, %v9685_v4  ;;  %v9830_v1 = vpop.xlane.xlu2 %5791  ;;  %v9849_v56 = vld [vmem:[%s8065_s30 + $0x38] sm:$0xf] }
 0x27a   : > { %6308 = vst [vmem:[%s9309_s25 + $0x1f] sm:$0x1] %v6083_v42  ;;  %v9738_v35 = vmul.f32 %v8956_v38, %v2104_v19  ;;  %v7218_v38 = vsel %vm1574_vm3, %v7217_v55, %v7216_v62  ;;  %v7223_v40 = vrot.slane %v6963_v14, 2  ;;  %v7225_v47 = vrot.slane %v6964_v20, 1  ;;  %v9833_v19 = vld [vmem:[%s8065_s30 + $0x20] sm:$0xf] }
 0x27b   : > { %v7220_v36 = vsel %vm1576_vm4, %v7219_v7, %v7218_v38  ;;  %v2114_v46 = vand.u32 2147483647, %v9645_v18  ;;  %vm2111_vm14 = vweird.f32 %v9709_v30  ;;  %v2116_v44 = vand.u32 2147483648, %v9645_v18  ;;  %v9841_v14 = vld [vmem:[%s8065_s30 + $0x34] sm:$0xf] }
 0x27c   : > { %v2340_v29 = vrot.slane %v9738_v35, 1  ;;  %v2341_v8 = vrot.slane %v9738_v35, 2  ;;  %v2342_v42 = vrot.slane %v9738_v35, 3  ;;  %2565 = vst [vmem:[%s9309_s25 + $0x20] sm:$0x1] %v9738_v35  ;;  %v2343_v2 = vrot.slane %v9738_v35, 4 }
 0x27d   : > { %v7222_v43 = vsel %vm1578_vm5, %v7221_v23, %v7220_v36  ;;  %v2344_v52 = vrot.slane %v9738_v35, 5  ;;  %v2345_v63 = vrot.slane %v9738_v35, 6  ;;  %v2346_v12 = vrot.slane %v9738_v35, 7  ;;  %v9863_v23 = vld [vmem:[%s8065_s30 + $0x24] sm:$0xf] }
 0x27e   : > { %2566 = vst [vmem:[%s9309_s25 + $0x24] sm:$0x1] %v2340_v29  ;;  %v7224_v41 = vsel %vm1580_vm6, %v7223_v40, %v7222_v43  ;;  %v2108_v58 = vmul.f32 %v9709_v30, %v2107_v3  ;;  %v3085_v61 = vsub.f32 1.0, %v3084_v31  ;;  %v9785_v54 = vmul.f32 %v9781_v33, %v9585_v15  ;;  %v9877_v36 = vld [vmem:[%s8065_s30 + $0x3c] sm:$0xf] }
 0x27f   : > { %2567 = vst [vmem:[%s9309_s25 + $0x28] sm:$0x1] %v2341_v8  ;;  %v7226_v26 = vsel %vm1582_vm7, %v7225_v47, %v7224_v41  ;;  %vm2110_vm15 = vweird.f32 %v9645_v18  ;;  %vm3089_vm0 = vweird.f32 %v9735_v11  ;;  %v3094_v6 = vand.u32 2147483648, %v9685_v4  ;;  %v9805_v18 = vld [vmem:[%s8065_s30 + $0x30] sm:$0xf] }
 0x280   : > { %2568 = vst [vmem:[%s9309_s25 + $0x2c] sm:$0x1] %v2342_v42  ;;  %v2109_v22 = vadd.f32 %v9709_v30, %v2108_v58  ;;  %v3086_v37 = vmul.f32 %v9735_v11, %v3085_v61  ;;  %v14898_v34 = vrot.slane %v9585_v15, 1  ;;  %v14899_v13 = vrot.slane %v9585_v15, 2  ;;  %vm9817_vm8 = vmor %vm2110_vm15, %vm2111_vm14 }
 0x281   : > { %2569 = vst [vmem:[%s9309_s25 + $0x30] sm:$0x1] %v2343_v2  ;;  %v2117_v53 = vor.u32 1.1754944e-38, %v2116_v44  ;;  %v3092_v24 = vand.u32 2147483647, %v9685_v4  ;;  %vm2115_vm9 = vcmp.eq.f32.partialorder %v2114_v46, 8.507059e+37  ;;  %vm3088_vm10 = vweird.f32 %v9685_v4 }
 0x282   : > { %7453 = vst [vmem:[%s9759_s27] sm:$0xff] %v7226_v26  ;;  %v9802_v5 = vmul.f32 %v9797_v21, %v14898_v34  ;;  %v9810_v0 = vmul.f32 %v9805_v18, %v14899_v13  ;;  %v2113_v49 = vsel %vm9817_vm8, %v9709_v30, %v2109_v22  ;;  %v3087_v39 = vadd.f32 %v9735_v11, %v3086_v37  ;;  %vm9858_vm11 = vmor %vm3088_vm10, %vm3089_vm0 }
 0x283   : > { %2570 = vst [vmem:[%s9309_s25 + $0x34] sm:$0x1] %v2344_v52  ;;  %v9838_v57 = vmul.f32 %v9833_v19, %v4713_v50  ;;  %v14902_v20 = vrot.slane %v9585_v15, 3  ;;  %v14903_v4 = vrot.slane %v9585_v15, 4  ;;  %v2118_v7 = vsel %vm2115_vm9, %v2117_v53, %v2113_v49 }
 0x284   : > { %2571 = vst [vmem:[%s9309_s25 + $0x38] sm:$0x1] %v2345_v63  ;;  %v9868_v62 = vmul.f32 %v9863_v23, %v4714_v28  ;;  %v9871_v38 = vmul.f32 %v8964_v60, %v2118_v7  ;;  %v3091_v3 = vsel %vm9858_vm11, %v9735_v11, %v3087_v39  ;;  %v3095_v31 = vor.u32 1.1754944e-38, %v3094_v6  ;;  %v9886_v60 = vpop.xlane.xlu0 %5793 }
 0x285   : > { %2572 = vst [vmem:[%s9309_s25 + $0x3c] sm:$0x1] %v2346_v12  ;;  %v9846_v30 = vmul.f32 %v9841_v14, %v14902_v20  ;;  %v9854_v55 = vmul.f32 %v9849_v56, %v14903_v4  ;;  %v9882_v40 = vmul.f32 %v9877_v36, %v4712_v9  ;;  %vm3093_vm12 = vcmp.eq.f32.partialorder %v3092_v24, 8.507059e+37  ;;  %v9957_v4 = vpop.xlane.xlu2 %3041 }
 0x286   : > { %v2347_v47 = vrot.slane %v9871_v38, 1  ;;  %v14689_v11 = vrot.slane %v9871_v38, 2  ;;  %v14688_v46 = vrot.slane %v9871_v38, 3  ;;  %2573 = vst [vmem:[%s9309_s25 + $0x40] sm:$0x1] %v9871_v38  ;;  %v3096_v15 = vsel %vm3093_vm12, %v3095_v31, %v3091_v3 }
 0x287   : > { %v14687_v44 = vrot.slane %v9871_v38, 4  ;;  %7724 = vrcp.f32 %v9830_v1  ;;  %v14686_v61 = vrot.slane %v9871_v38, 5  ;;  %v14685_v6 = vrot.slane %v9871_v38, 6 }
 0x288   : > { %2574 = vst [vmem:[%s9309_s25 + $0x44] sm:$0x1] %v2347_v47  ;;  %7726 = vrcp.f32 %v9886_v60  ;;  %v9911_v34 = vmul.f32 %v8977_v16, %v3096_v15  ;;  %v9915_v13 = vmul.f32 %v9833_v19, %v9738_v35  ;;  %v9920_v10 = vmul.f32 %v9863_v23, %v2340_v29 }
 0x289   : > { %2575 = vst [vmem:[%s9309_s25 + $0x48] sm:$0x1] %v14689_v11  ;;  %v14684_v53 = vrot.slane %v9871_v38, 7  ;;  %v5846_v24 = vand.u32 2147483648, %v9830_v1  ;;  %v9930_v16 = vmul.f32 %v9781_v33, %v2341_v8  ;;  %v9935_v49 = vmul.f32 %v9797_v21, %v2342_v42 }
 0x28a   : > { %2576 = vst [vmem:[%s9309_s25 + $0x4c] sm:$0x1] %v14688_v46  ;;  %v9940_v29 = vmul.f32 %v9805_v18, %v2343_v2  ;;  %v3332_v39 = vrot.slane %v9911_v34, 1  ;;  %v9949_v8 = vmul.f32 %v9841_v14, %v2344_v52  ;;  %v3333_v42 = vrot.slane %v9911_v34, 2  ;;  %v10024_v46 = vld [vmem:[%s8065_s30 + $0x44] sm:$0xf] }
 0x28b   : > { %2577 = vst [vmem:[%s9309_s25 + $0x50] sm:$0x1] %v14687_v44  ;;  %v5844_v2 = vand.u32 2147483647, %v9830_v1  ;;  %v5860_v20 = vand.u32 2147483648, %v9886_v60  ;;  %v9964_v50 = vmul.f32 %v9849_v56, %v2345_v63  ;;  %v3334_v52 = vrot.slane %v9911_v34, 3 }
 0x28c   : > { %2578 = vst [vmem:[%s9309_s25 + $0x54] sm:$0x1] %v14686_v61  ;;  %v3335_v3 = vrot.slane %v9911_v34, 4  ;;  %v3338_v31 = vrot.slane %v9911_v34, 7  ;;  %v9977_v37 = vmul.f32 %v9877_v36, %v2346_v12  ;;  %v3336_v63 = vrot.slane %v9911_v34, 5 }
 0x28d   : > { %v9959_v7 = vpop.eup %7724  ;;  %2579 = vst [vmem:[%s9309_s25 + $0x58] sm:$0x1] %v14685_v6  ;;  %v3337_v58 = vrot.slane %v9911_v34, 6  ;;  %v9984_v41 = vor.u32 1.1754944e-38, %v5846_v24  ;;  %v3702_v9 = vmul.f32 %v9863_v23, %v9911_v34  ;;  %v3703_v35 = vmul.f32 %v9781_v33, %v3332_v39  ;;  %v10009_v6 = vld [vmem:[%s8065_s30 + $0x40] sm:$0xf] }
 0x28e   : > { %v9972_v15 = vpop.eup %7726  ;;  %2580 = vst [vmem:[%s9309_s25 + $0x5c] sm:$0x1] %v14684_v53  ;;  %v5858_v12 = vand.u32 2147483647, %v9886_v60  ;;  %7728 = vrcp.f32 %v9957_v4  ;;  %v3704_v53 = vmul.f32 %v9797_v21, %v3333_v42  ;;  %v5836_v24 = vmul.f32 %v9959_v7, %v9830_v1 }
 0x28f   : > { %3557 = vst [vmem:[%s9309_s25 + $0x21] sm:$0x1] %v9911_v34  ;;  %vm5840_vm13 = vweird.f32 %v9830_v1  ;;  %v9998_v26 = vor.u32 1.1754944e-38, %v5860_v20  ;;  %v3701_v28 = vmul.f32 %v9833_v19, %v3338_v31  ;;  %v3705_v43 = vmul.f32 %v9805_v18, %v3334_v52 }
 0x290   : > { %3558 = vst [vmem:[%s9309_s25 + $0x25] sm:$0x1] %v3332_v39  ;;  %v3706_v39 = vmul.f32 %v9841_v14, %v3335_v3  ;;  %v5850_v22 = vmul.f32 %v9972_v15, %v9886_v60  ;;  %vm5854_vm14 = vweird.f32 %v9886_v60  ;;  %v10013_v20 = vmul.f32 %v10009_v6, %v9871_v38 }
 0x291   : > { %3559 = vst [vmem:[%s9309_s25 + $0x29] sm:$0x1] %v3333_v42  ;;  %v3707_v42 = vmul.f32 %v9849_v56, %v3336_v63  ;;  %v3708_v34 = vmul.f32 %v9877_v36, %v3337_v58  ;;  %vm10018_vm15 = vcmp.eq.f32.partialorder %v5844_v2, 8.507059e+37  ;;  %v10029_v11 = vmul.f32 %v10024_v46, %v2347_v47 }
 0x292   : > { %14906 = vst [vmem:[#allocation55_spill] sm:$0xff] %v10013_v20  ;;  %v14912_v45 = vrot.slane %v9871_v38, 2  ;;  %v3958_v2 = vrot.slane %v3702_v9, 1  ;;  %v3959_v27 = vrot.slane %v3703_v35, 1  ;;  %vm10040_vm0 = vcmp.eq.f32.partialorder %v5858_v12, 8.507059e+37 }
 0x293   : > { %3560 = vst [vmem:[%s9309_s25 + $0x2d] sm:$0x1] %v3334_v52  ;;  %v10032_v52 = vld [vmem:[%s8065_s30 + $0x48] sm:$0xf]  ;;  %v14917_v47 = vrot.slane %v9871_v38, 3  ;;  %v3960_v9 = vrot.slane %v3704_v53, 1  ;;  %vm5841_vm8 = vweird.f32 %v9959_v7  ;;  %vm5855_vm9 = vweird.f32 %v9972_v15 }
 0x294   : > { %14909 = vst [vmem:[#allocation56_spill] sm:$0xff] %v10024_v46  ;;  %v10037_v59 = vmul.f32 %v10032_v52, %v14912_v45  ;;  %v10053_v20 = vld [vmem:[%s8065_s30 + $0x50] sm:$0xf]  ;;  %v14919_v45 = vrot.slane %v9871_v38, 4  ;;  %v5837_v35 = vsub.f32 1.0, %v5836_v24  ;;  %v10061_v12 = vpop.eup %7728  ;;  %v5851_v46 = vsub.f32 1.0, %v5850_v22  ;;  %vm5842_vm10 = vmor %vm5840_vm13, %vm5841_vm8 }
 0x295   : > { %14910 = vst [vmem:[#allocation57_spill] sm:$0xff] %v10029_v11  ;;  %v10050_v48 = vmul.f32 %v10045_v25, %v14917_v47  ;;  %v3961_v11 = vrot.slane %v3705_v43, 1  ;;  %v3963_v47 = vrot.slane %v3707_v42, 1  ;;  %v4215_v53 = vadd.f32 %v3959_v27, %v9930_v16  ;;  %vm5856_vm11 = vmor %vm5854_vm14, %vm5855_vm9 }
 0x296   : > { %14911 = vst [vmem:[#allocation58_spill] sm:$0xff] %v10032_v52  ;;  %v3962_v52 = vrot.slane %v3706_v39, 1  ;;  %v5838_v25 = vmul.f32 %v9959_v7, %v5837_v35  ;;  %v5852_v24 = vmul.f32 %v9972_v15, %v5851_v46  ;;  %v14920_v43 = vrot.slane %v9871_v38, 5  ;;  %v10090_v39 = vld [vmem:[%s8065_s30 + $0x58] sm:$0xf] }
 0x297   : > { %14913 = vst [vmem:[#allocation59_spill] sm:$0xff] %v10037_v59  ;;  %v3957_v59 = vrot.slane %v3701_v28, 1  ;;  %v10072_v28 = vld [vmem:[%s8065_s30 + $0x54] sm:$0xf]  ;;  %v4216_v22 = vadd.f32 %v3960_v9, %v9935_v49  ;;  %v4217_v46 = vadd.f32 %v3961_v11, %v9940_v29  ;;  %v14921_v49 = vrot.slane %v9871_v38, 6 }
 0x298   : > { %3561 = vst [vmem:[%s9309_s25 + $0x31] sm:$0x1] %v3335_v3  ;;  %v10058_v3 = vmul.f32 %v10053_v20, %v14919_v45  ;;  %v4218_v16 = vadd.f32 %v3962_v52, %v9949_v8  ;;  %v4219_v42 = vadd.f32 %v3963_v47, %v9964_v50  ;;  %v14922_v1 = vrot.slane %v9868_v62, 2 }
 0x299   : > { %14918 = vst [vmem:[#allocation61_spill] sm:$0xff] %v10050_v48  ;;  %v3964_v48 = vrot.slane %v3708_v34, 1  ;;  %v4213_v27 = vadd.f32 %v3957_v59, %v9915_v13  ;;  %v5853_v34 = vadd.f32 %v9972_v15, %v5852_v24  ;;  %v14923_v29 = vrot.slane %v9785_v54, 2 }
 0x29a   : > { %3562 = vst [vmem:[%s9309_s25 + $0x35] sm:$0x1] %v3336_v63  ;;  %v4214_v63 = vadd.f32 %v3958_v2, %v9920_v10  ;;  %v3098_v10 = vmul.f32 %v10061_v12, %v9957_v4  ;;  %v14925_v60 = vrot.slane %v9838_v57, 2  ;;  %v14926_v61 = vrot.slane %v9810_v0, 2 }
 0x29b   : > { %3563 = vst [vmem:[%s9309_s25 + $0x39] sm:$0x1] %v3337_v58  ;;  %v10077_v58 = vmul.f32 %v10072_v28, %v14920_v43  ;;  %v4220_v59 = vadd.f32 %v3964_v48, %v9977_v37  ;;  %v5591_v8 = vadd.f32 %v14923_v29, %v4215_v53  ;;  %v5857_v48 = vsel %vm5856_vm11, %v9972_v15, %v5853_v34 }
 0x29c   : > { %3564 = vst [vmem:[%s9309_s25 + $0x3d] sm:$0x1] %v3338_v31  ;;  %v5839_v31 = vadd.f32 %v9959_v7, %v5838_v25  ;;  %v10095_v25 = vmul.f32 %v10090_v39, %v14921_v49  ;;  %v5590_v13 = vadd.f32 %v14922_v1, %v4214_v63  ;;  %v14924_v37 = vrot.slane %v9802_v5, 2 }
 0x29d   : > { %v5862_v62 = vsel %vm10040_vm0, %v9998_v26, %v5857_v48  ;;  %v3099_v54 = vsub.f32 1.0, %v3098_v10  ;;  %v5589_v2 = vadd.f32 %v14925_v60, %v4213_v27  ;;  %v14927_v15 = vrot.slane %v9846_v30, 2 }
 0x29e   : > { %v5843_v11 = vsel %vm5842_vm10, %v9959_v7, %v5839_v31  ;;  %v5592_v7 = vadd.f32 %v14924_v37, %v4216_v22  ;;  %v10125_v5 = vmul.f32 %v8985_v32, %v5862_v62  ;;  %vm3102_vm12 = vweird.f32 %v9957_v4  ;;  %v10141_v31 = vpop.xlane.xlu1 %4417  ;;  %v10161_v62 = vld [vmem:[%s8065_s30 + $0x5c] sm:$0xf] }
 0x29f   : > { %v5848_v50 = vsel %vm10018_vm15, %v9984_v41, %v5843_v11  ;;  %v5593_v41 = vadd.f32 %v14926_v61, %v4217_v46  ;;  %v5594_v45 = vadd.f32 %v14927_v15, %v4218_v16  ;;  %v3100_v53 = vmul.f32 %v10061_v12, %v3099_v54 }
 0x2a0   : > { %v6046_v52 = vmul.f32 %v8979_v51, %v5848_v50  ;;  %6317 = vst [vmem:[%s9309_s25 + $0x43] sm:$0x1] %v10125_v5  ;;  %vm3103_vm13 = vweird.f32 %v10061_v12  ;;  %7730 = vrcp.f32 %v10141_v31  ;;  %v6091_v37 = vrot.slane %v10125_v5, 1 }
 0x2a1   : > { %v6093_v60 = vrot.slane %v10125_v5, 3  ;;  %v6095_v15 = vrot.slane %v10125_v5, 5  ;;  %vm10187_vm14 = vmor %vm3102_vm12, %vm3103_vm13  ;;  %vm4478_vm8 = vweird.f32 %v10141_v31 }
 0x2a2   : > { %v6084_v51 = vrot.slane %v6046_v52, 1  ;;  %v6085_v9 = vrot.slane %v6046_v52, 2  ;;  %v6086_v44 = vrot.slane %v6046_v52, 3  ;;  %v6087_v35 = vrot.slane %v6046_v52, 4  ;;  %6309 = vst [vmem:[%s9309_s25 + $0x23] sm:$0x1] %v6046_v52 }
 0x2a3   : > { %v6088_v26 = vrot.slane %v6046_v52, 5  ;;  %v6089_v47 = vrot.slane %v6046_v52, 6  ;;  %v6090_v63 = vrot.slane %v6046_v52, 7  ;;  %v6456_v57 = vmul.f32 %v9797_v21, %v6046_v52  ;;  %v10158_v52 = vpop.xlane.xlu0 %3043  ;;  %6318 = vst [vmem:[%s9309_s25 + $0x47] sm:$0x1] %v6091_v37 }
 0x2a4   : > { %6310 = vst [vmem:[%s9309_s25 + $0x27] sm:$0x1] %v6084_v51  ;;  %v6457_v0 = vmul.f32 %v9805_v18, %v6084_v51  ;;  %v6458_v32 = vmul.f32 %v9841_v14, %v6085_v9  ;;  %v6459_v30 = vmul.f32 %v9849_v56, %v6086_v44  ;;  %v14928_v18 = vrot.slane %v9854_v55, 2 }
 0x2a5   : > { %6311 = vst [vmem:[%s9309_s25 + $0x2b] sm:$0x1] %v6085_v9  ;;  %v6453_v24 = vmul.f32 %v9833_v19, %v6088_v26  ;;  %v6454_v43 = vmul.f32 %v9863_v23, %v6089_v47  ;;  %v6455_v21 = vmul.f32 %v9781_v33, %v6090_v63  ;;  %v6712_v22 = vrot.slane %v6456_v57, 3 }
 0x2a6   : > { %v5595_v14 = vadd.f32 %v14928_v18, %v4219_v42  ;;  %v14929_v56 = vrot.slane %v9882_v40, 2  ;;  %6312 = vst [vmem:[%s9309_s25 + $0x2f] sm:$0x1] %v6086_v44  ;;  %v6460_v19 = vmul.f32 %v9877_v36, %v6087_v35  ;;  %v6713_v16 = vrot.slane %v6457_v0, 3 }
 0x2a7   : > { %6313 = vst [vmem:[%s9309_s25 + $0x33] sm:$0x1] %v6087_v35  ;;  %v6709_v33 = vrot.slane %v6453_v24, 3  ;;  %v6710_v23 = vrot.slane %v6454_v43, 3  ;;  %v6711_v27 = vrot.slane %v6455_v21, 3  ;;  %v6968_v46 = vadd.f32 %v6712_v22, %v5592_v7 }
 0x2a8   : > { %v5596_v10 = vadd.f32 %v14929_v56, %v4220_v59  ;;  %6314 = vst [vmem:[%s9309_s25 + $0x37] sm:$0x1] %v6088_v26  ;;  %v6714_v34 = vrot.slane %v6458_v32, 3  ;;  %v3101_v55 = vadd.f32 %v10061_v12, %v3100_v53  ;;  %v6715_v40 = vrot.slane %v6459_v30, 3 }
 0x2a9   : > { %6315 = vst [vmem:[%s9309_s25 + $0x3b] sm:$0x1] %v6089_v47  ;;  %v6965_v49 = vadd.f32 %v6709_v33, %v5589_v2  ;;  %v6966_v36 = vadd.f32 %v6710_v23, %v5590_v13  ;;  %v6967_v42 = vadd.f32 %v6711_v27, %v5591_v8  ;;  %v6716_v59 = vrot.slane %v6460_v19, 3 }
 0x2aa   : > { %6316 = vst [vmem:[%s9309_s25 + $0x3f] sm:$0x1] %v6090_v63  ;;  %v6969_v11 = vadd.f32 %v6713_v16, %v5593_v41  ;;  %v6970_v1 = vadd.f32 %v6714_v34, %v5594_v45  ;;  %v7231_v29 = vrot.slane %v6968_v46, 5  ;;  %v6092_v7 = vrot.slane %v10125_v5, 2  ;;  %v10176_v45 = vpop.eup %7730  ;;  %v14935_v16 = vld [vmem:[#allocation60_spill] sm:$0xff] }
 0x2ab   : > { %v7227_v50 = vrot.slane %v6966_v36, 7  ;;  %v7229_v48 = vrot.slane %v6967_v42, 6  ;;  %v14930_v13 = vrot.slane %v9871_v38, 7  ;;  %v6971_v54 = vadd.f32 %v6715_v40, %v5595_v14  ;;  %6320 = vst [vmem:[%s9309_s25 + $0x4f] sm:$0x1] %v6093_v60  ;;  %v14936_v36 = vld [vmem:[#allocation56_spill] sm:$0xff] }
 0x2ac   : > { %v6094_v2 = vrot.slane %v10125_v5, 4  ;;  %v6972_v61 = vadd.f32 %v6716_v59, %v5596_v10  ;;  %v4484_v38 = vand.u32 2147483648, %v10141_v31  ;;  %v7233_v9 = vrot.slane %v6969_v11, 4  ;;  %6319 = vst [vmem:[%s9309_s25 + $0x4b] sm:$0x1] %v6092_v7 }
 0x2ad   : > { %v10166_v8 = vmul.f32 %v10161_v62, %v14930_v13  ;;  %v7228_v41 = vsel %vm1570_vm1, %v7227_v50, %v6965_v49  ;;  %v6096_v44 = vrot.slane %v10125_v5, 6  ;;  %v3122_v26 = vand.u32 2147483648, %v10158_v52  ;;  %6322 = vst [vmem:[%s9309_s25 + $0x57] sm:$0x1] %v6095_v15  ;;  %v14937_v50 = vld [vmem:[#allocation58_spill] sm:$0xff] }
 0x2ae   : > { %v7230_v51 = vsel %vm1572_vm2, %v7229_v48, %v7228_v41  ;;  %v7235_v63 = vrot.slane %v6970_v1, 3  ;;  %v6097_v57 = vrot.slane %v10125_v5, 7  ;;  %v3105_v0 = vsel %vm10187_vm14, %v10061_v12, %v3101_v55  ;;  %6321 = vst [vmem:[%s9309_s25 + $0x53] sm:$0x1] %v6094_v2  ;;  %v10208_v12 = vpop.xlane.xlu2 %4419 }
 0x2af   : > { %v7232_v47 = vsel %vm1574_vm3, %v7231_v29, %v7230_v51  ;;  %v7237_v30 = vrot.slane %v6971_v54, 2  ;;  %v14933_v53 = vand.u32 2147483647, %v9957_v4  ;;  %v14934_v24 = vand.u32 2147483648, %v9957_v4  ;;  %6323 = vst [vmem:[%s9309_s25 + $0x5b] sm:$0x1] %v6096_v44 }
 0x2b0   : > { %v7234_v32 = vsel %vm1576_vm4, %v7233_v9, %v7232_v47  ;;  %v7239_v22 = vrot.slane %v6972_v61, 1  ;;  %v4482_v18 = vand.u32 2147483647, %v10141_v31  ;;  %7732 = vrcp.f32 %v10158_v52  ;;  %6324 = vst [vmem:[%s9309_s25 + $0x5f] sm:$0x1] %v6097_v57 }
 0x2b1   : > { %vm3107_vm15 = vcmp.eq.f32.partialorder %v14933_v53, 8.507059e+37  ;;  %v3109_v43 = vor.u32 1.1754944e-38, %v14934_v24  ;;  %v7236_v21 = vsel %vm1578_vm5, %v7235_v63, %v7234_v32  ;;  %v10212_v10 = vor.u32 1.1754944e-38, %v4484_v38 }
 0x2b2   : > { %v7238_v14 = vsel %vm1580_vm6, %v7237_v30, %v7236_v21  ;;  %v3120_v4 = vand.u32 2147483647, %v10158_v52  ;;  %v4474_v23 = vmul.f32 %v10176_v45, %v10141_v31  ;;  %v10220_v27 = vor.u32 1.1754944e-38, %v3122_v26 }
 0x2b3   : > { %v3110_v56 = vsel %vm3107_vm15, %v3109_v43, %v3105_v0  ;;  %v7240_v19 = vsel %vm1582_vm7, %v7239_v22, %v7238_v14  ;;  %v10224_v46 = vmul.f32 %v10009_v6, %v6095_v15  ;;  %v10228_v34 = vmul.f32 %v14935_v16, %v10125_v5 }
 0x2b4   : > { %v3295_v33 = vmul.f32 %v8998_v17, %v3110_v56  ;;  %7454 = vst [vmem:[%s9759_s27 + $0x8] sm:$0xff] %v7240_v19  ;;  %vm4479_vm0 = vweird.f32 %v10176_v45  ;;  %7734 = vrcp.f32 %v10208_v12  ;;  %v10234_v42 = vmul.f32 %v14936_v36, %v6096_v44 }
 0x2b5   : > { %v10240_v48 = vmul.f32 %v14937_v50, %v6097_v57  ;;  %v10245_v13 = vmul.f32 %v10053_v20, %v6091_v37  ;;  %v10250_v54 = vmul.f32 %v10072_v28, %v6092_v7  ;;  %v10253_v61 = vmul.f32 %v10090_v39, %v6093_v60  ;;  %vm4480_vm10 = vmor %vm4478_vm8, %vm4479_vm0 }
 0x2b6   : > { %v3339_v55 = vrot.slane %v3295_v33, 1  ;;  %v3340_v17 = vrot.slane %v3295_v33, 2  ;;  %v3341_v40 = vrot.slane %v3295_v33, 3  ;;  %v3342_v49 = vrot.slane %v3295_v33, 4  ;;  %3565 = vst [vmem:[%s9309_s25 + $0x41] sm:$0x1] %v3295_v33  ;;  %v10237_v29 = vpop.eup %7732 }
 0x2b7   : > { %v3343_v59 = vrot.slane %v3295_v33, 5  ;;  %v3344_v11 = vrot.slane %v3295_v33, 6  ;;  %v3345_v1 = vrot.slane %v3295_v33, 7  ;;  %v10257_v41 = vmul.f32 %v10161_v62, %v6094_v2 }
 0x2b8   : > { %3566 = vst [vmem:[%s9309_s25 + $0x45] sm:$0x1] %v3339_v55  ;;  %v3710_v15 = vmul.f32 %v14936_v36, %v3295_v33  ;;  %v3712_v38 = vmul.f32 %v14935_v16, %v3340_v17  ;;  %v4475_v37 = vsub.f32 1.0, %v4474_v23  ;;  %vm10262_vm9 = vcmp.eq.f32.partialorder %v4482_v18, 8.507059e+37 }
 0x2b9   : > { %3567 = vst [vmem:[%s9309_s25 + $0x49] sm:$0x1] %v3340_v17  ;;  %v6717_v7 = vrot.slane %v10224_v46, 3  ;;  %v3711_v60 = vmul.f32 %v14937_v50, %v3339_v55  ;;  %v3713_v2 = vmul.f32 %v10053_v20, %v3341_v40  ;;  %v3714_v51 = vmul.f32 %v10072_v28, %v3342_v49 }
 0x2ba   : > { %3568 = vst [vmem:[%s9309_s25 + $0x4d] sm:$0x1] %v3341_v40  ;;  %v10271_v9 = vpop.eup %7734  ;;  %v6718_v44 = vrot.slane %v10234_v42, 3  ;;  %v3709_v35 = vmul.f32 %v10009_v6, %v3345_v1  ;;  %v3715_v26 = vmul.f32 %v10090_v39, %v3343_v59  ;;  %v3716_v47 = vmul.f32 %v10161_v62, %v3344_v11 }
 0x2bb   : > { %3569 = vst [vmem:[%s9309_s25 + $0x51] sm:$0x1] %v3342_v49  ;;  %v6719_v63 = vrot.slane %v10240_v48, 3  ;;  %v6720_v57 = vrot.slane %v10228_v34, 3  ;;  %v6721_v0 = vrot.slane %v10245_v13, 3  ;;  %v3112_v32 = vmul.f32 %v10237_v29, %v10158_v52  ;;  %v10369_v34 = vpop.xlane.xlu0 %4421 }
 0x2bc   : > { %3570 = vst [vmem:[%s9309_s25 + $0x55] sm:$0x1] %v3343_v59  ;;  %v6722_v30 = vrot.slane %v10250_v54, 3  ;;  %v3966_v53 = vrot.slane %v3710_v15, 1  ;;  %v3968_v24 = vrot.slane %v3712_v38, 1  ;;  %v4476_v43 = vmul.f32 %v10176_v45, %v4475_v37  ;;  %v14940_v59 = vld [vmem:[#allocation57_spill] sm:$0xff] }
 0x2bd   : > { %3571 = vst [vmem:[%s9309_s25 + $0x59] sm:$0x1] %v3344_v11  ;;  %v3967_v21 = vrot.slane %v3711_v60, 1  ;;  %v3969_v22 = vrot.slane %v3713_v2, 1  ;;  %v3970_v18 = vrot.slane %v3714_v51, 1  ;;  %v4488_v14 = vmul.f32 %v10271_v9, %v10208_v12  ;;  %v14942_v51 = vld [vmem:[#allocation59_spill] sm:$0xff] }
 0x2be   : > { %3572 = vst [vmem:[%s9309_s25 + $0x5d] sm:$0x1] %v3345_v1  ;;  %v3965_v56 = vrot.slane %v3709_v35, 1  ;;  %v3971_v19 = vrot.slane %v3715_v26, 1  ;;  %v3972_v33 = vrot.slane %v3716_v47, 1  ;;  %v4477_v23 = vadd.f32 %v10176_v45, %v4476_v43  ;;  %v14941_v1 = vld [vmem:[#allocation61_spill] sm:$0xff] }
 0x2bf   : > { %v6723_v55 = vrot.slane %v10253_v61, 3  ;;  %v6724_v17 = vrot.slane %v10257_v41, 3  ;;  %v3113_v40 = vsub.f32 1.0, %v3112_v32  ;;  %v4489_v49 = vsub.f32 1.0, %v4488_v14  ;;  %v14943_v26 = vld [vmem:[#allocation55_spill] sm:$0xff] }
 0x2c0   : > { %v4222_v11 = vadd.f32 %v3966_v53, %v14940_v59  ;;  %v4224_v15 = vadd.f32 %v3968_v24, %v14941_v1  ;;  %v4481_v38 = vsel %vm4480_vm10, %v10176_v45, %v4477_v23  ;;  %vm3117_vm11 = vweird.f32 %v10237_v29  ;;  %v14944_v53 = vld [vmem:[#allocation34_spill] sm:$0xff] }
 0x2c1   : > { %v4496_v37 = vand.u32 2147483647, %v10208_v12  ;;  %v4225_v60 = vadd.f32 %v3969_v22, %v10058_v3  ;;  %v4226_v2 = vadd.f32 %v3970_v18, %v10077_v58  ;;  %v4223_v31 = vadd.f32 %v3967_v21, %v14942_v51 }
 0x2c2   : > { %v4486_v35 = vsel %vm10262_vm9, %v10212_v10, %v4481_v38  ;;  %v4221_v47 = vadd.f32 %v3965_v56, %v14943_v26  ;;  %v4227_v32 = vadd.f32 %v3971_v19, %v10095_v25  ;;  %v4228_v45 = vadd.f32 %v3972_v33, %v10166_v8 }
 0x2c3   : > { %v4671_v24 = vmul.f32 %v14944_v53, %v4486_v35  ;;  %vm3116_vm12 = vweird.f32 %v10158_v52  ;;  %v3114_v3 = vmul.f32 %v10237_v29, %v3113_v40  ;;  %v4490_v58 = vmul.f32 %v10271_v9, %v4489_v49 }
 0x2c4   : > { %vm4493_vm13 = vweird.f32 %v10271_v9  ;;  %v4498_v5 = vand.u32 2147483648, %v10208_v12  ;;  %vm4492_vm14 = vweird.f32 %v10208_v12  ;;  %vm10327_vm15 = vcmp.eq.f32.partialorder %v3120_v4, 8.507059e+37  ;;  %vm10347_vm0 = vmor %vm3116_vm12, %vm3117_vm11 }
 0x2c5   : > { %v4715_v10 = vrot.slane %v4671_v24, 1  ;;  %v4716_v43 = vrot.slane %v4671_v24, 2  ;;  %v4717_v21 = vrot.slane %v4671_v24, 3  ;;  %v4718_v25 = vrot.slane %v4671_v24, 4  ;;  %4941 = vst [vmem:[%s9309_s25 + $0x42] sm:$0x1] %v4671_v24  ;;  %vm4494_vm9 = vmor %vm4492_vm14, %vm4493_vm13 }
 0x2c6   : > { %v4719_v8 = vrot.slane %v4671_v24, 5  ;;  %v4720_v22 = vrot.slane %v4671_v24, 6  ;;  %v4721_v18 = vrot.slane %v4671_v24, 7  ;;  %v5087_v14 = vmul.f32 %v14937_v50, %v4671_v24 }
 0x2c7   : > { %4942 = vst [vmem:[%s9309_s25 + $0x46] sm:$0x1] %v4715_v10  ;;  %v5088_v56 = vmul.f32 %v14935_v16, %v4715_v10  ;;  %v5089_v19 = vmul.f32 %v10053_v20, %v4716_v43  ;;  %v5090_v33 = vmul.f32 %v10072_v28, %v4717_v21  ;;  %v5091_v23 = vmul.f32 %v10090_v39, %v4718_v25 }
 0x2c8   : > { %4943 = vst [vmem:[%s9309_s25 + $0x4a] sm:$0x1] %v4716_v43  ;;  %v5085_v50 = vmul.f32 %v10009_v6, %v4720_v22  ;;  %v5086_v49 = vmul.f32 %v14936_v36, %v4721_v18  ;;  %v5092_v16 = vmul.f32 %v10161_v62, %v4719_v8  ;;  %v5343_v59 = vrot.slane %v5087_v14, 2 }
 0x2c9   : > { %4944 = vst [vmem:[%s9309_s25 + $0x4e] sm:$0x1] %v4717_v21  ;;  %v5344_v20 = vrot.slane %v5088_v56, 2  ;;  %v5345_v28 = vrot.slane %v5089_v19, 2  ;;  %v5346_v39 = vrot.slane %v5090_v33, 2  ;;  %v3115_v1 = vadd.f32 %v10237_v29, %v3114_v3  ;;  %v10351_v3 = vpop.xlane.xlu1 %2051 }
 0x2ca   : > { %4945 = vst [vmem:[%s9309_s25 + $0x52] sm:$0x1] %v4718_v25  ;;  %v5341_v4 = vrot.slane %v5085_v50, 2  ;;  %v5342_v38 = vrot.slane %v5086_v49, 2  ;;  %v5599_v51 = vadd.f32 %v5343_v59, %v4223_v31  ;;  %v4491_v35 = vadd.f32 %v10271_v9, %v4490_v58  ;;  %v10471_v31 = vld [vmem:[%s8065_s30 + $0x60] sm:$0xf] }
 0x2cb   : > { %4946 = vst [vmem:[%s9309_s25 + $0x56] sm:$0x1] %v4719_v8  ;;  %v5347_v6 = vrot.slane %v5091_v23, 2  ;;  %v5600_v36 = vadd.f32 %v5344_v20, %v4224_v15  ;;  %v5601_v26 = vadd.f32 %v5345_v28, %v4225_v60  ;;  %v5602_v62 = vadd.f32 %v5346_v39, %v4226_v2 }
 0x2cc   : > { %4947 = vst [vmem:[%s9309_s25 + $0x5a] sm:$0x1] %v4720_v22  ;;  %v5348_v53 = vrot.slane %v5092_v16, 2  ;;  %v5597_v24 = vadd.f32 %v5341_v4, %v4221_v47  ;;  %v5598_v10 = vadd.f32 %v5342_v38, %v4222_v11  ;;  %v6975_v43 = vadd.f32 %v6719_v63, %v5599_v51  ;;  %v10483_v63 = vld [vmem:[%s8065_s30 + $0x70] sm:$0xf] }
 0x2cd   : > { %4948 = vst [vmem:[%s9309_s25 + $0x5e] sm:$0x1] %v4721_v18  ;;  %v5603_v15 = vadd.f32 %v5347_v6, %v4227_v32  ;;  %v6976_v60 = vadd.f32 %v6720_v57, %v5600_v36  ;;  %v3119_v48 = vsel %vm10347_vm0, %v10237_v29, %v3115_v1  ;;  %vm10359_vm8 = vcmp.eq.f32.partialorder %v4496_v37, 8.507059e+37 }
 0x2ce   : > { %v5604_v52 = vadd.f32 %v5348_v53, %v4228_v45  ;;  %v6973_v11 = vadd.f32 %v6717_v7, %v5597_v24  ;;  %v6974_v2 = vadd.f32 %v6718_v44, %v5598_v10  ;;  %v6977_v47 = vadd.f32 %v6721_v0, %v5601_v26  ;;  %v14951_v44 = vld [vmem:[#allocation35_spill] sm:$0xff]  ;;  %v10455_v26 = vld [vmem:[%s8065_s30 + $0x64] sm:$0xf] }
 0x2cf   : > { %v6978_v57 = vadd.f32 %v6722_v30, %v5602_v62  ;;  %v7243_v29 = vrot.slane %v6975_v43, 6  ;;  %v4499_v37 = vor.u32 1.1754944e-38, %v4498_v5  ;;  %7736 = vrcp.f32 %v10351_v3  ;;  %v10462_v53 = vld [vmem:[%s8065_s30 + $0x68] sm:$0xf] }
 0x2d0   : > { %v7241_v46 = vrot.slane %v6974_v2, 7  ;;  %v7245_v42 = vrot.slane %v6976_v60, 5  ;;  %v3124_v13 = vsel %vm10327_vm15, %v10220_v27, %v3119_v48  ;;  %v4495_v7 = vsel %vm4494_vm9, %v10271_v9, %v4491_v35  ;;  %v14952_v9 = vld [vmem:[#allocation37_spill] sm:$0xff]  ;;  %v10477_v60 = vld [vmem:[%s8065_s30 + $0x6c] sm:$0xf] }
 0x2d1   : > { %v6979_v54 = vadd.f32 %v6723_v55, %v5603_v15  ;;  %v10385_v0 = vmul.f32 %v14951_v44, %v3124_v13  ;;  %v4500_v12 = vsel %vm10359_vm8, %v4499_v37, %v4495_v7  ;;  %7738 = vrcp.f32 %v10369_v34  ;;  %v10504_v37 = vld [vmem:[%s8065_s30 + $0x78] sm:$0xf] }
 0x2d2   : > { %v6980_v30 = vadd.f32 %v6724_v17, %v5604_v52  ;;  %v7242_v27 = vsel %vm1570_vm1, %v7241_v46, %v6973_v11  ;;  %v7247_v32 = vrot.slane %v6977_v47, 4  ;;  %v10394_v45 = vmul.f32 %v14952_v9, %v4500_v12 }
 0x2d3   : > { %v7244_v61 = vsel %vm1572_vm2, %v7243_v29, %v7242_v27  ;;  %v3346_v55 = vrot.slane %v10385_v0, 1  ;;  %v3347_v58 = vrot.slane %v10385_v0, 2  ;;  %v3348_v5 = vrot.slane %v10385_v0, 3  ;;  %3573 = vst [vmem:[%s9309_s25 + $0x61] sm:$0x1] %v10385_v0 }
 0x2d4   : > { %v7246_v41 = vsel %vm1574_vm3, %v7245_v42, %v7244_v61  ;;  %v7249_v17 = vrot.slane %v6978_v57, 3  ;;  %v3349_v21 = vrot.slane %v10385_v0, 4  ;;  %4949 = vst [vmem:[%s9309_s25 + $0x62] sm:$0x1] %v10394_v45  ;;  %v7251_v22 = vrot.slane %v6979_v54, 2 }
 0x2d5   : > { %v10406_v25 = vpop.eup %7736  ;;  %v7248_v8 = vsel %vm1576_vm4, %v7247_v32, %v7246_v41  ;;  %3574 = vst [vmem:[%s9309_s25 + $0x65] sm:$0x1] %v3346_v55  ;;  %v7253_v14 = vrot.slane %v6980_v30, 1  ;;  %v3350_v56 = vrot.slane %v10385_v0, 5  ;;  %v3351_v23 = vrot.slane %v10385_v0, 6 }
 0x2d6   : > { %v7250_v18 = vsel %vm1578_vm5, %v7249_v17, %v7248_v8  ;;  %3575 = vst [vmem:[%s9309_s25 + $0x69] sm:$0x1] %v3347_v58  ;;  %v3352_v50 = vrot.slane %v10385_v0, 7  ;;  %v4722_v49 = vrot.slane %v10394_v45, 1  ;;  %v4723_v16 = vrot.slane %v10394_v45, 2 }
 0x2d7   : > { %v10413_v19 = vpop.eup %7738  ;;  %v7252_v33 = vsel %vm1580_vm6, %v7251_v22, %v7250_v18  ;;  %3576 = vst [vmem:[%s9309_s25 + $0x6d] sm:$0x1] %v3348_v5  ;;  %v4724_v59 = vrot.slane %v10394_v45, 3  ;;  %v2128_v20 = vand.u32 2147483647, %v10351_v3  ;;  %v4725_v28 = vrot.slane %v10394_v45, 4 }
 0x2d8   : > { %v7254_v40 = vsel %vm1582_vm7, %v7253_v14, %v7252_v33  ;;  %3577 = vst [vmem:[%s9309_s25 + $0x71] sm:$0x1] %v3349_v21  ;;  %v2120_v39 = vmul.f32 %v10406_v25, %v10351_v3  ;;  %v4502_v1 = vmul.f32 %v10413_v19, %v10369_v34  ;;  %v4726_v4 = vrot.slane %v10394_v45, 5  ;;  %v10498_v57 = vld [vmem:[%s8065_s30 + $0x74] sm:$0xf]  ;;  %v14956_v14 = vld [vmem:[#allocation38_spill] sm:$0xff] }
 0x2d9   : > { %7455 = vst [vmem:[%s9759_s27 + $0x10] sm:$0xff] %v7254_v40  ;;  %v4727_v38 = vrot.slane %v10394_v45, 6  ;;  %vm2124_vm10 = vweird.f32 %v10351_v3  ;;  %v2130_v51 = vand.u32 2147483648, %v10351_v3  ;;  %v4728_v35 = vrot.slane %v10394_v45, 7  ;;  %v10510_v42 = vld [vmem:[%s8065_s30 + $0x7c] sm:$0xf] }
 0x2da   : > { %3578 = vst [vmem:[%s9309_s25 + $0x75] sm:$0x1] %v3350_v56  ;;  %vm10448_vm11 = vcmp.eq.f32.partialorder %v2128_v20, 8.507059e+37  ;;  %vm4506_vm12 = vweird.f32 %v10369_v34  ;;  %v4512_v36 = vand.u32 2147483648, %v10369_v34  ;;  %v10459_v62 = vmul.f32 %v10455_v26, %v10385_v0  ;;  %v14955_v22 = vld [vmem:[#allocation36_spill] sm:$0xff] }
 0x2db   : > { %3579 = vst [vmem:[%s9309_s25 + $0x79] sm:$0x1] %v3351_v23  ;;  %v10465_v24 = vmul.f32 %v10462_v53, %v3346_v55  ;;  %v2121_v10 = vsub.f32 1.0, %v2120_v39  ;;  %v4503_v43 = vsub.f32 1.0, %v4502_v1  ;;  %v10474_v15 = vmul.f32 %v10471_v31, %v3352_v50 }
 0x2dc   : > { %3580 = vst [vmem:[%s9309_s25 + $0x7d] sm:$0x1] %v3352_v50  ;;  %v10480_v48 = vmul.f32 %v10477_v60, %v3347_v58  ;;  %v10486_v52 = vmul.f32 %v10483_v63, %v3348_v5  ;;  %vm2125_vm13 = vweird.f32 %v10406_v25  ;;  %vm4507_vm14 = vweird.f32 %v10413_v19  ;;  %v10537_v58 = vpop.xlane.xlu2 %2053 }
 0x2dd   : > { %4950 = vst [vmem:[%s9309_s25 + $0x66] sm:$0x1] %v4722_v49  ;;  %v2122_v11 = vmul.f32 %v10406_v25, %v2121_v10  ;;  %v4504_v2 = vmul.f32 %v10413_v19, %v4503_v43  ;;  %v4510_v47 = vand.u32 2147483647, %v10369_v34  ;;  %v10501_v29 = vmul.f32 %v10498_v57, %v3349_v21  ;;  %vm2126_vm15 = vmor %vm2124_vm10, %vm2125_vm13  ;;  %v10551_v21 = vpop.xlane.xlu1 %5795 }
 0x2de   : > { %4951 = vst [vmem:[%s9309_s25 + $0x6a] sm:$0x1] %v4723_v16  ;;  %v10507_v46 = vmul.f32 %v10504_v37, %v3350_v56  ;;  %v10513_v13 = vmul.f32 %v10510_v42, %v3351_v23  ;;  %v2131_v7 = vor.u32 1.1754944e-38, %v2130_v51  ;;  %v3974_v54 = vrot.slane %v10459_v62, 1  ;;  %vm4508_vm0 = vmor %vm4506_vm12, %vm4507_vm14 }
 0x2df   : > { %4952 = vst [vmem:[%s9309_s25 + $0x6e] sm:$0x1] %v4724_v59  ;;  %v3975_v44 = vrot.slane %v10465_v24, 1  ;;  %v2123_v0 = vadd.f32 %v10406_v25, %v2122_v11  ;;  %v4505_v12 = vadd.f32 %v10413_v19, %v4504_v2  ;;  %v3973_v30 = vrot.slane %v10474_v15, 1 }
 0x2e0   : > { %4953 = vst [vmem:[%s9309_s25 + $0x72] sm:$0x1] %v4725_v28  ;;  %v3977_v32 = vrot.slane %v10486_v52, 1  ;;  %v4513_v9 = vor.u32 1.1754944e-38, %v4512_v36  ;;  %v10533_v61 = vmul.f32 %v10462_v53, %v10394_v45  ;;  %vm4511_vm8 = vcmp.eq.f32.partialorder %v4510_v47, 8.507059e+37 }
 0x2e1   : > { %4954 = vst [vmem:[%s9309_s25 + $0x76] sm:$0x1] %v4726_v4  ;;  %v2127_v3 = vsel %vm2126_vm15, %v10406_v25, %v2123_v0  ;;  %v4509_v55 = vsel %vm4508_vm0, %v10413_v19, %v4505_v12  ;;  %v10542_v5 = vmul.f32 %v10477_v60, %v4722_v49  ;;  %v10547_v34 = vmul.f32 %v10483_v63, %v4723_v16 }
 0x2e2   : > { %4955 = vst [vmem:[%s9309_s25 + $0x7a] sm:$0x1] %v4727_v38  ;;  %v2132_v41 = vsel %vm10448_vm11, %v2131_v7, %v2127_v3  ;;  %v4514_v17 = vsel %vm4511_vm8, %v4513_v9, %v4509_v55  ;;  %v10554_v25 = vmul.f32 %v10471_v31, %v4727_v38  ;;  %v10559_v8 = vmul.f32 %v10498_v57, %v4724_v59  ;;  %v10590_v38 = vpop.xlane.xlu0 %2055 }
 0x2e3   : > { %4956 = vst [vmem:[%s9309_s25 + $0x7e] sm:$0x1] %v4728_v35  ;;  %v2304_v18 = vmul.f32 %v14955_v22, %v2132_v41  ;;  %v10563_v56 = vmul.f32 %v14956_v14, %v4514_v17  ;;  %v10566_v19 = vmul.f32 %v10455_v26, %v4728_v35  ;;  %v10571_v33 = vmul.f32 %v10504_v37, %v4725_v28 }
 0x2e4   : > { %v10576_v23 = vmul.f32 %v10510_v42, %v4726_v4  ;;  %7740 = vrcp.f32 %v10537_v58  ;;  %v3978_v16 = vrot.slane %v10501_v29, 1  ;;  %v3979_v59 = vrot.slane %v10507_v46, 1 }
 0x2e5   : > { %v2354_v40 = vrot.slane %v2304_v18, 1  ;;  %v2355_v50 = vrot.slane %v2304_v18, 2  ;;  %v2356_v49 = vrot.slane %v2304_v18, 3  ;;  %2581 = vst [vmem:[%s9309_s25 + $0x60] sm:$0x1] %v2304_v18  ;;  %7742 = vrcp.f32 %v10551_v21 }
 0x2e6   : > { %v2357_v45 = vrot.slane %v2304_v18, 4  ;;  %4957 = vst [vmem:[%s9309_s25 + $0x82] sm:$0x1] %v10563_v56  ;;  %v2358_v1 = vrot.slane %v2304_v18, 5  ;;  %v2144_v4 = vand.u32 2147483648, %v10537_v58  ;;  %v2359_v36 = vrot.slane %v2304_v18, 6 }
 0x2e7   : > { %2582 = vst [vmem:[%s9309_s25 + $0x64] sm:$0x1] %v2354_v40  ;;  %v5350_v10 = vrot.slane %v10566_v19, 2  ;;  %v2360_v2 = vrot.slane %v2304_v18, 7  ;;  %v2142_v7 = vand.u32 2147483647, %v10537_v58  ;;  %7744 = vrcp.f32 %v10590_v38 }
 0x2e8   : > { %2583 = vst [vmem:[%s9309_s25 + $0x68] sm:$0x1] %v2355_v50  ;;  %v5872_v0 = vand.u32 2147483647, %v10551_v21  ;;  %v4729_v9 = vrot.slane %v10563_v56, 1  ;;  %v10610_v3 = vor.u32 1.1754944e-38, %v2144_v4  ;;  %v2726_v17 = vmul.f32 %v10455_v26, %v2354_v40 }
 0x2e9   : > { %2584 = vst [vmem:[%s9309_s25 + $0x6c] sm:$0x1] %v2356_v49  ;;  %v5874_v55 = vand.u32 2147483648, %v10551_v21  ;;  %v2158_v41 = vand.u32 2147483648, %v10590_v38  ;;  %v2727_v22 = vmul.f32 %v10462_v53, %v2355_v50  ;;  %v2729_v14 = vmul.f32 %v10483_v63, %v2357_v45 }
 0x2ea   : > { %v10600_v47 = vpop.eup %7740  ;;  %2585 = vst [vmem:[%s9309_s25 + $0x70] sm:$0x1] %v2357_v45  ;;  %v4730_v19 = vrot.slane %v10563_v56, 2  ;;  %v2730_v39 = vmul.f32 %v10498_v57, %v2358_v1  ;;  %v2731_v4 = vmul.f32 %v10504_v37, %v2359_v36  ;;  %v4731_v11 = vrot.slane %v10563_v56, 3 }
 0x2eb   : > { %v10606_v12 = vpop.eup %7742  ;;  %2586 = vst [vmem:[%s9309_s25 + $0x74] sm:$0x1] %v2358_v1  ;;  %v4732_v43 = vrot.slane %v10563_v56, 4  ;;  %vm2138_vm9 = vweird.f32 %v10537_v58  ;;  %v2725_v40 = vmul.f32 %v10471_v31, %v2304_v18  ;;  %v2134_v45 = vmul.f32 %v10600_v47, %v10537_v58 }
 0x2ec   : > { %2587 = vst [vmem:[%s9309_s25 + $0x78] sm:$0x1] %v2359_v36  ;;  %v5864_v1 = vmul.f32 %v10606_v12, %v10551_v21  ;;  %vm5868_vm10 = vweird.f32 %v10551_v21  ;;  %v2728_v36 = vmul.f32 %v10477_v60, %v2356_v49  ;;  %v2732_v6 = vmul.f32 %v10510_v42, %v2360_v2 }
 0x2ed   : > { %2588 = vst [vmem:[%s9309_s25 + $0x7c] sm:$0x1] %v2360_v2  ;;  %v4734_v35 = vrot.slane %v10563_v56, 6  ;;  %v10638_v28 = vpop.eup %7744  ;;  %v4230_v51 = vadd.f32 %v3974_v54, %v2726_v17  ;;  %v4735_v20 = vrot.slane %v10563_v56, 7  ;;  %vm10644_vm11 = vcmp.eq.f32.partialorder %v2142_v7, 8.507059e+37 }
 0x2ee   : > { %4958 = vst [vmem:[%s9309_s25 + $0x86] sm:$0x1] %v4729_v9  ;;  %vm10648_vm12 = vcmp.eq.f32.partialorder %v5872_v0, 8.507059e+37  ;;  %v5875_v2 = vor.u32 1.1754944e-38, %v5874_v55  ;;  %v10652_v50 = vor.u32 1.1754944e-38, %v2158_v41  ;;  %v4231_v18 = vadd.f32 %v3975_v44, %v2727_v22 }
 0x2ef   : > { %4959 = vst [vmem:[%s9309_s25 + $0x8a] sm:$0x1] %v4730_v19  ;;  %v4233_v62 = vadd.f32 %v3977_v32, %v2729_v14  ;;  %v4234_v54 = vadd.f32 %v3978_v16, %v2730_v39  ;;  %v4235_v7 = vadd.f32 %v3979_v59, %v2731_v4  ;;  %v4229_v0 = vadd.f32 %v3973_v30, %v2725_v40  ;;  %v10705_v14 = vld [vmem:[%s8065_s30 + $0x88] sm:$0xf]  ;;  %v10712_v4 = vld [vmem:[%s8065_s30 + $0x8c] sm:$0xf] }
 0x2f0   : > { %4960 = vst [vmem:[%s9309_s25 + $0x8e] sm:$0x1] %v4731_v11  ;;  %v14961_v55 = vrot.slane %v10563_v56, 5  ;;  %v2135_v41 = vsub.f32 1.0, %v2134_v45  ;;  %vm2139_vm13 = vweird.f32 %v10600_v47  ;;  %v5865_v24 = vsub.f32 1.0, %v5864_v1 }
 0x2f1   : > { %4961 = vst [vmem:[%s9309_s25 + $0x92] sm:$0x1] %v4732_v43  ;;  %v14962_v52 = vrot.slane %v10480_v48, 1  ;;  %v14963_v44 = vrot.slane %v10513_v13, 1  ;;  %vm5869_vm14 = vweird.f32 %v10606_v12  ;;  %v2148_v15 = vmul.f32 %v10638_v28, %v10590_v38  ;;  %vm10722_vm15 = vmor %vm2138_vm9, %vm2139_vm13  ;;  %v10728_v45 = vld [vmem:[%s8065_s30 + $0x80] sm:$0xf] }
 0x2f2   : > { %4962 = vst [vmem:[%s9309_s25 + $0x96] sm:$0x1] %v14961_v55  ;;  %v14964_v30 = vrot.slane %v10554_v25, 2  ;;  %v10683_v16 = vadd.f32 %v5350_v10, %v4230_v51  ;;  %v2136_v48 = vmul.f32 %v10600_v47, %v2135_v41  ;;  %v5866_v13 = vmul.f32 %v10606_v12, %v5865_v24  ;;  %vm5870_vm0 = vmor %vm5868_vm10, %vm5869_vm14  ;;  %v10764_v55 = vld [vmem:[%s8065_s30 + $0x84] sm:$0xf] }
 0x2f3   : > { %v10671_v29 = vadd.f32 %v14962_v52, %v2728_v36  ;;  %v4236_v46 = vadd.f32 %v14963_v44, %v2732_v6  ;;  %4963 = vst [vmem:[%s9309_s25 + $0x9a] sm:$0x1] %v4734_v35  ;;  %v14965_v59 = vrot.slane %v10533_v61, 2  ;;  %v14966_v6 = vrot.slane %v10547_v34, 2  ;;  %v10770_v41 = vld [vmem:[%s8065_s30 + $0x9c] sm:$0xf] }
 0x2f4   : > { %v10681_v32 = vadd.f32 %v14964_v30, %v4229_v0  ;;  %4964 = vst [vmem:[%s9309_s25 + $0x9e] sm:$0x1] %v4735_v20  ;;  %v14967_v25 = vrot.slane %v10559_v8, 2  ;;  %v14968_v51 = vrot.slane %v10571_v33, 2  ;;  %v10709_v61 = vmul.f32 %v10705_v14, %v10563_v56  ;;  %v14973_v44 = vld [vmem:[#allocation40_spill] sm:$0xff]  ;;  %v10792_v30 = vpop.xlane.xlu2 %5797 }
 0x2f5   : > { %v10690_v39 = vadd.f32 %v14965_v59, %v4231_v18  ;;  %v10694_v17 = vadd.f32 %v14966_v6, %v4233_v62  ;;  %v10715_v34 = vmul.f32 %v10712_v4, %v4729_v9  ;;  %v2137_v8 = vadd.f32 %v10600_v47, %v2136_v48  ;;  %v10734_v9 = vld [vmem:[%s8065_s30 + $0x90] sm:$0xf]  ;;  %v10740_v18 = vld [vmem:[%s8065_s30 + $0x94] sm:$0xf]  ;;  %v10799_v48 = vpop.xlane.xlu0 %5799 }
 0x2f6   : > { %v10698_v22 = vadd.f32 %v14967_v25, %v4234_v54  ;;  %v10702_v10 = vadd.f32 %v14968_v51, %v4235_v7  ;;  %v5867_v40 = vadd.f32 %v10606_v12, %v5866_v13  ;;  %v10731_v1 = vmul.f32 %v10728_v45, %v4734_v35  ;;  %v10754_v7 = vld [vmem:[%s8065_s30 + $0x98] sm:$0xf] }
 0x2f7   : > { %v10737_v36 = vmul.f32 %v10734_v9, %v4730_v19  ;;  %v10743_v58 = vmul.f32 %v10740_v18, %v4731_v11  ;;  %v2149_v62 = vsub.f32 1.0, %v2148_v15  ;;  %v14971_v54 = vrot.slane %v10576_v23, 2 }
 0x2f8   : > { %v10757_v19 = vmul.f32 %v10754_v7, %v4732_v43  ;;  %v2141_v11 = vsel %vm10722_vm15, %v10600_v47, %v2137_v8  ;;  %v5871_v0 = vsel %vm5870_vm0, %v10606_v12, %v5867_v40  ;;  %v10767_v21 = vmul.f32 %v10764_v55, %v4735_v20  ;;  %v10782_v12 = vpop.xlane.xlu1 %3045 }
 0x2f9   : > { %v10751_v35 = vadd.f32 %v14971_v54, %v4236_v46  ;;  %v14972_v23 = vrot.slane %v10563_v56, 5  ;;  %v2146_v43 = vsel %vm10644_vm11, %v10610_v3, %v2141_v11  ;;  %v5876_v47 = vsel %vm10648_vm12, %v5875_v2, %v5871_v0  ;;  %v14974_v56 = vld [vmem:[#allocation39_spill] sm:$0xff] }
 0x2fa   : > { %v10787_v46 = vmul.f32 %v14973_v44, %v2146_v43  ;;  %v10790_v15 = vmul.f32 %v14974_v56, %v5876_v47  ;;  %v2150_v2 = vmul.f32 %v10638_v28, %v2149_v62  ;;  %vm2152_vm8 = vweird.f32 %v10590_v38 }
 0x2fb   : > { %v10775_v24 = vmul.f32 %v10770_v41, %v14972_v23  ;;  %7746 = vrcp.f32 %v10782_v12  ;;  %vm2153_vm9 = vweird.f32 %v10638_v28  ;;  %v14975_v23 = vand.u32 2147483647, %v10590_v38 }
 0x2fc   : > { %v2361_v13 = vrot.slane %v10787_v46, 1  ;;  %v2362_v59 = vrot.slane %v10787_v46, 2  ;;  %v14703_v6 = vrot.slane %v10787_v46, 3  ;;  %2589 = vst [vmem:[%s9309_s25 + $0x80] sm:$0x1] %v10787_v46  ;;  %v14701_v8 = vrot.slane %v10787_v46, 4  ;;  %vm10876_vm11 = vmor %vm2152_vm8, %vm2153_vm9 }
 0x2fd   : > { %6325 = vst [vmem:[%s9309_s25 + $0x63] sm:$0x1] %v10790_v15  ;;  %7748 = vrcp.f32 %v10792_v30  ;;  %v14702_v40 = vrot.slane %v10787_v46, 5  ;;  %v2366_v62 = vrot.slane %v10787_v46, 6  ;;  %v14704_v54 = vrot.slane %v10787_v46, 7 }
 0x2fe   : > { %2590 = vst [vmem:[%s9309_s25 + $0x84] sm:$0x1] %v2361_v13  ;;  %7750 = vrcp.f32 %v10799_v48  ;;  %v6098_v11 = vrot.slane %v10790_v15, 1  ;;  %v2151_v0 = vadd.f32 %v10638_v28, %v2150_v2  ;;  %vm10829_vm10 = vcmp.eq.f32.partialorder %v14975_v23, 8.507059e+37 }
 0x2ff   : > { %2591 = vst [vmem:[%s9309_s25 + $0x88] sm:$0x1] %v2362_v59  ;;  %v6099_v47 = vrot.slane %v10790_v15, 2  ;;  %v6100_v44 = vrot.slane %v10790_v15, 3  ;;  %v6101_v56 = vrot.slane %v10790_v15, 4  ;;  %v6102_v51 = vrot.slane %v10790_v15, 5 }
 0x300   : > { %2592 = vst [vmem:[%s9309_s25 + $0x8c] sm:$0x1] %v14703_v6  ;;  %v6103_v2 = vrot.slane %v10790_v15, 6  ;;  %v6104_v23 = vrot.slane %v10790_v15, 7  ;;  %v6472_v25 = vmul.f32 %v10477_v60, %v10790_v15  ;;  %v6473_v49 = vmul.f32 %v10483_v63, %v6098_v11 }
 0x301   : > { %2593 = vst [vmem:[%s9309_s25 + $0x90] sm:$0x1] %v14701_v8  ;;  %v10848_v3 = vpop.eup %7746  ;;  %v6469_v27 = vmul.f32 %v10471_v31, %v6102_v51  ;;  %v6474_v52 = vmul.f32 %v10498_v57, %v6099_v47  ;;  %v6475_v20 = vmul.f32 %v10504_v37, %v6100_v44  ;;  %v6476_v33 = vmul.f32 %v10510_v42, %v6101_v56 }
 0x302   : > { %2594 = vst [vmem:[%s9309_s25 + $0x94] sm:$0x1] %v14702_v40  ;;  %v6470_v60 = vmul.f32 %v10455_v26, %v6103_v2  ;;  %v6471_v63 = vmul.f32 %v10462_v53, %v6104_v23  ;;  %v6728_v15 = vrot.slane %v6472_v25, 3  ;;  %v6729_v40 = vrot.slane %v6473_v49, 3 }
 0x303   : > { %v10857_v8 = vpop.eup %7748  ;;  %2595 = vst [vmem:[%s9309_s25 + $0x98] sm:$0x1] %v2366_v62  ;;  %v14978_v57 = vrot.slane %v10542_v5, 2  ;;  %v6725_v42 = vrot.slane %v6469_v27, 3  ;;  %v6730_v6 = vrot.slane %v6474_v52, 3  ;;  %v3136_v53 = vand.u32 2147483648, %v10782_v12 }
 0x304   : > { %v10864_v31 = vpop.eup %7750  ;;  %2596 = vst [vmem:[%s9309_s25 + $0x9c] sm:$0x1] %v14704_v54  ;;  %v6726_v49 = vrot.slane %v6470_v60, 3  ;;  %v6727_v25 = vrot.slane %v6471_v63, 3  ;;  %v6731_v54 = vrot.slane %v6475_v20, 3  ;;  %v2155_v5 = vsel %vm10876_vm11, %v10638_v28, %v2151_v0 }
 0x305   : > { %v5608_v37 = vadd.f32 %v14978_v57, %v10671_v29  ;;  %6326 = vst [vmem:[%s9309_s25 + $0x67] sm:$0x1] %v6098_v11  ;;  %v6732_v29 = vrot.slane %v6476_v33, 3  ;;  %v6985_v38 = vadd.f32 %v6729_v40, %v10694_v17  ;;  %v3126_v27 = vmul.f32 %v10848_v3, %v10782_v12 }
 0x306   : > { %6327 = vst [vmem:[%s9309_s25 + $0x6b] sm:$0x1] %v6099_v47  ;;  %v6982_v11 = vadd.f32 %v6726_v49, %v10683_v16  ;;  %v6983_v60 = vadd.f32 %v6727_v25, %v10690_v39  ;;  %v3134_v20 = vand.u32 2147483647, %v10782_v12  ;;  %v5886_v63 = vand.u32 2147483647, %v10792_v30 }
 0x307   : > { %v6984_v52 = vadd.f32 %v6728_v15, %v5608_v37  ;;  %6328 = vst [vmem:[%s9309_s25 + $0x6f] sm:$0x1] %v6100_v44  ;;  %v6981_v28 = vadd.f32 %v6725_v42, %v10681_v32  ;;  %v6986_v33 = vadd.f32 %v6730_v6, %v10698_v22  ;;  %v2160_v17 = vsel %vm10829_vm10, %v10652_v50, %v2155_v5  ;;  %v14981_v47 = vld [vmem:[#allocation41_spill] sm:$0xff] }
 0x308   : > { %6329 = vst [vmem:[%s9309_s25 + $0x73] sm:$0x1] %v6101_v56  ;;  %v10900_v40 = vor.u32 1.1754944e-38, %v3136_v53  ;;  %v6987_v16 = vadd.f32 %v6731_v54, %v10702_v10  ;;  %v7255_v39 = vrot.slane %v6982_v11, 7  ;;  %v7257_v0 = vrot.slane %v6983_v60, 6 }
 0x309   : > { %6330 = vst [vmem:[%s9309_s25 + $0x77] sm:$0x1] %v6102_v51  ;;  %v10905_v44 = vmul.f32 %v14981_v47, %v2160_v17  ;;  %v6988_v32 = vadd.f32 %v6732_v29, %v10751_v35  ;;  %v7259_v56 = vrot.slane %v6984_v52, 5  ;;  %v7261_v22 = vrot.slane %v6985_v38, 4 }
 0x30a   : > { %6331 = vst [vmem:[%s9309_s25 + $0x7b] sm:$0x1] %v6103_v2  ;;  %v3127_v6 = vsub.f32 1.0, %v3126_v27  ;;  %vm3130_vm12 = vweird.f32 %v10782_v12  ;;  %v7256_v50 = vsel %vm1570_vm1, %v7255_v39, %v6981_v28  ;;  %vm10919_vm13 = vcmp.eq.f32.partialorder %v3134_v20, 8.507059e+37 }
 0x30b   : > { %6332 = vst [vmem:[%s9309_s25 + $0x7f] sm:$0x1] %v6104_v23  ;;  %v2368_v10 = vrot.slane %v10905_v44, 1  ;;  %v2369_v51 = vrot.slane %v10905_v44, 2  ;;  %v2370_v54 = vrot.slane %v10905_v44, 3  ;;  %v7258_v43 = vsel %vm1572_vm2, %v7257_v0, %v7256_v50 }
 0x30c   : > { %v2371_v35 = vrot.slane %v10905_v44, 4  ;;  %2597 = vst [vmem:[%s9309_s25 + $0xa0] sm:$0x1] %v10905_v44  ;;  %v5878_v23 = vmul.f32 %v10857_v8, %v10792_v30  ;;  %vm5882_vm14 = vweird.f32 %v10792_v30  ;;  %v5892_v15 = vmul.f32 %v10864_v31, %v10799_v48 }
 0x30d   : > { %v7260_v57 = vsel %vm1574_vm3, %v7259_v56, %v7258_v43  ;;  %v7263_v37 = vrot.slane %v6986_v33, 3  ;;  %v14707_v42 = vrot.slane %v10905_v44, 5  ;;  %2598 = vst [vmem:[%s9309_s25 + $0xa4] sm:$0x1] %v2368_v10  ;;  %v5888_v26 = vand.u32 2147483648, %v10792_v30 }
 0x30e   : > { %v7262_v53 = vsel %vm1576_vm4, %v7261_v22, %v7260_v57  ;;  %v7265_v49 = vrot.slane %v6987_v16, 2  ;;  %2599 = vst [vmem:[%s9309_s25 + $0xa8] sm:$0x1] %v2369_v51  ;;  %vm3131_vm15 = vweird.f32 %v10848_v3  ;;  %vm5896_vm0 = vweird.f32 %v10799_v48 }
 0x30f   : > { %v7264_v25 = vsel %vm1578_vm5, %v7263_v37, %v7262_v53  ;;  %v7267_v5 = vrot.slane %v6988_v32, 1  ;;  %v14706_v29 = vrot.slane %v10905_v44, 6  ;;  %v14705_v52 = vrot.slane %v10905_v44, 7  ;;  %2600 = vst [vmem:[%s9309_s25 + $0xac] sm:$0x1] %v2370_v54  ;;  %vm3132_vm9 = vmor %vm3130_vm12, %vm3131_vm15 }
 0x310   : > { %v7266_v38 = vsel %vm1580_vm6, %v7265_v49, %v7264_v25  ;;  %2601 = vst [vmem:[%s9309_s25 + $0xb0] sm:$0x1] %v2371_v35  ;;  %v3128_v27 = vmul.f32 %v10848_v3, %v3127_v6  ;;  %v5879_v11 = vsub.f32 1.0, %v5878_v23  ;;  %v5893_v60 = vsub.f32 1.0, %v5892_v15  ;;  %v11036_v49 = vld [vmem:[%s8065_s30 + $0xa4] sm:$0xf] }
 0x311   : > { %v7268_v20 = vsel %vm1582_vm7, %v7267_v5, %v7266_v38  ;;  %2602 = vst [vmem:[%s9309_s25 + $0xb4] sm:$0x1] %v14707_v42  ;;  %v10953_v28 = vor.u32 1.1754944e-38, %v5888_v26  ;;  %v5900_v33 = vand.u32 2147483647, %v10799_v48  ;;  %v5902_v17 = vand.u32 2147483648, %v10799_v48 }
 0x312   : > { %7456 = vst [vmem:[%s9759_s27 + $0x18] sm:$0xff] %v7268_v20  ;;  %v3129_v16 = vadd.f32 %v10848_v3, %v3128_v27  ;;  %v5880_v39 = vmul.f32 %v10857_v8, %v5879_v11  ;;  %vm5883_vm8 = vweird.f32 %v10857_v8  ;;  %v5894_v0 = vmul.f32 %v10864_v31, %v5893_v60  ;;  %v11055_v38 = vld [vmem:[%s8065_s30 + $0xa8] sm:$0xf]  ;;  %v11063_v27 = vld [vmem:[%s8065_s30 + $0xac] sm:$0xf] }
 0x313   : > { %v10964_v47 = vmul.f32 %v10728_v45, %v10787_v46  ;;  %v2734_v32 = vmul.f32 %v10764_v55, %v2361_v13  ;;  %v2735_v56 = vmul.f32 %v10705_v14, %v2362_v59  ;;  %2603 = vst [vmem:[%s9309_s25 + $0xb8] sm:$0x1] %v14706_v29  ;;  %vm5897_vm10 = vweird.f32 %v10864_v31  ;;  %vm11013_vm11 = vmor %vm5882_vm14, %vm5883_vm8  ;;  %v11109_v48 = vld [vmem:[%s8065_s30 + $0xb4] sm:$0xf] }
 0x314   : > { %v14984_v22 = vrot.slane %v10787_v46, 3  ;;  %2604 = vst [vmem:[%s9309_s25 + $0xbc] sm:$0x1] %v14705_v52  ;;  %v3133_v59 = vsel %vm3132_vm9, %v10848_v3, %v3129_v16  ;;  %v5881_v6 = vadd.f32 %v10857_v8, %v5880_v39  ;;  %v10989_v50 = vadd.f32 %v10864_v31, %v5894_v0 }
 0x315   : > { %v14985_v12 = vrot.slane %v10787_v46, 4  ;;  %v14986_v23 = vrot.slane %v10787_v46, 5  ;;  %v11004_v3 = vmul.f32 %v10754_v7, %v2366_v62  ;;  %v3138_v57 = vsel %vm10919_vm13, %v10900_v40, %v3133_v59  ;;  %v11029_v40 = vld [vmem:[%s8065_s30 + $0xa0] sm:$0xf]  ;;  %vm11046_vm13 = vmor %vm5896_vm0, %vm5897_vm10 }
 0x316   : > { %v2736_v13 = vmul.f32 %v10712_v4, %v14984_v22  ;;  %vm11019_vm12 = vcmp.eq.f32.partialorder %v5886_v63, 8.507059e+37  ;;  %v14991_v62 = vrot.slane %v10787_v46, 7  ;;  %v11033_v2 = vmul.f32 %v11029_v40, %v10905_v44  ;;  %v14992_v63 = vld [vmem:[#allocation42_spill] sm:$0xff] }
 0x317   : > { %v10994_v43 = vmul.f32 %v10734_v9, %v14985_v12  ;;  %v10999_v15 = vmul.f32 %v10740_v18, %v14986_v23  ;;  %v11039_v30 = vmul.f32 %v11036_v49, %v2368_v10  ;;  %v3297_v25 = vmul.f32 %v14992_v63, %v3138_v57 }
 0x318   : > { %v11026_v53 = vmul.f32 %v10770_v41, %v14991_v62  ;;  %vm11050_vm14 = vcmp.eq.f32.partialorder %v5900_v33, 8.507059e+37  ;;  %v11060_v10 = vmul.f32 %v11055_v38, %v2369_v51  ;;  %v11068_v11 = vmul.f32 %v11063_v27, %v2370_v54 }
 0x319   : > { %v5885_v60 = vsel %vm11013_vm11, %v10857_v8, %v5881_v6  ;;  %v5899_v20 = vsel %vm11046_vm13, %v10864_v31, %v10989_v50  ;;  %v3353_v33 = vrot.slane %v3297_v25, 1  ;;  %v3354_v51 = vrot.slane %v3297_v25, 2  ;;  %3581 = vst [vmem:[%s9309_s25 + $0x81] sm:$0x1] %v3297_v25 }
 0x31a   : > { %v3355_v16 = vrot.slane %v3297_v25, 3  ;;  %v3356_v39 = vrot.slane %v3297_v25, 4  ;;  %v3357_v0 = vrot.slane %v3297_v25, 5  ;;  %v3358_v22 = vrot.slane %v3297_v25, 6 }
 0x31b   : > { %v3359_v54 = vrot.slane %v3297_v25, 7  ;;  %v3726_v59 = vmul.f32 %v10764_v55, %v3297_v25  ;;  %3582 = vst [vmem:[%s9309_s25 + $0x85] sm:$0x1] %v3353_v33  ;;  %v3727_v8 = vmul.f32 %v10705_v14, %v3353_v33  ;;  %v3728_v6 = vmul.f32 %v10712_v4, %v3354_v51  ;;  %v11089_v33 = vpop.xlane.xlu2 %3047 }
 0x31c   : > { %v3729_v12 = vmul.f32 %v10734_v9, %v3355_v16  ;;  %v3730_v31 = vmul.f32 %v10740_v18, %v3356_v39  ;;  %3583 = vst [vmem:[%s9309_s25 + $0x89] sm:$0x1] %v3354_v51  ;;  %v3731_v23 = vmul.f32 %v10754_v7, %v3357_v0  ;;  %v3732_v57 = vmul.f32 %v10770_v41, %v3358_v22 }
 0x31d   : > { %v3725_v50 = vmul.f32 %v10728_v45, %v3359_v54  ;;  %v3982_v37 = vrot.slane %v3726_v59, 1  ;;  %3584 = vst [vmem:[%s9309_s25 + $0x8d] sm:$0x1] %v3355_v16  ;;  %v3983_v62 = vrot.slane %v3727_v8, 1  ;;  %v3984_v63 = vrot.slane %v3728_v6, 1  ;;  %v11094_v59 = vpop.xlane.xlu1 %4423 }
 0x31e   : > { %v3985_v25 = vrot.slane %v3729_v12, 1  ;;  %v3986_v46 = vrot.slane %v3730_v31, 1  ;;  %3585 = vst [vmem:[%s9309_s25 + $0x91] sm:$0x1] %v3356_v39  ;;  %v3987_v52 = vrot.slane %v3731_v23, 1  ;;  %v3988_v29 = vrot.slane %v3732_v57, 1 }
 0x31f   : > { %v3981_v51 = vrot.slane %v3725_v50, 1  ;;  %v5903_v42 = vor.u32 1.1754944e-38, %v5902_v17  ;;  %3586 = vst [vmem:[%s9309_s25 + $0x95] sm:$0x1] %v3357_v0  ;;  %v4238_v16 = vadd.f32 %v3982_v37, %v2734_v32  ;;  %v4239_v8 = vadd.f32 %v3983_v62, %v2735_v56  ;;  %v11101_v31 = vld [vmem:[%s8065_s30 + $0xb0] sm:$0xf] }
 0x320   : > { %v4240_v6 = vadd.f32 %v3984_v63, %v2736_v13  ;;  %v5890_v12 = vsel %vm11019_vm12, %v10953_v28, %v5885_v60  ;;  %v11106_v39 = vmul.f32 %v11101_v31, %v2371_v35  ;;  %v14997_v17 = vrot.slane %v10905_v44, 5  ;;  %3587 = vst [vmem:[%s9309_s25 + $0x99] sm:$0x1] %v3358_v22  ;;  %v11121_v28 = vld [vmem:[%s8065_s30 + $0xb8] sm:$0xf]  ;;  %v15003_v37 = vld [vmem:[#allocation44_spill] sm:$0xff] }
 0x321   : > { %v5904_v32 = vsel %vm11050_vm14, %v5903_v42, %v5899_v20  ;;  %7752 = vrcp.f32 %v11089_v33  ;;  %v14998_v56 = vrot.slane %v10905_v44, 6  ;;  %3588 = vst [vmem:[%s9309_s25 + $0x9d] sm:$0x1] %v3359_v54  ;;  %v4241_v13 = vadd.f32 %v3985_v25, %v10994_v43  ;;  %v14999_v20 = vld [vmem:[#allocation43_spill] sm:$0xff] }
 0x322   : > { %v11114_v0 = vmul.f32 %v11109_v48, %v14997_v17  ;;  %v4242_v26 = vadd.f32 %v3986_v46, %v10999_v15  ;;  %7754 = vrcp.f32 %v11094_v59  ;;  %v4237_v5 = vadd.f32 %v3981_v51, %v10964_v47 }
 0x323   : > { %v11126_v35 = vmul.f32 %v11121_v28, %v14998_v56  ;;  %v4243_v42 = vadd.f32 %v3987_v52, %v11004_v3  ;;  %v4244_v60 = vadd.f32 %v3988_v29, %v11026_v53  ;;  %v6049_v22 = vmul.f32 %v14999_v20, %v5890_v12 }
 0x324   : > { %v15000_v50 = vrot.slane %v10767_v21, 2  ;;  %v15001_v54 = vrot.slane %v10709_v61, 2  ;;  %v15002_v43 = vrot.slane %v10715_v34, 2  ;;  %v11143_v62 = vmul.f32 %v15003_v37, %v5904_v32  ;;  %v11149_v61 = vpop.xlane.xlu0 %3049 }
 0x325   : > { %v6105_v47 = vrot.slane %v6049_v22, 1  ;;  %v6106_v52 = vrot.slane %v6049_v22, 2  ;;  %v6107_v3 = vrot.slane %v6049_v22, 3  ;;  %v6108_v29 = vrot.slane %v6049_v22, 4  ;;  %6333 = vst [vmem:[%s9309_s25 + $0x83] sm:$0x1] %v6049_v22 }
 0x326   : > { %v5614_v23 = vadd.f32 %v15000_v50, %v4238_v16  ;;  %v5615_v57 = vadd.f32 %v15001_v54, %v4239_v8  ;;  %v5616_v15 = vadd.f32 %v15002_v43, %v4240_v6  ;;  %v6109_v53 = vrot.slane %v6049_v22, 5  ;;  %6341 = vst [vmem:[%s9309_s25 + $0xa3] sm:$0x1] %v11143_v62 }
 0x327   : > { %v6110_v63 = vrot.slane %v6049_v22, 6  ;;  %v6111_v21 = vrot.slane %v6049_v22, 7  ;;  %v6480_v25 = vmul.f32 %v10712_v4, %v6049_v22  ;;  %v11151_v34 = vpop.eup %7752  ;;  %v15004_v46 = vrot.slane %v10731_v1, 2  ;;  %6334 = vst [vmem:[%s9309_s25 + $0x87] sm:$0x1] %v6105_v47 }
 0x328   : > { %v6481_v16 = vmul.f32 %v10734_v9, %v6105_v47  ;;  %v6482_v8 = vmul.f32 %v10740_v18, %v6106_v52  ;;  %v6483_v6 = vmul.f32 %v10754_v7, %v6107_v3  ;;  %v11159_v12 = vpop.eup %7754  ;;  %6335 = vst [vmem:[%s9309_s25 + $0x8b] sm:$0x1] %v6106_v52  ;;  %v6477_v4 = vmul.f32 %v10728_v45, %v6109_v53 }
 0x329   : > { %v5613_v51 = vadd.f32 %v15004_v46, %v4237_v5  ;;  %v6478_v17 = vmul.f32 %v10764_v55, %v6110_v63  ;;  %v6479_v32 = vmul.f32 %v10705_v14, %v6111_v21  ;;  %v6736_v1 = vrot.slane %v6480_v25, 3  ;;  %6336 = vst [vmem:[%s9309_s25 + $0x8f] sm:$0x1] %v6107_v3 }
 0x32a   : > { %v15005_v56 = vrot.slane %v10737_v36, 2  ;;  %v15006_v9 = vrot.slane %v10743_v58, 2  ;;  %v6484_v7 = vmul.f32 %v10770_v41, %v6108_v29  ;;  %7756 = vrcp.f32 %v11149_v61  ;;  %6337 = vst [vmem:[%s9309_s25 + $0x93] sm:$0x1] %v6108_v29 }
 0x32b   : > { %v6733_v45 = vrot.slane %v6477_v4, 3  ;;  %v6734_v20 = vrot.slane %v6478_v17, 3  ;;  %v6735_v55 = vrot.slane %v6479_v32, 3  ;;  %v6992_v22 = vadd.f32 %v6736_v1, %v5616_v15  ;;  %6338 = vst [vmem:[%s9309_s25 + $0x97] sm:$0x1] %v6109_v53 }
 0x32c   : > { %v5617_v5 = vadd.f32 %v15005_v56, %v4241_v13  ;;  %v5618_v18 = vadd.f32 %v15006_v9, %v4242_v26  ;;  %v15007_v14 = vrot.slane %v10757_v19, 2  ;;  %v15008_v36 = vrot.slane %v10775_v24, 2  ;;  %6339 = vst [vmem:[%s9309_s25 + $0x9b] sm:$0x1] %v6110_v63 }
 0x32d   : > { %v6737_v58 = vrot.slane %v6481_v16, 3  ;;  %v6738_v26 = vrot.slane %v6482_v8, 3  ;;  %v6739_v54 = vrot.slane %v6483_v6, 3  ;;  %v6989_v41 = vadd.f32 %v6733_v45, %v5613_v51  ;;  %6340 = vst [vmem:[%s9309_s25 + $0x9f] sm:$0x1] %v6111_v21 }
 0x32e   : > { %v5619_v50 = vadd.f32 %v15007_v14, %v4243_v42  ;;  %v5620_v13 = vadd.f32 %v15008_v36, %v4244_v60  ;;  %v6990_v43 = vadd.f32 %v6734_v20, %v5614_v23  ;;  %v6991_v37 = vadd.f32 %v6735_v55, %v5615_v57 }
 0x32f   : > { %v6740_v47 = vrot.slane %v6484_v7, 3  ;;  %v6993_v52 = vadd.f32 %v6737_v58, %v5617_v5  ;;  %v6994_v3 = vadd.f32 %v6738_v26, %v5618_v18  ;;  %v7273_v15 = vrot.slane %v6992_v22, 5  ;;  %v11202_v5 = vld [vmem:[%s8065_s30 + $0xbc] sm:$0xf] }
 0x330   : > { %v7269_v29 = vrot.slane %v6990_v43, 7  ;;  %v7271_v19 = vrot.slane %v6991_v37, 6  ;;  %v6112_v24 = vrot.slane %v11143_v62, 1  ;;  %v6113_v42 = vrot.slane %v11143_v62, 2  ;;  %v11182_v60 = vpop.eup %7756 }
 0x331   : > { %v6995_v53 = vadd.f32 %v6739_v54, %v5619_v50  ;;  %v6114_v63 = vrot.slane %v11143_v62, 3  ;;  %v6115_v23 = vrot.slane %v11143_v62, 4  ;;  %v3148_v57 = vand.u32 2147483647, %v11089_v33 }
 0x332   : > { %v6996_v21 = vadd.f32 %v6740_v47, %v5620_v13  ;;  %v7270_v25 = vsel %vm1570_vm1, %v7269_v29, %v6989_v41  ;;  %v6116_v46 = vrot.slane %v11143_v62, 5  ;;  %6342 = vst [vmem:[%s9309_s25 + $0xa7] sm:$0x1] %v6112_v24  ;;  %v3150_v51 = vand.u32 2147483648, %v11089_v33 }
 0x333   : > { %v7272_v16 = vsel %vm1572_vm2, %v7271_v19, %v7270_v25  ;;  %v7275_v8 = vrot.slane %v6993_v52, 4  ;;  %v6117_v6 = vrot.slane %v11143_v62, 6  ;;  %6343 = vst [vmem:[%s9309_s25 + $0xab] sm:$0x1] %v6113_v42  ;;  %v3140_v4 = vmul.f32 %v11151_v34, %v11089_v33 }
 0x334   : > { %v7274_v17 = vsel %vm1574_vm3, %v7273_v15, %v7272_v16  ;;  %v7277_v32 = vrot.slane %v6994_v3, 3  ;;  %v6118_v1 = vrot.slane %v11143_v62, 7  ;;  %6344 = vst [vmem:[%s9309_s25 + $0xaf] sm:$0x1] %v6114_v63  ;;  %v4516_v56 = vmul.f32 %v11159_v12, %v11094_v59 }
 0x335   : > { %v15009_v9 = vrot.slane %v10905_v44, 7  ;;  %v7276_v7 = vsel %vm1576_vm4, %v7275_v8, %v7274_v17  ;;  %v7279_v45 = vrot.slane %v6995_v53, 2  ;;  %6345 = vst [vmem:[%s9309_s25 + $0xb3] sm:$0x1] %v6115_v23  ;;  %vm3144_vm15 = vweird.f32 %v11089_v33  ;;  %v15015_v17 = vld [vmem:[#allocation46_spill] sm:$0xff] }
 0x336   : > { %v7278_v20 = vsel %vm1578_vm5, %v7277_v32, %v7276_v7  ;;  %v7281_v55 = vrot.slane %v6996_v21, 1  ;;  %6346 = vst [vmem:[%s9309_s25 + $0xb7] sm:$0x1] %v6116_v46  ;;  %vm4520_vm0 = vweird.f32 %v11094_v59  ;;  %v4524_v22 = vand.u32 2147483647, %v11094_v59 }
 0x337   : > { %v11207_v18 = vmul.f32 %v11202_v5, %v15009_v9  ;;  %v7280_v44 = vsel %vm1580_vm6, %v7279_v45, %v7278_v20  ;;  %6347 = vst [vmem:[%s9309_s25 + $0xbb] sm:$0x1] %v6117_v6  ;;  %v3141_v14 = vsub.f32 1.0, %v3140_v4  ;;  %vm11218_vm8 = vcmp.eq.f32.partialorder %v3148_v57, 8.507059e+37  ;;  %v15014_v4 = vld [vmem:[#allocation45_spill] sm:$0xff] }
 0x338   : > { %v3151_v36 = vor.u32 1.1754944e-38, %v3150_v51  ;;  %v7282_v13 = vsel %vm1582_vm7, %v7281_v55, %v7280_v44  ;;  %6348 = vst [vmem:[%s9309_s25 + $0xbf] sm:$0x1] %v6118_v1  ;;  %v4517_v58 = vsub.f32 1.0, %v4516_v56  ;;  %v4526_v26 = vand.u32 2147483648, %v11094_v59 }
 0x339   : > { %v3154_v54 = vmul.f32 %v11182_v60, %v11149_v61  ;;  %7457 = vst [vmem:[%s9759_s27 + $0x20] sm:$0xff] %v7282_v13  ;;  %v11229_v41 = vmul.f32 %v11029_v40, %v6116_v46  ;;  %v11232_v43 = vmul.f32 %v11036_v49, %v6117_v6  ;;  %v3142_v37 = vmul.f32 %v11151_v34, %v3141_v14 }
 0x33a   : > { %vm3145_vm9 = vweird.f32 %v11151_v34  ;;  %v11237_v47 = vmul.f32 %v11055_v38, %v6118_v1  ;;  %v11241_v52 = vmul.f32 %v11063_v27, %v11143_v62  ;;  %v4518_v3 = vmul.f32 %v11159_v12, %v4517_v58 }
 0x33b   : > { %vm4521_vm10 = vweird.f32 %v11159_v12  ;;  %v11246_v15 = vmul.f32 %v11101_v31, %v6112_v24  ;;  %v11249_v29 = vmul.f32 %v11109_v48, %v6113_v42  ;;  %v3143_v19 = vadd.f32 %v11151_v34, %v3142_v37  ;;  %vm3146_vm12 = vmor %vm3144_vm15, %vm3145_vm9 }
 0x33c   : > { %vm11252_vm11 = vcmp.eq.f32.partialorder %v4524_v22, 8.507059e+37  ;;  %v11257_v57 = vmul.f32 %v11121_v28, %v6114_v63  ;;  %v4519_v62 = vadd.f32 %v11159_v12, %v4518_v3  ;;  %v4527_v21 = vor.u32 1.1754944e-38, %v4526_v26  ;;  %vm4522_vm13 = vmor %vm4520_vm0, %vm4521_vm10  ;;  %v11295_v26 = vpop.xlane.xlu2 %2059 }
 0x33d   : > { %v3155_v24 = vsub.f32 1.0, %v3154_v54  ;;  %v11263_v25 = vmul.f32 %v11202_v5, %v6115_v23  ;;  %v6741_v42 = vrot.slane %v11229_v41, 3  ;;  %v6742_v46 = vrot.slane %v11232_v43, 3 }
 0x33e   : > { %v3147_v51 = vsel %vm3146_vm12, %v11151_v34, %v3143_v19  ;;  %v6743_v63 = vrot.slane %v11237_v47, 3  ;;  %v6744_v33 = vrot.slane %v11241_v52, 3  ;;  %v4523_v23 = vsel %vm4522_vm13, %v11159_v12, %v4519_v62 }
 0x33f   : > { %v3152_v16 = vsel %vm11218_vm8, %v3151_v36, %v3147_v51  ;;  %v6745_v8 = vrot.slane %v11246_v15, 3  ;;  %v6746_v6 = vrot.slane %v11249_v29, 3  ;;  %v4528_v59 = vsel %vm11252_vm11, %v4527_v21, %v4523_v23 }
 0x340   : > { %v3298_v34 = vmul.f32 %v15014_v4, %v3152_v16  ;;  %v11281_v32 = vmul.f32 %v15015_v17, %v4528_v59  ;;  %v3156_v1 = vmul.f32 %v11182_v60, %v3155_v24  ;;  %v3162_v56 = vand.u32 2147483647, %v11149_v61 }
 0x341   : > { %v3164_v12 = vand.u32 2147483648, %v11149_v61  ;;  %vm3159_vm14 = vweird.f32 %v11182_v60  ;;  %7758 = vrcp.f32 %v11295_v26  ;;  %vm3158_vm15 = vweird.f32 %v11149_v61 }
 0x342   : > { %v3360_v9 = vrot.slane %v3298_v34, 1  ;;  %v3361_v7 = vrot.slane %v3298_v34, 2  ;;  %v3362_v45 = vrot.slane %v3298_v34, 3  ;;  %v3363_v20 = vrot.slane %v3298_v34, 4  ;;  %3589 = vst [vmem:[%s9309_s25 + $0xa1] sm:$0x1] %v3298_v34  ;;  %vm11355_vm0 = vmor %vm3158_vm15, %vm3159_vm14 }
 0x343   : > { %v3364_v55 = vrot.slane %v3298_v34, 5  ;;  %v3365_v22 = vrot.slane %v3298_v34, 6  ;;  %v3366_v44 = vrot.slane %v3298_v34, 7  ;;  %v3734_v14 = vmul.f32 %v11036_v49, %v3298_v34  ;;  %4965 = vst [vmem:[%s9309_s25 + $0xa2] sm:$0x1] %v11281_v32 }
 0x344   : > { %3590 = vst [vmem:[%s9309_s25 + $0xa5] sm:$0x1] %v3360_v9  ;;  %v3735_v50 = vmul.f32 %v11055_v38, %v3360_v9  ;;  %v3736_v36 = vmul.f32 %v11063_v27, %v3361_v7  ;;  %v3737_v13 = vmul.f32 %v11101_v31, %v3362_v45  ;;  %v3738_v58 = vmul.f32 %v11109_v48, %v3363_v20 }
 0x345   : > { %3591 = vst [vmem:[%s9309_s25 + $0xa9] sm:$0x1] %v3361_v7  ;;  %v3733_v54 = vmul.f32 %v11029_v40, %v3366_v44  ;;  %v3739_v37 = vmul.f32 %v11121_v28, %v3364_v55  ;;  %v3740_v3 = vmul.f32 %v11202_v5, %v3365_v22  ;;  %v3990_v19 = vrot.slane %v3734_v14, 1 }
 0x346   : > { %3592 = vst [vmem:[%s9309_s25 + $0xad] sm:$0x1] %v3362_v45  ;;  %v3991_v53 = vrot.slane %v3735_v50, 1  ;;  %v3992_v62 = vrot.slane %v3736_v36, 1  ;;  %v3993_v21 = vrot.slane %v3737_v13, 1  ;;  %v3994_v24 = vrot.slane %v3738_v58, 1 }
 0x347   : > { %3593 = vst [vmem:[%s9309_s25 + $0xb1] sm:$0x1] %v3363_v20  ;;  %v3989_v51 = vrot.slane %v3733_v54, 1  ;;  %v3995_v16 = vrot.slane %v3739_v37, 1  ;;  %v11305_v23 = vadd.f32 %v11182_v60, %v3156_v1  ;;  %v3996_v4 = vrot.slane %v3740_v3, 1  ;;  %v11334_v36 = vpop.eup %7758 }
 0x348   : > { %3594 = vst [vmem:[%s9309_s25 + $0xb5] sm:$0x1] %v3364_v55  ;;  %v4246_v34 = vadd.f32 %v3990_v19, %v11039_v30  ;;  %v4248_v59 = vadd.f32 %v3992_v62, %v11068_v11  ;;  %v4249_v17 = vadd.f32 %v3993_v21, %v11106_v39  ;;  %v4250_v1 = vadd.f32 %v3994_v24, %v11114_v0  ;;  %v11343_v19 = vpop.xlane.xlu1 %2057 }
 0x349   : > { %3595 = vst [vmem:[%s9309_s25 + $0xb9] sm:$0x1] %v3365_v22  ;;  %v4245_v9 = vadd.f32 %v3989_v51, %v11033_v2  ;;  %v4247_v7 = vadd.f32 %v3991_v53, %v11060_v10  ;;  %v4736_v45 = vrot.slane %v11281_v32, 1  ;;  %v4737_v30 = vrot.slane %v11281_v32, 2  ;;  %v11453_v51 = vld [vmem:[%s8065_s30 + $0xcc] sm:$0xf] }
 0x34a   : > { %3596 = vst [vmem:[%s9309_s25 + $0xbd] sm:$0x1] %v3366_v44  ;;  %v4738_v11 = vrot.slane %v11281_v32, 3  ;;  %v4739_v39 = vrot.slane %v11281_v32, 4  ;;  %v4740_v20 = vrot.slane %v11281_v32, 5  ;;  %v4741_v55 = vrot.slane %v11281_v32, 6 }
 0x34b   : > { %v4742_v2 = vrot.slane %v11281_v32, 7  ;;  %4966 = vst [vmem:[%s9309_s25 + $0xa6] sm:$0x1] %v4736_v45  ;;  %v5111_v10 = vmul.f32 %v11055_v38, %v11281_v32  ;;  %v5112_v0 = vmul.f32 %v11063_v27, %v4736_v45  ;;  %v5113_v22 = vmul.f32 %v11101_v31, %v4737_v30 }
 0x34c   : > { %4967 = vst [vmem:[%s9309_s25 + $0xaa] sm:$0x1] %v4737_v30  ;;  %v5114_v44 = vmul.f32 %v11109_v48, %v4738_v11  ;;  %v5115_v14 = vmul.f32 %v11121_v28, %v4739_v39  ;;  %v5116_v50 = vmul.f32 %v11202_v5, %v4740_v20  ;;  %v5109_v13 = vmul.f32 %v11029_v40, %v4741_v55 }
 0x34d   : > { %4968 = vst [vmem:[%s9309_s25 + $0xae] sm:$0x1] %v4738_v11  ;;  %v5110_v38 = vmul.f32 %v11036_v49, %v4742_v2  ;;  %v5367_v32 = vrot.slane %v5111_v10, 2  ;;  %v5368_v27 = vrot.slane %v5112_v0, 2  ;;  %v4251_v58 = vadd.f32 %v3995_v16, %v11126_v35 }
 0x34e   : > { %v4252_v31 = vadd.f32 %v3996_v4, %v11207_v18  ;;  %4969 = vst [vmem:[%s9309_s25 + $0xb2] sm:$0x1] %v4739_v39  ;;  %v5369_v48 = vrot.slane %v5113_v22, 2  ;;  %v5370_v28 = vrot.slane %v5114_v44, 2  ;;  %v5365_v5 = vrot.slane %v5109_v13, 2 }
 0x34f   : > { %4970 = vst [vmem:[%s9309_s25 + $0xb6] sm:$0x1] %v4740_v20  ;;  %v5366_v54 = vrot.slane %v5110_v38, 2  ;;  %v5623_v37 = vadd.f32 %v5367_v32, %v4247_v7  ;;  %v5624_v3 = vadd.f32 %v5368_v27, %v4248_v59  ;;  %v5371_v40 = vrot.slane %v5115_v14, 2 }
 0x350   : > { %4971 = vst [vmem:[%s9309_s25 + $0xba] sm:$0x1] %v4741_v55  ;;  %v5372_v49 = vrot.slane %v5116_v50, 2  ;;  %v5625_v53 = vadd.f32 %v5369_v48, %v4249_v17  ;;  %v5626_v62 = vadd.f32 %v5370_v28, %v4250_v1  ;;  %v5621_v35 = vadd.f32 %v5365_v5, %v4245_v9 }
 0x351   : > { %4972 = vst [vmem:[%s9309_s25 + $0xbe] sm:$0x1] %v4742_v2  ;;  %v5622_v21 = vadd.f32 %v5366_v54, %v4246_v34  ;;  %v6999_v18 = vadd.f32 %v6743_v63, %v5623_v37  ;;  %v7000_v24 = vadd.f32 %v6744_v33, %v5624_v3  ;;  %v5627_v16 = vadd.f32 %v5371_v40, %v4251_v58 }
 0x352   : > { %v5628_v4 = vadd.f32 %v5372_v49, %v4252_v31  ;;  %v3161_v34 = vsel %vm11355_vm0, %v11182_v60, %v11305_v23  ;;  %7760 = vrcp.f32 %v11343_v19  ;;  %v6997_v47 = vadd.f32 %v6741_v42, %v5621_v35  ;;  %v11376_v60 = vpop.xlane.xlu0 %4425 }
 0x353   : > { %v6998_v52 = vadd.f32 %v6742_v46, %v5622_v21  ;;  %v7001_v63 = vadd.f32 %v6745_v8, %v5625_v53  ;;  %v3165_v33 = vor.u32 1.1754944e-38, %v3164_v12  ;;  %v6747_v59 = vrot.slane %v11257_v57, 3  ;;  %v15018_v12 = vld [vmem:[#allocation47_spill] sm:$0xff] }
 0x354   : > { %v6748_v17 = vrot.slane %v11263_v25, 3  ;;  %v7285_v9 = vrot.slane %v6999_v18, 6  ;;  %vm3163_vm8 = vcmp.eq.f32.partialorder %v3162_v56, 8.507059e+37  ;;  %v7002_v41 = vadd.f32 %v6746_v6, %v5626_v62  ;;  %v11432_v62 = vld [vmem:[%s8065_s30 + $0xc4] sm:$0xf] }
 0x355   : > { %v7283_v43 = vrot.slane %v6998_v52, 7  ;;  %v7287_v15 = vrot.slane %v7000_v24, 5  ;;  %v3166_v42 = vsel %vm3163_vm8, %v3165_v33, %v3161_v34  ;;  %v7003_v46 = vadd.f32 %v6747_v59, %v5627_v16  ;;  %v11447_v24 = vld [vmem:[%s8065_s30 + $0xc8] sm:$0xf]  ;;  %v11465_v52 = vld [vmem:[%s8065_s30 + $0xc0] sm:$0xf] }
 0x356   : > { %v7004_v8 = vadd.f32 %v6748_v17, %v5628_v4  ;;  %v11381_v23 = vmul.f32 %v15018_v12, %v3166_v42  ;;  %v7289_v25 = vrot.slane %v7001_v63, 4  ;;  %v2176_v61 = vmul.f32 %v11334_v36, %v11295_v26  ;;  %v15023_v4 = vld [vmem:[#allocation48_spill] sm:$0xff]  ;;  %v11492_v12 = vpop.xlane.xlu2 %5803 }
 0x357   : > { %v7284_v57 = vsel %vm1570_vm1, %v7283_v43, %v6997_v47  ;;  %7762 = vrcp.f32 %v11376_v60  ;;  %v7291_v30 = vrot.slane %v7002_v41, 3  ;;  %v7293_v20 = vrot.slane %v7003_v46, 2  ;;  %v11471_v33 = vld [vmem:[%s8065_s30 + $0xd0] sm:$0xf]  ;;  %v11477_v17 = vld [vmem:[%s8065_s30 + $0xd4] sm:$0xf]  ;;  %v11483_v43 = vpop.xlane.xlu1 %5801 }
 0x358   : > { %v11387_v29 = vpop.eup %7760  ;;  %v7286_v6 = vsel %vm1572_vm2, %v7285_v9, %v7284_v57  ;;  %v3367_v56 = vrot.slane %v11381_v23, 1  ;;  %v3368_v1 = vrot.slane %v11381_v23, 2  ;;  %v3369_v7 = vrot.slane %v11381_v23, 3  ;;  %3597 = vst [vmem:[%s9309_s25 + $0xc1] sm:$0x1] %v11381_v23 }
 0x359   : > { %v7288_v45 = vsel %vm1574_vm3, %v7287_v15, %v7286_v6  ;;  %v3370_v11 = vrot.slane %v11381_v23, 4  ;;  %v7295_v55 = vrot.slane %v7004_v8, 1  ;;  %v3371_v10 = vrot.slane %v11381_v23, 5 }
 0x35a   : > { %v7290_v39 = vsel %vm1576_vm4, %v7289_v25, %v7288_v45  ;;  %3598 = vst [vmem:[%s9309_s25 + $0xc5] sm:$0x1] %v3367_v56  ;;  %v2177_v0 = vsub.f32 1.0, %v2176_v61  ;;  %v2162_v22 = vmul.f32 %v11387_v29, %v11343_v19  ;;  %v3372_v14 = vrot.slane %v11381_v23, 6  ;;  %v11501_v25 = vld [vmem:[%s8065_s30 + $0xdc] sm:$0xf] }
 0x35b   : > { %v7292_v2 = vsel %vm1578_vm5, %v7291_v30, %v7290_v39  ;;  %3599 = vst [vmem:[%s9309_s25 + $0xc9] sm:$0x1] %v3368_v1  ;;  %v3373_v38 = vrot.slane %v11381_v23, 7  ;;  %v2184_v32 = vand.u32 2147483647, %v11295_v26  ;;  %v2186_v27 = vand.u32 2147483648, %v11295_v26 }
 0x35c   : > { %v7294_v44 = vsel %vm1580_vm6, %v7293_v20, %v7292_v2  ;;  %3600 = vst [vmem:[%s9309_s25 + $0xcd] sm:$0x1] %v3369_v7  ;;  %v2178_v58 = vmul.f32 %v11334_v36, %v2177_v0  ;;  %vm2181_vm9 = vweird.f32 %v11334_v36  ;;  %v2163_v31 = vsub.f32 1.0, %v2162_v22  ;;  %v15024_v45 = vld [vmem:[#allocation4_spill] sm:$0xff] }
 0x35d   : > { %v11407_v50 = vpop.eup %7762  ;;  %v7296_v13 = vsel %vm1582_vm7, %v7295_v55, %v7294_v44  ;;  %3601 = vst [vmem:[%s9309_s25 + $0xd1] sm:$0x1] %v3370_v11  ;;  %v2170_v28 = vand.u32 2147483647, %v11343_v19  ;;  %v2172_v5 = vand.u32 2147483648, %v11343_v19  ;;  %vm2180_vm10 = vweird.f32 %v11295_v26 }
 0x35e   : > { %7458 = vst [vmem:[%s9759_s27 + $0x28] sm:$0xff] %v7296_v13  ;;  %v4530_v48 = vmul.f32 %v11407_v50, %v11376_v60  ;;  %v2179_v54 = vadd.f32 %v11334_v36, %v2178_v58  ;;  %v2164_v37 = vmul.f32 %v11387_v29, %v2163_v31  ;;  %vm2167_vm11 = vweird.f32 %v11387_v29  ;;  %vm2182_vm12 = vmor %vm2180_vm10, %vm2181_vm9 }
 0x35f   : > { %3602 = vst [vmem:[%s9309_s25 + $0xd5] sm:$0x1] %v3371_v10  ;;  %v2187_v3 = vor.u32 1.1754944e-38, %v2186_v27  ;;  %vm2185_vm13 = vcmp.eq.f32.partialorder %v2184_v32, 8.507059e+37  ;;  %vm2166_vm14 = vweird.f32 %v11343_v19  ;;  %v11436_v26 = vmul.f32 %v11432_v62, %v11381_v23  ;;  %v11495_v23 = vld [vmem:[%s8065_s30 + $0xd8] sm:$0xf] }
 0x360   : > { %3603 = vst [vmem:[%s9309_s25 + $0xd9] sm:$0x1] %v3372_v14  ;;  %v4531_v40 = vsub.f32 1.0, %v4530_v48  ;;  %v2183_v49 = vsel %vm2182_vm12, %v11334_v36, %v2179_v54  ;;  %v2165_v53 = vadd.f32 %v11387_v29, %v2164_v37  ;;  %vm11438_vm15 = vmor %vm2166_vm14, %vm2167_vm11  ;;  %vm11442_vm0 = vcmp.eq.f32.partialorder %v2170_v28, 8.507059e+37  ;;  %v11562_v48 = vpop.xlane.xlu0 %2061 }
 0x361   : > { %3604 = vst [vmem:[%s9309_s25 + $0xdd] sm:$0x1] %v3373_v38  ;;  %v2188_v35 = vsel %vm2185_vm13, %v2187_v3, %v2183_v49  ;;  %v2173_v18 = vor.u32 1.1754944e-38, %v2172_v5  ;;  %v11450_v19 = vmul.f32 %v11447_v24, %v3367_v56  ;;  %v11456_v16 = vmul.f32 %v11453_v51, %v3368_v1 }
 0x362   : > { %v11459_v34 = vmul.f32 %v15023_v4, %v2188_v35  ;;  %v2169_v47 = vsel %vm11438_vm15, %v11387_v29, %v2165_v53  ;;  %v11468_v63 = vmul.f32 %v11465_v52, %v3373_v38  ;;  %v11474_v59 = vmul.f32 %v11471_v33, %v3369_v7  ;;  %v15029_v4 = vld [vmem:[#allocation6_spill] sm:$0xff] }
 0x363   : > { %v11480_v9 = vmul.f32 %v11477_v17, %v3370_v11  ;;  %v4532_v41 = vmul.f32 %v11407_v50, %v4531_v40  ;;  %v2174_v8 = vsel %vm11442_vm0, %v2173_v18, %v2169_v47  ;;  %v11498_v57 = vmul.f32 %v11495_v23, %v3371_v10 }
 0x364   : > { %v2382_v15 = vrot.slane %v11459_v34, 1  ;;  %v2383_v42 = vrot.slane %v11459_v34, 2  ;;  %v2384_v46 = vrot.slane %v11459_v34, 3  ;;  %2613 = vst [vmem:[%s9309_s25 + $0xe0] sm:$0x1] %v11459_v34  ;;  %v11504_v61 = vmul.f32 %v11501_v25, %v3372_v14 }
 0x365   : > { %v2385_v29 = vrot.slane %v11459_v34, 4  ;;  %vm4535_vm8 = vweird.f32 %v11407_v50  ;;  %v2386_v6 = vrot.slane %v11459_v34, 5  ;;  %v4538_v56 = vand.u32 2147483647, %v11376_v60 }
 0x366   : > { %2614 = vst [vmem:[%s9309_s25 + $0xe4] sm:$0x1] %v2382_v15  ;;  %v4540_v1 = vand.u32 2147483648, %v11376_v60  ;;  %7764 = vrcp.f32 %v11483_v43  ;;  %v2387_v7 = vrot.slane %v11459_v34, 6  ;;  %v11520_v30 = vmul.f32 %v15024_v45, %v2174_v8 }
 0x367   : > { %2615 = vst [vmem:[%s9309_s25 + $0xe8] sm:$0x1] %v2383_v42  ;;  %v4533_v11 = vadd.f32 %v11407_v50, %v4532_v41  ;;  %7766 = vrcp.f32 %v11492_v12  ;;  %v3998_v39 = vrot.slane %v11436_v26, 1  ;;  %v3999_v20 = vrot.slane %v11450_v19, 1 }
 0x368   : > { %v2388_v55 = vrot.slane %v11459_v34, 7  ;;  %2616 = vst [vmem:[%s9309_s25 + $0xec] sm:$0x1] %v2384_v46  ;;  %v5916_v2 = vand.u32 2147483648, %v11483_v43  ;;  %v3997_v10 = vrot.slane %v11468_v63, 1  ;;  %v4000_v0 = vrot.slane %v11456_v16, 1 }
 0x369   : > { %v4001_v22 = vrot.slane %v11474_v59, 1  ;;  %2617 = vst [vmem:[%s9309_s25 + $0xf0] sm:$0x1] %v2385_v29  ;;  %vm4534_vm9 = vweird.f32 %v11376_v60  ;;  %v4002_v44 = vrot.slane %v11480_v9, 1  ;;  %v4003_v14 = vrot.slane %v11498_v57, 1 }
 0x36a   : > { %v4004_v13 = vrot.slane %v11504_v61, 1  ;;  %2618 = vst [vmem:[%s9309_s25 + $0xf4] sm:$0x1] %v2386_v6  ;;  %v2375_v38 = vrot.slane %v11520_v30, 1  ;;  %vm11547_vm10 = vmor %vm4534_vm9, %vm4535_vm8  ;;  %v2376_v60 = vrot.slane %v11520_v30, 2  ;;  %vm11558_vm11 = vcmp.eq.f32.partialorder %v4538_v56, 8.507059e+37 }
 0x36b   : > { %2619 = vst [vmem:[%s9309_s25 + $0xf8] sm:$0x1] %v2387_v7  ;;  %v4537_v27 = vsel %vm11547_vm10, %v11407_v50, %v4533_v11  ;;  %v4541_v31 = vor.u32 1.1754944e-38, %v4540_v1  ;;  %v2377_v5 = vrot.slane %v11520_v30, 3  ;;  %v5914_v54 = vand.u32 2147483647, %v11483_v43 }
 0x36c   : > { %v11564_v28 = vpop.eup %7764  ;;  %2620 = vst [vmem:[%s9309_s25 + $0xfc] sm:$0x1] %v2388_v55  ;;  %v11571_v37 = vor.u32 1.1754944e-38, %v5916_v2  ;;  %v2378_v3 = vrot.slane %v11520_v30, 4  ;;  %v5928_v40 = vand.u32 2147483647, %v11492_v12  ;;  %7768 = vrcp.f32 %v11562_v48 }
 0x36d   : > { %v11573_v50 = vpop.eup %7766  ;;  %2605 = vst [vmem:[%s9309_s25 + $0xc0] sm:$0x1] %v11520_v30  ;;  %v5930_v49 = vand.u32 2147483648, %v11492_v12  ;;  %v2379_v53 = vrot.slane %v11520_v30, 5  ;;  %v2380_v35 = vrot.slane %v11520_v30, 6  ;;  %v4542_v21 = vsel %vm11558_vm11, %v4541_v31, %v4537_v27 }
 0x36e   : > { %2606 = vst [vmem:[%s9309_s25 + $0xc4] sm:$0x1] %v2375_v38  ;;  %v2381_v36 = vrot.slane %v11520_v30, 7  ;;  %v2749_v18 = vmul.f32 %v11465_v52, %v11520_v30  ;;  %v11591_v47 = vmul.f32 %v15029_v4, %v4542_v21  ;;  %v5906_v63 = vmul.f32 %v11564_v28, %v11483_v43 }
 0x36f   : > { %2607 = vst [vmem:[%s9309_s25 + $0xc8] sm:$0x1] %v2376_v60  ;;  %v2750_v41 = vmul.f32 %v11432_v62, %v2375_v38  ;;  %v2751_v8 = vmul.f32 %v11447_v24, %v2376_v60  ;;  %vm5911_vm12 = vweird.f32 %v11564_v28  ;;  %v5920_v56 = vmul.f32 %v11573_v50, %v11492_v12 }
 0x370   : > { %2608 = vst [vmem:[%s9309_s25 + $0xcc] sm:$0x1] %v2377_v5  ;;  %v2752_v1 = vmul.f32 %v11453_v51, %v2377_v5  ;;  %v2753_v45 = vmul.f32 %v11471_v33, %v2378_v3  ;;  %v4744_v30 = vrot.slane %v11591_v47, 2  ;;  %v4745_v11 = vrot.slane %v11591_v47, 3 }
 0x371   : > { %2609 = vst [vmem:[%s9309_s25 + $0xd0] sm:$0x1] %v2378_v3  ;;  %v2754_v2 = vmul.f32 %v11477_v17, %v2379_v53  ;;  %v2755_v38 = vmul.f32 %v11495_v23, %v2380_v35  ;;  %v4743_v32 = vrot.slane %v11591_v47, 1  ;;  %v4746_v60 = vrot.slane %v11591_v47, 4 }
 0x372   : > { %2610 = vst [vmem:[%s9309_s25 + $0xd4] sm:$0x1] %v2379_v53  ;;  %vm5910_vm13 = vweird.f32 %v11483_v43  ;;  %v2756_v27 = vmul.f32 %v11501_v25, %v2381_v36  ;;  %v4253_v58 = vadd.f32 %v3997_v10, %v2749_v18  ;;  %v4748_v31 = vrot.slane %v11591_v47, 6  ;;  %v11617_v3 = vpop.eup %7768 }
 0x373   : > { %2611 = vst [vmem:[%s9309_s25 + $0xd8] sm:$0x1] %v2380_v35  ;;  %v4749_v5 = vrot.slane %v11591_v47, 7  ;;  %vm5924_vm14 = vweird.f32 %v11492_v12  ;;  %v4254_v53 = vadd.f32 %v3998_v39, %v2750_v41  ;;  %v4255_v21 = vadd.f32 %v3999_v20, %v2751_v8  ;;  %vm5912_vm9 = vmor %vm5910_vm13, %vm5911_vm12 }
 0x374   : > { %2612 = vst [vmem:[%s9309_s25 + $0xdc] sm:$0x1] %v2381_v36  ;;  %v4747_v35 = vrot.slane %v11591_v47, 5  ;;  %v5907_v10 = vsub.f32 1.0, %v5906_v63  ;;  %vm11625_vm15 = vcmp.eq.f32.partialorder %v5914_v54, 8.507059e+37  ;;  %v4256_v4 = vadd.f32 %v4000_v0, %v2752_v1 }
 0x375   : > { %4973 = vst [vmem:[%s9309_s25 + $0xc2] sm:$0x1] %v11591_v47  ;;  %v5121_v26 = vmul.f32 %v11471_v33, %v4744_v30  ;;  %v5122_v39 = vmul.f32 %v11477_v17, %v4745_v11  ;;  %v5921_v19 = vsub.f32 1.0, %v5920_v56  ;;  %v4257_v20 = vadd.f32 %v4001_v22, %v2753_v45 }
 0x376   : > { %4974 = vst [vmem:[%s9309_s25 + $0xc6] sm:$0x1] %v4743_v32  ;;  %v5119_v54 = vmul.f32 %v11447_v24, %v11591_v47  ;;  %v5120_v36 = vmul.f32 %v11453_v51, %v4743_v32  ;;  %v5123_v16 = vmul.f32 %v11495_v23, %v4746_v60  ;;  %v4258_v0 = vadd.f32 %v4002_v44, %v2754_v2 }
 0x377   : > { %v4259_v63 = vadd.f32 %v4003_v14, %v2755_v38  ;;  %4975 = vst [vmem:[%s9309_s25 + $0xca] sm:$0x1] %v4744_v30  ;;  %v5117_v59 = vmul.f32 %v11465_v52, %v4748_v31  ;;  %v5118_v22 = vmul.f32 %v11432_v62, %v4749_v5  ;;  %v4260_v47 = vadd.f32 %v4004_v13, %v2756_v27 }
 0x378   : > { %4976 = vst [vmem:[%s9309_s25 + $0xce] sm:$0x1] %v4745_v11  ;;  %v5124_v41 = vmul.f32 %v11501_v25, %v4747_v35  ;;  %v5908_v8 = vmul.f32 %v11564_v28, %v5907_v10  ;;  %vm5925_vm0 = vweird.f32 %v11573_v50  ;;  %v5377_v9 = vrot.slane %v5121_v26, 2 }
 0x379   : > { %4977 = vst [vmem:[%s9309_s25 + $0xd2] sm:$0x1] %v4746_v60  ;;  %v5378_v57 = vrot.slane %v5122_v39, 2  ;;  %v5922_v44 = vmul.f32 %v11573_v50, %v5921_v19  ;;  %vm11659_vm8 = vcmp.eq.f32.partialorder %v5928_v40, 8.507059e+37  ;;  %v5375_v61 = vrot.slane %v5119_v54, 2  ;;  %vm5926_vm10 = vmor %vm5924_vm14, %vm5925_vm0  ;;  %v15035_v39 = vld [vmem:[#allocation5_spill] sm:$0xff] }
 0x37a   : > { %4978 = vst [vmem:[%s9309_s25 + $0xd6] sm:$0x1] %v4747_v35  ;;  %v5376_v13 = vrot.slane %v5120_v36, 2  ;;  %v5379_v56 = vrot.slane %v5123_v16, 2  ;;  %v5909_v1 = vadd.f32 %v11564_v28, %v5908_v8  ;;  %v5373_v45 = vrot.slane %v5117_v59, 2 }
 0x37b   : > { %4979 = vst [vmem:[%s9309_s25 + $0xda] sm:$0x1] %v4748_v31  ;;  %v5374_v30 = vrot.slane %v5118_v22, 2  ;;  %v5923_v11 = vadd.f32 %v11573_v50, %v5922_v44  ;;  %v2190_v40 = vmul.f32 %v11617_v3, %v11562_v48  ;;  %v5380_v2 = vrot.slane %v5124_v41, 2 }
 0x37c   : > { %4980 = vst [vmem:[%s9309_s25 + $0xde] sm:$0x1] %v4749_v5  ;;  %v5631_v38 = vadd.f32 %v5375_v61, %v4255_v21  ;;  %v5913_v32 = vsel %vm5912_vm9, %v11564_v28, %v5909_v1  ;;  %v5931_v60 = vor.u32 1.1754944e-38, %v5930_v49  ;;  %v5633_v43 = vadd.f32 %v5377_v9, %v4257_v20  ;;  %v15034_v28 = vld [vmem:[#allocation2_spill] sm:$0xff]  ;;  %v11705_v9 = vpop.xlane.xlu1 %3051  ;;  %v11716_v1 = vpop.xlane.xlu2 %3053 }
 0x37d   : > { %v5634_v27 = vadd.f32 %v5378_v57, %v4258_v0  ;;  %v5918_v31 = vsel %vm11625_vm15, %v11571_v37, %v5913_v32  ;;  %v5927_v5 = vsel %vm5926_vm10, %v11573_v50, %v5923_v11  ;;  %v5635_v21 = vadd.f32 %v5379_v56, %v4259_v63 }
 0x37e   : > { %v5632_v35 = vadd.f32 %v5376_v13, %v4256_v4  ;;  %v6051_v10 = vmul.f32 %v15034_v28, %v5918_v31  ;;  %v5932_v26 = vsel %vm11659_vm8, %v5931_v60, %v5927_v5  ;;  %v5629_v12 = vadd.f32 %v5373_v45, %v4253_v58 }
 0x37f   : > { %v5630_v49 = vadd.f32 %v5374_v30, %v4254_v53  ;;  %v11689_v19 = vmul.f32 %v15035_v39, %v5932_v26  ;;  %v2191_v20 = vsub.f32 1.0, %v2190_v40  ;;  %vm2194_vm11 = vweird.f32 %v11562_v48 }
 0x380   : > { %v6119_v18 = vrot.slane %v6051_v10, 1  ;;  %v6120_v37 = vrot.slane %v6051_v10, 2  ;;  %v6121_v54 = vrot.slane %v6051_v10, 3  ;;  %v6122_v50 = vrot.slane %v6051_v10, 4  ;;  %6349 = vst [vmem:[%s9309_s25 + $0xc3] sm:$0x1] %v6051_v10 }
 0x381   : > { %v6123_v4 = vrot.slane %v6051_v10, 5  ;;  %v6124_v36 = vrot.slane %v6051_v10, 6  ;;  %v6125_v16 = vrot.slane %v6051_v10, 7  ;;  %v6496_v0 = vmul.f32 %v11453_v51, %v6051_v10  ;;  %6357 = vst [vmem:[%s9309_s25 + $0xe3] sm:$0x1] %v11689_v19 }
 0x382   : > { %6350 = vst [vmem:[%s9309_s25 + $0xc7] sm:$0x1] %v6119_v18  ;;  %v6497_v58 = vmul.f32 %v11471_v33, %v6119_v18  ;;  %v6498_v53 = vmul.f32 %v11477_v17, %v6120_v37  ;;  %v6499_v63 = vmul.f32 %v11495_v23, %v6121_v54  ;;  %v6500_v59 = vmul.f32 %v11501_v25, %v6122_v50 }
 0x383   : > { %6351 = vst [vmem:[%s9309_s25 + $0xcb] sm:$0x1] %v6120_v37  ;;  %v6493_v22 = vmul.f32 %v11465_v52, %v6123_v4  ;;  %v6494_v41 = vmul.f32 %v11432_v62, %v6124_v36  ;;  %v6495_v51 = vmul.f32 %v11447_v24, %v6125_v16  ;;  %v6752_v8 = vrot.slane %v6496_v0, 3 }
 0x384   : > { %v5636_v33 = vadd.f32 %v5380_v2, %v4260_v47  ;;  %6352 = vst [vmem:[%s9309_s25 + $0xcf] sm:$0x1] %v6121_v54  ;;  %v6753_v17 = vrot.slane %v6497_v58, 3  ;;  %v6754_v23 = vrot.slane %v6498_v53, 3  ;;  %v2192_v25 = vmul.f32 %v11617_v3, %v2191_v20  ;;  %v11771_v53 = vld [vmem:[%s8065_s30 + $0xe4] sm:$0xf] }
 0x385   : > { %6353 = vst [vmem:[%s9309_s25 + $0xd3] sm:$0x1] %v6122_v50  ;;  %v6749_v52 = vrot.slane %v6493_v22, 3  ;;  %v6750_v57 = vrot.slane %v6494_v41, 3  ;;  %v6751_v44 = vrot.slane %v6495_v51, 3  ;;  %vm2195_vm12 = vweird.f32 %v11617_v3  ;;  %v15040_v51 = vld [vmem:[#allocation8_spill] sm:$0xff] }
 0x386   : > { %6354 = vst [vmem:[%s9309_s25 + $0xd7] sm:$0x1] %v6123_v4  ;;  %v6755_v62 = vrot.slane %v6499_v63, 3  ;;  %v2198_v24 = vand.u32 2147483647, %v11562_v48  ;;  %v2200_v14 = vand.u32 2147483648, %v11562_v48  ;;  %7770 = vrcp.f32 %v11705_v9  ;;  %vm11741_vm13 = vmor %vm2194_vm11, %vm2195_vm12 }
 0x387   : > { %6355 = vst [vmem:[%s9309_s25 + $0xdb] sm:$0x1] %v6124_v36  ;;  %v6756_v47 = vrot.slane %v6500_v59, 3  ;;  %v7006_v61 = vadd.f32 %v6750_v57, %v5630_v49  ;;  %v7007_v13 = vadd.f32 %v6751_v44, %v5631_v38  ;;  %v7008_v56 = vadd.f32 %v6752_v8, %v5632_v35  ;;  %v11804_v57 = vld [vmem:[%s8065_s30 + $0xf0] sm:$0xf] }
 0x388   : > { %6356 = vst [vmem:[%s9309_s25 + $0xdf] sm:$0x1] %v6125_v16  ;;  %v7005_v45 = vadd.f32 %v6749_v52, %v5629_v12  ;;  %v7009_v30 = vadd.f32 %v6753_v17, %v5633_v43  ;;  %v7010_v11 = vadd.f32 %v6754_v23, %v5634_v27  ;;  %v2193_v40 = vadd.f32 %v11617_v3, %v2192_v25  ;;  %v11788_v23 = vld [vmem:[%s8065_s30 + $0xe8] sm:$0xf]  ;;  %v11796_v25 = vld [vmem:[%s8065_s30 + $0xec] sm:$0xf] }
 0x389   : > { %v7297_v2 = vrot.slane %v7006_v61, 7  ;;  %v7299_v32 = vrot.slane %v7007_v13, 6  ;;  %v6126_v60 = vrot.slane %v11689_v19, 1  ;;  %v6127_v31 = vrot.slane %v11689_v19, 2  ;;  %15039 = vst [vmem:[#allocation56_spill] sm:$0xff] %v11771_v53 }
 0x38a   : > { %v7011_v5 = vadd.f32 %v6755_v62, %v5635_v21  ;;  %v6128_v38 = vrot.slane %v11689_v19, 3  ;;  %v6129_v35 = vrot.slane %v11689_v19, 4  ;;  %7772 = vrcp.f32 %v11716_v1  ;;  %v11830_v61 = vld [vmem:[%s8065_s30 + $0xf8] sm:$0xf] }
 0x38b   : > { %v7012_v28 = vadd.f32 %v6756_v47, %v5636_v33  ;;  %v7298_v43 = vsel %vm1570_vm1, %v7297_v2, %v7005_v45  ;;  %v7301_v27 = vrot.slane %v7008_v56, 5  ;;  %v6130_v10 = vrot.slane %v11689_v19, 5  ;;  %6358 = vst [vmem:[%s9309_s25 + $0xe7] sm:$0x1] %v6126_v60  ;;  %v11822_v47 = vld [vmem:[%s8065_s30 + $0xf4] sm:$0xf] }
 0x38c   : > { %v11730_v26 = vpop.eup %7770  ;;  %v7300_v21 = vsel %vm1572_vm2, %v7299_v32, %v7298_v43  ;;  %v7303_v12 = vrot.slane %v7009_v30, 4  ;;  %v6131_v49 = vrot.slane %v11689_v19, 6  ;;  %6359 = vst [vmem:[%s9309_s25 + $0xeb] sm:$0x1] %v6127_v31  ;;  %v7305_v18 = vrot.slane %v7010_v11, 3 }
 0x38d   : > { %v7302_v20 = vsel %vm1574_vm3, %v7301_v27, %v7300_v21  ;;  %v6132_v37 = vrot.slane %v11689_v19, 7  ;;  %6360 = vst [vmem:[%s9309_s25 + $0xef] sm:$0x1] %v6128_v38  ;;  %v2197_v54 = vsel %vm11741_vm13, %v11617_v3, %v2193_v40  ;;  %v7307_v50 = vrot.slane %v7011_v5, 2  ;;  %v11764_v3 = vld [vmem:[%s8065_s30 + $0xe0] sm:$0xf] }
 0x38e   : > { %v7304_v48 = vsel %vm1576_vm4, %v7303_v12, %v7302_v20  ;;  %6361 = vst [vmem:[%s9309_s25 + $0xf3] sm:$0x1] %v6129_v35  ;;  %v2201_v4 = vor.u32 1.1754944e-38, %v2200_v14  ;;  %v7309_v16 = vrot.slane %v7012_v28, 1  ;;  %vm2199_vm14 = vcmp.eq.f32.partialorder %v2198_v24, 8.507059e+37 }
 0x38f   : > { %v7306_v36 = vsel %vm1578_vm5, %v7305_v18, %v7304_v48  ;;  %6362 = vst [vmem:[%s9309_s25 + $0xf7] sm:$0x1] %v6130_v10  ;;  %v11768_v58 = vmul.f32 %v11764_v3, %v11459_v34  ;;  %v11776_v63 = vmul.f32 %v11771_v53, %v2382_v15  ;;  %v3176_v33 = vand.u32 2147483647, %v11705_v9  ;;  %v11838_v56 = vld [vmem:[%s8065_s30 + $0xfc] sm:$0xf] }
 0x390   : > { %v11761_v0 = vpop.eup %7772  ;;  %15038 = vst [vmem:[#allocation60_spill] sm:$0xff] %v11764_v3  ;;  %v7308_v59 = vsel %vm1580_vm6, %v7307_v50, %v7306_v36  ;;  %v2202_v22 = vsel %vm2199_vm14, %v2201_v4, %v2197_v54  ;;  %v3178_v17 = vand.u32 2147483648, %v11705_v9  ;;  %v11793_v15 = vmul.f32 %v11788_v23, %v2383_v42  ;;  %v11931_v50 = vpop.xlane.xlu0 %5805 }
 0x391   : > { %6363 = vst [vmem:[%s9309_s25 + $0xfb] sm:$0x1] %v6131_v49  ;;  %v7310_v41 = vsel %vm1582_vm7, %v7309_v16, %v7308_v59  ;;  %v11783_v8 = vmul.f32 %v15040_v51, %v2202_v22  ;;  %v11801_v52 = vmul.f32 %v11796_v25, %v2384_v46  ;;  %v11809_v44 = vmul.f32 %v11804_v57, %v2385_v29  ;;  %v15053_v59 = vld [vmem:[#allocation3_spill] sm:$0xff]  ;;  %v11940_v51 = vpop.xlane.xlu1 %4427 }
 0x392   : > { %6364 = vst [vmem:[%s9309_s25 + $0xff] sm:$0x1] %v6132_v37  ;;  %v3168_v42 = vmul.f32 %v11730_v26, %v11705_v9  ;;  %v3182_v46 = vmul.f32 %v11761_v0, %v11716_v1  ;;  %v11827_v29 = vmul.f32 %v11822_v47, %v2386_v6  ;;  %v11835_v13 = vmul.f32 %v11830_v61, %v2387_v7 }
 0x393   : > { %7459 = vst [vmem:[%s9759_s27 + $0x30] sm:$0xff] %v7310_v41  ;;  %v2389_v62 = vrot.slane %v11783_v8, 1  ;;  %v2390_v24 = vrot.slane %v11783_v8, 2  ;;  %v2391_v14 = vrot.slane %v11783_v8, 3  ;;  %v11843_v45 = vmul.f32 %v11838_v56, %v2388_v55 }
 0x394   : > { %2621 = vst [vmem:[%s9309_s25 + $0x100] sm:$0x1] %v11783_v8  ;;  %v2392_v30 = vrot.slane %v11783_v8, 4  ;;  %v2393_v6 = vrot.slane %v11783_v8, 5  ;;  %vm3172_vm15 = vweird.f32 %v11705_v9  ;;  %vm11851_vm0 = vcmp.eq.f32.partialorder %v3176_v33, 8.507059e+37 }
 0x395   : > { %15041 = vst [vmem:[#allocation58_spill] sm:$0xff] %v11830_v61  ;;  %v3179_v11 = vor.u32 1.1754944e-38, %v3178_v17  ;;  %v11857_v34 = vmul.f32 %v11796_v25, %v11689_v19  ;;  %v2394_v55 = vrot.slane %v11783_v8, 6  ;;  %v3169_v40 = vsub.f32 1.0, %v3168_v42  ;;  %v11943_v33 = vld [vmem:[%s8065_s30 + $0x100] sm:$0xf] }
 0x396   : > { %15042 = vst [vmem:[#allocation57_spill] sm:$0xff] %v11838_v56  ;;  %v3192_v2 = vand.u32 2147483648, %v11716_v1  ;;  %v11867_v32 = vmul.f32 %v11764_v3, %v6130_v10  ;;  %v11870_v5 = vmul.f32 %v11771_v53, %v6131_v49  ;;  %v2395_v28 = vrot.slane %v11783_v8, 7 }
 0x397   : > { %2622 = vst [vmem:[%s9309_s25 + $0x104] sm:$0x1] %v2389_v62  ;;  %v3183_v43 = vsub.f32 1.0, %v3182_v46  ;;  %v11877_v27 = vmul.f32 %v11788_v23, %v6132_v37  ;;  %v11882_v21 = vmul.f32 %v11804_v57, %v6126_v60  ;;  %v3170_v10 = vmul.f32 %v11730_v26, %v3169_v40  ;;  %v15054_v46 = vld [vmem:[#allocation7_spill] sm:$0xff] }
 0x398   : > { %15045 = vst [vmem:[#allocation61_spill] sm:$0xff] %v11857_v34  ;;  %vm3173_vm8 = vweird.f32 %v11730_v26  ;;  %v11892_v12 = vmul.f32 %v11822_v47, %v6127_v31  ;;  %vm3187_vm9 = vweird.f32 %v11761_v0  ;;  %v3190_v60 = vand.u32 2147483647, %v11716_v1 }
 0x399   : > { %2623 = vst [vmem:[%s9309_s25 + $0x108] sm:$0x1] %v2390_v24  ;;  %v3184_v49 = vmul.f32 %v11761_v0, %v3183_v43  ;;  %v11903_v39 = vmul.f32 %v11830_v61, %v6128_v38  ;;  %v11908_v20 = vmul.f32 %v11838_v56, %v6129_v35  ;;  %v3171_v31 = vadd.f32 %v11730_v26, %v3170_v10  ;;  %vm3174_vm11 = vmor %vm3172_vm15, %vm3173_vm8  ;;  %v11964_v10 = vld [vmem:[%s8065_s30 + $0x108] sm:$0xf] }
 0x39a   : > { %15046 = vst [vmem:[#allocation59_spill] sm:$0xff] %v11867_v32  ;;  %vm3186_vm10 = vweird.f32 %v11716_v1  ;;  %v3193_v48 = vor.u32 1.1754944e-38, %v3192_v2  ;;  %vm3191_vm13 = vcmp.eq.f32.partialorder %v3190_v60, 8.507059e+37  ;;  %v11947_v17 = vmul.f32 %v11943_v33, %v11783_v8 }
 0x39b   : > { %15047 = vst [vmem:[#allocation55_spill] sm:$0xff] %v11870_v5  ;;  %v3185_v19 = vadd.f32 %v11761_v0, %v3184_v49  ;;  %v3175_v35 = vsel %vm3174_vm11, %v11730_v26, %v3171_v31  ;;  %vm3188_vm12 = vmor %vm3186_vm10, %vm3187_vm9  ;;  %7774 = vrcp.f32 %v11931_v50  ;;  %v5944_v43 = vand.u32 2147483648, %v11931_v50  ;;  %v11976_v31 = vld [vmem:[%s8065_s30 + $0x10c] sm:$0xf] }
 0x39c   : > { %2624 = vst [vmem:[%s9309_s25 + $0x10c] sm:$0x1] %v2391_v14  ;;  %v3180_v9 = vsel %vm11851_vm0, %v3179_v11, %v3175_v35  ;;  %7776 = vrcp.f32 %v11940_v51  ;;  %v4554_v60 = vand.u32 2147483648, %v11940_v51  ;;  %v11984_v35 = vld [vmem:[%s8065_s30 + $0x110] sm:$0xf]  ;;  %vm5938_vm14 = vweird.f32 %v11931_v50 }
 0x39d   : > { %15048 = vst [vmem:[#allocation34_spill] sm:$0xff] %v11877_v27  ;;  %v3189_v36 = vsel %vm3188_vm12, %v11761_v0, %v3185_v19  ;;  %v3300_v22 = vmul.f32 %v15053_v59, %v3180_v9  ;;  %v11950_v0 = vld [vmem:[%s8065_s30 + $0x104] sm:$0xf]  ;;  %v11981_v19 = vmul.f32 %v11976_v31, %v2391_v14  ;;  %v12000_v14 = vpop.xlane.xlu2 %4429  ;;  %v12003_v59 = vld [vmem:[%s8065_s30 + $0x118] sm:$0xf]  ;;  %v12022_v37 = vor.u32 1.1754944e-38, %v5944_v43 }
 0x39e   : > { %15049 = vst [vmem:[#allocation35_spill] sm:$0xff] %v11882_v21  ;;  %v3194_v41 = vsel %vm3191_vm13, %v3193_v48, %v3189_v36  ;;  %v11955_v42 = vmul.f32 %v11950_v0, %v2389_v62  ;;  %v11969_v62 = vmul.f32 %v11964_v10, %v2390_v24  ;;  %v11989_v24 = vmul.f32 %v11984_v35, %v2392_v30  ;;  %v11992_v48 = vld [vmem:[%s8065_s30 + $0x114] sm:$0xf] }
 0x39f   : > { %2625 = vst [vmem:[%s9309_s25 + $0x110] sm:$0x1] %v2392_v30  ;;  %v11958_v7 = vmul.f32 %v15054_v46, %v3194_v41  ;;  %v3374_v11 = vrot.slane %v3300_v22, 1  ;;  %v3375_v40 = vrot.slane %v3300_v22, 2  ;;  %v3376_v2 = vrot.slane %v3300_v22, 3 }
 0x3a0   : > { %15050 = vst [vmem:[#allocation37_spill] sm:$0xff] %v11892_v12  ;;  %v3377_v49 = vrot.slane %v3300_v22, 4  ;;  %v11997_v9 = vmul.f32 %v11992_v48, %v2393_v6  ;;  %v3378_v36 = vrot.slane %v3300_v22, 5  ;;  %v12008_v41 = vmul.f32 %v12003_v59, %v2394_v55 }
 0x3a1   : > { %2626 = vst [vmem:[%s9309_s25 + $0x114] sm:$0x1] %v2393_v6  ;;  %v3379_v30 = vrot.slane %v3300_v22, 6  ;;  %v3380_v46 = vrot.slane %v3300_v22, 7  ;;  %v5942_v18 = vand.u32 2147483647, %v11931_v50  ;;  %v3750_v16 = vmul.f32 %v11771_v53, %v3300_v22  ;;  %v12025_v4 = vpop.eup %7774 }
 0x3a2   : > { %15051 = vst [vmem:[#allocation36_spill] sm:$0xff] %v11903_v39  ;;  %v12013_v6 = vld [vmem:[%s8065_s30 + $0x11c] sm:$0xf]  ;;  %v3752_v1 = vmul.f32 %v11796_v25, %v3375_v40  ;;  %v12029_v54 = vor.u32 1.1754944e-38, %v4554_v60  ;;  %7778 = vrcp.f32 %v12000_v14  ;;  %v3381_v43 = vrot.slane %v11958_v7, 1  ;;  %v12040_v32 = vpop.eup %7776 }
 0x3a3   : > { %15052 = vst [vmem:[#allocation38_spill] sm:$0xff] %v11908_v20  ;;  %v12018_v26 = vmul.f32 %v12013_v6, %v2395_v28  ;;  %v4568_v38 = vand.u32 2147483648, %v12000_v14  ;;  %v3754_v60 = vmul.f32 %v11822_v47, %v3377_v49  ;;  %v3755_v8 = vmul.f32 %v11830_v61, %v3378_v36 }
 0x3a4   : > { %2627 = vst [vmem:[%s9309_s25 + $0x118] sm:$0x1] %v2394_v55  ;;  %v4552_v55 = vand.u32 2147483647, %v11940_v51  ;;  %v4006_v20 = vrot.slane %v3750_v16, 1  ;;  %v3383_v39 = vrot.slane %v11958_v7, 3  ;;  %vm5939_vm15 = vweird.f32 %v12025_v4 }
 0x3a5   : > { %2628 = vst [vmem:[%s9309_s25 + $0x11c] sm:$0x1] %v2395_v28  ;;  %v12035_v28 = vmul.f32 %v11788_v23, %v3374_v11  ;;  %v3384_v5 = vrot.slane %v11958_v7, 4  ;;  %v4008_v12 = vrot.slane %v3752_v1, 1  ;;  %v3385_v21 = vrot.slane %v11958_v7, 5  ;;  %vm5940_vm11 = vmor %vm5938_vm14, %vm5939_vm15 }
 0x3a6   : > { %3605 = vst [vmem:[%s9309_s25 + $0xe1] sm:$0x1] %v3300_v22  ;;  %v3753_v22 = vmul.f32 %v11804_v57, %v3376_v2  ;;  %v4544_v16 = vmul.f32 %v12040_v32, %v11940_v51  ;;  %vm4549_vm0 = vweird.f32 %v12040_v32  ;;  %v12062_v1 = vor.u32 1.1754944e-38, %v4568_v38 }
 0x3a7   : > { %3613 = vst [vmem:[%s9309_s25 + $0x101] sm:$0x1] %v11958_v7  ;;  %v4010_v27 = vrot.slane %v3754_v60, 1  ;;  %vm12069_vm8 = vcmp.eq.f32.partialorder %v5942_v18, 8.507059e+37  ;;  %vm4548_vm9 = vweird.f32 %v11940_v51  ;;  %v4011_v61 = vrot.slane %v3755_v8, 1 }
 0x3a8   : > { %3606 = vst [vmem:[%s9309_s25 + $0xe5] sm:$0x1] %v3374_v11  ;;  %v3382_v11 = vrot.slane %v11958_v7, 2  ;;  %v4009_v34 = vrot.slane %v3753_v22, 1  ;;  %v12079_v22 = vadd.f32 %v4008_v12, %v11801_v52  ;;  %v3758_v18 = vmul.f32 %v11950_v0, %v11958_v7  ;;  %vm12130_vm12 = vmor %vm4548_vm9, %vm4549_vm0 }
 0x3a9   : > { %3607 = vst [vmem:[%s9309_s25 + $0xe9] sm:$0x1] %v3375_v40  ;;  %v3749_v40 = vmul.f32 %v11764_v3, %v3380_v46  ;;  %v3762_v8 = vmul.f32 %v11992_v48, %v3384_v5  ;;  %v12094_v52 = vadd.f32 %v4010_v27, %v11827_v29  ;;  %vm12098_vm10 = vcmp.eq.f32.partialorder %v4552_v55, 8.507059e+37 }
 0x3aa   : > { %3608 = vst [vmem:[%s9309_s25 + $0xed] sm:$0x1] %v3376_v2  ;;  %v3756_v2 = vmul.f32 %v11838_v56, %v3379_v30  ;;  %v3387_v56 = vrot.slane %v11958_v7, 7  ;;  %v3760_v60 = vmul.f32 %v11976_v31, %v3382_v11  ;;  %v4014_v29 = vrot.slane %v3758_v18, 1 }
 0x3ab   : > { %3609 = vst [vmem:[%s9309_s25 + $0xf1] sm:$0x1] %v3377_v49  ;;  %v5934_v49 = vmul.f32 %v12025_v4, %v11931_v50  ;;  %v4005_v3 = vrot.slane %v3749_v40, 1  ;;  %v3761_v40 = vmul.f32 %v11984_v35, %v3383_v39  ;;  %v15062_v50 = vld [vmem:[#allocation10_spill] sm:$0xff]  ;;  %vm4562_vm14 = vweird.f32 %v12000_v14 }
 0x3ac   : > { %3610 = vst [vmem:[%s9309_s25 + $0xf5] sm:$0x1] %v3378_v36  ;;  %v3386_v36 = vrot.slane %v11958_v7, 6  ;;  %v4012_v38 = vrot.slane %v3756_v2, 1  ;;  %v3763_v2 = vmul.f32 %v12003_v59, %v3385_v21  ;;  %v4545_v7 = vsub.f32 1.0, %v4544_v16 }
 0x3ad   : > { %3611 = vst [vmem:[%s9309_s25 + $0xf9] sm:$0x1] %v3379_v30  ;;  %v12064_v30 = vpop.eup %7778  ;;  %v4017_v55 = vrot.slane %v3761_v40, 1 }
 0x3ae   : > { %3612 = vst [vmem:[%s9309_s25 + $0xfd] sm:$0x1] %v3380_v46  ;;  %v5935_v46 = vsub.f32 1.0, %v5934_v49  ;;  %v4546_v49 = vmul.f32 %v12040_v32, %v4545_v7  ;;  %v4019_v16 = vrot.slane %v3763_v2, 1  ;;  %v12121_v18 = vadd.f32 %v4012_v38, %v11843_v45 }
 0x3af   : > { %3614 = vst [vmem:[%s9309_s25 + $0x105] sm:$0x1] %v3381_v43  ;;  %vm4563_vm13 = vweird.f32 %v12064_v30 }
 0x3b0   : > { %3615 = vst [vmem:[%s9309_s25 + $0x109] sm:$0x1] %v3382_v11  ;;  %v5936_v12 = vmul.f32 %v12025_v4, %v5935_v46  ;;  %v12151_v38 = vadd.f32 %v4019_v16, %v12008_v41  ;;  %vm12249_vm0 = vmor %vm4562_vm14, %vm4563_vm13 }
 0x3b1   : > { %15055 = vst [vmem:[#allocation40_spill] sm:$0xff] %v12062_v1  ;;  %v12075_v1 = vadd.f32 %v4006_v20, %v11776_v63  ;;  %v3764_v63 = vmul.f32 %v12013_v6, %v3386_v36  ;;  %v12091_v20 = vadd.f32 %v4009_v34, %v11809_v44  ;;  %v4558_v44 = vmul.f32 %v12064_v30, %v12000_v14 }
 0x3b2   : > { %3616 = vst [vmem:[%s9309_s25 + $0x10d] sm:$0x1] %v3383_v39  ;;  %v3759_v39 = vmul.f32 %v11964_v10, %v3381_v43  ;;  %v4016_v34 = vrot.slane %v3760_v60, 1  ;;  %v5937_v27 = vadd.f32 %v12025_v4, %v5936_v12 }
 0x3b3   : > { %3617 = vst [vmem:[%s9309_s25 + $0x111] sm:$0x1] %v3384_v5  ;;  %v12103_v5 = vadd.f32 %v4005_v3, %v11768_v58  ;;  %v4020_v46 = vrot.slane %v3764_v63, 1  ;;  %v12116_v3 = vadd.f32 %v4011_v61, %v11835_v13  ;;  %v4559_v43 = vsub.f32 1.0, %v4558_v44 }
 0x3b4   : > { %3618 = vst [vmem:[%s9309_s25 + $0x115] sm:$0x1] %v3385_v21  ;;  %v3757_v21 = vmul.f32 %v11943_v33, %v3387_v56  ;;  %v5941_v58 = vsel %vm5940_vm11, %v12025_v4, %v5937_v27  ;;  %v4015_v40 = vrot.slane %v3759_v39, 1  ;;  %v12135_v13 = vadd.f32 %v4014_v29, %v11955_v42 }
 0x3b5   : > { %3619 = vst [vmem:[%s9309_s25 + $0x119] sm:$0x1] %v3386_v36  ;;  %v4018_v36 = vrot.slane %v3762_v8, 1  ;;  %v5946_v8 = vsel %vm12069_vm8, %v12022_v37, %v5941_v58  ;;  %v12138_v45 = vadd.f32 %v4016_v34, %v11981_v19  ;;  %v12145_v37 = vadd.f32 %v4017_v55, %v11989_v24  ;;  %v12158_v24 = vpop.xlane.xlu0 %3055  ;;  %v15065_v55 = vld [vmem:[#allocation9_spill] sm:$0xff] }
 0x3b6   : > { %3620 = vst [vmem:[%s9309_s25 + $0x11d] sm:$0x1] %v3387_v56  ;;  %v4547_v56 = vadd.f32 %v12040_v32, %v4546_v49  ;;  %v4013_v60 = vrot.slane %v3757_v21, 1  ;;  %v6053_v4 = vmul.f32 %v15062_v50, %v5946_v8  ;;  %v12154_v42 = vadd.f32 %v4020_v46, %v12018_v26 }
 0x3b7   : > { %v12148_v51 = vadd.f32 %v4018_v36, %v11997_v9  ;;  %v12178_v34 = vadd.f32 %v4015_v40, %v11969_v62  ;;  %7780 = vrcp.f32 %v12158_v24  ;;  %vm3200_vm8 = vweird.f32 %v12158_v24 }
 0x3b8   : > { %v4551_v53 = vsel %vm12130_vm12, %v12040_v32, %v4547_v56  ;;  %v6133_v19 = vrot.slane %v6053_v4, 1  ;;  %v6134_v2 = vrot.slane %v6053_v4, 2  ;;  %v6135_v63 = vrot.slane %v6053_v4, 3  ;;  %6365 = vst [vmem:[%s9309_s25 + $0x103] sm:$0x1] %v6053_v4 }
 0x3b9   : > { %v4560_v32 = vmul.f32 %v12064_v30, %v4559_v43  ;;  %v12161_v12 = vadd.f32 %v4013_v60, %v11947_v17  ;;  %v6136_v9 = vrot.slane %v6053_v4, 4  ;;  %v6137_v7 = vrot.slane %v6053_v4, 5 }
 0x3ba   : > { %v4556_v26 = vsel %vm12098_vm10, %v12029_v54, %v4551_v53  ;;  %v6138_v41 = vrot.slane %v6053_v4, 6  ;;  %v6139_v21 = vrot.slane %v6053_v4, 7  ;;  %6366 = vst [vmem:[%s9309_s25 + $0x107] sm:$0x1] %v6133_v19  ;;  %v12168_v39 = vmul.f32 %v11976_v31, %v6053_v4 }
 0x3bb   : > { %v12171_v44 = vmul.f32 %v11984_v35, %v6133_v19  ;;  %6367 = vst [vmem:[%s9309_s25 + $0x10b] sm:$0x1] %v6134_v2  ;;  %v15063_v17 = vrot.slane %v12035_v28, 1  ;;  %v12184_v54 = vmul.f32 %v11992_v48, %v6134_v2  ;;  %v12187_v11 = vadd.f32 %v12064_v30, %v4560_v32 }
 0x3bc   : > { %6368 = vst [vmem:[%s9309_s25 + $0x10f] sm:$0x1] %v6135_v63  ;;  %v12196_v62 = vmul.f32 %v12003_v59, %v6135_v63  ;;  %v12199_v49 = vmul.f32 %v12013_v6, %v6136_v9  ;;  %v4676_v36 = vmul.f32 %v15065_v55, %v4556_v26  ;;  %v12205_v16 = vmul.f32 %v11950_v0, %v6138_v41 }
 0x3bd   : > { %v4263_v29 = vadd.f32 %v15063_v17, %v11793_v15  ;;  %6369 = vst [vmem:[%s9309_s25 + $0x113] sm:$0x1] %v6136_v9  ;;  %v12193_v15 = vmul.f32 %v11943_v33, %v6137_v7  ;;  %v12208_v46 = vmul.f32 %v11964_v10, %v6139_v21  ;;  %v12215_v19 = vpop.eup %7780  ;;  %v15066_v9 = vld [vmem:[#allocation58_spill] sm:$0xff]  ;;  %v15067_v26 = vand.u32 2147483647, %v12000_v14  ;;  %v15071_v17 = vld [vmem:[#allocation56_spill] sm:$0xff] }
 0x3be   : > { %15064 = vst [vmem:[#allocation39_spill] sm:$0xff] %v12199_v49  ;;  %v4750_v43 = vrot.slane %v4676_v36, 1  ;;  %v4751_v60 = vrot.slane %v4676_v36, 2  ;;  %v4752_v40 = vrot.slane %v4676_v36, 3  ;;  %v4753_v8 = vrot.slane %v4676_v36, 4 }
 0x3bf   : > { %6370 = vst [vmem:[%s9309_s25 + $0x117] sm:$0x1] %v6137_v7  ;;  %v4754_v61 = vrot.slane %v4676_v36, 5  ;;  %v4755_v50 = vrot.slane %v4676_v36, 6  ;;  %v4756_v4 = vrot.slane %v4676_v36, 7  ;;  %v5127_v53 = vmul.f32 %v11788_v23, %v4676_v36  ;;  %v15070_v23 = vld [vmem:[#allocation60_spill] sm:$0xff] }
 0x3c0   : > { %6371 = vst [vmem:[%s9309_s25 + $0x11b] sm:$0x1] %v6138_v41  ;;  %v5128_v2 = vmul.f32 %v11796_v25, %v4750_v43  ;;  %v5129_v63 = vmul.f32 %v11804_v57, %v4751_v60  ;;  %v5130_v32 = vmul.f32 %v11822_v47, %v4752_v40  ;;  %v5131_v7 = vmul.f32 %v15066_v9, %v4753_v8 }
 0x3c1   : > { %6372 = vst [vmem:[%s9309_s25 + $0x11f] sm:$0x1] %v6139_v21  ;;  %vm12224_vm15 = vcmp.eq.f32.partialorder %v15067_v26, 8.507059e+37  ;;  %v5125_v21 = vmul.f32 %v15070_v23, %v4755_v50  ;;  %v5126_v55 = vmul.f32 %v15071_v17, %v4756_v4  ;;  %v5383_v28 = vrot.slane %v5127_v53, 2 }
 0x3c2   : > { %4981 = vst [vmem:[%s9309_s25 + $0xe2] sm:$0x1] %v4676_v36  ;;  %v15072_v36 = vld [vmem:[#allocation57_spill] sm:$0xff]  ;;  %v5384_v57 = vrot.slane %v5128_v2, 2  ;;  %v5385_v47 = vrot.slane %v5129_v63, 2  ;;  %v5386_v9 = vrot.slane %v5130_v32, 2  ;;  %v4565_v14 = vsel %vm12249_vm0, %v12064_v30, %v12187_v11 }
 0x3c3   : > { %4982 = vst [vmem:[%s9309_s25 + $0xe6] sm:$0x1] %v4750_v43  ;;  %v5132_v25 = vmul.f32 %v15072_v36, %v4754_v61  ;;  %v5387_v56 = vrot.slane %v5131_v7, 2  ;;  %v5381_v26 = vrot.slane %v5125_v21, 2  ;;  %v5382_v58 = vrot.slane %v5126_v55, 2  ;;  %v15073_v32 = vld [vmem:[#allocation34_spill] sm:$0xff] }
 0x3c4   : > { %4983 = vst [vmem:[%s9309_s25 + $0xea] sm:$0x1] %v4751_v60  ;;  %v5639_v49 = vadd.f32 %v5383_v28, %v4263_v29  ;;  %v5640_v43 = vadd.f32 %v5384_v57, %v12079_v22  ;;  %v5641_v23 = vadd.f32 %v5385_v47, %v12091_v20  ;;  %v5642_v53 = vadd.f32 %v5386_v9, %v12094_v52  ;;  %v12253_v20 = vpop.xlane.xlu2 %2065  ;;  %v15077_v52 = vld [vmem:[#allocation61_spill] sm:$0xff]  ;;  %v15085_v21 = vld [vmem:[#allocation36_spill] sm:$0xff]  ;;  %v15087_v55 = vld [vmem:[#allocation38_spill] sm:$0xff] }
 0x3c5   : > { %4984 = vst [vmem:[%s9309_s25 + $0xee] sm:$0x1] %v4752_v40  ;;  %v5388_v27 = vrot.slane %v5132_v25, 2  ;;  %v5643_v60 = vadd.f32 %v5387_v56, %v12116_v3  ;;  %v5637_v2 = vadd.f32 %v5381_v26, %v12103_v5  ;;  %v5638_v40 = vadd.f32 %v5382_v58, %v12075_v1  ;;  %v15079_v1 = vld [vmem:[#allocation35_spill] sm:$0xff] }
 0x3c6   : > { %4985 = vst [vmem:[%s9309_s25 + $0xf2] sm:$0x1] %v4753_v8  ;;  %v15074_v7 = vrot.slane %v15073_v32, 3  ;;  %v15078_v5 = vrot.slane %v15077_v52, 3  ;;  %v15080_v28 = vrot.slane %v15079_v1, 3  ;;  %v15083_v56 = vld [vmem:[#allocation55_spill] sm:$0xff]  ;;  %v3196_v57 = vmul.f32 %v12215_v19, %v12158_v24 }
 0x3c7   : > { %4986 = vst [vmem:[%s9309_s25 + $0xf6] sm:$0x1] %v4754_v61  ;;  %v5644_v63 = vadd.f32 %v5388_v27, %v12121_v18  ;;  %v15081_v27 = vld [vmem:[#allocation37_spill] sm:$0xff]  ;;  %v15084_v8 = vrot.slane %v15083_v56, 3  ;;  %v15088_v36 = vrot.slane %v15087_v55, 3  ;;  %v6766_v47 = vrot.slane %v12205_v16, 3 }
 0x3c8   : > { %v7015_v29 = vadd.f32 %v15074_v7, %v5639_v49  ;;  %4987 = vst [vmem:[%s9309_s25 + $0xfa] sm:$0x1] %v4755_v50  ;;  %v7016_v3 = vadd.f32 %v15078_v5, %v5640_v43  ;;  %v7017_v18 = vadd.f32 %v15080_v28, %v5641_v23  ;;  %v15082_v58 = vrot.slane %v15081_v27, 3  ;;  %v15089_v30 = vld [vmem:[#allocation59_spill] sm:$0xff] }
 0x3c9   : > { %4988 = vst [vmem:[%s9309_s25 + $0xfe] sm:$0x1] %v4756_v4  ;;  %v7014_v61 = vadd.f32 %v15084_v8, %v5638_v40  ;;  %v15086_v50 = vrot.slane %v15085_v21, 3  ;;  %v7020_v25 = vadd.f32 %v15088_v36, %v5644_v63  ;;  %v6767_v9 = vrot.slane %v12208_v46, 3  ;;  %v15092_v7 = vld [vmem:[#allocation11_spill] sm:$0xff] }
 0x3ca   : > { %v7018_v49 = vadd.f32 %v15082_v58, %v5642_v53  ;;  %v6770_v26 = vrot.slane %v12184_v54, 3  ;;  %7782 = vrcp.f32 %v12253_v20  ;;  %v15090_v11 = vrot.slane %v15089_v30, 3  ;;  %v15091_v53 = vld [vmem:[#allocation40_spill] sm:$0xff] }
 0x3cb   : > { %v7019_v17 = vadd.f32 %v15086_v50, %v5643_v60  ;;  %v7311_v43 = vrot.slane %v7014_v61, 7  ;;  %v7313_v23 = vrot.slane %v7015_v29, 6  ;;  %v4570_v60 = vsel %vm12224_vm15, %v15091_v53, %v4565_v14 }
 0x3cc   : > { %v7013_v4 = vadd.f32 %v15090_v11, %v5637_v2  ;;  %v7315_v40 = vrot.slane %v7016_v3, 5  ;;  %v7317_v63 = vrot.slane %v7017_v18, 4  ;;  %v7319_v32 = vrot.slane %v7018_v49, 3 }
 0x3cd   : > { %v4677_v22 = vmul.f32 %v15092_v7, %v4570_v60  ;;  %v7321_v5 = vrot.slane %v7019_v17, 2  ;;  %v7323_v1 = vrot.slane %v7020_v25, 1  ;;  %v3197_v28 = vsub.f32 1.0, %v3196_v57 }
 0x3ce   : > { %v7312_v52 = vsel %vm1570_vm1, %v7311_v43, %v7013_v4  ;;  %vm3201_vm10 = vweird.f32 %v12215_v19  ;;  %vm2222_vm13 = vweird.f32 %v12253_v20 }
 0x3cf   : > { %v7314_v2 = vsel %vm1572_vm2, %v7313_v23, %v7312_v52  ;;  %v4757_v27 = vrot.slane %v4677_v22, 1  ;;  %v4758_v29 = vrot.slane %v4677_v22, 2  ;;  %v4759_v58 = vrot.slane %v4677_v22, 3  ;;  %4989 = vst [vmem:[%s9309_s25 + $0x102] sm:$0x1] %v4677_v22  ;;  %vm3202_vm11 = vmor %vm3200_vm8, %vm3201_vm10 }
 0x3d0   : > { %v7316_v41 = vsel %vm1574_vm3, %v7315_v40, %v7314_v2  ;;  %v4760_v3 = vrot.slane %v4677_v22, 4  ;;  %v4761_v18 = vrot.slane %v4677_v22, 5  ;;  %v4762_v49 = vrot.slane %v4677_v22, 6  ;;  %v12289_v14 = vpop.eup %7782 }
 0x3d1   : > { %v7318_v56 = vsel %vm1576_vm4, %v7317_v63, %v7316_v41  ;;  %v4763_v8 = vrot.slane %v4677_v22, 7  ;;  %4990 = vst [vmem:[%s9309_s25 + $0x106] sm:$0x1] %v4757_v27  ;;  %v5135_v61 = vmul.f32 %v11964_v10, %v4677_v22  ;;  %v5136_v21 = vmul.f32 %v11976_v31, %v4757_v27  ;;  %v12351_v41 = vpop.xlane.xlu0 %4431 }
 0x3d2   : > { %v7320_v50 = vsel %vm1578_vm5, %v7319_v32, %v7318_v56  ;;  %4991 = vst [vmem:[%s9309_s25 + $0x10a] sm:$0x1] %v4758_v29  ;;  %v5133_v17 = vmul.f32 %v11943_v33, %v4762_v49  ;;  %v5137_v55 = vmul.f32 %v11984_v35, %v4758_v29  ;;  %v5138_v36 = vmul.f32 %v11992_v48, %v4759_v58 }
 0x3d3   : > { %v7322_v25 = vsel %vm1580_vm6, %v7321_v5, %v7320_v50  ;;  %4992 = vst [vmem:[%s9309_s25 + $0x10e] sm:$0x1] %v4759_v58  ;;  %v5134_v10 = vmul.f32 %v11950_v0, %v4763_v8  ;;  %v5139_v31 = vmul.f32 %v12003_v59, %v4760_v3  ;;  %v5140_v57 = vmul.f32 %v12013_v6, %v4761_v18 }
 0x3d4   : > { %v7324_v30 = vsel %vm1582_vm7, %v7323_v1, %v7322_v25  ;;  %4993 = vst [vmem:[%s9309_s25 + $0x112] sm:$0x1] %v4760_v3  ;;  %v5389_v33 = vrot.slane %v5133_v17, 2  ;;  %v5391_v35 = vrot.slane %v5135_v61, 2  ;;  %v5392_v11 = vrot.slane %v5136_v21, 2 }
 0x3d5   : > { %v15093_v48 = vand.u32 2147483647, %v12158_v24  ;;  %7460 = vst [vmem:[%s9759_s27 + $0x38] sm:$0xff] %v7324_v30  ;;  %v5390_v0 = vrot.slane %v5134_v10, 2  ;;  %v5393_v43 = vrot.slane %v5137_v55, 2  ;;  %v5394_v59 = vrot.slane %v5138_v36, 2 }
 0x3d6   : > { %v5395_v23 = vrot.slane %v5139_v31, 2  ;;  %4994 = vst [vmem:[%s9309_s25 + $0x116] sm:$0x1] %v4761_v18  ;;  %v5396_v6 = vrot.slane %v5140_v57, 2  ;;  %v5647_v53 = vadd.f32 %v5391_v35, %v12178_v34  ;;  %v5648_v60 = vadd.f32 %v5392_v11, %v12138_v45 }
 0x3d7   : > { %vm12310_vm9 = vcmp.eq.f32.partialorder %v15093_v48, 8.507059e+37  ;;  %v3198_v40 = vmul.f32 %v12215_v19, %v3197_v28  ;;  %4995 = vst [vmem:[%s9309_s25 + $0x11a] sm:$0x1] %v4762_v49  ;;  %v5645_v63 = vadd.f32 %v5389_v33, %v12161_v12  ;;  %v5646_v32 = vadd.f32 %v5390_v0, %v12135_v13  ;;  %v15098_v28 = vld [vmem:[#allocation39_spill] sm:$0xff]  ;;  %v15100_v49 = vld [vmem:[#allocation14_spill] sm:$0xff] }
 0x3d8   : > { %v5649_v7 = vadd.f32 %v5393_v43, %v12145_v37  ;;  %v5650_v22 = vadd.f32 %v5394_v59, %v12148_v51  ;;  %4996 = vst [vmem:[%s9309_s25 + $0x11e] sm:$0x1] %v4763_v8  ;;  %v5651_v52 = vadd.f32 %v5395_v23, %v12151_v38  ;;  %v5652_v5 = vadd.f32 %v5396_v6, %v12154_v42 }
 0x3d9   : > { %v7023_v34 = vadd.f32 %v6767_v9, %v5647_v53  ;;  %v6765_v45 = vrot.slane %v12193_v15, 3  ;;  %v7022_v12 = vadd.f32 %v6766_v47, %v5646_v32  ;;  %v15096_v13 = vrot.slane %v12168_v39, 3  ;;  %v12348_v47 = vpop.xlane.xlu1 %2063 }
 0x3da   : > { %v15097_v51 = vrot.slane %v12171_v44, 3  ;;  %v6771_v38 = vrot.slane %v12196_v62, 3  ;;  %v6772_v42 = vrot.slane %v15098_v28, 3  ;;  %v3199_v46 = vadd.f32 %v12215_v19, %v3198_v40 }
 0x3db   : > { %v7024_v37 = vadd.f32 %v15096_v13, %v5648_v60  ;;  %v2218_v9 = vmul.f32 %v12289_v14, %v12253_v20  ;;  %v7021_v2 = vadd.f32 %v6765_v45, %v5645_v63  ;;  %v7026_v15 = vadd.f32 %v6770_v26, %v5650_v22 }
 0x3dc   : > { %v7025_v1 = vadd.f32 %v15097_v51, %v5649_v7  ;;  %v7325_v16 = vrot.slane %v7022_v12, 7  ;;  %v15099_v39 = vand.u32 2147483648, %v12158_v24  ;;  %v7027_v62 = vadd.f32 %v6771_v38, %v5651_v52  ;;  %v15101_v7 = vld [vmem:[#allocation18_spill] sm:$0xff]  ;;  %v12424_v38 = vld [vmem:[%s8065_s30 + $0x128] sm:$0xf] }
 0x3dd   : > { %v7028_v27 = vadd.f32 %v6772_v42, %v5652_v5  ;;  %v7327_v29 = vrot.slane %v7023_v34, 6  ;;  %v3203_v58 = vsel %vm3202_vm11, %v12215_v19, %v3199_v46  ;;  %v7329_v26 = vrot.slane %v7024_v37, 5  ;;  %v12414_v37 = vld [vmem:[%s8065_s30 + $0x124] sm:$0xf]  ;;  %v12430_v42 = vld [vmem:[%s8065_s30 + $0x12c] sm:$0xf] }
 0x3de   : > { %v3207_v44 = vor.u32 1.1754944e-38, %v15099_v39  ;;  %v7326_v54 = vsel %vm1570_vm1, %v7325_v16, %v7021_v2  ;;  %v7331_v3 = vrot.slane %v7025_v1, 4  ;;  %v2219_v8 = vsub.f32 1.0, %v2218_v9  ;;  %v12436_v9 = vld [vmem:[%s8065_s30 + $0x130] sm:$0xf] }
 0x3df   : > { %v7328_v24 = vsel %vm1572_vm2, %v7327_v29, %v7326_v54  ;;  %7784 = vrcp.f32 %v12348_v47  ;;  %v7333_v61 = vrot.slane %v7026_v15, 3  ;;  %v7335_v50 = vrot.slane %v7027_v62, 2  ;;  %v12446_v16 = vld [vmem:[%s8065_s30 + $0x120] sm:$0xf] }
 0x3e0   : > { %v3208_v18 = vsel %vm12310_vm9, %v3207_v44, %v3203_v58  ;;  %v7330_v19 = vsel %vm1574_vm3, %v7329_v26, %v7328_v24  ;;  %7786 = vrcp.f32 %v12351_v41  ;;  %v7337_v25 = vrot.slane %v7028_v27, 1  ;;  %v12452_v44 = vld [vmem:[%s8065_s30 + $0x134] sm:$0xf]  ;;  %v12463_v58 = vld [vmem:[%s8065_s30 + $0x138] sm:$0xf] }
 0x3e1   : > { %v12358_v56 = vmul.f32 %v15100_v49, %v3208_v18  ;;  %v7332_v21 = vsel %vm1576_vm4, %v7331_v3, %v7330_v19  ;;  %v2220_v30 = vmul.f32 %v12289_v14, %v2219_v8  ;;  %v2228_v11 = vand.u32 2147483648, %v12253_v20  ;;  %v12402_v22 = vpop.xlane.xlu1 %5807  ;;  %v12478_v24 = vld [vmem:[%s8065_s30 + $0x13c] sm:$0xf] }
 0x3e2   : > { %v7334_v36 = vsel %vm1578_vm5, %v7333_v61, %v7332_v21  ;;  %vm2223_vm12 = vweird.f32 %v12289_v14  ;;  %v2226_v0 = vand.u32 2147483647, %v12253_v20  ;;  %vm2208_vm0 = vweird.f32 %v12348_v47 }
 0x3e3   : > { %v3388_v17 = vrot.slane %v12358_v56, 1  ;;  %v3389_v55 = vrot.slane %v12358_v56, 2  ;;  %3621 = vst [vmem:[%s9309_s25 + $0x121] sm:$0x1] %v12358_v56  ;;  %v3390_v10 = vrot.slane %v12358_v56, 3  ;;  %v7336_v31 = vsel %vm1580_vm6, %v7335_v50, %v7334_v36  ;;  %vm2224_vm14 = vmor %vm2222_vm13, %vm2223_vm12 }
 0x3e4   : > { %v3391_v57 = vrot.slane %v12358_v56, 4  ;;  %v7338_v33 = vsel %vm1582_vm7, %v7337_v25, %v7336_v31  ;;  %v3392_v35 = vrot.slane %v12358_v56, 5  ;;  %v3393_v4 = vrot.slane %v12358_v56, 6 }
 0x3e5   : > { %3622 = vst [vmem:[%s9309_s25 + $0x125] sm:$0x1] %v3388_v17  ;;  %v12378_v48 = vpop.eup %7784  ;;  %v3394_v59 = vrot.slane %v12358_v56, 7  ;;  %v2221_v23 = vadd.f32 %v12289_v14, %v2220_v30  ;;  %v2229_v6 = vor.u32 1.1754944e-38, %v2228_v11  ;;  %vm2227_vm15 = vcmp.eq.f32.partialorder %v2226_v0, 8.507059e+37  ;;  %v12510_v30 = vpop.xlane.xlu2 %5809 }
 0x3e6   : > { %3623 = vst [vmem:[%s9309_s25 + $0x129] sm:$0x1] %v3389_v55  ;;  %v12384_v43 = vpop.eup %7786  ;;  %v2204_v53 = vmul.f32 %v12378_v48, %v12348_v47  ;;  %v2214_v5 = vand.u32 2147483648, %v12348_v47  ;;  %v12418_v51 = vmul.f32 %v12414_v37, %v12358_v56  ;;  %vm2209_vm8 = vweird.f32 %v12378_v48 }
 0x3e7   : > { %7461 = vst [vmem:[%s9759_s27 + $0x40] sm:$0xff] %v7338_v33  ;;  %v2225_v60 = vsel %vm2224_vm14, %v12289_v14, %v2221_v23  ;;  %v4572_v40 = vmul.f32 %v12384_v43, %v12351_v41  ;;  %v2212_v14 = vand.u32 2147483647, %v12348_v47  ;;  %7788 = vrcp.f32 %v12402_v22  ;;  %vm2210_vm9 = vmor %vm2208_vm0, %vm2209_vm8 }
 0x3e8   : > { %3624 = vst [vmem:[%s9309_s25 + $0x12d] sm:$0x1] %v3390_v10  ;;  %v2230_v63 = vsel %vm2227_vm15, %v2229_v6, %v2225_v60  ;;  %v2205_v32 = vsub.f32 1.0, %v2204_v53  ;;  %v12427_v28 = vmul.f32 %v12424_v38, %v3388_v17  ;;  %v12433_v46 = vmul.f32 %v12430_v42, %v3389_v55  ;;  %v15102_v17 = vld [vmem:[#allocation13_spill] sm:$0xff] }
 0x3e9   : > { %3625 = vst [vmem:[%s9309_s25 + $0x131] sm:$0x1] %v3391_v57  ;;  %v12400_v20 = vmul.f32 %v15101_v7, %v2230_v63  ;;  %v4573_v13 = vsub.f32 1.0, %v4572_v40  ;;  %v12439_v2 = vmul.f32 %v12436_v9, %v3390_v10  ;;  %v12449_v39 = vmul.f32 %v12446_v16, %v3394_v59 }
 0x3ea   : > { %3626 = vst [vmem:[%s9309_s25 + $0x135] sm:$0x1] %v3392_v35  ;;  %v2206_v52 = vmul.f32 %v12378_v48, %v2205_v32  ;;  %v12455_v62 = vmul.f32 %v12452_v44, %v3391_v57  ;;  %v12466_v54 = vmul.f32 %v12463_v58, %v3392_v35  ;;  %v2215_v3 = vor.u32 1.1754944e-38, %v2214_v5 }
 0x3eb   : > { %3627 = vst [vmem:[%s9309_s25 + $0x139] sm:$0x1] %v3393_v4  ;;  %v2403_v34 = vrot.slane %v12400_v20, 1  ;;  %v2404_v45 = vrot.slane %v12400_v20, 2  ;;  %v2405_v12 = vrot.slane %v12400_v20, 3  ;;  %v2406_v1 = vrot.slane %v12400_v20, 4 }
 0x3ec   : > { %3628 = vst [vmem:[%s9309_s25 + $0x13d] sm:$0x1] %v3394_v59  ;;  %v2407_v15 = vrot.slane %v12400_v20, 5  ;;  %v2408_v27 = vrot.slane %v12400_v20, 6  ;;  %v2207_v29 = vadd.f32 %v12378_v48, %v2206_v52  ;;  %v2409_v26 = vrot.slane %v12400_v20, 7 }
 0x3ed   : > { %2637 = vst [vmem:[%s9309_s25 + $0x140] sm:$0x1] %v12400_v20  ;;  %v4574_v18 = vmul.f32 %v12384_v43, %v4573_v13  ;;  %v12481_v49 = vmul.f32 %v12478_v24, %v3393_v4  ;;  %v4022_v56 = vrot.slane %v12418_v51, 1  ;;  %vm2213_vm10 = vcmp.eq.f32.partialorder %v2212_v14, 8.507059e+37  ;;  %v12494_v50 = vpop.eup %7788  ;;  %v12514_v4 = vpop.xlane.xlu0 %2067 }
 0x3ee   : > { %2638 = vst [vmem:[%s9309_s25 + $0x144] sm:$0x1] %v2403_v34  ;;  %v2211_v8 = vsel %vm2210_vm9, %v12378_v48, %v2207_v29  ;;  %v4023_v47 = vrot.slane %v12427_v28, 1  ;;  %v4024_v19 = vrot.slane %v12433_v46, 1  ;;  %v4025_v61 = vrot.slane %v12439_v2, 1 }
 0x3ef   : > { %2639 = vst [vmem:[%s9309_s25 + $0x148] sm:$0x1] %v2404_v45  ;;  %v2216_v21 = vsel %vm2213_vm10, %v2215_v3, %v2211_v8  ;;  %v4575_v36 = vadd.f32 %v12384_v43, %v4574_v18  ;;  %vm4577_vm11 = vweird.f32 %v12384_v43  ;;  %v4580_v25 = vand.u32 2147483647, %v12351_v41  ;;  %v15105_v18 = vld [vmem:[#allocation16_spill] sm:$0xff] }
 0x3f0   : > { %2640 = vst [vmem:[%s9309_s25 + $0x14c] sm:$0x1] %v2405_v12  ;;  %v2310_v55 = vmul.f32 %v15102_v17, %v2216_v21  ;;  %v4021_v10 = vrot.slane %v12449_v39, 1  ;;  %v4026_v31 = vrot.slane %v12455_v62, 1  ;;  %vm4576_vm12 = vweird.f32 %v12351_v41 }
 0x3f1   : > { %2641 = vst [vmem:[%s9309_s25 + $0x150] sm:$0x1] %v2406_v1  ;;  %v4582_v57 = vand.u32 2147483648, %v12351_v41  ;;  %v5958_v48 = vand.u32 2147483648, %v12402_v22  ;;  %v4027_v0 = vrot.slane %v12466_v54, 1  ;;  %v4028_v59 = vrot.slane %v12481_v49, 1  ;;  %vm12520_vm13 = vmor %vm4576_vm12, %vm4577_vm11 }
 0x3f2   : > { %2642 = vst [vmem:[%s9309_s25 + $0x154] sm:$0x1] %v2407_v15  ;;  %v2396_v33 = vrot.slane %v2310_v55, 1  ;;  %v2397_v35 = vrot.slane %v2310_v55, 2  ;;  %v2398_v11 = vrot.slane %v2310_v55, 3  ;;  %v2399_v23 = vrot.slane %v2310_v55, 4 }
 0x3f3   : > { %2643 = vst [vmem:[%s9309_s25 + $0x158] sm:$0x1] %v2408_v27  ;;  %v5948_v6 = vmul.f32 %v12494_v50, %v12402_v22  ;;  %v2400_v53 = vrot.slane %v2310_v55, 5  ;;  %v4579_v60 = vsel %vm12520_vm13, %v12384_v43, %v4575_v36  ;;  %vm4581_vm14 = vcmp.eq.f32.partialorder %v4580_v25, 8.507059e+37 }
 0x3f4   : > { %2644 = vst [vmem:[%s9309_s25 + $0x15c] sm:$0x1] %v2409_v26  ;;  %7790 = vrcp.f32 %v12510_v30  ;;  %v2401_v40 = vrot.slane %v2310_v55, 6  ;;  %v4583_v63 = vor.u32 1.1754944e-38, %v4582_v57  ;;  %v5956_v32 = vand.u32 2147483647, %v12402_v22 }
 0x3f5   : > { %2629 = vst [vmem:[%s9309_s25 + $0x120] sm:$0x1] %v2310_v55  ;;  %7792 = vrcp.f32 %v12514_v4  ;;  %v2402_v7 = vrot.slane %v2310_v55, 7  ;;  %v12535_v52 = vor.u32 1.1754944e-38, %v5958_v48  ;;  %v5970_v14 = vand.u32 2147483647, %v12510_v30 }
 0x3f6   : > { %2630 = vst [vmem:[%s9309_s25 + $0x124] sm:$0x1] %v2396_v33  ;;  %v2773_v43 = vmul.f32 %v12446_v16, %v2310_v55  ;;  %v4584_v5 = vsel %vm4581_vm14, %v4583_v63, %v4579_v60  ;;  %v5949_v13 = vsub.f32 1.0, %v5948_v6  ;;  %vm5953_vm15 = vweird.f32 %v12494_v50 }
 0x3f7   : > { %2631 = vst [vmem:[%s9309_s25 + $0x128] sm:$0x1] %v2397_v35  ;;  %v5972_v39 = vand.u32 2147483648, %v12510_v30  ;;  %v2774_v29 = vmul.f32 %v12414_v37, %v2396_v33  ;;  %v2775_v3 = vmul.f32 %v12424_v38, %v2397_v35  ;;  %v4678_v8 = vmul.f32 %v15105_v18, %v4584_v5 }
 0x3f8   : > { %2632 = vst [vmem:[%s9309_s25 + $0x12c] sm:$0x1] %v2398_v11  ;;  %v2240_v21 = vand.u32 2147483647, %v12514_v4  ;;  %v2776_v17 = vmul.f32 %v12430_v42, %v2398_v11  ;;  %v2777_v55 = vmul.f32 %v12436_v9, %v2399_v23  ;;  %v2778_v36 = vmul.f32 %v12452_v44, %v2400_v53 }
 0x3f9   : > { %2633 = vst [vmem:[%s9309_s25 + $0x130] sm:$0x1] %v2399_v23  ;;  %v2779_v25 = vmul.f32 %v12463_v58, %v2401_v40  ;;  %vm5952_vm0 = vweird.f32 %v12402_v22  ;;  %v4764_v33 = vrot.slane %v4678_v8, 1  ;;  %v4765_v35 = vrot.slane %v4678_v8, 2 }
 0x3fa   : > { %2634 = vst [vmem:[%s9309_s25 + $0x134] sm:$0x1] %v2400_v53  ;;  %v12553_v57 = vpop.eup %7790  ;;  %v4766_v48 = vrot.slane %v4678_v8, 3  ;;  %v4767_v41 = vrot.slane %v4678_v8, 4  ;;  %v2780_v11 = vmul.f32 %v12478_v24, %v2402_v7  ;;  %v4277_v23 = vadd.f32 %v4021_v10, %v2773_v43  ;;  %vm5954_vm9 = vmor %vm5952_vm0, %vm5953_vm15 }
 0x3fb   : > { %2635 = vst [vmem:[%s9309_s25 + $0x138] sm:$0x1] %v2401_v40  ;;  %v12556_v6 = vpop.eup %7792  ;;  %v4769_v53 = vrot.slane %v4678_v8, 6  ;;  %v4770_v60 = vrot.slane %v4678_v8, 7  ;;  %vm12560_vm8 = vcmp.eq.f32.partialorder %v5956_v32, 8.507059e+37  ;;  %v12566_v63 = vadd.f32 %v4022_v56, %v2774_v29 }
 0x3fc   : > { %2636 = vst [vmem:[%s9309_s25 + $0x13c] sm:$0x1] %v2402_v7  ;;  %v4279_v5 = vadd.f32 %v4023_v47, %v2775_v3  ;;  %v4768_v18 = vrot.slane %v4678_v8, 5  ;;  %v5145_v7 = vmul.f32 %v12436_v9, %v4765_v35  ;;  %v5144_v10 = vmul.f32 %v12430_v42, %v4764_v33 }
 0x3fd   : > { %4997 = vst [vmem:[%s9309_s25 + $0x122] sm:$0x1] %v4678_v8  ;;  %v5146_v32 = vmul.f32 %v12452_v44, %v4766_v48  ;;  %v5147_v43 = vmul.f32 %v12463_v58, %v4767_v41  ;;  %v5950_v51 = vmul.f32 %v12494_v50, %v5949_v13  ;;  %v5141_v28 = vmul.f32 %v12446_v16, %v4769_v53 }
 0x3fe   : > { %4998 = vst [vmem:[%s9309_s25 + $0x126] sm:$0x1] %v4764_v33  ;;  %v5143_v56 = vmul.f32 %v12424_v38, %v4678_v8  ;;  %v5962_v47 = vmul.f32 %v12553_v57, %v12510_v30  ;;  %v2232_v29 = vmul.f32 %v12556_v6, %v12514_v4  ;;  %v4280_v3 = vadd.f32 %v4024_v19, %v2776_v17 }
 0x3ff   : > { %4999 = vst [vmem:[%s9309_s25 + $0x12a] sm:$0x1] %v4765_v35  ;;  %v4281_v33 = vadd.f32 %v4025_v61, %v2777_v55  ;;  %v4282_v13 = vadd.f32 %v4026_v31, %v2778_v36  ;;  %v5142_v35 = vmul.f32 %v12414_v37, %v4770_v60  ;;  %v4283_v8 = vadd.f32 %v4027_v0, %v2779_v25 }
 0x400   : > { %5000 = vst [vmem:[%s9309_s25 + $0x12e] sm:$0x1] %v4766_v48  ;;  %v12596_v48 = vadd.f32 %v4028_v59, %v2780_v11  ;;  %v12600_v46 = vmul.f32 %v12478_v24, %v4768_v18  ;;  %v5401_v19 = vrot.slane %v5145_v7, 2  ;;  %v5400_v2 = vrot.slane %v5144_v10, 2 }
 0x401   : > { %5001 = vst [vmem:[%s9309_s25 + $0x132] sm:$0x1] %v4767_v41  ;;  %v5402_v61 = vrot.slane %v5146_v32, 2  ;;  %v5403_v62 = vrot.slane %v5147_v43, 2  ;;  %v5951_v31 = vadd.f32 %v12494_v50, %v5950_v51  ;;  %v5397_v17 = vrot.slane %v5141_v28, 2 }
 0x402   : > { %5002 = vst [vmem:[%s9309_s25 + $0x136] sm:$0x1] %v4768_v18  ;;  %v5399_v55 = vrot.slane %v5143_v56, 2  ;;  %v5963_v54 = vsub.f32 1.0, %v5962_v47  ;;  %v2233_v49 = vsub.f32 1.0, %v2232_v29  ;;  %v5398_v0 = vrot.slane %v5142_v35, 2 }
 0x403   : > { %5003 = vst [vmem:[%s9309_s25 + $0x13a] sm:$0x1] %v4769_v53  ;;  %v5955_v59 = vsel %vm5954_vm9, %v12494_v50, %v5951_v31  ;;  %vm5967_vm10 = vweird.f32 %v12553_v57  ;;  %v12613_v36 = vor.u32 1.1754944e-38, %v5972_v39  ;;  %v5404_v25 = vrot.slane %v12600_v46, 2  ;;  %v15108_v18 = vld [vmem:[#allocation12_spill] sm:$0xff] }
 0x404   : > { %5004 = vst [vmem:[%s9309_s25 + $0x13e] sm:$0x1] %v4770_v60  ;;  %v5655_v41 = vadd.f32 %v5399_v55, %v4279_v5  ;;  %v5657_v11 = vadd.f32 %v5401_v19, %v4281_v33  ;;  %v5960_v22 = vsel %vm12560_vm8, %v12535_v52, %v5955_v59  ;;  %vm2237_vm11 = vweird.f32 %v12556_v6  ;;  %v12651_v19 = vpop.xlane.xlu1 %3057 }
 0x405   : > { %v5658_v53 = vadd.f32 %v5402_v61, %v4282_v13  ;;  %v12620_v60 = vadd.f32 %v5403_v62, %v4283_v8  ;;  %v5656_v50 = vadd.f32 %v5400_v2, %v4280_v3  ;;  %v6054_v7 = vmul.f32 %v15108_v18, %v5960_v22  ;;  %v12658_v62 = vpop.xlane.xlu2 %3059 }
 0x406   : > { %vm5966_vm12 = vweird.f32 %v12510_v30  ;;  %v5653_v39 = vadd.f32 %v5397_v17, %v4277_v23  ;;  %v5964_v5 = vmul.f32 %v12553_v57, %v5963_v54  ;;  %v2234_v10 = vmul.f32 %v12556_v6, %v2233_v49 }
 0x407   : > { %vm2236_vm13 = vweird.f32 %v12514_v4  ;;  %v2242_v52 = vand.u32 2147483648, %v12514_v4  ;;  %v6140_v40 = vrot.slane %v6054_v7, 1  ;;  %v6141_v32 = vrot.slane %v6054_v7, 2  ;;  %6373 = vst [vmem:[%s9309_s25 + $0x123] sm:$0x1] %v6054_v7  ;;  %vm5968_vm0 = vmor %vm5966_vm12, %vm5967_vm10 }
 0x408   : > { %v6142_v43 = vrot.slane %v6054_v7, 3  ;;  %v6143_v51 = vrot.slane %v6054_v7, 4  ;;  %v6144_v28 = vrot.slane %v6054_v7, 5  ;;  %v6145_v56 = vrot.slane %v6054_v7, 6  ;;  %vm2238_vm8 = vmor %vm2236_vm13, %vm2237_vm11 }
 0x409   : > { %v6146_v47 = vrot.slane %v6054_v7, 7  ;;  %v6520_v23 = vmul.f32 %v12430_v42, %v6054_v7  ;;  %vm12632_vm14 = vcmp.eq.f32.partialorder %v5970_v14, 8.507059e+37  ;;  %vm12638_vm15 = vcmp.eq.f32.partialorder %v2240_v21, 8.507059e+37  ;;  %6374 = vst [vmem:[%s9309_s25 + $0x127] sm:$0x1] %v6140_v40 }
 0x40a   : > { %v6521_v33 = vmul.f32 %v12436_v9, %v6140_v40  ;;  %v6522_v13 = vmul.f32 %v12452_v44, %v6141_v32  ;;  %v6523_v42 = vmul.f32 %v12463_v58, %v6142_v43  ;;  %v6524_v35 = vmul.f32 %v12478_v24, %v6143_v51  ;;  %6375 = vst [vmem:[%s9309_s25 + $0x12b] sm:$0x1] %v6141_v32 }
 0x40b   : > { %v6517_v14 = vmul.f32 %v12446_v16, %v6144_v28  ;;  %v6518_v8 = vmul.f32 %v12414_v37, %v6145_v56  ;;  %v6519_v21 = vmul.f32 %v12424_v38, %v6146_v47  ;;  %v6776_v46 = vrot.slane %v6520_v23, 3  ;;  %6376 = vst [vmem:[%s9309_s25 + $0x12f] sm:$0x1] %v6142_v43 }
 0x40c   : > { %v5654_v2 = vadd.f32 %v5398_v0, %v12566_v63  ;;  %v6777_v9 = vrot.slane %v6521_v33, 3  ;;  %v6778_v44 = vrot.slane %v6522_v13, 3  ;;  %v5965_v58 = vadd.f32 %v12553_v57, %v5964_v5  ;;  %6377 = vst [vmem:[%s9309_s25 + $0x133] sm:$0x1] %v6143_v51 }
 0x40d   : > { %v6773_v24 = vrot.slane %v6517_v14, 3  ;;  %v6774_v16 = vrot.slane %v6518_v8, 3  ;;  %v6775_v61 = vrot.slane %v6519_v21, 3  ;;  %v2235_v37 = vadd.f32 %v12556_v6, %v2234_v10  ;;  %6378 = vst [vmem:[%s9309_s25 + $0x137] sm:$0x1] %v6144_v28 }
 0x40e   : > { %v5660_v38 = vadd.f32 %v5404_v25, %v12596_v48  ;;  %v6779_v31 = vrot.slane %v6523_v42, 3  ;;  %v6780_v63 = vrot.slane %v6524_v35, 3  ;;  %7794 = vrcp.f32 %v12651_v19  ;;  %6379 = vst [vmem:[%s9309_s25 + $0x13b] sm:$0x1] %v6145_v56  ;;  %v12719_v8 = vld [vmem:[%s8065_s30 + $0x140] sm:$0xf] }
 0x40f   : > { %v7030_v17 = vadd.f32 %v6774_v16, %v5654_v2  ;;  %v7031_v55 = vadd.f32 %v6775_v61, %v5655_v41  ;;  %v7032_v54 = vadd.f32 %v6776_v46, %v5656_v50  ;;  %v2243_v49 = vor.u32 1.1754944e-38, %v2242_v52  ;;  %6380 = vst [vmem:[%s9309_s25 + $0x13f] sm:$0x1] %v6146_v47  ;;  %v12745_v16 = vld [vmem:[%s8065_s30 + $0x14c] sm:$0xf] }
 0x410   : > { %v7029_v0 = vadd.f32 %v6773_v24, %v5653_v39  ;;  %v7033_v59 = vadd.f32 %v6777_v9, %v5657_v11  ;;  %v7034_v22 = vadd.f32 %v6778_v44, %v5658_v53  ;;  %7796 = vrcp.f32 %v12658_v62  ;;  %v15113_v39 = vld [vmem:[#allocation17_spill] sm:$0xff]  ;;  %15115 = vst [vmem:[#allocation41_spill] sm:$0xff] %v12719_v8  ;;  %v12729_v9 = vld [vmem:[%s8065_s30 + $0x144] sm:$0xf] }
 0x411   : > { %v7339_v48 = vrot.slane %v7030_v17, 7  ;;  %v7341_v25 = vrot.slane %v7031_v55, 6  ;;  %v5969_v41 = vsel %vm5968_vm0, %v12553_v57, %v5965_v58  ;;  %v2239_v50 = vsel %vm2238_vm8, %v12556_v6, %v2235_v37  ;;  %v15114_v57 = vld [vmem:[#allocation20_spill] sm:$0xff]  ;;  %15116 = vst [vmem:[#allocation42_spill] sm:$0xff] %v12729_v9  ;;  %v12737_v58 = vld [vmem:[%s8065_s30 + $0x148] sm:$0xf] }
 0x412   : > { %v7035_v30 = vadd.f32 %v6779_v31, %v12620_v60  ;;  %v7036_v18 = vadd.f32 %v6780_v63, %v5660_v38  ;;  %v5974_v11 = vsel %vm12632_vm14, %v12613_v36, %v5969_v41  ;;  %v2244_v4 = vsel %vm12638_vm15, %v2243_v49, %v2239_v50  ;;  %v12756_v37 = vld [vmem:[%s8065_s30 + $0x150] sm:$0xf]  ;;  %v12769_v63 = vld [vmem:[%s8065_s30 + $0x154] sm:$0xf]  ;;  %v12777_v55 = vld [vmem:[%s8065_s30 + $0x158] sm:$0xf] }
 0x413   : > { %v7340_v53 = vsel %vm1570_vm1, %v7339_v48, %v7029_v0  ;;  %v7343_v7 = vrot.slane %v7032_v54, 5  ;;  %v12684_v5 = vmul.f32 %v15113_v39, %v5974_v11  ;;  %v12687_v6 = vmul.f32 %v15114_v57, %v2244_v4  ;;  %v12785_v54 = vld [vmem:[%s8065_s30 + $0x15c] sm:$0xf] }
 0x414   : > { %v12689_v60 = vpop.eup %7794  ;;  %v7342_v10 = vsel %vm1572_vm2, %v7341_v25, %v7340_v53  ;;  %v7345_v52 = vrot.slane %v7033_v59, 4  ;;  %v7347_v36 = vrot.slane %v7034_v22, 3  ;;  %v7349_v47 = vrot.slane %v7035_v30, 2  ;;  %15117 = vst [vmem:[#allocation43_spill] sm:$0xff] %v12785_v54 }
 0x415   : > { %v7344_v40 = vsel %vm1574_vm3, %v7343_v7, %v7342_v10  ;;  %v6147_v32 = vrot.slane %v12684_v5, 1  ;;  %v6148_v43 = vrot.slane %v12684_v5, 2  ;;  %v6149_v51 = vrot.slane %v12684_v5, 3  ;;  %6381 = vst [vmem:[%s9309_s25 + $0x143] sm:$0x1] %v12684_v5 }
 0x416   : > { %v12698_v28 = vpop.eup %7796  ;;  %v7346_v56 = vsel %vm1576_vm4, %v7345_v52, %v7344_v40  ;;  %2645 = vst [vmem:[%s9309_s25 + $0x160] sm:$0x1] %v12687_v6  ;;  %v7351_v29 = vrot.slane %v7036_v18, 1  ;;  %v6150_v3 = vrot.slane %v12684_v5, 4  ;;  %v3210_v33 = vmul.f32 %v12689_v60, %v12651_v19 }
 0x417   : > { %v7348_v23 = vsel %vm1578_vm5, %v7347_v36, %v7346_v56  ;;  %6382 = vst [vmem:[%s9309_s25 + $0x147] sm:$0x1] %v6147_v32  ;;  %v6151_v42 = vrot.slane %v12684_v5, 5  ;;  %v6152_v14 = vrot.slane %v12684_v5, 6  ;;  %v12723_v21 = vmul.f32 %v12719_v8, %v12400_v20  ;;  %v15131_v56 = vld [vmem:[#allocation19_spill] sm:$0xff] }
 0x418   : > { %v7350_v13 = vsel %vm1580_vm6, %v7349_v47, %v7348_v23  ;;  %6383 = vst [vmem:[%s9309_s25 + $0x14b] sm:$0x1] %v6148_v43  ;;  %v6153_v46 = vrot.slane %v12684_v5, 7  ;;  %v3220_v2 = vand.u32 2147483648, %v12651_v19  ;;  %v12734_v44 = vmul.f32 %v12729_v9, %v2403_v34  ;;  %v12968_v23 = vld [vmem:[%s8065_s30 + $0x17c] sm:$0xf] }
 0x419   : > { %v7352_v35 = vsel %vm1582_vm7, %v7351_v29, %v7350_v13  ;;  %6384 = vst [vmem:[%s9309_s25 + $0x14f] sm:$0x1] %v6149_v51  ;;  %v12742_v24 = vmul.f32 %v12737_v58, %v2404_v45  ;;  %v12750_v61 = vmul.f32 %v12745_v16, %v2405_v12  ;;  %v3211_v34 = vsub.f32 1.0, %v3210_v33 }
 0x41a   : > { %7462 = vst [vmem:[%s9759_s27 + $0x48] sm:$0xff] %v7352_v35  ;;  %v12761_v45 = vmul.f32 %v12756_v37, %v2406_v1  ;;  %v2410_v38 = vrot.slane %v12687_v6, 1  ;;  %v2411_v31 = vrot.slane %v12687_v6, 2  ;;  %v3224_v12 = vmul.f32 %v12698_v28, %v12658_v62 }
 0x41b   : > { %6385 = vst [vmem:[%s9309_s25 + $0x153] sm:$0x1] %v6150_v3  ;;  %v12774_v17 = vmul.f32 %v12769_v63, %v2407_v15  ;;  %v12782_v1 = vmul.f32 %v12777_v55, %v2408_v27  ;;  %v12790_v49 = vmul.f32 %v12785_v54, %v2409_v26  ;;  %v2412_v0 = vrot.slane %v12687_v6, 3 }
 0x41c   : > { %6386 = vst [vmem:[%s9309_s25 + $0x157] sm:$0x1] %v6151_v42  ;;  %v2413_v15 = vrot.slane %v12687_v6, 4  ;;  %vm3214_vm9 = vweird.f32 %v12651_v19  ;;  %v3218_v27 = vand.u32 2147483647, %v12651_v19  ;;  %v3221_v59 = vor.u32 1.1754944e-38, %v3220_v2 }
 0x41d   : > { %6387 = vst [vmem:[%s9309_s25 + $0x15b] sm:$0x1] %v6152_v14  ;;  %v2414_v22 = vrot.slane %v12687_v6, 5  ;;  %v3212_v20 = vmul.f32 %v12689_v60, %v3211_v34  ;;  %vm3215_vm10 = vweird.f32 %v12689_v60  ;;  %v3232_v26 = vand.u32 2147483647, %v12658_v62 }
 0x41e   : > { %6388 = vst [vmem:[%s9309_s25 + $0x15f] sm:$0x1] %v6153_v46  ;;  %v12806_v48 = vmul.f32 %v12719_v8, %v6151_v42  ;;  %v12810_v25 = vmul.f32 %v12745_v16, %v12684_v5  ;;  %v2415_v41 = vrot.slane %v12687_v6, 6  ;;  %v3225_v50 = vsub.f32 1.0, %v3224_v12  ;;  %vm3216_vm11 = vmor %vm3214_vm9, %vm3215_vm10  ;;  %v12892_v2 = vld [vmem:[%s8065_s30 + $0x160] sm:$0xf] }
 0x41f   : > { %2646 = vst [vmem:[%s9309_s25 + $0x164] sm:$0x1] %v2410_v38  ;;  %v12817_v30 = vmul.f32 %v12729_v9, %v6152_v14  ;;  %v12820_v18 = vmul.f32 %v12756_v37, %v6147_v32  ;;  %v2416_v11 = vrot.slane %v12687_v6, 7  ;;  %v3213_v4 = vadd.f32 %v12689_v60, %v3212_v20  ;;  %v12888_v14 = vpop.xlane.xlu1 %4433  ;;  %v12899_v12 = vld [vmem:[%s8065_s30 + $0x164] sm:$0xf] }
 0x420   : > { %15118 = vst [vmem:[#allocation44_spill] sm:$0xff] %v12806_v48  ;;  %v12828_v53 = vmul.f32 %v12737_v58, %v6153_v46  ;;  %v12833_v7 = vmul.f32 %v12769_v63, %v6148_v43  ;;  %v12838_v39 = vmul.f32 %v12777_v55, %v6149_v51  ;;  %v3226_v57 = vmul.f32 %v12698_v28, %v3225_v50  ;;  %v15128_v43 = vld [vmem:[#allocation15_spill] sm:$0xff]  ;;  %v12951_v46 = vld [vmem:[%s8065_s30 + $0x174] sm:$0xf] }
 0x421   : > { %15119 = vst [vmem:[#allocation45_spill] sm:$0xff] %v12810_v25  ;;  %v3217_v10 = vsel %vm3216_vm11, %v12689_v60, %v3213_v4  ;;  %vm3219_vm12 = vcmp.eq.f32.partialorder %v3218_v27, 8.507059e+37  ;;  %vm3228_vm13 = vweird.f32 %v12658_v62  ;;  %vm3229_vm14 = vweird.f32 %v12698_v28  ;;  %v12908_v20 = vld [vmem:[%s8065_s30 + $0x168] sm:$0xf]  ;;  %v12978_v60 = vpop.xlane.xlu2 %4435 }
 0x422   : > { %2647 = vst [vmem:[%s9309_s25 + $0x168] sm:$0x1] %v2411_v31  ;;  %v12857_v52 = vmul.f32 %v12785_v54, %v6150_v3  ;;  %v3222_v36 = vsel %vm3219_vm12, %v3221_v59, %v3217_v10  ;;  %vm12863_vm15 = vcmp.eq.f32.partialorder %v3232_v26, 8.507059e+37  ;;  %v3227_v29 = vadd.f32 %v12698_v28, %v3226_v57  ;;  %v12880_v3 = vpop.xlane.xlu0 %5811  ;;  %vm12921_vm0 = vmor %vm3228_vm13, %vm3229_vm14  ;;  %v12935_v10 = vld [vmem:[%s8065_s30 + $0x16c] sm:$0xf] }
 0x423   : > { %15120 = vst [vmem:[#allocation46_spill] sm:$0xff] %v12817_v30  ;;  %v12874_v51 = vmul.f32 %v15128_v43, %v3222_v36  ;;  %v3234_v35 = vand.u32 2147483648, %v12658_v62  ;;  %v12896_v34 = vmul.f32 %v12892_v2, %v12687_v6  ;;  %v12904_v27 = vmul.f32 %v12899_v12, %v2410_v38  ;;  %v12943_v43 = vld [vmem:[%s8065_s30 + $0x170] sm:$0xf]  ;;  %v12960_v38 = vld [vmem:[%s8065_s30 + $0x178] sm:$0xf] }
 0x424   : > { %15121 = vst [vmem:[#allocation47_spill] sm:$0xff] %v12820_v18  ;;  %v12913_v26 = vmul.f32 %v12908_v20, %v2411_v31  ;;  %7798 = vrcp.f32 %v12880_v3  ;;  %v5986_v4 = vand.u32 2147483648, %v12880_v3  ;;  %v3231_v62 = vsel %vm12921_vm0, %v12698_v28, %v3227_v29 }
 0x425   : > { %2648 = vst [vmem:[%s9309_s25 + $0x16c] sm:$0x1] %v2412_v0  ;;  %v3395_v33 = vrot.slane %v12874_v51, 1  ;;  %v3396_v13 = vrot.slane %v12874_v51, 2  ;;  %v3397_v42 = vrot.slane %v12874_v51, 3  ;;  %v3398_v59 = vrot.slane %v12874_v51, 4 }
 0x426   : > { %15122 = vst [vmem:[#allocation48_spill] sm:$0xff] %v12828_v53  ;;  %v3399_v50 = vrot.slane %v12874_v51, 5  ;;  %v3400_v31 = vrot.slane %v12874_v51, 6  ;;  %v3401_v57 = vrot.slane %v12874_v51, 7  ;;  %7800 = vrcp.f32 %v12888_v14 }
 0x427   : > { %15123 = vst [vmem:[#allocation4_spill] sm:$0xff] %v12833_v7  ;;  %v12940_v36 = vmul.f32 %v12935_v10, %v2412_v0  ;;  %v12948_v19 = vmul.f32 %v12943_v43, %v2413_v15  ;;  %v12956_v28 = vmul.f32 %v12951_v46, %v2414_v22  ;;  %v3235_v29 = vor.u32 1.1754944e-38, %v3234_v35 }
 0x428   : > { %15124 = vst [vmem:[#allocation6_spill] sm:$0xff] %v12838_v39  ;;  %v12965_v0 = vmul.f32 %v12960_v38, %v2415_v41  ;;  %v4594_v35 = vand.u32 2147483647, %v12888_v14  ;;  %v3776_v47 = vmul.f32 %v12745_v16, %v3396_v13  ;;  %v3777_v5 = vmul.f32 %v12756_v37, %v3397_v42 }
 0x429   : > { %2649 = vst [vmem:[%s9309_s25 + $0x170] sm:$0x1] %v2413_v15  ;;  %v12973_v15 = vmul.f32 %v12968_v23, %v2416_v11  ;;  %v3236_v6 = vsel %vm12863_vm15, %v3235_v29, %v3231_v62  ;;  %v3778_v32 = vmul.f32 %v12769_v63, %v3398_v59  ;;  %v3779_v40 = vmul.f32 %v12777_v55, %v3399_v50 }
 0x42a   : > { %2650 = vst [vmem:[%s9309_s25 + $0x174] sm:$0x1] %v2414_v22  ;;  %v5984_v22 = vand.u32 2147483647, %v12880_v3  ;;  %v12991_v48 = vmul.f32 %v15131_v56, %v3236_v6  ;;  %v12995_v39 = vpop.eup %7798  ;;  %7802 = vrcp.f32 %v12978_v60  ;;  %v3780_v56 = vmul.f32 %v12785_v54, %v3400_v31 }
 0x42b   : > { %15125 = vst [vmem:[#allocation2_spill] sm:$0xff] %v12857_v52  ;;  %v12993_v52 = vor.u32 1.1754944e-38, %v5986_v4  ;;  %v4033_v62 = vrot.slane %v3777_v5, 1  ;;  %v4034_v30 = vrot.slane %v3778_v32, 1  ;;  %vm5980_vm8 = vweird.f32 %v12880_v3  ;;  %v15137_v32 = vld [vmem:[#allocation21_spill] sm:$0xff] }
 0x42c   : > { %2651 = vst [vmem:[%s9309_s25 + $0x178] sm:$0x1] %v2415_v41  ;;  %v3774_v41 = vmul.f32 %v12729_v9, %v12874_v51  ;;  %v3403_v4 = vrot.slane %v12991_v48, 2  ;;  %v3405_v29 = vrot.slane %v12991_v48, 4  ;;  %v3406_v7 = vrot.slane %v12991_v48, 5 }
 0x42d   : > { %2652 = vst [vmem:[%s9309_s25 + $0x17c] sm:$0x1] %v2416_v11  ;;  %v3773_v11 = vmul.f32 %v12719_v8, %v3401_v57  ;;  %v4035_v18 = vrot.slane %v3779_v40, 1  ;;  %v3407_v25 = vrot.slane %v12991_v48, 6  ;;  %vm13024_vm9 = vcmp.eq.f32.partialorder %v5984_v22, 8.507059e+37 }
 0x42e   : > { %3629 = vst [vmem:[%s9309_s25 + $0x141] sm:$0x1] %v12874_v51  ;;  %v12999_v51 = vmul.f32 %v12737_v58, %v3395_v33  ;;  %vm4590_vm10 = vweird.f32 %v12888_v14  ;;  %vm13041_vm11 = vcmp.eq.f32.partialorder %v4594_v35, 8.507059e+37  ;;  %v13049_v40 = vadd.f32 %v4033_v62, %v12761_v45 }
 0x42f   : > { %3630 = vst [vmem:[%s9309_s25 + $0x145] sm:$0x1] %v3395_v33  ;;  %v4030_v33 = vrot.slane %v3774_v41, 1  ;;  %v4029_v6 = vrot.slane %v3773_v11, 1  ;;  %v3408_v41 = vrot.slane %v12991_v48, 7  ;;  %v3784_v35 = vmul.f32 %v12935_v10, %v3403_v4 }
 0x430   : > { %3631 = vst [vmem:[%s9309_s25 + $0x149] sm:$0x1] %v3396_v13  ;;  %v4596_v13 = vand.u32 2147483648, %v12888_v14  ;;  %v4031_v9 = vrot.slane %v12999_v51, 1  ;;  %v13052_v51 = vadd.f32 %v4034_v30, %v12774_v17  ;;  %vm5981_vm12 = vweird.f32 %v12995_v39 }
 0x431   : > { %3632 = vst [vmem:[%s9309_s25 + $0x14d] sm:$0x1] %v3397_v42  ;;  %v13004_v42 = vpop.eup %7800  ;;  %v13035_v8 = vadd.f32 %v4030_v33, %v12734_v44  ;;  %v13046_v11 = vadd.f32 %v4029_v6, %v12723_v21  ;;  %v3786_v30 = vmul.f32 %v12951_v46, %v3405_v29  ;;  %v3788_v62 = vmul.f32 %v12968_v23, %v3407_v25  ;;  %vm5982_vm14 = vmor %vm5980_vm8, %vm5981_vm12 }
 0x432   : > { %3633 = vst [vmem:[%s9309_s25 + $0x151] sm:$0x1] %v3398_v59  ;;  %v3402_v59 = vrot.slane %v12991_v48, 1  ;;  %v4586_v5 = vmul.f32 %v13004_v42, %v12888_v14  ;;  %v13031_v53 = vpop.eup %7802  ;;  %vm4591_vm13 = vweird.f32 %v13004_v42  ;;  %vm4604_vm8 = vweird.f32 %v12978_v60 }
 0x433   : > { %3634 = vst [vmem:[%s9309_s25 + $0x155] sm:$0x1] %v3399_v50  ;;  %v4032_v50 = vrot.slane %v3776_v47, 1  ;;  %v4597_v47 = vor.u32 1.1754944e-38, %v4596_v13  ;;  %v4036_v13 = vrot.slane %v3780_v56, 1  ;;  %v13056_v56 = vadd.f32 %v4035_v18, %v12782_v1  ;;  %vm4592_vm15 = vmor %vm4590_vm10, %vm4591_vm13 }
 0x434   : > { %3635 = vst [vmem:[%s9309_s25 + $0x159] sm:$0x1] %v3400_v31  ;;  %v5976_v31 = vmul.f32 %v12995_v39, %v12880_v3  ;;  %v4587_v33 = vsub.f32 1.0, %v4586_v5  ;;  %v3783_v21 = vmul.f32 %v12908_v20, %v3402_v59  ;;  %v4600_v17 = vmul.f32 %v13031_v53, %v12978_v60 }
 0x435   : > { %3636 = vst [vmem:[%s9309_s25 + $0x15d] sm:$0x1] %v3401_v57  ;;  %v3404_v57 = vrot.slane %v12991_v48, 3  ;;  %v13038_v22 = vadd.f32 %v4032_v50, %v12750_v61  ;;  %v3782_v61 = vmul.f32 %v12899_v12, %v12991_v48  ;;  %vm4605_vm0 = vweird.f32 %v13031_v53 }
 0x436   : > { %3637 = vst [vmem:[%s9309_s25 + $0x161] sm:$0x1] %v12991_v48  ;;  %v5977_v44 = vsub.f32 1.0, %v5976_v31  ;;  %v4588_v18 = vmul.f32 %v13004_v42, %v4587_v33  ;;  %v13073_v48 = vadd.f32 %v4036_v13, %v12790_v49  ;;  %v4040_v31 = vrot.slane %v3784_v35, 1  ;;  %v15136_v35 = vld [vmem:[#allocation22_spill] sm:$0xff]  ;;  %vm4606_vm10 = vmor %vm4604_vm8, %vm4605_vm0 }
 0x437   : > { %3638 = vst [vmem:[%s9309_s25 + $0x165] sm:$0x1] %v3402_v59  ;;  %v3785_v1 = vmul.f32 %v12943_v43, %v3404_v57  ;;  %v3781_v59 = vmul.f32 %v12892_v2, %v3408_v41  ;;  %v4038_v6 = vrot.slane %v3782_v61, 1  ;;  %v13084_v49 = vadd.f32 %v4031_v9, %v12742_v24 }
 0x438   : > { %3639 = vst [vmem:[%s9309_s25 + $0x169] sm:$0x1] %v3403_v4  ;;  %v5978_v45 = vmul.f32 %v12995_v39, %v5977_v44  ;;  %v3787_v4 = vmul.f32 %v12960_v38, %v3406_v7  ;;  %v4044_v24 = vrot.slane %v3788_v62, 1  ;;  %v13101_v33 = vadd.f32 %v4040_v31, %v12940_v36 }
 0x439   : > { %3640 = vst [vmem:[%s9309_s25 + $0x16d] sm:$0x1] %v3404_v57  ;;  %v4589_v57 = vadd.f32 %v13004_v42, %v4588_v18  ;;  %v4037_v44 = vrot.slane %v3781_v59, 1  ;;  %v13098_v14 = vadd.f32 %v4038_v6, %v12904_v27  ;;  %v13112_v27 = vpop.xlane.xlu0 %3061 }
 0x43a   : > { %3641 = vst [vmem:[%s9309_s25 + $0x171] sm:$0x1] %v3405_v29  ;;  %v5979_v50 = vadd.f32 %v12995_v39, %v5978_v45  ;;  %v4039_v29 = vrot.slane %v3783_v21, 1  ;;  %v4043_v61 = vrot.slane %v3787_v4, 1  ;;  %v13134_v4 = vadd.f32 %v4044_v24, %v12973_v15 }
 0x43b   : > { %3642 = vst [vmem:[%s9309_s25 + $0x175] sm:$0x1] %v3406_v7  ;;  %v4601_v7 = vsub.f32 1.0, %v4600_v17  ;;  %v4593_v13 = vsel %vm4592_vm15, %v13004_v42, %v4589_v57  ;;  %7804 = vrcp.f32 %v13112_v27 }
 0x43c   : > { %3643 = vst [vmem:[%s9309_s25 + $0x179] sm:$0x1] %v3407_v25  ;;  %v5983_v5 = vsel %vm5982_vm14, %v12995_v39, %v5979_v50  ;;  %v4042_v25 = vrot.slane %v3786_v30, 1  ;;  %v4598_v9 = vsel %vm13041_vm11, %v4597_v47, %v4593_v13  ;;  %v13123_v30 = vadd.f32 %v4037_v44, %v12896_v34 }
 0x43d   : > { %3644 = vst [vmem:[%s9309_s25 + $0x17d] sm:$0x1] %v3408_v41  ;;  %v4041_v41 = vrot.slane %v3785_v1, 1  ;;  %v5988_v3 = vsel %vm13024_vm9, %v12993_v52, %v5983_v5  ;;  %v13104_v52 = vmul.f32 %v15137_v32, %v4598_v9  ;;  %v4602_v47 = vmul.f32 %v13031_v53, %v4601_v7  ;;  %v15139_v32 = vld [vmem:[#allocation43_spill] sm:$0xff] }
 0x43e   : > { %v13093_v39 = vmul.f32 %v15136_v35, %v5988_v3  ;;  %v13126_v18 = vadd.f32 %v4042_v25, %v12956_v28  ;;  %v13129_v59 = vadd.f32 %v4043_v61, %v12965_v0  ;;  %v13140_v50 = vadd.f32 %v4039_v29, %v12913_v26 }
 0x43f   : > { %v13115_v36 = vadd.f32 %v4041_v41, %v12948_v19  ;;  %5005 = vst [vmem:[%s9309_s25 + $0x142] sm:$0x1] %v13104_v52  ;;  %v15138_v34 = vand.u32 2147483648, %v12978_v60  ;;  %v13155_v15 = vadd.f32 %v13031_v53, %v4602_v47  ;;  %v4771_v29 = vrot.slane %v13104_v52, 1 }
 0x440   : > { %v6154_v42 = vrot.slane %v13093_v39, 1  ;;  %v6155_v21 = vrot.slane %v13093_v39, 2  ;;  %v6156_v54 = vrot.slane %v13093_v39, 3  ;;  %6389 = vst [vmem:[%s9309_s25 + $0x163] sm:$0x1] %v13093_v39  ;;  %v6157_v45 = vrot.slane %v13093_v39, 4 }
 0x441   : > { %v6159_v17 = vrot.slane %v13093_v39, 6  ;;  %v6160_v1 = vrot.slane %v13093_v39, 7  ;;  %v6158_v19 = vrot.slane %v13093_v39, 5  ;;  %v13144_v28 = vor.u32 1.1754944e-38, %v15138_v34  ;;  %v13192_v47 = vpop.eup %7804  ;;  %5006 = vst [vmem:[%s9309_s25 + $0x146] sm:$0x1] %v4771_v29 }
 0x442   : > { %6390 = vst [vmem:[%s9309_s25 + $0x167] sm:$0x1] %v6154_v42  ;;  %v13152_v0 = vmul.f32 %v12935_v10, %v13093_v39  ;;  %v13169_v57 = vmul.f32 %v12943_v43, %v6154_v42  ;;  %v4772_v5 = vrot.slane %v13104_v52, 2  ;;  %v4773_v7 = vrot.slane %v13104_v52, 3  ;;  %v13258_v39 = vpop.xlane.xlu2 %2071 }
 0x443   : > { %6391 = vst [vmem:[%s9309_s25 + $0x16b] sm:$0x1] %v6155_v21  ;;  %v13163_v6 = vmul.f32 %v12899_v12, %v6159_v17  ;;  %v13166_v31 = vmul.f32 %v12908_v20, %v6160_v1  ;;  %v4774_v41 = vrot.slane %v13104_v52, 4  ;;  %v4775_v25 = vrot.slane %v13104_v52, 5 }
 0x444   : > { %6392 = vst [vmem:[%s9309_s25 + $0x16f] sm:$0x1] %v6156_v54  ;;  %v4776_v3 = vrot.slane %v13104_v52, 6  ;;  %v4777_v13 = vrot.slane %v13104_v52, 7  ;;  %v5151_v44 = vmul.f32 %v12737_v58, %v13104_v52  ;;  %v5152_v61 = vmul.f32 %v12745_v16, %v4771_v29  ;;  %v15141_v52 = vld [vmem:[#allocation42_spill] sm:$0xff] }
 0x445   : > { %6393 = vst [vmem:[%s9309_s25 + $0x173] sm:$0x1] %v6157_v45  ;;  %v5153_v35 = vmul.f32 %v12756_v37, %v4772_v5  ;;  %v5154_v9 = vmul.f32 %v12769_v63, %v4773_v7  ;;  %v5155_v24 = vmul.f32 %v12777_v55, %v4774_v41  ;;  %v5156_v42 = vmul.f32 %v15139_v32, %v4775_v25 }
 0x446   : > { %6394 = vst [vmem:[%s9309_s25 + $0x177] sm:$0x1] %v6158_v19  ;;  %v5150_v16 = vmul.f32 %v15141_v52, %v4777_v13  ;;  %v5407_v34 = vrot.slane %v5151_v44, 2  ;;  %v5408_v26 = vrot.slane %v5152_v61, 2  ;;  %7806 = vrcp.f32 %v13258_v39 }
 0x447   : > { %6395 = vst [vmem:[%s9309_s25 + $0x17b] sm:$0x1] %v6159_v17  ;;  %v15140_v17 = vld [vmem:[#allocation41_spill] sm:$0xff]  ;;  %v5409_v63 = vrot.slane %v5153_v35, 2  ;;  %v5410_v55 = vrot.slane %v5154_v9, 2  ;;  %v5411_v32 = vrot.slane %v5155_v24, 2  ;;  %vm3242_vm11 = vweird.f32 %v13112_v27 }
 0x448   : > { %6396 = vst [vmem:[%s9309_s25 + $0x17f] sm:$0x1] %v6160_v1  ;;  %v5149_v58 = vmul.f32 %v15140_v17, %v4776_v3  ;;  %v15142_v1 = vand.u32 2147483647, %v12978_v60  ;;  %v5412_v62 = vrot.slane %v5156_v42, 2  ;;  %v5406_v17 = vrot.slane %v5150_v16, 2 }
 0x449   : > { %5007 = vst [vmem:[%s9309_s25 + $0x14a] sm:$0x1] %v4772_v5  ;;  %v5663_v52 = vadd.f32 %v5407_v34, %v13084_v49  ;;  %v5664_v44 = vadd.f32 %v5408_v26, %v13038_v22  ;;  %v5665_v61 = vadd.f32 %v5409_v63, %v13049_v40  ;;  %v5667_v5 = vadd.f32 %v5411_v32, %v13056_v56  ;;  %v15145_v26 = vld [vmem:[#allocation48_spill] sm:$0xff]  ;;  %v15147_v56 = vld [vmem:[#allocation45_spill] sm:$0xff]  ;;  %v15149_v9 = vld [vmem:[#allocation47_spill] sm:$0xff] }
 0x44a   : > { %vm13199_vm9 = vcmp.eq.f32.partialorder %v15142_v1, 8.507059e+37  ;;  %5008 = vst [vmem:[%s9309_s25 + $0x14e] sm:$0x1] %v4773_v7  ;;  %v5405_v29 = vrot.slane %v5149_v58, 2  ;;  %v5666_v1 = vadd.f32 %v5410_v55, %v13052_v51  ;;  %v5668_v35 = vadd.f32 %v5412_v62, %v13073_v48  ;;  %v15155_v34 = vld [vmem:[#allocation6_spill] sm:$0xff] }
 0x44b   : > { %5009 = vst [vmem:[%s9309_s25 + $0x152] sm:$0x1] %v4774_v41  ;;  %v13215_v7 = vmul.f32 %v12951_v46, %v6155_v21  ;;  %v5662_v22 = vadd.f32 %v5406_v17, %v13035_v8  ;;  %v15146_v41 = vrot.slane %v15145_v26, 3  ;;  %v13225_v51 = vmul.f32 %v12960_v38, %v6156_v54  ;;  %v13264_v26 = vpop.xlane.xlu1 %2069 }
 0x44c   : > { %5010 = vst [vmem:[%s9309_s25 + $0x156] sm:$0x1] %v4775_v25  ;;  %v5661_v49 = vadd.f32 %v5405_v29, %v13046_v11  ;;  %v15148_v48 = vrot.slane %v15147_v56, 3  ;;  %v15150_v21 = vrot.slane %v15149_v9, 3  ;;  %v15151_v25 = vld [vmem:[#allocation4_spill] sm:$0xff]  ;;  %v13237_v8 = vmul.f32 %v12892_v2, %v6158_v19  ;;  %v15157_v19 = vld [vmem:[#allocation2_spill] sm:$0xff] }
 0x44d   : > { %v7039_v40 = vadd.f32 %v15146_v41, %v5663_v52  ;;  %5011 = vst [vmem:[%s9309_s25 + $0x15a] sm:$0x1] %v4776_v3  ;;  %v15152_v42 = vrot.slane %v15151_v25, 3  ;;  %v13242_v54 = vmul.f32 %v12968_v23, %v6157_v45  ;;  %v15153_v3 = vld [vmem:[#allocation46_spill] sm:$0xff]  ;;  %v15156_v63 = vrot.slane %v15155_v34, 3  ;;  %v15159_v45 = vld [vmem:[#allocation44_spill] sm:$0xff] }
 0x44e   : > { %v7040_v62 = vadd.f32 %v15148_v48, %v5664_v44  ;;  %v7041_v24 = vadd.f32 %v15150_v21, %v5665_v61  ;;  %5012 = vst [vmem:[%s9309_s25 + $0x15e] sm:$0x1] %v4777_v13  ;;  %v15154_v58 = vrot.slane %v15153_v3, 3  ;;  %v6790_v32 = vrot.slane %v13163_v6, 3  ;;  %v15161_v21 = vld [vmem:[#allocation23_spill] sm:$0xff] }
 0x44f   : > { %v7042_v11 = vadd.f32 %v15152_v42, %v5666_v1  ;;  %v7043_v55 = vadd.f32 %v15156_v63, %v5667_v5  ;;  %v6791_v29 = vrot.slane %v13166_v31, 3  ;;  %v6792_v17 = vrot.slane %v13152_v0, 3 }
 0x450   : > { %v7038_v16 = vadd.f32 %v15154_v58, %v5662_v22  ;;  %v15158_v52 = vrot.slane %v15157_v19, 3  ;;  %v15160_v13 = vrot.slane %v15159_v45, 3  ;;  %v7355_v5 = vrot.slane %v7039_v40, 6  ;;  %v13288_v45 = vpop.eup %7806 }
 0x451   : > { %v4607_v22 = vsel %vm4606_vm10, %v13031_v53, %v13155_v15  ;;  %v7357_v41 = vrot.slane %v7040_v62, 5  ;;  %v7361_v56 = vrot.slane %v7042_v11, 3  ;;  %v7363_v9 = vrot.slane %v7043_v55, 2 }
 0x452   : > { %v7044_v44 = vadd.f32 %v15158_v52, %v5668_v35  ;;  %v7037_v61 = vadd.f32 %v15160_v13, %v5661_v49  ;;  %v7353_v1 = vrot.slane %v7038_v16, 7  ;;  %v7359_v35 = vrot.slane %v7041_v24, 4 }
 0x453   : > { %v4612_v60 = vsel %vm13199_vm9, %v13144_v28, %v4607_v22  ;;  %v3238_v40 = vmul.f32 %v13192_v47, %v13112_v27  ;;  %7808 = vrcp.f32 %v13264_v26  ;;  %vm3243_vm12 = vweird.f32 %v13192_v47 }
 0x454   : > { %v7354_v48 = vsel %vm1570_vm1, %v7353_v1, %v7037_v61  ;;  %v4680_v49 = vmul.f32 %v15161_v21, %v4612_v60  ;;  %v7365_v15 = vrot.slane %v7044_v44, 1  ;;  %v15162_v6 = vand.u32 2147483648, %v13112_v27  ;;  %vm3244_vm13 = vmor %vm3242_vm11, %vm3243_vm12 }
 0x455   : > { %v7356_v53 = vsel %vm1572_vm2, %v7355_v5, %v7354_v48  ;;  %v3239_v60 = vsub.f32 1.0, %v3238_v40  ;;  %v2260_v0 = vmul.f32 %v13288_v45, %v13258_v39  ;;  %vm2265_vm15 = vweird.f32 %v13288_v45 }
 0x456   : > { %v7358_v37 = vsel %vm1574_vm3, %v7357_v41, %v7356_v53  ;;  %v4778_v28 = vrot.slane %v4680_v49, 1  ;;  %v4779_v62 = vrot.slane %v4680_v49, 2  ;;  %v4780_v24 = vrot.slane %v4680_v49, 3  ;;  %5013 = vst [vmem:[%s9309_s25 + $0x162] sm:$0x1] %v4680_v49 }
 0x457   : > { %v7360_v25 = vsel %vm1576_vm4, %v7359_v35, %v7358_v37  ;;  %v4781_v42 = vrot.slane %v4680_v49, 4  ;;  %v4782_v11 = vrot.slane %v4680_v49, 5  ;;  %v4783_v3 = vrot.slane %v4680_v49, 6 }
 0x458   : > { %v7362_v58 = vsel %vm1578_vm5, %v7361_v56, %v7360_v25  ;;  %v4784_v16 = vrot.slane %v4680_v49, 7  ;;  %5014 = vst [vmem:[%s9309_s25 + $0x166] sm:$0x1] %v4778_v28  ;;  %v5159_v34 = vmul.f32 %v12908_v20, %v4680_v49  ;;  %v5160_v63 = vmul.f32 %v12935_v10, %v4778_v28 }
 0x459   : > { %v7364_v55 = vsel %vm1580_vm6, %v7363_v9, %v7362_v58  ;;  %5015 = vst [vmem:[%s9309_s25 + $0x16a] sm:$0x1] %v4779_v62  ;;  %v5157_v19 = vmul.f32 %v12892_v2, %v4783_v3  ;;  %v5161_v52 = vmul.f32 %v12943_v43, %v4779_v62  ;;  %v5162_v44 = vmul.f32 %v12951_v46, %v4780_v24  ;;  %v13295_v1 = vpop.eup %7808 }
 0x45a   : > { %v7366_v13 = vsel %vm1582_vm7, %v7365_v15, %v7364_v55  ;;  %5016 = vst [vmem:[%s9309_s25 + $0x16e] sm:$0x1] %v4780_v24  ;;  %v5158_v20 = vmul.f32 %v12899_v12, %v4784_v16  ;;  %v5163_v10 = vmul.f32 %v12960_v38, %v4781_v42  ;;  %v5164_v61 = vmul.f32 %v12968_v23, %v4782_v11  ;;  %v15164_v55 = vld [vmem:[#allocation24_spill] sm:$0xff] }
 0x45b   : > { %7463 = vst [vmem:[%s9759_s27 + $0x50] sm:$0xff] %v7366_v13  ;;  %v5413_v2 = vrot.slane %v5157_v19, 2  ;;  %v5415_v43 = vrot.slane %v5159_v34, 2  ;;  %v5416_v5 = vrot.slane %v5160_v63, 2  ;;  %v5417_v46 = vrot.slane %v5161_v52, 2  ;;  %v13339_v34 = vpop.xlane.xlu0 %4437 }
 0x45c   : > { %5017 = vst [vmem:[%s9309_s25 + $0x172] sm:$0x1] %v4781_v42  ;;  %v5414_v22 = vrot.slane %v5158_v20, 2  ;;  %v5418_v41 = vrot.slane %v5162_v44, 2  ;;  %v5419_v35 = vrot.slane %v5163_v10, 2  ;;  %v5420_v12 = vrot.slane %v5164_v61, 2 }
 0x45d   : > { %5018 = vst [vmem:[%s9309_s25 + $0x176] sm:$0x1] %v4782_v11  ;;  %v5671_v38 = vadd.f32 %v5415_v43, %v13140_v50  ;;  %v5672_v23 = vadd.f32 %v5416_v5, %v13101_v33  ;;  %v5673_v56 = vadd.f32 %v5417_v46, %v13115_v36  ;;  %v5669_v48 = vadd.f32 %v5413_v2, %v13123_v30 }
 0x45e   : > { %5019 = vst [vmem:[%s9309_s25 + $0x17a] sm:$0x1] %v4783_v3  ;;  %v5670_v9 = vadd.f32 %v5414_v22, %v13098_v14  ;;  %v5674_v21 = vadd.f32 %v5418_v41, %v13126_v18  ;;  %v5675_v49 = vadd.f32 %v5419_v35, %v13129_v59  ;;  %v6793_v53 = vrot.slane %v13169_v57, 3 }
 0x45f   : > { %v6794_v15 = vrot.slane %v13215_v7, 3  ;;  %v6795_v50 = vrot.slane %v13225_v51, 3  ;;  %5020 = vst [vmem:[%s9309_s25 + $0x17e] sm:$0x1] %v4784_v16  ;;  %v7047_v33 = vadd.f32 %v6791_v29, %v5671_v38  ;;  %v6789_v36 = vrot.slane %v13237_v8, 3 }
 0x460   : > { %v5676_v30 = vadd.f32 %v5420_v12, %v13134_v4  ;;  %v7046_v14 = vadd.f32 %v6790_v32, %v5670_v9  ;;  %v7048_v18 = vadd.f32 %v6792_v17, %v5672_v23  ;;  %v6796_v59 = vrot.slane %v13242_v54, 3 }
 0x461   : > { %v7049_v57 = vadd.f32 %v6793_v53, %v5673_v56  ;;  %v3240_v7 = vmul.f32 %v13192_v47, %v3239_v60  ;;  %v7045_v51 = vadd.f32 %v6789_v36, %v5669_v48  ;;  %v7050_v31 = vadd.f32 %v6794_v15, %v5674_v21  ;;  %v13387_v36 = vld [vmem:[%s8065_s30 + $0x184] sm:$0xf] }
 0x462   : > { %v7051_v29 = vadd.f32 %v6795_v50, %v5675_v49  ;;  %v7367_v40 = vrot.slane %v7046_v14, 7  ;;  %v7369_v8 = vrot.slane %v7047_v33, 6  ;;  %v3249_v32 = vor.u32 1.1754944e-38, %v15162_v6  ;;  %v13384_v33 = vpop.xlane.xlu2 %3065 }
 0x463   : > { %v3241_v4 = vadd.f32 %v13192_v47, %v3240_v7  ;;  %v7052_v17 = vadd.f32 %v6796_v59, %v5676_v30  ;;  %v7371_v37 = vrot.slane %v7048_v18, 5  ;;  %v2246_v28 = vmul.f32 %v13295_v1, %v13264_v26  ;;  %v15165_v30 = vld [vmem:[#allocation29_spill] sm:$0xff]  ;;  %v13400_v59 = vld [vmem:[%s8065_s30 + $0x188] sm:$0xf]  ;;  %v13406_v7 = vld [vmem:[%s8065_s30 + $0x18c] sm:$0xf] }
 0x464   : > { %v7368_v54 = vsel %vm1570_vm1, %v7367_v40, %v7045_v51  ;;  %v7373_v24 = vrot.slane %v7049_v57, 4  ;;  %v15163_v42 = vand.u32 2147483647, %v13112_v27  ;;  %v7375_v3 = vrot.slane %v7050_v31, 3  ;;  %v13412_v31 = vld [vmem:[%s8065_s30 + $0x190] sm:$0xf] }
 0x465   : > { %v7370_v62 = vsel %vm1572_vm2, %v7369_v8, %v7368_v54  ;;  %v3245_v25 = vsel %vm3244_vm13, %v13192_v47, %v3241_v4  ;;  %v7377_v58 = vrot.slane %v7051_v29, 2  ;;  %v2261_v52 = vsub.f32 1.0, %v2260_v0  ;;  %v13418_v40 = vld [vmem:[%s8065_s30 + $0x194] sm:$0xf]  ;;  %v13423_v4 = vpop.xlane.xlu1 %5813 }
 0x466   : > { %vm3247_vm14 = vcmp.eq.f32.partialorder %v15163_v42, 8.507059e+37  ;;  %v7372_v11 = vsel %vm1574_vm3, %v7371_v37, %v7370_v62  ;;  %v2247_v44 = vsub.f32 1.0, %v2246_v28  ;;  %v7379_v47 = vrot.slane %v7052_v17, 1  ;;  %v13432_v17 = vld [vmem:[%s8065_s30 + $0x198] sm:$0xf] }
 0x467   : > { %v3250_v16 = vsel %vm3247_vm14, %v3249_v32, %v3245_v25  ;;  %v7374_v63 = vsel %vm1576_vm4, %v7373_v24, %v7372_v11  ;;  %7810 = vrcp.f32 %v13339_v34  ;;  %v2262_v5 = vmul.f32 %v13288_v45, %v2261_v52  ;;  %v13438_v37 = vld [vmem:[%s8065_s30 + $0x19c] sm:$0xf]  ;;  %v13447_v25 = vld [vmem:[%s8065_s30 + $0x180] sm:$0xf] }
 0x468   : > { %v13343_v19 = vmul.f32 %v15164_v55, %v3250_v16  ;;  %v7376_v27 = vsel %vm1578_vm5, %v7375_v3, %v7374_v63  ;;  %v2268_v46 = vand.u32 2147483647, %v13258_v39  ;;  %v2248_v22 = vmul.f32 %v13295_v1, %v2247_v44 }
 0x469   : > { %v7378_v13 = vsel %vm1580_vm6, %v7377_v58, %v7376_v27  ;;  %v2270_v35 = vand.u32 2147483648, %v13258_v39  ;;  %v2256_v12 = vand.u32 2147483648, %v13264_v26  ;;  %vm2251_vm0 = vweird.f32 %v13295_v1 }
 0x46a   : > { %v3409_v20 = vrot.slane %v13343_v19, 1  ;;  %v3410_v10 = vrot.slane %v13343_v19, 2  ;;  %3645 = vst [vmem:[%s9309_s25 + $0x181] sm:$0x1] %v13343_v19  ;;  %v7380_v61 = vsel %vm1582_vm7, %v7379_v47, %v7378_v13  ;;  %v3411_v2 = vrot.slane %v13343_v19, 3 }
 0x46b   : > { %7464 = vst [vmem:[%s9759_s27 + $0x58] sm:$0xff] %v7380_v61  ;;  %v3412_v43 = vrot.slane %v13343_v19, 4  ;;  %v3413_v41 = vrot.slane %v13343_v19, 5  ;;  %v3414_v38 = vrot.slane %v13343_v19, 6  ;;  %v2254_v23 = vand.u32 2147483647, %v13264_v26 }
 0x46c   : > { %3646 = vst [vmem:[%s9309_s25 + $0x185] sm:$0x1] %v3409_v20  ;;  %v3415_v56 = vrot.slane %v13343_v19, 7  ;;  %vm2264_vm8 = vweird.f32 %v13258_v39  ;;  %v2263_v48 = vadd.f32 %v13288_v45, %v2262_v5  ;;  %v2249_v9 = vadd.f32 %v13295_v1, %v2248_v22 }
 0x46d   : > { %3647 = vst [vmem:[%s9309_s25 + $0x189] sm:$0x1] %v3410_v10  ;;  %v13371_v60 = vpop.eup %7810  ;;  %vm2266_vm9 = vmor %vm2264_vm8, %vm2265_vm15  ;;  %vm2250_vm10 = vweird.f32 %v13264_v26  ;;  %v2271_v21 = vor.u32 1.1754944e-38, %v2270_v35  ;;  %v2257_v49 = vor.u32 1.1754944e-38, %v2256_v12  ;;  %vm2269_vm12 = vcmp.eq.f32.partialorder %v2268_v46, 8.507059e+37 }
 0x46e   : > { %3648 = vst [vmem:[%s9309_s25 + $0x18d] sm:$0x1] %v3411_v2  ;;  %vm2252_vm11 = vmor %vm2250_vm10, %vm2251_vm0  ;;  %v2267_v39 = vsel %vm2266_vm9, %v13288_v45, %v2263_v48  ;;  %vm2255_vm13 = vcmp.eq.f32.partialorder %v2254_v23, 8.507059e+37  ;;  %v4614_v26 = vmul.f32 %v13371_v60, %v13339_v34  ;;  %v13391_v45 = vmul.f32 %v13387_v36, %v13343_v19 }
 0x46f   : > { %3649 = vst [vmem:[%s9309_s25 + $0x191] sm:$0x1] %v3412_v43  ;;  %v2253_v53 = vsel %vm2252_vm11, %v13295_v1, %v2249_v9  ;;  %v2272_v15 = vsel %vm2269_vm12, %v2271_v21, %v2267_v39  ;;  %v15166_v1 = vld [vmem:[#allocation25_spill] sm:$0xff]  ;;  %v13403_v57 = vmul.f32 %v13400_v59, %v3409_v20  ;;  %v13409_v51 = vmul.f32 %v13406_v7, %v3410_v10 }
 0x470   : > { %3650 = vst [vmem:[%s9309_s25 + $0x195] sm:$0x1] %v3413_v41  ;;  %v2258_v50 = vsel %vm2255_vm13, %v2257_v49, %v2253_v53  ;;  %v13394_v14 = vmul.f32 %v15165_v30, %v2272_v15  ;;  %v13415_v29 = vmul.f32 %v13412_v31, %v3411_v2  ;;  %v13421_v8 = vmul.f32 %v13418_v40, %v3412_v43 }
 0x471   : > { %3651 = vst [vmem:[%s9309_s25 + $0x199] sm:$0x1] %v3414_v38  ;;  %v13397_v18 = vmul.f32 %v15166_v1, %v2258_v50  ;;  %7812 = vrcp.f32 %v13384_v33  ;;  %v13435_v54 = vmul.f32 %v13432_v17, %v3413_v41  ;;  %v13441_v28 = vmul.f32 %v13438_v37, %v3414_v38 }
 0x472   : > { %3652 = vst [vmem:[%s9309_s25 + $0x19d] sm:$0x1] %v3415_v56  ;;  %v2424_v6 = vrot.slane %v13394_v14, 1  ;;  %v2425_v32 = vrot.slane %v13394_v14, 2  ;;  %v2426_v0 = vrot.slane %v13394_v14, 3  ;;  %v14735_v62 = vrot.slane %v13394_v14, 4 }
 0x473   : > { %2661 = vst [vmem:[%s9309_s25 + $0x1a0] sm:$0x1] %v13394_v14  ;;  %v4615_v24 = vsub.f32 1.0, %v4614_v26  ;;  %v3789_v42 = vmul.f32 %v13447_v25, %v3415_v56  ;;  %v4046_v11 = vrot.slane %v13391_v45, 1  ;;  %v14734_v3 = vrot.slane %v13394_v14, 5 }
 0x474   : > { %2653 = vst [vmem:[%s9309_s25 + $0x180] sm:$0x1] %v13397_v18  ;;  %7814 = vrcp.f32 %v13423_v4  ;;  %v4047_v58 = vrot.slane %v13403_v57, 1  ;;  %v4048_v16 = vrot.slane %v13409_v51, 1  ;;  %v4049_v63 = vrot.slane %v13415_v29, 1 }
 0x475   : > { %2662 = vst [vmem:[%s9309_s25 + $0x1a4] sm:$0x1] %v2424_v6  ;;  %v14733_v55 = vrot.slane %v13394_v14, 6  ;;  %v14732_v19 = vrot.slane %v13394_v14, 7  ;;  %vm4618_vm14 = vweird.f32 %v13339_v34  ;;  %v4622_v52 = vand.u32 2147483647, %v13339_v34 }
 0x476   : > { %2663 = vst [vmem:[%s9309_s25 + $0x1a8] sm:$0x1] %v2425_v32  ;;  %v4624_v44 = vand.u32 2147483648, %v13339_v34  ;;  %v4050_v27 = vrot.slane %v13421_v8, 1  ;;  %v2417_v47 = vrot.slane %v13397_v18, 1  ;;  %v2418_v13 = vrot.slane %v13397_v18, 2 }
 0x477   : > { %2664 = vst [vmem:[%s9309_s25 + $0x1ac] sm:$0x1] %v2426_v0  ;;  %v4616_v20 = vmul.f32 %v13371_v60, %v4615_v24  ;;  %v13477_v10 = vpop.eup %7812  ;;  %v2419_v61 = vrot.slane %v13397_v18, 3  ;;  %v2420_v2 = vrot.slane %v13397_v18, 4  ;;  %v2421_v43 = vrot.slane %v13397_v18, 5  ;;  %v15169_v8 = vld [vmem:[#allocation26_spill] sm:$0xff] }
 0x478   : > { %2665 = vst [vmem:[%s9309_s25 + $0x1b0] sm:$0x1] %v14735_v62  ;;  %v2422_v5 = vrot.slane %v13397_v18, 6  ;;  %v4045_v46 = vrot.slane %v3789_v42, 1  ;;  %v4051_v22 = vrot.slane %v13435_v54, 1  ;;  %v4052_v41 = vrot.slane %v13441_v28, 1 }
 0x479   : > { %2666 = vst [vmem:[%s9309_s25 + $0x1b4] sm:$0x1] %v14734_v3  ;;  %vm4619_vm15 = vweird.f32 %v13371_v60  ;;  %v2423_v12 = vrot.slane %v13397_v18, 7  ;;  %v2797_v38 = vmul.f32 %v13447_v25, %v13397_v18  ;;  %vm13500_vm0 = vcmp.eq.f32.partialorder %v4622_v52, 8.507059e+37 }
 0x47a   : > { %2667 = vst [vmem:[%s9309_s25 + $0x1b8] sm:$0x1] %v14733_v55  ;;  %v13492_v35 = vpop.eup %7814  ;;  %v4625_v56 = vor.u32 1.1754944e-38, %v4624_v44  ;;  %v2798_v48 = vmul.f32 %v13387_v36, %v2417_v47  ;;  %v2799_v9 = vmul.f32 %v13400_v59, %v2418_v13  ;;  %v4617_v21 = vadd.f32 %v13371_v60, %v4616_v20  ;;  %vm4620_vm8 = vmor %vm4618_vm14, %vm4619_vm15 }
 0x47b   : > { %2668 = vst [vmem:[%s9309_s25 + $0x1bc] sm:$0x1] %v14732_v19  ;;  %v3266_v49 = vmul.f32 %v13477_v10, %v13384_v33  ;;  %v2800_v39 = vmul.f32 %v13406_v7, %v2419_v61  ;;  %v2801_v53 = vmul.f32 %v13412_v31, %v2420_v2  ;;  %v2802_v15 = vmul.f32 %v13418_v40, %v2421_v43 }
 0x47c   : > { %2654 = vst [vmem:[%s9309_s25 + $0x184] sm:$0x1] %v2417_v47  ;;  %v2803_v50 = vmul.f32 %v13432_v17, %v2422_v5  ;;  %v4621_v26 = vsel %vm4620_vm8, %v13371_v60, %v4617_v21  ;;  %v3274_v45 = vand.u32 2147483647, %v13384_v33  ;;  %v3276_v30 = vand.u32 2147483648, %v13384_v33 }
 0x47d   : > { %2655 = vst [vmem:[%s9309_s25 + $0x188] sm:$0x1] %v2418_v13  ;;  %v5990_v1 = vmul.f32 %v13492_v35, %v13423_v4  ;;  %v2804_v18 = vmul.f32 %v13438_v37, %v2423_v12  ;;  %v13527_v57 = vadd.f32 %v4045_v46, %v2797_v38  ;;  %v4626_v34 = vsel %vm13500_vm0, %v4625_v56, %v4621_v26 }
 0x47e   : > { %2656 = vst [vmem:[%s9309_s25 + $0x18c] sm:$0x1] %v2419_v61  ;;  %v5998_v51 = vand.u32 2147483647, %v13423_v4  ;;  %v13533_v60 = vadd.f32 %v4046_v11, %v2798_v48  ;;  %v13535_v29 = vadd.f32 %v4047_v58, %v2799_v9  ;;  %v4681_v54 = vmul.f32 %v15169_v8, %v4626_v34  ;;  %v13548_v11 = vpop.xlane.xlu0 %2073  ;;  %v13552_v61 = vpop.xlane.xlu1 %3063 }
 0x47f   : > { %2657 = vst [vmem:[%s9309_s25 + $0x190] sm:$0x1] %v2420_v2  ;;  %v3267_v28 = vsub.f32 1.0, %v3266_v49  ;;  %vm3270_vm9 = vweird.f32 %v13384_v33  ;;  %v13540_v24 = vadd.f32 %v4048_v16, %v2800_v39  ;;  %v13542_v42 = vadd.f32 %v4049_v63, %v2801_v53 }
 0x480   : > { %2658 = vst [vmem:[%s9309_s25 + $0x194] sm:$0x1] %v2421_v43  ;;  %v13544_v52 = vadd.f32 %v4050_v27, %v2802_v15  ;;  %v13546_v44 = vadd.f32 %v4051_v22, %v2803_v50  ;;  %v4785_v58 = vrot.slane %v4681_v54, 1  ;;  %v4786_v47 = vrot.slane %v4681_v54, 2 }
 0x481   : > { %2659 = vst [vmem:[%s9309_s25 + $0x198] sm:$0x1] %v2422_v5  ;;  %v4787_v13 = vrot.slane %v4681_v54, 3  ;;  %v5991_v20 = vsub.f32 1.0, %v5990_v1  ;;  %vm5994_vm10 = vweird.f32 %v13423_v4  ;;  %v13554_v16 = vadd.f32 %v4052_v41, %v2804_v18 }
 0x482   : > { %2660 = vst [vmem:[%s9309_s25 + $0x19c] sm:$0x1] %v2423_v12  ;;  %v4788_v63 = vrot.slane %v4681_v54, 4  ;;  %v4790_v27 = vrot.slane %v4681_v54, 6  ;;  %vm3271_vm11 = vweird.f32 %v13477_v10  ;;  %v4789_v2 = vrot.slane %v4681_v54, 5 }
 0x483   : > { %5021 = vst [vmem:[%s9309_s25 + $0x182] sm:$0x1] %v4681_v54  ;;  %v4791_v43 = vrot.slane %v4681_v54, 7  ;;  %v3268_v5 = vmul.f32 %v13477_v10, %v3267_v28  ;;  %7816 = vrcp.f32 %v13548_v11  ;;  %v5169_v46 = vmul.f32 %v13412_v31, %v4786_v47  ;;  %vm3272_vm14 = vmor %vm3270_vm9, %vm3271_vm11 }
 0x484   : > { %5022 = vst [vmem:[%s9309_s25 + $0x186] sm:$0x1] %v4785_v58  ;;  %v5170_v22 = vmul.f32 %v13418_v40, %v4787_v13  ;;  %v6000_v41 = vand.u32 2147483648, %v13423_v4  ;;  %7818 = vrcp.f32 %v13552_v61  ;;  %v5167_v12 = vmul.f32 %v13400_v59, %v4681_v54 }
 0x485   : > { %5023 = vst [vmem:[%s9309_s25 + $0x18a] sm:$0x1] %v4786_v47  ;;  %vm13568_vm12 = vcmp.eq.f32.partialorder %v3274_v45, 8.507059e+37  ;;  %v3277_v23 = vor.u32 1.1754944e-38, %v3276_v30  ;;  %v5992_v56 = vmul.f32 %v13492_v35, %v5991_v20  ;;  %v5165_v48 = vmul.f32 %v13447_v25, %v4790_v27 }
 0x486   : > { %5024 = vst [vmem:[%s9309_s25 + $0x18e] sm:$0x1] %v4787_v13  ;;  %v5168_v9 = vmul.f32 %v13406_v7, %v4785_v58  ;;  %v5171_v21 = vmul.f32 %v13432_v17, %v4788_v63  ;;  %vm5995_vm13 = vweird.f32 %v13492_v35  ;;  %v5166_v49 = vmul.f32 %v13387_v36, %v4791_v43 }
 0x487   : > { %5025 = vst [vmem:[%s9309_s25 + $0x192] sm:$0x1] %v4788_v63  ;;  %v5172_v39 = vmul.f32 %v13438_v37, %v4789_v2  ;;  %v3269_v53 = vadd.f32 %v13477_v10, %v3268_v5  ;;  %v2282_v15 = vand.u32 2147483647, %v13548_v11  ;;  %v5425_v50 = vrot.slane %v5169_v46, 2  ;;  %vm13606_vm0 = vmor %vm5994_vm10, %vm5995_vm13  ;;  %v15176_v63 = vld [vmem:[#allocation32_spill] sm:$0xff] }
 0x488   : > { %5026 = vst [vmem:[%s9309_s25 + $0x196] sm:$0x1] %v4789_v2  ;;  %v5426_v26 = vrot.slane %v5170_v22, 2  ;;  %vm13588_vm15 = vcmp.eq.f32.partialorder %v5998_v51, 8.507059e+37  ;;  %v6001_v30 = vor.u32 1.1754944e-38, %v6000_v41  ;;  %v5423_v18 = vrot.slane %v5167_v12, 2 }
 0x489   : > { %5027 = vst [vmem:[%s9309_s25 + $0x19a] sm:$0x1] %v4790_v27  ;;  %v13592_v1 = vpop.eup %7816  ;;  %v3273_v34 = vsel %vm3272_vm14, %v13477_v10, %v3269_v53  ;;  %v5993_v8 = vadd.f32 %v13492_v35, %v5992_v56  ;;  %v2284_v54 = vand.u32 2147483648, %v13548_v11  ;;  %v5421_v58 = vrot.slane %v5165_v48, 2  ;;  %v13649_v48 = vld [vmem:[%s8065_s30 + $0x1c4] sm:$0xf] }
 0x48a   : > { %5028 = vst [vmem:[%s9309_s25 + $0x19e] sm:$0x1] %v4791_v43  ;;  %v13598_v28 = vpop.eup %7818  ;;  %v5424_v33 = vrot.slane %v5168_v9, 2  ;;  %v5427_v51 = vrot.slane %v5171_v21, 2  ;;  %v3278_v47 = vsel %vm13568_vm12, %v3277_v23, %v3273_v34  ;;  %v5422_v10 = vrot.slane %v5166_v49, 2 }
 0x48b   : > { %v5428_v20 = vrot.slane %v5172_v39, 2  ;;  %v13611_v27 = vmul.f32 %v15176_v63, %v3278_v47  ;;  %v5997_v2 = vsel %vm13606_vm0, %v13492_v35, %v5993_v8  ;;  %v13617_v43 = vadd.f32 %v5423_v18, %v13535_v29  ;;  %v13656_v9 = vld [vmem:[%s8065_s30 + $0x1c8] sm:$0xf]  ;;  %v13690_v18 = vld [vmem:[%s8065_s30 + $0x1d0] sm:$0xf] }
 0x48c   : > { %v13620_v4 = vadd.f32 %v5425_v50, %v13542_v42  ;;  %v13623_v5 = vadd.f32 %v5426_v26, %v13544_v52  ;;  %v13627_v46 = vmul.f32 %v13592_v1, %v13548_v11  ;;  %v13636_v29 = vmul.f32 %v13598_v28, %v13552_v61  ;;  %v13711_v47 = vld [vmem:[%s8065_s30 + $0x1dc] sm:$0xf] }
 0x48d   : > { %v3423_v22 = vrot.slane %v13611_v27, 1  ;;  %v14731_v35 = vrot.slane %v13611_v27, 2  ;;  %v3425_v41 = vrot.slane %v13611_v27, 3  ;;  %3661 = vst [vmem:[%s9309_s25 + $0x1c1] sm:$0x1] %v13611_v27  ;;  %v13639_v42 = vadd.f32 %v5427_v51, %v13546_v44 }
 0x48e   : > { %v3426_v52 = vrot.slane %v13611_v27, 4  ;;  %v3429_v12 = vrot.slane %v13611_v27, 7  ;;  %v6002_v38 = vsel %vm13588_vm15, %v6001_v30, %v5997_v2  ;;  %v3427_v23 = vrot.slane %v13611_v27, 5 }
 0x48f   : > { %v3428_v56 = vrot.slane %v13611_v27, 6  ;;  %3662 = vst [vmem:[%s9309_s25 + $0x1c5] sm:$0x1] %v3423_v22  ;;  %v13653_v44 = vmul.f32 %v13649_v48, %v13611_v27  ;;  %v13659_v21 = vmul.f32 %v13656_v9, %v3423_v22  ;;  %v13662_v49 = vadd.f32 %v5421_v58, %v13527_v57 }
 0x490   : > { %v13665_v39 = vadd.f32 %v5422_v10, %v13533_v60  ;;  %v13668_v53 = vadd.f32 %v5428_v20, %v13554_v16  ;;  %3663 = vst [vmem:[%s9309_s25 + $0x1c9] sm:$0x1] %v14731_v35  ;;  %v13673_v50 = vor.u32 1.1754944e-38, %v2284_v54  ;;  %v13677_v26 = vadd.f32 %v5424_v33, %v13540_v24  ;;  %v13684_v16 = vld [vmem:[%s8065_s30 + $0x1c0] sm:$0xf]  ;;  %v15177_v54 = vld [vmem:[#allocation27_spill] sm:$0xff] }
 0x491   : > { %3664 = vst [vmem:[%s9309_s25 + $0x1cd] sm:$0x1] %v3425_v41  ;;  %v2275_v57 = vsub.f32 1.0, %v13627_v46  ;;  %v3253_v60 = vsub.f32 1.0, %v13636_v29  ;;  %v3260_v45 = vand.u32 2147483647, %v13552_v61  ;;  %v13687_v30 = vmul.f32 %v13684_v16, %v3429_v12 }
 0x492   : > { %3665 = vst [vmem:[%s9309_s25 + $0x1d1] sm:$0x1] %v3426_v52  ;;  %v13693_v34 = vmul.f32 %v13690_v18, %v3425_v41  ;;  %v13696_v24 = vld [vmem:[%s8065_s30 + $0x1d4] sm:$0xf]  ;;  %v6057_v58 = vmul.f32 %v15177_v54, %v6002_v38  ;;  %vm2279_vm8 = vweird.f32 %v13592_v1  ;;  %v13705_v33 = vld [vmem:[%s8065_s30 + $0x1d8] sm:$0xf]  ;;  %v13714_v13 = vmul.f32 %v13711_v47, %v3428_v56 }
 0x493   : > { %v13699_v8 = vmul.f32 %v13696_v24, %v3426_v52  ;;  %3666 = vst [vmem:[%s9309_s25 + $0x1d5] sm:$0x1] %v3427_v23  ;;  %v13708_v51 = vmul.f32 %v13705_v33, %v3427_v23  ;;  %v4062_v10 = vrot.slane %v13653_v44, 1  ;;  %v4063_v20 = vrot.slane %v13659_v21, 1 }
 0x494   : > { %vm3257_vm9 = vweird.f32 %v13598_v28  ;;  %3667 = vst [vmem:[%s9309_s25 + $0x1d9] sm:$0x1] %v3428_v56  ;;  %v6161_v63 = vrot.slane %v6057_v58, 1  ;;  %v6162_v2 = vrot.slane %v6057_v58, 2  ;;  %v6163_v46 = vrot.slane %v6057_v58, 3 }
 0x495   : > { %v6164_v22 = vrot.slane %v6057_v58, 4  ;;  %vm2278_vm10 = vweird.f32 %v13548_v11  ;;  %3668 = vst [vmem:[%s9309_s25 + $0x1dd] sm:$0x1] %v3429_v12  ;;  %v6165_v41 = vrot.slane %v6057_v58, 5  ;;  %v6166_v29 = vrot.slane %v6057_v58, 6 }
 0x496   : > { %v6167_v52 = vrot.slane %v6057_v58, 7  ;;  %v6544_v38 = vmul.f32 %v13406_v7, %v6057_v58  ;;  %vm3256_vm11 = vweird.f32 %v13552_v61  ;;  %6397 = vst [vmem:[%s9309_s25 + $0x183] sm:$0x1] %v6057_v58  ;;  %v6545_v23 = vmul.f32 %v13412_v31, %v6161_v63  ;;  %vm2280_vm13 = vmor %vm2278_vm10, %vm2279_vm8 }
 0x497   : > { %v6546_v56 = vmul.f32 %v13418_v40, %v6162_v2  ;;  %v6547_v54 = vmul.f32 %v13432_v17, %v6163_v46  ;;  %v6548_v35 = vmul.f32 %v13438_v37, %v6164_v22  ;;  %6398 = vst [vmem:[%s9309_s25 + $0x187] sm:$0x1] %v6161_v63  ;;  %v6541_v12 = vmul.f32 %v13447_v25, %v6165_v41  ;;  %vm3258_vm14 = vmor %vm3256_vm11, %vm3257_vm9 }
 0x498   : > { %v6542_v19 = vmul.f32 %v13387_v36, %v6166_v29  ;;  %v6543_v7 = vmul.f32 %v13400_v59, %v6167_v52  ;;  %v6800_v55 = vrot.slane %v6544_v38, 3  ;;  %vm13735_vm12 = vcmp.eq.f32.partialorder %v2282_v15, 8.507059e+37  ;;  %6399 = vst [vmem:[%s9309_s25 + $0x18b] sm:$0x1] %v6162_v2 }
 0x499   : > { %v4065_v31 = vrot.slane %v13693_v34, 1  ;;  %v6801_v40 = vrot.slane %v6545_v23, 3  ;;  %v6802_v17 = vrot.slane %v6546_v56, 3  ;;  %v2276_v37 = vmul.f32 %v13592_v1, %v2275_v57  ;;  %6400 = vst [vmem:[%s9309_s25 + $0x18f] sm:$0x1] %v6163_v46 }
 0x49a   : > { %v6797_v36 = vrot.slane %v6541_v12, 3  ;;  %v6798_v25 = vrot.slane %v6542_v19, 3  ;;  %v6799_v59 = vrot.slane %v6543_v7, 3  ;;  %v3254_v63 = vmul.f32 %v13598_v28, %v3253_v60  ;;  %6401 = vst [vmem:[%s9309_s25 + $0x193] sm:$0x1] %v6164_v22 }
 0x49b   : > { %v4066_v15 = vrot.slane %v13699_v8, 1  ;;  %v6803_v38 = vrot.slane %v6547_v54, 3  ;;  %v6804_v3 = vrot.slane %v6548_v35, 3  ;;  %v3262_v62 = vand.u32 2147483648, %v13552_v61  ;;  %6402 = vst [vmem:[%s9309_s25 + $0x197] sm:$0x1] %v6165_v41 }
 0x49c   : > { %v4061_v2 = vrot.slane %v13687_v30, 1  ;;  %v7054_v57 = vadd.f32 %v6798_v25, %v13665_v39  ;;  %v7055_v46 = vadd.f32 %v6799_v59, %v13617_v43  ;;  %v7056_v19 = vadd.f32 %v6800_v55, %v13677_v26  ;;  %6403 = vst [vmem:[%s9309_s25 + $0x19b] sm:$0x1] %v6166_v29 }
 0x49d   : > { %v4067_v23 = vrot.slane %v13708_v51, 1  ;;  %v7053_v60 = vadd.f32 %v6797_v36, %v13662_v49  ;;  %v7057_v22 = vadd.f32 %v6801_v40, %v13620_v4  ;;  %v7058_v35 = vadd.f32 %v6802_v17, %v13623_v5  ;;  %6404 = vst [vmem:[%s9309_s25 + $0x19f] sm:$0x1] %v6167_v52  ;;  %v15181_v52 = vld [vmem:[#allocation28_spill] sm:$0xff]  ;;  %v13794_v36 = vpop.xlane.xlu2 %4441 }
 0x49e   : > { %v7381_v56 = vrot.slane %v7054_v57, 7  ;;  %v7383_v54 = vrot.slane %v7055_v46, 6  ;;  %v2277_v30 = vadd.f32 %v13592_v1, %v2276_v37  ;;  %v3255_v55 = vadd.f32 %v13598_v28, %v3254_v63 }
 0x49f   : > { %v7059_v43 = vadd.f32 %v6803_v38, %v13639_v42  ;;  %v7060_v49 = vadd.f32 %v6804_v3, %v13668_v53  ;;  %vm3261_vm15 = vcmp.eq.f32.partialorder %v3260_v45, 8.507059e+37  ;;  %v3263_v4 = vor.u32 1.1754944e-38, %v3262_v62  ;;  %v15180_v62 = vld [vmem:[#allocation33_spill] sm:$0xff] }
 0x4a0   : > { %v7382_v5 = vsel %vm1570_vm1, %v7381_v56, %v7053_v60  ;;  %v7385_v39 = vrot.slane %v7056_v19, 5  ;;  %v2281_v11 = vsel %vm2280_vm13, %v13592_v1, %v2277_v30  ;;  %v3259_v26 = vsel %vm3258_vm14, %v13598_v28, %v3255_v55  ;;  %v13808_v60 = vpop.xlane.xlu0 %3067 }
 0x4a1   : > { %v7384_v42 = vsel %vm1572_vm2, %v7383_v54, %v7382_v5  ;;  %v7387_v3 = vrot.slane %v7057_v22, 4  ;;  %v2286_v53 = vsel %vm13735_vm12, %v13673_v50, %v2281_v11  ;;  %v3264_v41 = vsel %vm3261_vm15, %v3263_v4, %v3259_v26  ;;  %v13864_v11 = vld [vmem:[%s8065_s30 + $0x1a0] sm:$0xf] }
 0x4a2   : > { %v7386_v61 = vsel %vm1574_vm3, %v7385_v39, %v7384_v42  ;;  %v7389_v45 = vrot.slane %v7058_v35, 3  ;;  %v13781_v29 = vmul.f32 %v15180_v62, %v2286_v53  ;;  %v13784_v1 = vmul.f32 %v15181_v52, %v3264_v41  ;;  %v13885_v62 = vld [vmem:[%s8065_s30 + $0x1a8] sm:$0xf] }
 0x4a3   : > { %v4068_v28 = vrot.slane %v13714_v13, 1  ;;  %v7388_v12 = vsel %vm1576_vm4, %v7387_v3, %v7386_v61  ;;  %v7391_v7 = vrot.slane %v7059_v43, 2  ;;  %v7393_v40 = vrot.slane %v7060_v49, 1  ;;  %v13873_v3 = vld [vmem:[%s8065_s30 + $0x1a4] sm:$0xf] }
 0x4a4   : > { %v7390_v50 = vsel %vm1578_vm5, %v7389_v45, %v7388_v12  ;;  %v2431_v58 = vrot.slane %v13781_v29, 1  ;;  %v2432_v17 = vrot.slane %v13781_v29, 2  ;;  %v2433_v37 = vrot.slane %v13781_v29, 3  ;;  %2669 = vst [vmem:[%s9309_s25 + $0x1c0] sm:$0x1] %v13781_v29 }
 0x4a5   : > { %v7392_v13 = vsel %vm1580_vm6, %v7391_v7, %v7390_v50  ;;  %v2434_v25 = vrot.slane %v13781_v29, 4  ;;  %v2435_v59 = vrot.slane %v13781_v29, 5  ;;  %v2436_v63 = vrot.slane %v13781_v29, 6  ;;  %3653 = vst [vmem:[%s9309_s25 + $0x1a1] sm:$0x1] %v13784_v1 }
 0x4a6   : > { %v7394_v38 = vsel %vm1582_vm7, %v7393_v40, %v7392_v13  ;;  %v2437_v57 = vrot.slane %v13781_v29, 7  ;;  %2670 = vst [vmem:[%s9309_s25 + $0x1c4] sm:$0x1] %v2431_v58  ;;  %v2813_v46 = vmul.f32 %v13684_v16, %v13781_v29  ;;  %v2814_v19 = vmul.f32 %v13649_v48, %v2431_v58  ;;  %v13901_v12 = vld [vmem:[%s8065_s30 + $0x1b0] sm:$0xf] }
 0x4a7   : > { %7465 = vst [vmem:[%s9759_s27 + $0x60] sm:$0xff] %v7394_v38  ;;  %v2815_v22 = vmul.f32 %v13656_v9, %v2432_v17  ;;  %v2817_v35 = vmul.f32 %v13690_v18, %v2434_v25  ;;  %v2818_v56 = vmul.f32 %v13696_v24, %v2435_v59  ;;  %7820 = vrcp.f32 %v13794_v36  ;;  %v13909_v50 = vld [vmem:[%s8065_s30 + $0x1b4] sm:$0xf] }
 0x4a8   : > { %2671 = vst [vmem:[%s9309_s25 + $0x1c8] sm:$0x1] %v2432_v17  ;;  %v2819_v54 = vmul.f32 %v13705_v33, %v2436_v63  ;;  %v2820_v30 = vmul.f32 %v13711_v47, %v2437_v57  ;;  %v13818_v55 = vadd.f32 %v4061_v2, %v2813_v46  ;;  %v13822_v43 = vadd.f32 %v4062_v10, %v2814_v19  ;;  %v13918_v17 = vld [vmem:[%s8065_s30 + $0x1b8] sm:$0xf]  ;;  %v13935_v46 = vld [vmem:[%s8065_s30 + $0x1cc] sm:$0xf] }
 0x4a9   : > { %2672 = vst [vmem:[%s9309_s25 + $0x1cc] sm:$0x1] %v2433_v37  ;;  %v13829_v49 = vadd.f32 %v4063_v20, %v2815_v22  ;;  %v13833_v4 = vadd.f32 %v4065_v31, %v2817_v35  ;;  %v13837_v2 = vadd.f32 %v4066_v15, %v2818_v56  ;;  %7822 = vrcp.f32 %v13808_v60  ;;  %v13947_v56 = vpop.xlane.xlu1 %4439 }
 0x4aa   : > { %2673 = vst [vmem:[%s9309_s25 + $0x1d0] sm:$0x1] %v2434_v25  ;;  %v13843_v44 = vadd.f32 %v4067_v23, %v2819_v54  ;;  %v13845_v21 = vadd.f32 %v4068_v28, %v2820_v30  ;;  %v3416_v34 = vrot.slane %v13784_v1, 1  ;;  %v3417_v10 = vrot.slane %v13784_v1, 2  ;;  %v13893_v28 = vld [vmem:[%s8065_s30 + $0x1ac] sm:$0xf] }
 0x4ab   : > { %2674 = vst [vmem:[%s9309_s25 + $0x1d4] sm:$0x1] %v2435_v59  ;;  %v3418_v8 = vrot.slane %v13784_v1, 3  ;;  %v3419_v51 = vrot.slane %v13784_v1, 4  ;;  %v3420_v31 = vrot.slane %v13784_v1, 5  ;;  %v3421_v23 = vrot.slane %v13784_v1, 6 }
 0x4ac   : > { %2675 = vst [vmem:[%s9309_s25 + $0x1d8] sm:$0x1] %v2436_v63  ;;  %v3422_v5 = vrot.slane %v13784_v1, 7  ;;  %v13868_v26 = vmul.f32 %v13864_v11, %v13394_v14  ;;  %v4650_v42 = vand.u32 2147483647, %v13794_v36  ;;  %v13878_v53 = vmul.f32 %v13873_v3, %v2424_v6 }
 0x4ad   : > { %v7821_v20 = vpop.eup %7820  ;;  %2676 = vst [vmem:[%s9309_s25 + $0x1dc] sm:$0x1] %v2437_v57  ;;  %v4652_v61 = vand.u32 2147483648, %v13794_v36  ;;  %v13890_v52 = vmul.f32 %v13885_v62, %v2425_v32  ;;  %v13898_v6 = vmul.f32 %v13893_v28, %v2426_v0  ;;  %v15182_v7 = vrot.slane %v13394_v14, 4  ;;  %v13927_v63 = vld [vmem:[%s8065_s30 + $0x1bc] sm:$0xf] }
 0x4ae   : > { %3654 = vst [vmem:[%s9309_s25 + $0x1a5] sm:$0x1] %v3416_v34  ;;  %v4642_v39 = vmul.f32 %v7821_v20, %v13794_v36  ;;  %v15183_v32 = vrot.slane %v13394_v14, 5  ;;  %v15184_v0 = vrot.slane %v13394_v14, 6  ;;  %vm4647_vm0 = vweird.f32 %v7821_v20 }
 0x4af   : > { %v13856_v15 = vpop.eup %7822  ;;  %3655 = vst [vmem:[%s9309_s25 + $0x1a9] sm:$0x1] %v3417_v10  ;;  %v13906_v40 = vmul.f32 %v13901_v12, %v15182_v7  ;;  %v15185_v38 = vrot.slane %v13394_v14, 7  ;;  %v15186_v19 = vrot.slane %v13611_v27, 2  ;;  %vm4646_vm8 = vweird.f32 %v13794_v36 }
 0x4b0   : > { %3656 = vst [vmem:[%s9309_s25 + $0x1ad] sm:$0x1] %v3418_v8  ;;  %v4643_v41 = vsub.f32 1.0, %v4642_v39  ;;  %v3280_v45 = vmul.f32 %v13856_v15, %v13808_v60  ;;  %v13914_v58 = vmul.f32 %v13909_v50, %v15183_v32  ;;  %v13923_v13 = vmul.f32 %v13918_v17, %v15184_v0  ;;  %vm4648_vm11 = vmor %vm4646_vm8, %vm4647_vm0 }
 0x4b1   : > { %3657 = vst [vmem:[%s9309_s25 + $0x1b1] sm:$0x1] %v3419_v51  ;;  %v13932_v57 = vmul.f32 %v13927_v63, %v15185_v38  ;;  %v13940_v22 = vmul.f32 %v13935_v46, %v15186_v19  ;;  %vm13943_vm9 = vcmp.eq.f32.partialorder %v4650_v42, 8.507059e+37  ;;  %v4653_v14 = vor.u32 1.1754944e-38, %v4652_v61  ;;  %v13960_v61 = vpop.xlane.xlu2 %5815 }
 0x4b2   : > { %3658 = vst [vmem:[%s9309_s25 + $0x1b5] sm:$0x1] %v3420_v31  ;;  %v4644_v25 = vmul.f32 %v7821_v20, %v4643_v41  ;;  %v3281_v59 = vsub.f32 1.0, %v3280_v45  ;;  %vm3284_vm10 = vweird.f32 %v13808_v60  ;;  %v3797_v39 = vmul.f32 %v13864_v11, %v3422_v5 }
 0x4b3   : > { %3659 = vst [vmem:[%s9309_s25 + $0x1b9] sm:$0x1] %v3421_v23  ;;  %v3798_v27 = vmul.f32 %v13873_v3, %v13784_v1  ;;  %v3801_v41 = vmul.f32 %v13901_v12, %v3418_v8  ;;  %v3288_v36 = vand.u32 2147483647, %v13808_v60  ;;  %vm3285_vm12 = vweird.f32 %v13856_v15 }
 0x4b4   : > { %3660 = vst [vmem:[%s9309_s25 + $0x1bd] sm:$0x1] %v3422_v5  ;;  %v4645_v54 = vadd.f32 %v7821_v20, %v4644_v25  ;;  %v3282_v30 = vmul.f32 %v13856_v15, %v3281_v59  ;;  %7824 = vrcp.f32 %v13947_v56  ;;  %v13963_v5 = vmul.f32 %v13885_v62, %v3416_v34  ;;  %v15189_v25 = vld [vmem:[#allocation49_spill] sm:$0xff]  ;;  %v13977_v34 = vpop.xlane.xlu0 %4443  ;;  %vm13983_vm13 = vmor %vm3284_vm10, %vm3285_vm12 }
 0x4b5   : > { %v13966_v1 = vmul.f32 %v13893_v28, %v3417_v10  ;;  %v3802_v7 = vmul.f32 %v13909_v50, %v3419_v51  ;;  %v3803_v32 = vmul.f32 %v13918_v17, %v3420_v31  ;;  %v3804_v0 = vmul.f32 %v13927_v63, %v3421_v23 }
 0x4b6   : > { %v4649_v42 = vsel %vm4648_vm11, %v7821_v20, %v4645_v54  ;;  %v3283_v45 = vadd.f32 %v13856_v15, %v3282_v30  ;;  %v3290_v20 = vand.u32 2147483648, %v13808_v60  ;;  %v4053_v38 = vrot.slane %v3797_v39, 1 }
 0x4b7   : > { %v4654_v8 = vsel %vm13943_vm9, %v4653_v14, %v4649_v42  ;;  %v4054_v10 = vrot.slane %v3798_v27, 1  ;;  %v4057_v19 = vrot.slane %v3801_v41, 1  ;;  %7826 = vrcp.f32 %v13960_v61 }
 0x4b8   : > { %v13975_v59 = vmul.f32 %v15189_v25, %v4654_v8  ;;  %v3287_v60 = vsel %vm13983_vm13, %v13856_v15, %v3283_v45  ;;  %v3291_v30 = vor.u32 1.1754944e-38, %v3290_v20  ;;  %7828 = vrcp.f32 %v13977_v34 }
 0x4b9   : > { %v4058_v27 = vrot.slane %v3802_v7, 1  ;;  %v4059_v41 = vrot.slane %v3803_v32, 1  ;;  %vm3289_vm14 = vcmp.eq.f32.partialorder %v3288_v36, 8.507059e+37  ;;  %v4060_v8 = vrot.slane %v3804_v0, 1  ;;  %v14015_v36 = vpop.xlane.xlu1 %2075 }
 0x4ba   : > { %v4799_v51 = vrot.slane %v13975_v59, 1  ;;  %v4800_v31 = vrot.slane %v13975_v59, 2  ;;  %v4801_v23 = vrot.slane %v13975_v59, 3  ;;  %5037 = vst [vmem:[%s9309_s25 + $0x1c2] sm:$0x1] %v13975_v59  ;;  %v4802_v54 = vrot.slane %v13975_v59, 4  ;;  %v14000_v39 = vpop.eup %7824 }
 0x4bb   : > { %v5183_v14 = vmul.f32 %v13656_v9, %v13975_v59  ;;  %v14741_v42 = vrot.slane %v13975_v59, 5  ;;  %v14738_v15 = vrot.slane %v13975_v59, 6  ;;  %v3292_v25 = vsel %vm3289_vm14, %v3291_v30, %v3287_v60 }
 0x4bc   : > { %5038 = vst [vmem:[%s9309_s25 + $0x1c6] sm:$0x1] %v4799_v51  ;;  %v4064_v9 = vrot.slane %v13940_v22, 1  ;;  %v14010_v20 = vmul.f32 %v13935_v46, %v2433_v37  ;;  %v4055_v7 = vrot.slane %v13963_v5, 1  ;;  %v14737_v32 = vrot.slane %v13975_v59, 7 }
 0x4bd   : > { %5039 = vst [vmem:[%s9309_s25 + $0x1ca] sm:$0x1] %v4800_v31  ;;  %v5439_v45 = vrot.slane %v5183_v14, 2  ;;  %v14017_v0 = vpop.eup %7826  ;;  %v4056_v35 = vrot.slane %v13966_v1, 1  ;;  %v14021_v60 = vadd.f32 %v4054_v10, %v13878_v53  ;;  %v4628_v37 = vmul.f32 %v14000_v39, %v13947_v56  ;;  %v15192_v53 = vld [vmem:[#allocation51_spill] sm:$0xff] }
 0x4be   : > { %5040 = vst [vmem:[%s9309_s25 + $0x1ce] sm:$0x1] %v4801_v23  ;;  %v14030_v5 = vadd.f32 %v4053_v38, %v13868_v26  ;;  %v14033_v14 = vadd.f32 %v4057_v19, %v13906_v40  ;;  %v14036_v1 = vadd.f32 %v4058_v27, %v13914_v58  ;;  %v14042_v10 = vmul.f32 %v15192_v53, %v3292_v25 }
 0x4bf   : > { %5041 = vst [vmem:[%s9309_s25 + $0x1d2] sm:$0x1] %v4802_v54  ;;  %v14025_v29 = vadd.f32 %v5439_v45, %v13829_v49  ;;  %v14044_v49 = vpop.eup %7828  ;;  %v14047_v30 = vadd.f32 %v4059_v41, %v13923_v13  ;;  %v14050_v26 = vadd.f32 %v4060_v8, %v13932_v57  ;;  %v4636_v40 = vand.u32 2147483647, %v13947_v56 }
 0x4c0   : > { %5042 = vst [vmem:[%s9309_s25 + $0x1d6] sm:$0x1] %v14741_v42  ;;  %7830 = vrcp.f32 %v14015_v36  ;;  %v14736_v58 = vrot.slane %v14042_v10, 1  ;;  %v14740_v38 = vrot.slane %v14042_v10, 2  ;;  %v14739_v13 = vrot.slane %v14042_v10, 3 }
 0x4c1   : > { %5043 = vst [vmem:[%s9309_s25 + $0x1da] sm:$0x1] %v14738_v15  ;;  %v4638_v57 = vand.u32 2147483648, %v13947_v56  ;;  %v14742_v19 = vrot.slane %v14042_v10, 4  ;;  %v14068_v27 = vadd.f32 %v4055_v7, %v13890_v52  ;;  %v4629_v41 = vsub.f32 1.0, %v4628_v37 }
 0x4c2   : > { %5044 = vst [vmem:[%s9309_s25 + $0x1de] sm:$0x1] %v14737_v32  ;;  %vm4632_vm15 = vweird.f32 %v13947_v56  ;;  %v5184_v8 = vmul.f32 %v13935_v46, %v4799_v51  ;;  %v14744_v45 = vrot.slane %v14042_v10, 5  ;;  %v6004_v25 = vmul.f32 %v14017_v0, %v13960_v61 }
 0x4c3   : > { %3669 = vst [vmem:[%s9309_s25 + $0x1e1] sm:$0x1] %v14042_v10  ;;  %v4656_v53 = vmul.f32 %v14044_v49, %v13977_v34  ;;  %v5185_v52 = vmul.f32 %v13690_v18, %v4800_v31  ;;  %v5186_v7 = vmul.f32 %v13696_v24, %v4801_v23  ;;  %v14743_v37 = vrot.slane %v14042_v10, 6 }
 0x4c4   : > { %3670 = vst [vmem:[%s9309_s25 + $0x1e5] sm:$0x1] %v14736_v58  ;;  %v14087_v51 = vadd.f32 %v4056_v35, %v13898_v6  ;;  %v5187_v58 = vmul.f32 %v13705_v33, %v4802_v54  ;;  %vm14094_vm0 = vcmp.eq.f32.partialorder %v4636_v40, 8.507059e+37  ;;  %v4639_v23 = vor.u32 1.1754944e-38, %v4638_v57 }
 0x4c5   : > { %3671 = vst [vmem:[%s9309_s25 + $0x1e9] sm:$0x1] %v14740_v38  ;;  %v4630_v6 = vmul.f32 %v14000_v39, %v4629_v41  ;;  %vm4633_vm8 = vweird.f32 %v14000_v39  ;;  %v6012_v54 = vand.u32 2147483647, %v13960_v61  ;;  %v6014_v35 = vand.u32 2147483648, %v13960_v61 }
 0x4c6   : > { %3672 = vst [vmem:[%s9309_s25 + $0x1ed] sm:$0x1] %v14739_v13  ;;  %v14098_v15 = vpop.eup %7830  ;;  %v5440_v13 = vrot.slane %v5184_v8, 2  ;;  %v6005_v40 = vsub.f32 1.0, %v6004_v25  ;;  %v4657_v57 = vsub.f32 1.0, %v4656_v53  ;;  %v5441_v42 = vrot.slane %v5185_v52, 2  ;;  %vm4634_vm10 = vmor %vm4632_vm15, %vm4633_vm8 }
 0x4c7   : > { %3673 = vst [vmem:[%s9309_s25 + $0x1f1] sm:$0x1] %v14742_v19  ;;  %v2288_v38 = vmul.f32 %v14098_v15, %v14015_v36  ;;  %v5442_v19 = vrot.slane %v5186_v7, 2  ;;  %v4631_v41 = vadd.f32 %v14000_v39, %v4630_v6  ;;  %vm6008_vm9 = vweird.f32 %v13960_v61 }
 0x4c8   : > { %3674 = vst [vmem:[%s9309_s25 + $0x1f5] sm:$0x1] %v14744_v45  ;;  %v4320_v8 = vadd.f32 %v4064_v9, %v14010_v20  ;;  %v5443_v32 = vrot.slane %v5187_v58, 2  ;;  %v15195_v25 = vrot.slane %v14042_v10, 7  ;;  %v6006_v53 = vmul.f32 %v14017_v0, %v6005_v40  ;;  %v15197_v40 = vld [vmem:[#allocation30_spill] sm:$0xff] }
 0x4c9   : > { %3675 = vst [vmem:[%s9309_s25 + $0x1f9] sm:$0x1] %v14743_v37  ;;  %v4658_v52 = vmul.f32 %v14044_v49, %v4657_v57  ;;  %v4664_v7 = vand.u32 2147483647, %v13977_v34  ;;  %v4635_v6 = vsel %vm4634_vm10, %v14000_v39, %v4631_v41  ;;  %v6015_v37 = vor.u32 1.1754944e-38, %v6014_v35 }
 0x4ca   : > { %3676 = vst [vmem:[%s9309_s25 + $0x1fd] sm:$0x1] %v15195_v25  ;;  %vm4660_vm11 = vweird.f32 %v13977_v34  ;;  %v4666_v22 = vand.u32 2147483648, %v13977_v34  ;;  %v15196_v9 = vrot.slane %v13975_v59, 5  ;;  %v4640_v56 = vsel %vm14094_vm0, %v4639_v23, %v4635_v6 }
 0x4cb   : > { %vm6009_vm12 = vweird.f32 %v14017_v0  ;;  %v2289_v58 = vsub.f32 1.0, %v2288_v38  ;;  %v4682_v57 = vmul.f32 %v15197_v40, %v4640_v56  ;;  %vm14140_vm13 = vcmp.eq.f32.partialorder %v6012_v54, 8.507059e+37 }
 0x4cc   : > { %v5188_v20 = vmul.f32 %v13711_v47, %v15196_v9  ;;  %v14144_v35 = vadd.f32 %v5440_v13, %v4320_v8  ;;  %v14147_v41 = vadd.f32 %v5441_v42, %v13833_v4  ;;  %v14150_v25 = vadd.f32 %v5442_v19, %v13837_v2  ;;  %vm14177_vm0 = vmor %vm6008_vm9, %vm6009_vm12 }
 0x4cd   : > { %v6007_v31 = vadd.f32 %v14017_v0, %v6006_v53  ;;  %v4659_v23 = vadd.f32 %v14044_v49, %v4658_v52  ;;  %vm4661_vm14 = vweird.f32 %v14044_v49  ;;  %vm14155_vm15 = vcmp.eq.f32.partialorder %v4664_v7, 8.507059e+37  ;;  %5029 = vst [vmem:[%s9309_s25 + $0x1a2] sm:$0x1] %v4682_v57 }
 0x4ce   : > { %15200 = vst [vmem:[#allocation5_spill] sm:$0xff] %v14150_v25  ;;  %v14160_v13 = vadd.f32 %v5443_v32, %v13843_v44  ;;  %v4792_v4 = vrot.slane %v4682_v57, 1  ;;  %v4793_v42 = vrot.slane %v4682_v57, 2  ;;  %v4794_v54 = vrot.slane %v4682_v57, 3  ;;  %vm14190_vm8 = vmor %vm4660_vm11, %vm4661_vm14 }
 0x4cf   : > { %v4795_v8 = vrot.slane %v4682_v57, 4  ;;  %v4796_v2 = vrot.slane %v4682_v57, 5  ;;  %v4797_v19 = vrot.slane %v4682_v57, 6  ;;  %v4798_v53 = vrot.slane %v4682_v57, 7 }
 0x4d0   : > { %15203 = vst [vmem:[#allocation8_spill] sm:$0xff] %v14160_v13  ;;  %v5175_v52 = vmul.f32 %v13885_v62, %v4682_v57  ;;  %v5176_v7 = vmul.f32 %v13893_v28, %v4792_v4  ;;  %v5177_v6 = vmul.f32 %v13901_v12, %v4793_v42  ;;  %v2290_v44 = vmul.f32 %v14098_v15, %v2289_v58 }
 0x4d1   : > { %5030 = vst [vmem:[%s9309_s25 + $0x1a6] sm:$0x1] %v4792_v4  ;;  %v2298_v32 = vand.u32 2147483648, %v14015_v36  ;;  %v5173_v9 = vmul.f32 %v13864_v11, %v4797_v19  ;;  %v5178_v56 = vmul.f32 %v13909_v50, %v4794_v54  ;;  %v5179_v40 = vmul.f32 %v13918_v17, %v4795_v8 }
 0x4d2   : > { %5031 = vst [vmem:[%s9309_s25 + $0x1aa] sm:$0x1] %v4793_v42  ;;  %v4667_v4 = vor.u32 1.1754944e-38, %v4666_v22  ;;  %v5444_v58 = vrot.slane %v5188_v20, 2  ;;  %v5174_v42 = vmul.f32 %v13873_v3, %v4798_v53  ;;  %v6011_v45 = vsel %vm14177_vm0, %v14017_v0, %v6007_v31 }
 0x4d3   : > { %5032 = vst [vmem:[%s9309_s25 + $0x1ae] sm:$0x1] %v4794_v54  ;;  %vm2293_vm9 = vweird.f32 %v14098_v15  ;;  %v5180_v22 = vmul.f32 %v13927_v63, %v4796_v2  ;;  %v5431_v20 = vrot.slane %v5175_v52, 2  ;;  %v5432_v54 = vrot.slane %v5176_v7, 2 }
 0x4d4   : > { %5033 = vst [vmem:[%s9309_s25 + $0x1b2] sm:$0x1] %v4795_v8  ;;  %v4663_v0 = vsel %vm14190_vm8, %v14044_v49, %v4659_v23  ;;  %v5433_v31 = vrot.slane %v5177_v6, 2  ;;  %v14202_v34 = vadd.f32 %v14098_v15, %v2290_v44  ;;  %vm2292_vm10 = vweird.f32 %v14015_v36  ;;  %v15208_v23 = vld [vmem:[#allocation31_spill] sm:$0xff] }
 0x4d5   : > { %5034 = vst [vmem:[%s9309_s25 + $0x1b6] sm:$0x1] %v4796_v2  ;;  %v2296_v57 = vand.u32 2147483647, %v14015_v36  ;;  %v14206_v13 = vor.u32 1.1754944e-38, %v2298_v32  ;;  %v5429_v8 = vrot.slane %v5173_v9, 2  ;;  %v6016_v7 = vsel %vm14140_vm13, %v6015_v37, %v6011_v45  ;;  %vm14250_vm11 = vmor %vm2292_vm10, %vm2293_vm9 }
 0x4d6   : > { %5035 = vst [vmem:[%s9309_s25 + $0x1ba] sm:$0x1] %v4797_v19  ;;  %v5434_v25 = vrot.slane %v5178_v56, 2  ;;  %v5435_v52 = vrot.slane %v5179_v40, 2  ;;  %v5430_v49 = vrot.slane %v5174_v42, 2  ;;  %v6058_v2 = vmul.f32 %v15208_v23, %v6016_v7  ;;  %v15209_v56 = vld [vmem:[#allocation53_spill] sm:$0xff] }
 0x4d7   : > { %5036 = vst [vmem:[%s9309_s25 + $0x1be] sm:$0x1] %v4798_v53  ;;  %v4668_v6 = vsel %vm14155_vm15, %v4667_v4, %v4663_v0  ;;  %v14216_v44 = vadd.f32 %v5444_v58, %v13845_v21  ;;  %v5436_v32 = vrot.slane %v5180_v22, 2  ;;  %v5687_v19 = vadd.f32 %v5431_v20, %v14068_v27  ;;  %v14237_v0 = vpop.xlane.xlu0 %5817 }
 0x4d8   : > { %v5688_v9 = vadd.f32 %v5432_v54, %v14087_v51  ;;  %v14221_v39 = vmul.f32 %v15209_v56, %v4668_v6  ;;  %v6168_v45 = vrot.slane %v6058_v2, 1  ;;  %v6169_v37 = vrot.slane %v6058_v2, 2  ;;  %6405 = vst [vmem:[%s9309_s25 + $0x1a3] sm:$0x1] %v6058_v2 }
 0x4d9   : > { %v6170_v53 = vrot.slane %v6058_v2, 3  ;;  %v6171_v40 = vrot.slane %v6058_v2, 4  ;;  %v6172_v38 = vrot.slane %v6058_v2, 5  ;;  %v6173_v4 = vrot.slane %v6058_v2, 6 }
 0x4da   : > { %v6174_v42 = vrot.slane %v6058_v2, 7  ;;  %v6552_v21 = vmul.f32 %v13893_v28, %v6058_v2  ;;  %5045 = vst [vmem:[%s9309_s25 + $0x1e2] sm:$0x1] %v14221_v39  ;;  %v5689_v27 = vadd.f32 %v5433_v31, %v14033_v14  ;;  %v5690_v51 = vadd.f32 %v5434_v25, %v14036_v1 }
 0x4db   : > { %6406 = vst [vmem:[%s9309_s25 + $0x1a7] sm:$0x1] %v6168_v45  ;;  %v6553_v58 = vmul.f32 %v13901_v12, %v6168_v45  ;;  %v6554_v61 = vmul.f32 %v13909_v50, %v6169_v37  ;;  %v5686_v22 = vadd.f32 %v5430_v49, %v14021_v60  ;;  %v6549_v20 = vmul.f32 %v13864_v11, %v6172_v38 }
 0x4dc   : > { %6407 = vst [vmem:[%s9309_s25 + $0x1ab] sm:$0x1] %v6169_v37  ;;  %v6550_v28 = vmul.f32 %v13873_v3, %v6173_v4  ;;  %v6551_v54 = vmul.f32 %v13885_v62, %v6174_v42  ;;  %v5685_v14 = vadd.f32 %v5429_v8, %v14030_v5  ;;  %v5691_v1 = vadd.f32 %v5435_v52, %v14047_v30 }
 0x4dd   : > { %6408 = vst [vmem:[%s9309_s25 + $0x1af] sm:$0x1] %v6170_v53  ;;  %v6555_v12 = vmul.f32 %v13918_v17, %v6170_v53  ;;  %v6556_v50 = vmul.f32 %v13927_v63, %v6171_v40  ;;  %v5692_v60 = vadd.f32 %v5436_v32, %v14050_v26  ;;  %v6808_v25 = vrot.slane %v6552_v21, 3 }
 0x4de   : > { %6409 = vst [vmem:[%s9309_s25 + $0x1b3] sm:$0x1] %v6171_v40  ;;  %v6806_v11 = vrot.slane %v6550_v28, 3  ;;  %v6807_v3 = vrot.slane %v6551_v54, 3  ;;  %v6809_v5 = vrot.slane %v6553_v58, 3  ;;  %v6810_v17 = vrot.slane %v6554_v61, 3 }
 0x4df   : > { %6410 = vst [vmem:[%s9309_s25 + $0x1b7] sm:$0x1] %v6172_v38  ;;  %v2295_v63 = vsel %vm14250_vm11, %v14098_v15, %v14202_v34  ;;  %7832 = vrcp.f32 %v14237_v0  ;;  %v6805_v30 = vrot.slane %v6549_v20, 3  ;;  %v7064_v8 = vadd.f32 %v6808_v25, %v5688_v9 }
 0x4e0   : > { %6411 = vst [vmem:[%s9309_s25 + $0x1bb] sm:$0x1] %v6173_v4  ;;  %v7062_v26 = vadd.f32 %v6806_v11, %v5686_v22  ;;  %v7063_v31 = vadd.f32 %v6807_v3, %v5687_v19  ;;  %v6811_v52 = vrot.slane %v6555_v12, 3  ;;  %v6812_v7 = vrot.slane %v6556_v50, 3 }
 0x4e1   : > { %6412 = vst [vmem:[%s9309_s25 + $0x1bf] sm:$0x1] %v6174_v42  ;;  %v7065_v49 = vadd.f32 %v6809_v5, %v5689_v27  ;;  %v7066_v23 = vadd.f32 %v6810_v17, %v5690_v51  ;;  %v7061_v2 = vadd.f32 %v6805_v30, %v5685_v14  ;;  %v4806_v32 = vrot.slane %v14221_v39, 1 }
 0x4e2   : > { %v7395_v6 = vrot.slane %v7062_v26, 7  ;;  %v4807_v15 = vrot.slane %v14221_v39, 2  ;;  %v7067_v34 = vadd.f32 %v6811_v52, %v5691_v1  ;;  %v7397_v56 = vrot.slane %v7063_v31, 6  ;;  %v14336_v31 = vld [vmem:[%s8065_s30 + $0x1e8] sm:$0xf] }
 0x4e3   : > { %v4808_v45 = vrot.slane %v14221_v39, 3  ;;  %v4809_v19 = vrot.slane %v14221_v39, 4  ;;  %v7068_v9 = vadd.f32 %v6812_v7, %v5692_v60  ;;  %v7399_v53 = vrot.slane %v7064_v8, 5  ;;  %5046 = vst [vmem:[%s9309_s25 + $0x1e6] sm:$0x1] %v4806_v32 }
 0x4e4   : > { %v7396_v37 = vsel %vm1570_vm1, %v7395_v6, %v7061_v2  ;;  %v4810_v40 = vrot.slane %v14221_v39, 5  ;;  %v7401_v42 = vrot.slane %v7065_v49, 4  ;;  %v4811_v21 = vrot.slane %v14221_v39, 6  ;;  %5047 = vst [vmem:[%s9309_s25 + $0x1ea] sm:$0x1] %v4807_v15 }
 0x4e5   : > { %v14271_v38 = vpop.eup %7832  ;;  %v7398_v4 = vsel %vm1572_vm2, %v7397_v56, %v7396_v37  ;;  %vm2297_vm12 = vcmp.eq.f32.partialorder %v2296_v57, 8.507059e+37  ;;  %v7403_v51 = vrot.slane %v7066_v23, 3  ;;  %v4812_v58 = vrot.slane %v14221_v39, 7  ;;  %5048 = vst [vmem:[%s9309_s25 + $0x1ee] sm:$0x1] %v4808_v45 }
 0x4e6   : > { %v7400_v27 = vsel %vm1574_vm3, %v7399_v53, %v7398_v4  ;;  %v2300_v61 = vsel %vm2297_vm12, %v14206_v13, %v2295_v63  ;;  %v7405_v20 = vrot.slane %v7067_v34, 2  ;;  %5049 = vst [vmem:[%s9309_s25 + $0x1f2] sm:$0x1] %v4809_v19  ;;  %v7407_v57 = vrot.slane %v7068_v9, 1  ;;  %v15212_v13 = vld [vmem:[#allocation52_spill] sm:$0xff] }
 0x4e7   : > { %v7402_v22 = vsel %vm1576_vm4, %v7401_v42, %v7400_v27  ;;  %5050 = vst [vmem:[%s9309_s25 + $0x1f6] sm:$0x1] %v4810_v40  ;;  %v14299_v54 = vmul.f32 %v15212_v13, %v2300_v61  ;;  %v6018_v60 = vmul.f32 %v14271_v38, %v14237_v0  ;;  %v15213_v25 = vrot.slane %v13975_v59, 6  ;;  %v14325_v63 = vld [vmem:[%s8065_s30 + $0x1e4] sm:$0xf] }
 0x4e8   : > { %v7404_v36 = vsel %vm1578_vm5, %v7403_v51, %v7402_v22  ;;  %5051 = vst [vmem:[%s9309_s25 + $0x1fa] sm:$0x1] %v4811_v21  ;;  %v15214_v5 = vrot.slane %v13975_v59, 7  ;;  %v14329_v30 = vmul.f32 %v14325_v63, %v14042_v10  ;;  %v15215_v59 = vrot.slane %v14042_v10, 1  ;;  %v14344_v8 = vld [vmem:[%s8065_s30 + $0x1ec] sm:$0xf] }
 0x4e9   : > { %v7406_v28 = vsel %vm1580_vm6, %v7405_v20, %v7404_v36  ;;  %5052 = vst [vmem:[%s9309_s25 + $0x1fe] sm:$0x1] %v4812_v58  ;;  %v2438_v1 = vrot.slane %v14299_v54, 1  ;;  %v2439_v12 = vrot.slane %v14299_v54, 2  ;;  %v2440_v50 = vrot.slane %v14299_v54, 3 }
 0x4ea   : > { %v7408_v14 = vsel %vm1582_vm7, %v7407_v57, %v7406_v28  ;;  %v2441_v11 = vrot.slane %v14299_v54, 4  ;;  %2677 = vst [vmem:[%s9309_s25 + $0x1e0] sm:$0x1] %v14299_v54  ;;  %v2442_v3 = vrot.slane %v14299_v54, 5  ;;  %v5181_v62 = vmul.f32 %v13684_v16, %v15213_v25  ;;  %v14356_v2 = vld [vmem:[%s8065_s30 + $0x1e0] sm:$0xf] }
 0x4eb   : > { %7466 = vst [vmem:[%s9759_s27 + $0x68] sm:$0xff] %v7408_v14  ;;  %v5182_v17 = vmul.f32 %v13649_v48, %v15214_v5  ;;  %v2443_v26 = vrot.slane %v14299_v54, 6  ;;  %v14341_v48 = vmul.f32 %v14336_v31, %v15215_v59  ;;  %v15216_v52 = vrot.slane %v14042_v10, 2  ;;  %v14364_v56 = vld [vmem:[%s8065_s30 + $0x1f0] sm:$0xf] }
 0x4ec   : > { %2678 = vst [vmem:[%s9309_s25 + $0x1e4] sm:$0x1] %v2438_v1  ;;  %v14745_v49 = vrot.slane %v14299_v54, 7  ;;  %v6019_v23 = vsub.f32 1.0, %v6018_v60  ;;  %v15217_v6 = vrot.slane %v14042_v10, 7  ;;  %v15218_v9 = vrot.slane %v14042_v10, 3 }
 0x4ed   : > { %2679 = vst [vmem:[%s9309_s25 + $0x1e8] sm:$0x1] %v2439_v12  ;;  %v14349_v7 = vmul.f32 %v14344_v8, %v15216_v52  ;;  %v14372_v53 = vld [vmem:[%s8065_s30 + $0x1f4] sm:$0xf]  ;;  %v15219_v4 = vrot.slane %v14042_v10, 4  ;;  %v15220_v51 = vrot.slane %v14042_v10, 5  ;;  %vm6023_vm13 = vweird.f32 %v14271_v38 }
 0x4ee   : > { %2680 = vst [vmem:[%s9309_s25 + $0x1ec] sm:$0x1] %v2440_v50  ;;  %v14361_v34 = vmul.f32 %v14356_v2, %v15217_v6  ;;  %v14369_v37 = vmul.f32 %v14364_v56, %v15218_v9  ;;  %v14380_v27 = vld [vmem:[%s8065_s30 + $0x1f8] sm:$0xf]  ;;  %v6020_v22 = vmul.f32 %v14271_v38, %v6019_v23  ;;  %v6026_v20 = vand.u32 2147483647, %v14237_v0 }
 0x4ef   : > { %v14377_v42 = vmul.f32 %v14372_v53, %v15219_v4  ;;  %v14385_v61 = vmul.f32 %v14380_v27, %v15220_v51  ;;  %2681 = vst [vmem:[%s9309_s25 + $0x1f0] sm:$0x1] %v2441_v11  ;;  %v6028_v36 = vand.u32 2147483648, %v14237_v0  ;;  %v5437_v57 = vrot.slane %v5181_v62, 2  ;;  %v14398_v13 = vld [vmem:[%s8065_s30 + $0x1fc] sm:$0xf]  ;;  %v14423_v4 = vpop.xlane.xlu1 %5819 }
 0x4f0   : > { %2682 = vst [vmem:[%s9309_s25 + $0x1f4] sm:$0x1] %v2442_v3  ;;  %v5438_v28 = vrot.slane %v5182_v17, 2  ;;  %v15221_v14 = vrot.slane %v14042_v10, 6  ;;  %v6021_v62 = vadd.f32 %v14271_v38, %v6020_v22  ;;  %vm6022_vm14 = vweird.f32 %v14237_v0  ;;  %v7964_v10 = vld [vmem:[%s8065_s30 + $0x1c4] sm:$0xf] }
 0x4f1   : > { %2683 = vst [vmem:[%s9309_s25 + $0x1f8] sm:$0x1] %v2443_v26  ;;  %vm6024_vm15 = vmor %vm6022_vm14, %vm6023_vm13  ;;  %v6029_v52 = vor.u32 1.1754944e-38, %v6028_v36  ;;  %vm6027_vm0 = vcmp.eq.f32.partialorder %v6026_v20, 8.507059e+37  ;;  %v5693_v51 = vadd.f32 %v5437_v57, %v13818_v55  ;;  %v14431_v36 = vmul.f32 %v14356_v2, %v4811_v21  ;;  %v15222_v20 = vld [vmem:[#allocation50_spill] sm:$0xff] }
 0x4f2   : > { %v14403_v60 = vmul.f32 %v14398_v13, %v15221_v14  ;;  %2684 = vst [vmem:[%s9309_s25 + $0x1fc] sm:$0x1] %v14745_v49  ;;  %v6025_v9 = vsel %vm6024_vm15, %v14271_v38, %v6021_v62  ;;  %v5694_v22 = vadd.f32 %v5438_v28, %v13822_v43  ;;  %v14435_v17 = vmul.f32 %v14336_v31, %v14221_v39  ;;  %v7965_v25 = vld [vmem:[%s8065_s30 + $0x1c8] sm:$0xf] }
 0x4f3   : > { %v6030_v14 = vsel %vm6027_vm0, %v6029_v52, %v6025_v9  ;;  %v14440_v38 = vmul.f32 %v14344_v8, %v4806_v32  ;;  %v14446_v43 = vmul.f32 %v14325_v63, %v4812_v58  ;;  %v14451_v21 = vmul.f32 %v14364_v56, %v4807_v15 }
 0x4f4   : > { %v6059_v55 = vmul.f32 %v15222_v20, %v6030_v14  ;;  %v14456_v57 = vmul.f32 %v14372_v53, %v4808_v45  ;;  %7834 = vrcp.f32 %v14423_v4  ;;  %v5447_v39 = vrot.slane %v14435_v17, 2 }
 0x4f5   : > { %vm6036_vm9 = vweird.f32 %v14423_v4 }
 0x4f6   : > { %v6175_v32 = vrot.slane %v6059_v55, 1  ;;  %v6176_v28 = vrot.slane %v6059_v55, 2  ;;  %v6177_v62 = vrot.slane %v6059_v55, 3  ;;  %v6178_v58 = vrot.slane %v6059_v55, 4  ;;  %6413 = vst [vmem:[%s9309_s25 + $0x1c3] sm:$0x1] %v6059_v55 }
 0x4f7   : > { %v6179_v52 = vrot.slane %v6059_v55, 5  ;;  %v6180_v9 = vrot.slane %v6059_v55, 6  ;;  %v6181_v14 = vrot.slane %v6059_v55, 7  ;;  %v6560_v15 = vmul.f32 %v13935_v46, %v6059_v55 }
 0x4f8   : > { %6414 = vst [vmem:[%s9309_s25 + $0x1c7] sm:$0x1] %v6175_v32  ;;  %v6561_v45 = vmul.f32 %v13690_v18, %v6175_v32  ;;  %v6562_v20 = vmul.f32 %v13696_v24, %v6176_v28  ;;  %v6563_v0 = vmul.f32 %v13705_v33, %v6177_v62  ;;  %v6564_v6 = vmul.f32 %v13711_v47, %v6178_v58 }
 0x4f9   : > { %6415 = vst [vmem:[%s9309_s25 + $0x1cb] sm:$0x1] %v6176_v28  ;;  %v6557_v59 = vmul.f32 %v13684_v16, %v6179_v52  ;;  %v6558_v5 = vmul.f32 %v7964_v10, %v6180_v9  ;;  %v6559_v23 = vmul.f32 %v7965_v25, %v6181_v14  ;;  %v6816_v49 = vrot.slane %v6560_v15, 3 }
 0x4fa   : > { %v14473_v18 = vmul.f32 %v14380_v27, %v4809_v19  ;;  %v14478_v24 = vmul.f32 %v14398_v13, %v4810_v40  ;;  %6416 = vst [vmem:[%s9309_s25 + $0x1cf] sm:$0x1] %v6177_v62  ;;  %v6817_v33 = vrot.slane %v6561_v45, 3  ;;  %v6818_v16 = vrot.slane %v6562_v20, 3  ;;  %v14481_v47 = vpop.eup %7834 }
 0x4fb   : > { %6417 = vst [vmem:[%s9309_s25 + $0x1d3] sm:$0x1] %v6178_v58  ;;  %v6813_v25 = vrot.slane %v6557_v59, 3  ;;  %v6814_v10 = vrot.slane %v6558_v5, 3  ;;  %v6815_v55 = vrot.slane %v6559_v23, 3  ;;  %v5446_v19 = vrot.slane %v14446_v43, 2 }
 0x4fc   : > { %v5448_v32 = vrot.slane %v14440_v38, 2  ;;  %6418 = vst [vmem:[%s9309_s25 + $0x1d7] sm:$0x1] %v6179_v52  ;;  %v6819_v40 = vrot.slane %v6563_v0, 3  ;;  %v6820_v28 = vrot.slane %v6564_v6, 3  ;;  %v7072_v45 = vadd.f32 %v6816_v49, %v14144_v35  ;;  %v15223_v23 = vld [vmem:[#allocation5_spill] sm:$0xff] }
 0x4fd   : > { %6419 = vst [vmem:[%s9309_s25 + $0x1db] sm:$0x1] %v6180_v9  ;;  %v7070_v62 = vadd.f32 %v6814_v10, %v5694_v22  ;;  %v7071_v15 = vadd.f32 %v6815_v55, %v14025_v29  ;;  %v5449_v58 = vrot.slane %v14451_v21, 2  ;;  %v2821_v5 = vmul.f32 %v14356_v2, %v14299_v54  ;;  %v15224_v49 = vld [vmem:[#allocation8_spill] sm:$0xff] }
 0x4fe   : > { %6420 = vst [vmem:[%s9309_s25 + $0x1df] sm:$0x1] %v6181_v14  ;;  %v7073_v59 = vadd.f32 %v6817_v33, %v14147_v41  ;;  %v7074_v20 = vadd.f32 %v6818_v16, %v15223_v23  ;;  %v7069_v46 = vadd.f32 %v6813_v25, %v5693_v51  ;;  %v6032_v6 = vmul.f32 %v14481_v47, %v14423_v4 }
 0x4ff   : > { %v7409_v52 = vrot.slane %v7070_v62, 7  ;;  %v7411_v0 = vrot.slane %v7071_v15, 6  ;;  %v2822_v29 = vmul.f32 %v14325_v63, %v2438_v1  ;;  %v2823_v35 = vmul.f32 %v14336_v31, %v2439_v12 }
 0x500   : > { %v2824_v41 = vmul.f32 %v14344_v8, %v2440_v50  ;;  %v7075_v22 = vadd.f32 %v6819_v40, %v15224_v49  ;;  %v7076_v51 = vadd.f32 %v6820_v28, %v14216_v44  ;;  %v7413_v14 = vrot.slane %v7072_v45, 5 }
 0x501   : > { %v7410_v9 = vsel %vm1570_vm1, %v7409_v52, %v7069_v46  ;;  %v6033_v33 = vsub.f32 1.0, %v6032_v6  ;;  %v7415_v25 = vrot.slane %v7073_v59, 4  ;;  %v6040_v1 = vand.u32 2147483647, %v14423_v4 }
 0x502   : > { %v7412_v16 = vsel %vm1572_vm2, %v7411_v0, %v7410_v9  ;;  %v6042_v10 = vand.u32 2147483648, %v14423_v4  ;;  %v7417_v55 = vrot.slane %v7074_v20, 3  ;;  %vm6037_vm8 = vweird.f32 %v14481_v47 }
 0x503   : > { %v7414_v12 = vsel %vm1574_vm3, %v7413_v14, %v7412_v16  ;;  %v6034_v50 = vmul.f32 %v14481_v47, %v6033_v33  ;;  %v2825_v44 = vmul.f32 %v14364_v56, %v2441_v11  ;;  %v2826_v46 = vmul.f32 %v14372_v53, %v2442_v3  ;;  %vm6038_vm10 = vmor %vm6036_vm9, %vm6037_vm8  ;;  %v15230_v16 = vld [vmem:[#allocation54_spill] sm:$0xff] }
 0x504   : > { %v7416_v40 = vsel %vm1576_vm4, %v7415_v25, %v7414_v12  ;;  %v7419_v28 = vrot.slane %v7075_v22, 2  ;;  %v7421_v15 = vrot.slane %v7076_v51, 1  ;;  %v2827_v59 = vmul.f32 %v14380_v27, %v2443_v26 }
 0x505   : > { %v7418_v62 = vsel %vm1578_vm5, %v7417_v55, %v7416_v40  ;;  %v6035_v45 = vadd.f32 %v14481_v47, %v6034_v50  ;;  %v15225_v11 = vrot.slane %v14299_v54, 7  ;;  %v6043_v20 = vor.u32 1.1754944e-38, %v6042_v10 }
 0x506   : > { %v7420_v3 = vsel %vm1580_vm6, %v7419_v28, %v7418_v62  ;;  %v5450_v52 = vrot.slane %v14456_v57, 2  ;;  %vm6041_vm11 = vcmp.eq.f32.partialorder %v6040_v1, 8.507059e+37  ;;  %v5451_v4 = vrot.slane %v14473_v18, 2 }
 0x507   : > { %v2828_v23 = vmul.f32 %v14398_v13, %v15225_v11  ;;  %v7422_v0 = vsel %vm1582_vm7, %v7421_v15, %v7420_v3  ;;  %v6039_v6 = vsel %vm6038_vm10, %v14481_v47, %v6035_v45  ;;  %v5452_v49 = vrot.slane %v14478_v24, 2 }
 0x508   : > { %v15226_v26 = vrot.slane %v14361_v34, 1  ;;  %7467 = vst [vmem:[%s9759_s27 + $0x70] sm:$0xff] %v7422_v0  ;;  %v6044_v22 = vsel %vm6041_vm11, %v6043_v20, %v6039_v6  ;;  %v15227_v51 = vrot.slane %v14329_v30, 1  ;;  %v15228_v57 = vrot.slane %v14341_v48, 1 }
 0x509   : > { %v15229_v33 = vrot.slane %v14369_v37, 1  ;;  %v6060_v18 = vmul.f32 %v15230_v16, %v6044_v22  ;;  %v15231_v24 = vrot.slane %v14377_v42, 1  ;;  %v15232_v34 = vrot.slane %v14385_v61, 1 }
 0x50a   : > { %v4325_v54 = vadd.f32 %v15226_v26, %v2821_v5  ;;  %v4326_v9 = vadd.f32 %v15227_v51, %v2822_v29  ;;  %v4327_v14 = vadd.f32 %v15228_v57, %v2823_v35  ;;  %v15233_v1 = vrot.slane %v14403_v60, 1 }
 0x50b   : > { %v4329_v47 = vadd.f32 %v15229_v33, %v2825_v44  ;;  %v4330_v25 = vadd.f32 %v15231_v24, %v2826_v46  ;;  %v4331_v5 = vadd.f32 %v15232_v34, %v2827_v59  ;;  %v15234_v30 = vrot.slane %v14349_v7, 1  ;;  %6421 = vst [vmem:[%s9309_s25 + $0x1e3] sm:$0x1] %v6060_v18 }
 0x50c   : > { %v4332_v10 = vadd.f32 %v15233_v1, %v2828_v23  ;;  %v6182_v29 = vrot.slane %v6060_v18, 1  ;;  %v6183_v35 = vrot.slane %v6060_v18, 2  ;;  %v6184_v37 = vrot.slane %v6060_v18, 3 }
 0x50d   : > { %v4328_v48 = vadd.f32 %v15234_v30, %v2824_v41  ;;  %v6185_v12 = vrot.slane %v6060_v18, 4  ;;  %v6186_v55 = vrot.slane %v6060_v18, 5  ;;  %v6187_v50 = vrot.slane %v6060_v18, 6 }
 0x50e   : > { %v6188_v42 = vrot.slane %v6060_v18, 7  ;;  %v6568_v44 = vmul.f32 %v14344_v8, %v6060_v18  ;;  %6422 = vst [vmem:[%s9309_s25 + $0x1e7] sm:$0x1] %v6182_v29  ;;  %v6569_v61 = vmul.f32 %v14364_v56, %v6182_v29  ;;  %v6570_v60 = vmul.f32 %v14372_v53, %v6183_v35 }
 0x50f   : > { %v6571_v7 = vmul.f32 %v14380_v27, %v6184_v37  ;;  %v6572_v41 = vmul.f32 %v14398_v13, %v6185_v12  ;;  %6423 = vst [vmem:[%s9309_s25 + $0x1eb] sm:$0x1] %v6183_v35  ;;  %v6565_v46 = vmul.f32 %v14356_v2, %v6186_v55  ;;  %v6566_v40 = vmul.f32 %v14325_v63, %v6187_v50 }
 0x510   : > { %v6567_v28 = vmul.f32 %v14336_v31, %v6188_v42  ;;  %v6824_v62 = vrot.slane %v6568_v44, 3  ;;  %v5702_v8 = vadd.f32 %v5446_v19, %v4326_v9  ;;  %v5703_v56 = vadd.f32 %v5447_v39, %v4327_v14  ;;  %6424 = vst [vmem:[%s9309_s25 + $0x1ef] sm:$0x1] %v6184_v37 }
 0x511   : > { %v5704_v53 = vadd.f32 %v5448_v32, %v4328_v48  ;;  %v6825_v27 = vrot.slane %v6569_v61, 3  ;;  %6425 = vst [vmem:[%s9309_s25 + $0x1f3] sm:$0x1] %v6185_v12  ;;  %v6821_v2 = vrot.slane %v6565_v46, 3  ;;  %v6822_v63 = vrot.slane %v6566_v40, 3 }
 0x512   : > { %v6823_v13 = vrot.slane %v6567_v28, 3  ;;  %v6826_v15 = vrot.slane %v6570_v60, 3  ;;  %v15235_v31 = vrot.slane %v14431_v36, 2  ;;  %v5705_v43 = vadd.f32 %v5449_v58, %v4329_v47  ;;  %6426 = vst [vmem:[%s9309_s25 + $0x1f7] sm:$0x1] %v6186_v55 }
 0x513   : > { %v5706_v19 = vadd.f32 %v5450_v52, %v4330_v25  ;;  %v6827_v17 = vrot.slane %v6571_v7, 3  ;;  %6427 = vst [vmem:[%s9309_s25 + $0x1fb] sm:$0x1] %v6187_v50  ;;  %v6828_v38 = vrot.slane %v6572_v41, 3  ;;  %v7078_v39 = vadd.f32 %v6822_v63, %v5702_v8 }
 0x514   : > { %v5701_v45 = vadd.f32 %v15235_v31, %v4325_v54  ;;  %v7079_v32 = vadd.f32 %v6823_v13, %v5703_v56  ;;  %v7080_v59 = vadd.f32 %v6824_v62, %v5704_v53  ;;  %v5707_v11 = vadd.f32 %v5451_v4, %v4331_v5  ;;  %6428 = vst [vmem:[%s9309_s25 + $0x1ff] sm:$0x1] %v6188_v42 }
 0x515   : > { %v5708_v23 = vadd.f32 %v5452_v49, %v4332_v10  ;;  %v7081_v3 = vadd.f32 %v6825_v27, %v5705_v43  ;;  %v7082_v0 = vadd.f32 %v6826_v15, %v5706_v19  ;;  %v7423_v6 = vrot.slane %v7078_v39, 7 }
 0x516   : > { %v7077_v20 = vadd.f32 %v6821_v2, %v5701_v45  ;;  %v7425_v36 = vrot.slane %v7079_v32, 6  ;;  %v7083_v26 = vadd.f32 %v6827_v17, %v5707_v11  ;;  %v7427_v52 = vrot.slane %v7080_v59, 5 }
 0x517   : > { %v7084_v21 = vadd.f32 %v6828_v38, %v5708_v23  ;;  %v7429_v22 = vrot.slane %v7081_v3, 4  ;;  %v7431_v9 = vrot.slane %v7082_v0, 3 }
 0x518   : > { %v7424_v58 = vsel %vm1570_vm1, %v7423_v6, %v7077_v20  ;;  %v7433_v49 = vrot.slane %v7083_v26, 2 }
 0x519   : > { %v7426_v54 = vsel %vm1572_vm2, %v7425_v36, %v7424_v58  ;;  %v7435_v14 = vrot.slane %v7084_v21, 1 }
 0x51a   : > { %v7428_v51 = vsel %vm1574_vm3, %v7427_v52, %v7426_v54 }
 0x51b   : > { %v7430_v4 = vsel %vm1576_vm4, %v7429_v22, %v7428_v51 }
 0x51c   : > { %v7432_v57 = vsel %vm1578_vm5, %v7431_v9, %v7430_v4 }
 0x51d   : > { %v7434_v33 = vsel %vm1580_vm6, %v7433_v49, %v7432_v57 }
 0x51e   : > { %v7436_v47 = vsel %vm1582_vm7, %v7435_v14, %v7434_v33 }
 0x51f   : > { %7468 = vst [vmem:[%s9759_s27 + $0x78] sm:$0xff] %v7436_v47 }
 0x520 PF: > { %s15_s15 = sadd.s32 1, %s7972_s15  }
 0x521   : > { %p12_p5 = scmp.ge.s32.totalorder %s15_s15, 4  }
 0x523   :  { %14 = sbr.rel (!%p12_p5) target bundleno = 1 (0x1), region = 74 }

</bundles_post_ra>
